<compile_context>
chip_gen: v7x
topology: tpu7x:2x2x1
jax: 0.10.0
libtpu: 0.0.40
codegen_flags: <defaults>
</compile_context>

<pallas_src>
import jax
import jax.numpy as jnp
from jax import lax
from jax.experimental import pallas as pl
from jax.experimental.pallas import tpu as pltpu

EPS = 1e-3
CB = 128  # lane width / channel sub-tile inside the kernel


def dwconv_bn_kernel(x_ref, w_ref, gamma_ref, beta_ref, o_ref):
    # x_ref:     (N, H+2, W+2, CBLK)  spatially pre-padded input slab (zero border)
    # w_ref:     (9, CBLK)            3x3 depthwise taps, row-major (kh*3 + kw)
    # gamma_ref: (1, CBLK)
    # beta_ref:  (1, CBLK)
    # o_ref:     (N, H, W, CBLK)
    N, Hp, Wp, Cblk = x_ref.shape
    H, W = Hp - 2, Wp - 2
    inv_cnt = jnp.float32(1.0 / (N * H * W))

    wv = w_ref[...].astype(jnp.float32)       # (9, CBLK)
    gv = gamma_ref[...].astype(jnp.float32)   # (1, CBLK)
    bv = beta_ref[...].astype(jnp.float32)    # (1, CBLK)

    # Unrolled loop over independent 128-lane channel sub-tiles.
    for cb in range(Cblk // CB):
        csl = slice(cb * CB, (cb + 1) * CB)

        # Hoist the nine per-tap weight lane-vectors (broadcasts built once, not per FMA).
        wt = [wv[t, csl].reshape(1, 1, 1, CB) for t in range(9)]

        # Depthwise 3x3: full-width aligned row loads per kh; kw offsets via XLU rolls.
        # acc[..., wp, :] = sum_{kh,kw} x_pad[..., h+kh, wp+kw, :] * w[kh,kw] for wp < W;
        # columns wp >= W hold wrapped garbage and are dropped below.
        acc = jnp.zeros((N, H, Wp, CB), jnp.float32)
        for kh in range(3):
            row = x_ref[:, kh:kh + H, :, csl].astype(jnp.float32)            # (N,H,Wp,CB)
            acc = acc + row * wt[kh * 3 + 0]                                  # x_pad[wp+0]
            acc = acc + pltpu.roll(row, Wp - 1, axis=2) * wt[kh * 3 + 1]      # x_pad[wp+1]
            acc = acc + pltpu.roll(row, Wp - 2, axis=2) * wt[kh * 3 + 2]      # x_pad[wp+2]

        y = acc[:, :, :W, :]  # (N,H,W,CB): single offset-0 slice at the very end

        # BatchNorm2d (training mode): per-channel batch stats over N*H*W,
        # mean-centered variance, folded into one scale/shift FMA.
        mean = jnp.sum(y, axis=(0, 1, 2), keepdims=True) * inv_cnt            # (1,1,1,CB)
        yc = y - mean
        var = jnp.sum(yc * yc, axis=(0, 1, 2), keepdims=True) * inv_cnt       # (1,1,1,CB)
        scale = gv[0, csl].reshape(1, 1, 1, CB) * lax.rsqrt(var + EPS)
        shift = bv[0, csl].reshape(1, 1, 1, CB)
        o_ref[:, :, :, csl] = (yc * scale + shift).astype(o_ref.dtype)


@jax.jit
def depthwise_conv_bn(x_nchw, w_oihw, gamma, beta):
    """x_nchw: (N, C, H, W); w_oihw: (C, 1, 3, 3) depthwise weights; gamma/beta: (C,)."""
    N, C, H, W = x_nchw.shape
    Cpad = ((C + CB - 1) // CB) * CB               # 960 -> 1024 (8 full lane blocks)
    # Two channel blocks -> grid=(2,): minimal step overhead, and the "parallel" axis can
    # still shard across both TensorCores on v7x (no-op on single-TC v5e/v6e).
    CBLK = Cpad // 2 if (Cpad >= 2 * CB and (Cpad // 2) % CB == 0) else Cpad

    # NCHW -> NHWC (channels on lanes); fuse the conv's spatial zero-pad (p=1) and the
    # channel pad into one wrapper-side pad -> (N, H+2, W+2, Cpad).
    x = jnp.transpose(x_nchw, (0, 2, 3, 1))
    x = jnp.pad(x, ((0, 0), (1, 1), (1, 1), (0, Cpad - C)))

    # depthwise weights (C,1,3,3) -> (9, Cpad), taps row-major (kh*3 + kw)
    w = jnp.transpose(w_oihw[:, 0, :, :], (1, 2, 0)).reshape(9, C)
    w = jnp.pad(w, ((0, 0), (0, Cpad - C)))
    # gamma/beta must stay ZERO-padded so padded channels come out exactly zero.
    g = jnp.pad(gamma.reshape(1, C).astype(jnp.float32), ((0, 0), (0, Cpad - C)))
    b = jnp.pad(beta.reshape(1, C).astype(jnp.float32), ((0, 0), (0, Cpad - C)))

    out_nhwc = pl.pallas_call(
        dwconv_bn_kernel,
        out_shape=jax.ShapeDtypeStruct((N, H, W, Cpad), x_nchw.dtype),
        grid=(Cpad // CBLK,),
        in_specs=[
            pl.BlockSpec((N, H + 2, W + 2, CBLK), lambda c: (0, 0, 0, c)),
            pl.BlockSpec((9, CBLK), lambda c: (0, c)),
            pl.BlockSpec((1, CBLK), lambda c: (0, c)),
            pl.BlockSpec((1, CBLK), lambda c: (0, c)),
        ],
        out_specs=pl.BlockSpec((N, H, W, CBLK), lambda c: (0, 0, 0, c)),
        compiler_params=pltpu.CompilerParams(
            dimension_semantics=("parallel",),  # channel blocks are independent
        ),
    )(x, w, g, b)

    # drop channel padding, back to PyTorch's NCHW
    return jnp.transpose(out_nhwc[..., :C], (0, 3, 1, 2))


def reference(x_nchw, w_oihw, gamma, beta):
    C = x_nchw.shape[1]
    conv = lax.conv_general_dilated(
        x_nchw, w_oihw, window_strides=(1, 1), padding=((1, 1), (1, 1)),
        dimension_numbers=("NCHW", "OIHW", "NCHW"), feature_group_count=C)
    mean = conv.mean(axis=(0, 2, 3), keepdims=True)
    var = ((conv - mean) ** 2).mean(axis=(0, 2, 3), keepdims=True)
    return ((conv - mean) / jnp.sqrt(var + EPS)) * gamma.reshape(1, C, 1, 1) \
        + beta.reshape(1, C, 1, 1)


if __name__ == "__main__":
    N, C, H, W = 1, 960, 14, 14  # matches the module's fixed 960-channel depthwise conv

    key = jax.random.PRNGKey(0)
    kx, kw, kg, kb = jax.random.split(key, 4)
    x = jax.random.normal(kx, (N, C, H, W), dtype=jnp.float32)
    w = jax.random.normal(kw, (C, 1, 3, 3), dtype=jnp.float32) * 0.1
    gamma = 1.0 + 0.1 * jax.random.normal(kg, (C,), dtype=jnp.float32)
    beta = 0.1 * jax.random.normal(kb, (C,), dtype=jnp.float32)

    out = depthwise_conv_bn(x, w, gamma, beta)
    out = jax.block_until_ready(out)

    ref = reference(x, w, gamma, beta)
    assert out.shape == (N, C, H, W), out.shape
    assert jnp.allclose(out, ref, atol=1e-3, rtol=1e-3), \
        float(jnp.max(jnp.abs(out - ref)))

    print("KERNEL_OK")
</pallas_src>

<mosaic_0001>
module attributes {stable_mosaic.version = 11 : i64} {
  func.func @dwconv_bn_kernel(%arg0: i32, %arg1: memref<1x16x16x512xf32, #tpu.memory_space<vmem>>, %arg2: memref<9x512xf32, #tpu.memory_space<vmem>>, %arg3: memref<1x512xf32, #tpu.memory_space<vmem>>, %arg4: memref<1x512xf32, #tpu.memory_space<vmem>>, %arg5: memref<1x14x14x512xf32, #tpu.memory_space<vmem>>) attributes {dimension_semantics = [#tpu.dimension_semantics<parallel>], iteration_bounds = array<i64: 2>, scalar_prefetch = 0 : i64, scratch_operands = 0 : i64, tpu.core_type = #tpu.core_type<tc>, window_params = [{transform_indices = @transform_0, window_bounds = array<i64: 1, 16, 16, 512>}, {transform_indices = @transform_1, window_bounds = array<i64: 9, 512>}, {transform_indices = @transform_2, window_bounds = array<i64: 1, 512>}, {transform_indices = @transform_3, window_bounds = array<i64: 1, 512>}, {transform_indices = @transform_4, window_bounds = array<i64: 1, 14, 14, 512>}]} {
    %c0 = arith.constant 0 : index
    %c0_0 = arith.constant 0 : index
    %0 = vector.load %arg2[%c0, %c0_0] : memref<9x512xf32, #tpu.memory_space<vmem>>, vector<9x512xf32>
    %c0_1 = arith.constant 0 : index
    %c0_2 = arith.constant 0 : index
    %1 = vector.load %arg3[%c0_1, %c0_2] : memref<1x512xf32, #tpu.memory_space<vmem>>, vector<1x512xf32>
    %c0_3 = arith.constant 0 : index
    %c0_4 = arith.constant 0 : index
    %2 = vector.load %arg4[%c0_3, %c0_4] : memref<1x512xf32, #tpu.memory_space<vmem>>, vector<1x512xf32>
    %3 = vector.extract_strided_slice %0 {offsets = [0, 0], sizes = [1, 128], strides = [1, 1]} : vector<9x512xf32> to vector<1x128xf32>
    %4 = vector.shape_cast %3 : vector<1x128xf32> to vector<128xf32>
    %5 = vector.shape_cast %4 : vector<128xf32> to vector<1x1x1x128xf32>
    %6 = vector.extract_strided_slice %0 {offsets = [1, 0], sizes = [1, 128], strides = [1, 1]} : vector<9x512xf32> to vector<1x128xf32>
    %7 = vector.shape_cast %6 : vector<1x128xf32> to vector<128xf32>
    %8 = vector.shape_cast %7 : vector<128xf32> to vector<1x1x1x128xf32>
    %9 = vector.extract_strided_slice %0 {offsets = [2, 0], sizes = [1, 128], strides = [1, 1]} : vector<9x512xf32> to vector<1x128xf32>
    %10 = vector.shape_cast %9 : vector<1x128xf32> to vector<128xf32>
    %11 = vector.shape_cast %10 : vector<128xf32> to vector<1x1x1x128xf32>
    %12 = vector.extract_strided_slice %0 {offsets = [3, 0], sizes = [1, 128], strides = [1, 1]} : vector<9x512xf32> to vector<1x128xf32>
    %13 = vector.shape_cast %12 : vector<1x128xf32> to vector<128xf32>
    %14 = vector.shape_cast %13 : vector<128xf32> to vector<1x1x1x128xf32>
    %15 = vector.extract_strided_slice %0 {offsets = [4, 0], sizes = [1, 128], strides = [1, 1]} : vector<9x512xf32> to vector<1x128xf32>
    %16 = vector.shape_cast %15 : vector<1x128xf32> to vector<128xf32>
    %17 = vector.shape_cast %16 : vector<128xf32> to vector<1x1x1x128xf32>
    %18 = vector.extract_strided_slice %0 {offsets = [5, 0], sizes = [1, 128], strides = [1, 1]} : vector<9x512xf32> to vector<1x128xf32>
    %19 = vector.shape_cast %18 : vector<1x128xf32> to vector<128xf32>
    %20 = vector.shape_cast %19 : vector<128xf32> to vector<1x1x1x128xf32>
    %21 = vector.extract_strided_slice %0 {offsets = [6, 0], sizes = [1, 128], strides = [1, 1]} : vector<9x512xf32> to vector<1x128xf32>
    %22 = vector.shape_cast %21 : vector<1x128xf32> to vector<128xf32>
    %23 = vector.shape_cast %22 : vector<128xf32> to vector<1x1x1x128xf32>
    %24 = vector.extract_strided_slice %0 {offsets = [7, 0], sizes = [1, 128], strides = [1, 1]} : vector<9x512xf32> to vector<1x128xf32>
    %25 = vector.shape_cast %24 : vector<1x128xf32> to vector<128xf32>
    %26 = vector.shape_cast %25 : vector<128xf32> to vector<1x1x1x128xf32>
    %27 = vector.extract_strided_slice %0 {offsets = [8, 0], sizes = [1, 128], strides = [1, 1]} : vector<9x512xf32> to vector<1x128xf32>
    %28 = vector.shape_cast %27 : vector<1x128xf32> to vector<128xf32>
    %29 = vector.shape_cast %28 : vector<128xf32> to vector<1x1x1x128xf32>
    %cst = arith.constant 0.000000e+00 : f32
    %30 = vector.broadcast %cst : f32 to vector<1x14x16x128xf32>
    %c0_5 = arith.constant 0 : index
    %c0_6 = arith.constant 0 : index
    %c0_7 = arith.constant 0 : index
    %c0_8 = arith.constant 0 : index
    %31 = vector.load %arg1[%c0_5, %c0_6, %c0_7, %c0_8] : memref<1x16x16x512xf32, #tpu.memory_space<vmem>>, vector<1x14x16x128xf32>
    %32 = vector.broadcast %5 : vector<1x1x1x128xf32> to vector<1x14x16x128xf32>
    %33 = arith.mulf %31, %32 : vector<1x14x16x128xf32>
    %34 = arith.addf %30, %33 : vector<1x14x16x128xf32>
    %c15_i32 = arith.constant 15 : i32
    %35 = tpu.dynamic_rotate %31 by %c15_i32 dim 2 : vector<1x14x16x128xf32>, i32 -> vector<1x14x16x128xf32>
    %36 = vector.broadcast %8 : vector<1x1x1x128xf32> to vector<1x14x16x128xf32>
    %37 = arith.mulf %35, %36 : vector<1x14x16x128xf32>
    %38 = arith.addf %34, %37 : vector<1x14x16x128xf32>
    %c14_i32 = arith.constant 14 : i32
    %39 = tpu.dynamic_rotate %31 by %c14_i32 dim 2 : vector<1x14x16x128xf32>, i32 -> vector<1x14x16x128xf32>
    %40 = vector.broadcast %11 : vector<1x1x1x128xf32> to vector<1x14x16x128xf32>
    %41 = arith.mulf %39, %40 : vector<1x14x16x128xf32>
    %42 = arith.addf %38, %41 : vector<1x14x16x128xf32>
    %c0_9 = arith.constant 0 : index
    %c1 = arith.constant 1 : index
    %c0_10 = arith.constant 0 : index
    %c0_11 = arith.constant 0 : index
    %43 = vector.load %arg1[%c0_9, %c1, %c0_10, %c0_11] : memref<1x16x16x512xf32, #tpu.memory_space<vmem>>, vector<1x14x16x128xf32>
    %44 = vector.broadcast %14 : vector<1x1x1x128xf32> to vector<1x14x16x128xf32>
    %45 = arith.mulf %43, %44 : vector<1x14x16x128xf32>
    %46 = arith.addf %42, %45 : vector<1x14x16x128xf32>
    %c15_i32_12 = arith.constant 15 : i32
    %47 = tpu.dynamic_rotate %43 by %c15_i32_12 dim 2 : vector<1x14x16x128xf32>, i32 -> vector<1x14x16x128xf32>
    %48 = vector.broadcast %17 : vector<1x1x1x128xf32> to vector<1x14x16x128xf32>
    %49 = arith.mulf %47, %48 : vector<1x14x16x128xf32>
    %50 = arith.addf %46, %49 : vector<1x14x16x128xf32>
    %c14_i32_13 = arith.constant 14 : i32
    %51 = tpu.dynamic_rotate %43 by %c14_i32_13 dim 2 : vector<1x14x16x128xf32>, i32 -> vector<1x14x16x128xf32>
    %52 = vector.broadcast %20 : vector<1x1x1x128xf32> to vector<1x14x16x128xf32>
    %53 = arith.mulf %51, %52 : vector<1x14x16x128xf32>
    %54 = arith.addf %50, %53 : vector<1x14x16x128xf32>
    %c0_14 = arith.constant 0 : index
    %c2 = arith.constant 2 : index
    %c0_15 = arith.constant 0 : index
    %c0_16 = arith.constant 0 : index
    %55 = vector.load %arg1[%c0_14, %c2, %c0_15, %c0_16] : memref<1x16x16x512xf32, #tpu.memory_space<vmem>>, vector<1x14x16x128xf32>
    %56 = vector.broadcast %23 : vector<1x1x1x128xf32> to vector<1x14x16x128xf32>
    %57 = arith.mulf %55, %56 : vector<1x14x16x128xf32>
    %58 = arith.addf %54, %57 : vector<1x14x16x128xf32>
    %c15_i32_17 = arith.constant 15 : i32
    %59 = tpu.dynamic_rotate %55 by %c15_i32_17 dim 2 : vector<1x14x16x128xf32>, i32 -> vector<1x14x16x128xf32>
    %60 = vector.broadcast %26 : vector<1x1x1x128xf32> to vector<1x14x16x128xf32>
    %61 = arith.mulf %59, %60 : vector<1x14x16x128xf32>
    %62 = arith.addf %58, %61 : vector<1x14x16x128xf32>
    %c14_i32_18 = arith.constant 14 : i32
    %63 = tpu.dynamic_rotate %55 by %c14_i32_18 dim 2 : vector<1x14x16x128xf32>, i32 -> vector<1x14x16x128xf32>
    %64 = vector.broadcast %29 : vector<1x1x1x128xf32> to vector<1x14x16x128xf32>
    %65 = arith.mulf %63, %64 : vector<1x14x16x128xf32>
    %66 = arith.addf %62, %65 : vector<1x14x16x128xf32>
    %67 = vector.extract_strided_slice %66 {offsets = [0, 0, 0, 0], sizes = [1, 14, 14, 128], strides = [1, 1, 1, 1]} : vector<1x14x16x128xf32> to vector<1x14x14x128xf32>
    %cst_19 = arith.constant dense<0.000000e+00> : vector<128xf32>
    %68 = vector.multi_reduction <add>, %67, %cst_19 [0, 1, 2] : vector<1x14x14x128xf32> to vector<128xf32>
    %69 = vector.shape_cast %68 : vector<128xf32> to vector<1x1x1x128xf32>
    %cst_20 = arith.constant 0.00510204071 : f32
    %70 = vector.broadcast %cst_20 : f32 to vector<1x1x1x128xf32>
    %71 = arith.mulf %69, %70 : vector<1x1x1x128xf32>
    %72 = vector.broadcast %71 : vector<1x1x1x128xf32> to vector<1x14x14x128xf32>
    %73 = arith.subf %67, %72 : vector<1x14x14x128xf32>
    %74 = arith.mulf %73, %73 : vector<1x14x14x128xf32>
    %cst_21 = arith.constant dense<0.000000e+00> : vector<128xf32>
    %75 = vector.multi_reduction <add>, %74, %cst_21 [0, 1, 2] : vector<1x14x14x128xf32> to vector<128xf32>
    %76 = vector.shape_cast %75 : vector<128xf32> to vector<1x1x1x128xf32>
    %cst_22 = arith.constant 0.00510204071 : f32
    %77 = vector.broadcast %cst_22 : f32 to vector<1x1x1x128xf32>
    %78 = arith.mulf %76, %77 : vector<1x1x1x128xf32>
    %79 = vector.extract_strided_slice %1 {offsets = [0, 0], sizes = [1, 128], strides = [1, 1]} : vector<1x512xf32> to vector<1x128xf32>
    %80 = vector.shape_cast %79 : vector<1x128xf32> to vector<128xf32>
    %81 = vector.shape_cast %80 : vector<128xf32> to vector<1x1x1x128xf32>
    %cst_23 = arith.constant 1.000000e-03 : f32
    %82 = vector.broadcast %cst_23 : f32 to vector<1x1x1x128xf32>
    %83 = arith.addf %78, %82 : vector<1x1x1x128xf32>
    %84 = math.rsqrt %83 : vector<1x1x1x128xf32>
    %85 = arith.mulf %81, %84 : vector<1x1x1x128xf32>
    %86 = vector.extract_strided_slice %2 {offsets = [0, 0], sizes = [1, 128], strides = [1, 1]} : vector<1x512xf32> to vector<1x128xf32>
    %87 = vector.shape_cast %86 : vector<1x128xf32> to vector<128xf32>
    %88 = vector.shape_cast %87 : vector<128xf32> to vector<1x1x1x128xf32>
    %89 = vector.broadcast %85 : vector<1x1x1x128xf32> to vector<1x14x14x128xf32>
    %90 = arith.mulf %73, %89 : vector<1x14x14x128xf32>
    %91 = vector.broadcast %88 : vector<1x1x1x128xf32> to vector<1x14x14x128xf32>
    %92 = arith.addf %90, %91 : vector<1x14x14x128xf32>
    %c0_24 = arith.constant 0 : index
    %c0_25 = arith.constant 0 : index
    %c0_26 = arith.constant 0 : index
    %c0_27 = arith.constant 0 : index
    %93 = vector.load %arg5[%c0_24, %c0_25, %c0_26, %c0_27] : memref<1x14x14x512xf32, #tpu.memory_space<vmem>>, vector<1x14x14x128xf32>
    tpu.vector_store %arg5[%c0_24, %c0_25, %c0_26, %c0_27], %92 {strides = array<i32>} : memref<1x14x14x512xf32, #tpu.memory_space<vmem>>, vector<1x14x14x128xf32>,
    %94 = vector.extract_strided_slice %0 {offsets = [0, 128], sizes = [1, 128], strides = [1, 1]} : vector<9x512xf32> to vector<1x128xf32>
    %95 = vector.shape_cast %94 : vector<1x128xf32> to vector<128xf32>
    %96 = vector.shape_cast %95 : vector<128xf32> to vector<1x1x1x128xf32>
    %97 = vector.extract_strided_slice %0 {offsets = [1, 128], sizes = [1, 128], strides = [1, 1]} : vector<9x512xf32> to vector<1x128xf32>
    %98 = vector.shape_cast %97 : vector<1x128xf32> to vector<128xf32>
    %99 = vector.shape_cast %98 : vector<128xf32> to vector<1x1x1x128xf32>
    %100 = vector.extract_strided_slice %0 {offsets = [2, 128], sizes = [1, 128], strides = [1, 1]} : vector<9x512xf32> to vector<1x128xf32>
    %101 = vector.shape_cast %100 : vector<1x128xf32> to vector<128xf32>
    %102 = vector.shape_cast %101 : vector<128xf32> to vector<1x1x1x128xf32>
    %103 = vector.extract_strided_slice %0 {offsets = [3, 128], sizes = [1, 128], strides = [1, 1]} : vector<9x512xf32> to vector<1x128xf32>
    %104 = vector.shape_cast %103 : vector<1x128xf32> to vector<128xf32>
    %105 = vector.shape_cast %104 : vector<128xf32> to vector<1x1x1x128xf32>
    %106 = vector.extract_strided_slice %0 {offsets = [4, 128], sizes = [1, 128], strides = [1, 1]} : vector<9x512xf32> to vector<1x128xf32>
    %107 = vector.shape_cast %106 : vector<1x128xf32> to vector<128xf32>
    %108 = vector.shape_cast %107 : vector<128xf32> to vector<1x1x1x128xf32>
    %109 = vector.extract_strided_slice %0 {offsets = [5, 128], sizes = [1, 128], strides = [1, 1]} : vector<9x512xf32> to vector<1x128xf32>
    %110 = vector.shape_cast %109 : vector<1x128xf32> to vector<128xf32>
    %111 = vector.shape_cast %110 : vector<128xf32> to vector<1x1x1x128xf32>
    %112 = vector.extract_strided_slice %0 {offsets = [6, 128], sizes = [1, 128], strides = [1, 1]} : vector<9x512xf32> to vector<1x128xf32>
    %113 = vector.shape_cast %112 : vector<1x128xf32> to vector<128xf32>
    %114 = vector.shape_cast %113 : vector<128xf32> to vector<1x1x1x128xf32>
    %115 = vector.extract_strided_slice %0 {offsets = [7, 128], sizes = [1, 128], strides = [1, 1]} : vector<9x512xf32> to vector<1x128xf32>
    %116 = vector.shape_cast %115 : vector<1x128xf32> to vector<128xf32>
    %117 = vector.shape_cast %116 : vector<128xf32> to vector<1x1x1x128xf32>
    %118 = vector.extract_strided_slice %0 {offsets = [8, 128], sizes = [1, 128], strides = [1, 1]} : vector<9x512xf32> to vector<1x128xf32>
    %119 = vector.shape_cast %118 : vector<1x128xf32> to vector<128xf32>
    %120 = vector.shape_cast %119 : vector<128xf32> to vector<1x1x1x128xf32>
    %cst_28 = arith.constant 0.000000e+00 : f32
    %121 = vector.broadcast %cst_28 : f32 to vector<1x14x16x128xf32>
    %c0_29 = arith.constant 0 : index
    %c0_30 = arith.constant 0 : index
    %c0_31 = arith.constant 0 : index
    %c128 = arith.constant 128 : index
    %122 = vector.load %arg1[%c0_29, %c0_30, %c0_31, %c128] : memref<1x16x16x512xf32, #tpu.memory_space<vmem>>, vector<1x14x16x128xf32>
    %123 = vector.broadcast %96 : vector<1x1x1x128xf32> to vector<1x14x16x128xf32>
    %124 = arith.mulf %122, %123 : vector<1x14x16x128xf32>
    %125 = arith.addf %121, %124 : vector<1x14x16x128xf32>
    %c15_i32_32 = arith.constant 15 : i32
    %126 = tpu.dynamic_rotate %122 by %c15_i32_32 dim 2 : vector<1x14x16x128xf32>, i32 -> vector<1x14x16x128xf32>
    %127 = vector.broadcast %99 : vector<1x1x1x128xf32> to vector<1x14x16x128xf32>
    %128 = arith.mulf %126, %127 : vector<1x14x16x128xf32>
    %129 = arith.addf %125, %128 : vector<1x14x16x128xf32>
    %c14_i32_33 = arith.constant 14 : i32
    %130 = tpu.dynamic_rotate %122 by %c14_i32_33 dim 2 : vector<1x14x16x128xf32>, i32 -> vector<1x14x16x128xf32>
    %131 = vector.broadcast %102 : vector<1x1x1x128xf32> to vector<1x14x16x128xf32>
    %132 = arith.mulf %130, %131 : vector<1x14x16x128xf32>
    %133 = arith.addf %129, %132 : vector<1x14x16x128xf32>
    %c0_34 = arith.constant 0 : index
    %c1_35 = arith.constant 1 : index
    %c0_36 = arith.constant 0 : index
    %c128_37 = arith.constant 128 : index
    %134 = vector.load %arg1[%c0_34, %c1_35, %c0_36, %c128_37] : memref<1x16x16x512xf32, #tpu.memory_space<vmem>>, vector<1x14x16x128xf32>
    %135 = vector.broadcast %105 : vector<1x1x1x128xf32> to vector<1x14x16x128xf32>
    %136 = arith.mulf %134, %135 : vector<1x14x16x128xf32>
    %137 = arith.addf %133, %136 : vector<1x14x16x128xf32>
    %c15_i32_38 = arith.constant 15 : i32
    %138 = tpu.dynamic_rotate %134 by %c15_i32_38 dim 2 : vector<1x14x16x128xf32>, i32 -> vector<1x14x16x128xf32>
    %139 = vector.broadcast %108 : vector<1x1x1x128xf32> to vector<1x14x16x128xf32>
    %140 = arith.mulf %138, %139 : vector<1x14x16x128xf32>
    %141 = arith.addf %137, %140 : vector<1x14x16x128xf32>
    %c14_i32_39 = arith.constant 14 : i32
    %142 = tpu.dynamic_rotate %134 by %c14_i32_39 dim 2 : vector<1x14x16x128xf32>, i32 -> vector<1x14x16x128xf32>
    %143 = vector.broadcast %111 : vector<1x1x1x128xf32> to vector<1x14x16x128xf32>
    %144 = arith.mulf %142, %143 : vector<1x14x16x128xf32>
    %145 = arith.addf %141, %144 : vector<1x14x16x128xf32>
    %c0_40 = arith.constant 0 : index
    %c2_41 = arith.constant 2 : index
    %c0_42 = arith.constant 0 : index
    %c128_43 = arith.constant 128 : index
    %146 = vector.load %arg1[%c0_40, %c2_41, %c0_42, %c128_43] : memref<1x16x16x512xf32, #tpu.memory_space<vmem>>, vector<1x14x16x128xf32>
    %147 = vector.broadcast %114 : vector<1x1x1x128xf32> to vector<1x14x16x128xf32>
    %148 = arith.mulf %146, %147 : vector<1x14x16x128xf32>
    %149 = arith.addf %145, %148 : vector<1x14x16x128xf32>
    %c15_i32_44 = arith.constant 15 : i32
    %150 = tpu.dynamic_rotate %146 by %c15_i32_44 dim 2 : vector<1x14x16x128xf32>, i32 -> vector<1x14x16x128xf32>
    %151 = vector.broadcast %117 : vector<1x1x1x128xf32> to vector<1x14x16x128xf32>
    %152 = arith.mulf %150, %151 : vector<1x14x16x128xf32>
    %153 = arith.addf %149, %152 : vector<1x14x16x128xf32>
    %c14_i32_45 = arith.constant 14 : i32
    %154 = tpu.dynamic_rotate %146 by %c14_i32_45 dim 2 : vector<1x14x16x128xf32>, i32 -> vector<1x14x16x128xf32>
    %155 = vector.broadcast %120 : vector<1x1x1x128xf32> to vector<1x14x16x128xf32>
    %156 = arith.mulf %154, %155 : vector<1x14x16x128xf32>
    %157 = arith.addf %153, %156 : vector<1x14x16x128xf32>
    %158 = vector.extract_strided_slice %157 {offsets = [0, 0, 0, 0], sizes = [1, 14, 14, 128], strides = [1, 1, 1, 1]} : vector<1x14x16x128xf32> to vector<1x14x14x128xf32>
    %cst_46 = arith.constant dense<0.000000e+00> : vector<128xf32>
    %159 = vector.multi_reduction <add>, %158, %cst_46 [0, 1, 2] : vector<1x14x14x128xf32> to vector<128xf32>
    %160 = vector.shape_cast %159 : vector<128xf32> to vector<1x1x1x128xf32>
    %cst_47 = arith.constant 0.00510204071 : f32
    %161 = vector.broadcast %cst_47 : f32 to vector<1x1x1x128xf32>
    %162 = arith.mulf %160, %161 : vector<1x1x1x128xf32>
    %163 = vector.broadcast %162 : vector<1x1x1x128xf32> to vector<1x14x14x128xf32>
    %164 = arith.subf %158, %163 : vector<1x14x14x128xf32>
    %165 = arith.mulf %164, %164 : vector<1x14x14x128xf32>
    %cst_48 = arith.constant dense<0.000000e+00> : vector<128xf32>
    %166 = vector.multi_reduction <add>, %165, %cst_48 [0, 1, 2] : vector<1x14x14x128xf32> to vector<128xf32>
    %167 = vector.shape_cast %166 : vector<128xf32> to vector<1x1x1x128xf32>
    %cst_49 = arith.constant 0.00510204071 : f32
    %168 = vector.broadcast %cst_49 : f32 to vector<1x1x1x128xf32>
    %169 = arith.mulf %167, %168 : vector<1x1x1x128xf32>
    %170 = vector.extract_strided_slice %1 {offsets = [0, 128], sizes = [1, 128], strides = [1, 1]} : vector<1x512xf32> to vector<1x128xf32>
    %171 = vector.shape_cast %170 : vector<1x128xf32> to vector<128xf32>
    %172 = vector.shape_cast %171 : vector<128xf32> to vector<1x1x1x128xf32>
    %cst_50 = arith.constant 1.000000e-03 : f32
    %173 = vector.broadcast %cst_50 : f32 to vector<1x1x1x128xf32>
    %174 = arith.addf %169, %173 : vector<1x1x1x128xf32>
    %175 = math.rsqrt %174 : vector<1x1x1x128xf32>
    %176 = arith.mulf %172, %175 : vector<1x1x1x128xf32>
    %177 = vector.extract_strided_slice %2 {offsets = [0, 128], sizes = [1, 128], strides = [1, 1]} : vector<1x512xf32> to vector<1x128xf32>
    %178 = vector.shape_cast %177 : vector<1x128xf32> to vector<128xf32>
    %179 = vector.shape_cast %178 : vector<128xf32> to vector<1x1x1x128xf32>
    %180 = vector.broadcast %176 : vector<1x1x1x128xf32> to vector<1x14x14x128xf32>
    %181 = arith.mulf %164, %180 : vector<1x14x14x128xf32>
    %182 = vector.broadcast %179 : vector<1x1x1x128xf32> to vector<1x14x14x128xf32>
    %183 = arith.addf %181, %182 : vector<1x14x14x128xf32>
    %c0_51 = arith.constant 0 : index
    %c0_52 = arith.constant 0 : index
    %c0_53 = arith.constant 0 : index
    %c128_54 = arith.constant 128 : index
    %184 = vector.load %arg5[%c0_51, %c0_52, %c0_53, %c128_54] : memref<1x14x14x512xf32, #tpu.memory_space<vmem>>, vector<1x14x14x128xf32>
    tpu.vector_store %arg5[%c0_51, %c0_52, %c0_53, %c128_54], %183 {strides = array<i32>} : memref<1x14x14x512xf32, #tpu.memory_space<vmem>>, vector<1x14x14x128xf32>,
    %185 = vector.extract_strided_slice %0 {offsets = [0, 256], sizes = [1, 128], strides = [1, 1]} : vector<9x512xf32> to vector<1x128xf32>
    %186 = vector.shape_cast %185 : vector<1x128xf32> to vector<128xf32>
    %187 = vector.shape_cast %186 : vector<128xf32> to vector<1x1x1x128xf32>
    %188 = vector.extract_strided_slice %0 {offsets = [1, 256], sizes = [1, 128], strides = [1, 1]} : vector<9x512xf32> to vector<1x128xf32>
    %189 = vector.shape_cast %188 : vector<1x128xf32> to vector<128xf32>
    %190 = vector.shape_cast %189 : vector<128xf32> to vector<1x1x1x128xf32>
    %191 = vector.extract_strided_slice %0 {offsets = [2, 256], sizes = [1, 128], strides = [1, 1]} : vector<9x512xf32> to vector<1x128xf32>
    %192 = vector.shape_cast %191 : vector<1x128xf32> to vector<128xf32>
    %193 = vector.shape_cast %192 : vector<128xf32> to vector<1x1x1x128xf32>
    %194 = vector.extract_strided_slice %0 {offsets = [3, 256], sizes = [1, 128], strides = [1, 1]} : vector<9x512xf32> to vector<1x128xf32>
    %195 = vector.shape_cast %194 : vector<1x128xf32> to vector<128xf32>
    %196 = vector.shape_cast %195 : vector<128xf32> to vector<1x1x1x128xf32>
    %197 = vector.extract_strided_slice %0 {offsets = [4, 256], sizes = [1, 128], strides = [1, 1]} : vector<9x512xf32> to vector<1x128xf32>
    %198 = vector.shape_cast %197 : vector<1x128xf32> to vector<128xf32>
    %199 = vector.shape_cast %198 : vector<128xf32> to vector<1x1x1x128xf32>
    %200 = vector.extract_strided_slice %0 {offsets = [5, 256], sizes = [1, 128], strides = [1, 1]} : vector<9x512xf32> to vector<1x128xf32>
    %201 = vector.shape_cast %200 : vector<1x128xf32> to vector<128xf32>
    %202 = vector.shape_cast %201 : vector<128xf32> to vector<1x1x1x128xf32>
    %203 = vector.extract_strided_slice %0 {offsets = [6, 256], sizes = [1, 128], strides = [1, 1]} : vector<9x512xf32> to vector<1x128xf32>
    %204 = vector.shape_cast %203 : vector<1x128xf32> to vector<128xf32>
    %205 = vector.shape_cast %204 : vector<128xf32> to vector<1x1x1x128xf32>
    %206 = vector.extract_strided_slice %0 {offsets = [7, 256], sizes = [1, 128], strides = [1, 1]} : vector<9x512xf32> to vector<1x128xf32>
    %207 = vector.shape_cast %206 : vector<1x128xf32> to vector<128xf32>
    %208 = vector.shape_cast %207 : vector<128xf32> to vector<1x1x1x128xf32>
    %209 = vector.extract_strided_slice %0 {offsets = [8, 256], sizes = [1, 128], strides = [1, 1]} : vector<9x512xf32> to vector<1x128xf32>
    %210 = vector.shape_cast %209 : vector<1x128xf32> to vector<128xf32>
    %211 = vector.shape_cast %210 : vector<128xf32> to vector<1x1x1x128xf32>
    %cst_55 = arith.constant 0.000000e+00 : f32
    %212 = vector.broadcast %cst_55 : f32 to vector<1x14x16x128xf32>
    %c0_56 = arith.constant 0 : index
    %c0_57 = arith.constant 0 : index
    %c0_58 = arith.constant 0 : index
    %c256 = arith.constant 256 : index
    %213 = vector.load %arg1[%c0_56, %c0_57, %c0_58, %c256] : memref<1x16x16x512xf32, #tpu.memory_space<vmem>>, vector<1x14x16x128xf32>
    %214 = vector.broadcast %187 : vector<1x1x1x128xf32> to vector<1x14x16x128xf32>
    %215 = arith.mulf %213, %214 : vector<1x14x16x128xf32>
    %216 = arith.addf %212, %215 : vector<1x14x16x128xf32>
    %c15_i32_59 = arith.constant 15 : i32
    %217 = tpu.dynamic_rotate %213 by %c15_i32_59 dim 2 : vector<1x14x16x128xf32>, i32 -> vector<1x14x16x128xf32>
    %218 = vector.broadcast %190 : vector<1x1x1x128xf32> to vector<1x14x16x128xf32>
    %219 = arith.mulf %217, %218 : vector<1x14x16x128xf32>
    %220 = arith.addf %216, %219 : vector<1x14x16x128xf32>
    %c14_i32_60 = arith.constant 14 : i32
    %221 = tpu.dynamic_rotate %213 by %c14_i32_60 dim 2 : vector<1x14x16x128xf32>, i32 -> vector<1x14x16x128xf32>
    %222 = vector.broadcast %193 : vector<1x1x1x128xf32> to vector<1x14x16x128xf32>
    %223 = arith.mulf %221, %222 : vector<1x14x16x128xf32>
    %224 = arith.addf %220, %223 : vector<1x14x16x128xf32>
    %c0_61 = arith.constant 0 : index
    %c1_62 = arith.constant 1 : index
    %c0_63 = arith.constant 0 : index
    %c256_64 = arith.constant 256 : index
    %225 = vector.load %arg1[%c0_61, %c1_62, %c0_63, %c256_64] : memref<1x16x16x512xf32, #tpu.memory_space<vmem>>, vector<1x14x16x128xf32>
    %226 = vector.broadcast %196 : vector<1x1x1x128xf32> to vector<1x14x16x128xf32>
    %227 = arith.mulf %225, %226 : vector<1x14x16x128xf32>
    %228 = arith.addf %224, %227 : vector<1x14x16x128xf32>
    %c15_i32_65 = arith.constant 15 : i32
    %229 = tpu.dynamic_rotate %225 by %c15_i32_65 dim 2 : vector<1x14x16x128xf32>, i32 -> vector<1x14x16x128xf32>
    %230 = vector.broadcast %199 : vector<1x1x1x128xf32> to vector<1x14x16x128xf32>
    %231 = arith.mulf %229, %230 : vector<1x14x16x128xf32>
    %232 = arith.addf %228, %231 : vector<1x14x16x128xf32>
    %c14_i32_66 = arith.constant 14 : i32
    %233 = tpu.dynamic_rotate %225 by %c14_i32_66 dim 2 : vector<1x14x16x128xf32>, i32 -> vector<1x14x16x128xf32>
    %234 = vector.broadcast %202 : vector<1x1x1x128xf32> to vector<1x14x16x128xf32>
    %235 = arith.mulf %233, %234 : vector<1x14x16x128xf32>
    %236 = arith.addf %232, %235 : vector<1x14x16x128xf32>
    %c0_67 = arith.constant 0 : index
    %c2_68 = arith.constant 2 : index
    %c0_69 = arith.constant 0 : index
    %c256_70 = arith.constant 256 : index
    %237 = vector.load %arg1[%c0_67, %c2_68, %c0_69, %c256_70] : memref<1x16x16x512xf32, #tpu.memory_space<vmem>>, vector<1x14x16x128xf32>
    %238 = vector.broadcast %205 : vector<1x1x1x128xf32> to vector<1x14x16x128xf32>
    %239 = arith.mulf %237, %238 : vector<1x14x16x128xf32>
    %240 = arith.addf %236, %239 : vector<1x14x16x128xf32>
    %c15_i32_71 = arith.constant 15 : i32
    %241 = tpu.dynamic_rotate %237 by %c15_i32_71 dim 2 : vector<1x14x16x128xf32>, i32 -> vector<1x14x16x128xf32>
    %242 = vector.broadcast %208 : vector<1x1x1x128xf32> to vector<1x14x16x128xf32>
    %243 = arith.mulf %241, %242 : vector<1x14x16x128xf32>
    %244 = arith.addf %240, %243 : vector<1x14x16x128xf32>
    %c14_i32_72 = arith.constant 14 : i32
    %245 = tpu.dynamic_rotate %237 by %c14_i32_72 dim 2 : vector<1x14x16x128xf32>, i32 -> vector<1x14x16x128xf32>
    %246 = vector.broadcast %211 : vector<1x1x1x128xf32> to vector<1x14x16x128xf32>
    %247 = arith.mulf %245, %246 : vector<1x14x16x128xf32>
    %248 = arith.addf %244, %247 : vector<1x14x16x128xf32>
    %249 = vector.extract_strided_slice %248 {offsets = [0, 0, 0, 0], sizes = [1, 14, 14, 128], strides = [1, 1, 1, 1]} : vector<1x14x16x128xf32> to vector<1x14x14x128xf32>
    %cst_73 = arith.constant dense<0.000000e+00> : vector<128xf32>
    %250 = vector.multi_reduction <add>, %249, %cst_73 [0, 1, 2] : vector<1x14x14x128xf32> to vector<128xf32>
    %251 = vector.shape_cast %250 : vector<128xf32> to vector<1x1x1x128xf32>
    %cst_74 = arith.constant 0.00510204071 : f32
    %252 = vector.broadcast %cst_74 : f32 to vector<1x1x1x128xf32>
    %253 = arith.mulf %251, %252 : vector<1x1x1x128xf32>
    %254 = vector.broadcast %253 : vector<1x1x1x128xf32> to vector<1x14x14x128xf32>
    %255 = arith.subf %249, %254 : vector<1x14x14x128xf32>
    %256 = arith.mulf %255, %255 : vector<1x14x14x128xf32>
    %cst_75 = arith.constant dense<0.000000e+00> : vector<128xf32>
    %257 = vector.multi_reduction <add>, %256, %cst_75 [0, 1, 2] : vector<1x14x14x128xf32> to vector<128xf32>
    %258 = vector.shape_cast %257 : vector<128xf32> to vector<1x1x1x128xf32>
    %cst_76 = arith.constant 0.00510204071 : f32
    %259 = vector.broadcast %cst_76 : f32 to vector<1x1x1x128xf32>
    %260 = arith.mulf %258, %259 : vector<1x1x1x128xf32>
    %261 = vector.extract_strided_slice %1 {offsets = [0, 256], sizes = [1, 128], strides = [1, 1]} : vector<1x512xf32> to vector<1x128xf32>
    %262 = vector.shape_cast %261 : vector<1x128xf32> to vector<128xf32>
    %263 = vector.shape_cast %262 : vector<128xf32> to vector<1x1x1x128xf32>
    %cst_77 = arith.constant 1.000000e-03 : f32
    %264 = vector.broadcast %cst_77 : f32 to vector<1x1x1x128xf32>
    %265 = arith.addf %260, %264 : vector<1x1x1x128xf32>
    %266 = math.rsqrt %265 : vector<1x1x1x128xf32>
    %267 = arith.mulf %263, %266 : vector<1x1x1x128xf32>
    %268 = vector.extract_strided_slice %2 {offsets = [0, 256], sizes = [1, 128], strides = [1, 1]} : vector<1x512xf32> to vector<1x128xf32>
    %269 = vector.shape_cast %268 : vector<1x128xf32> to vector<128xf32>
    %270 = vector.shape_cast %269 : vector<128xf32> to vector<1x1x1x128xf32>
    %271 = vector.broadcast %267 : vector<1x1x1x128xf32> to vector<1x14x14x128xf32>
    %272 = arith.mulf %255, %271 : vector<1x14x14x128xf32>
    %273 = vector.broadcast %270 : vector<1x1x1x128xf32> to vector<1x14x14x128xf32>
    %274 = arith.addf %272, %273 : vector<1x14x14x128xf32>
    %c0_78 = arith.constant 0 : index
    %c0_79 = arith.constant 0 : index
    %c0_80 = arith.constant 0 : index
    %c256_81 = arith.constant 256 : index
    %275 = vector.load %arg5[%c0_78, %c0_79, %c0_80, %c256_81] : memref<1x14x14x512xf32, #tpu.memory_space<vmem>>, vector<1x14x14x128xf32>
    tpu.vector_store %arg5[%c0_78, %c0_79, %c0_80, %c256_81], %274 {strides = array<i32>} : memref<1x14x14x512xf32, #tpu.memory_space<vmem>>, vector<1x14x14x128xf32>,
    %276 = vector.extract_strided_slice %0 {offsets = [0, 384], sizes = [1, 128], strides = [1, 1]} : vector<9x512xf32> to vector<1x128xf32>
    %277 = vector.shape_cast %276 : vector<1x128xf32> to vector<128xf32>
    %278 = vector.shape_cast %277 : vector<128xf32> to vector<1x1x1x128xf32>
    %279 = vector.extract_strided_slice %0 {offsets = [1, 384], sizes = [1, 128], strides = [1, 1]} : vector<9x512xf32> to vector<1x128xf32>
    %280 = vector.shape_cast %279 : vector<1x128xf32> to vector<128xf32>
    %281 = vector.shape_cast %280 : vector<128xf32> to vector<1x1x1x128xf32>
    %282 = vector.extract_strided_slice %0 {offsets = [2, 384], sizes = [1, 128], strides = [1, 1]} : vector<9x512xf32> to vector<1x128xf32>
    %283 = vector.shape_cast %282 : vector<1x128xf32> to vector<128xf32>
    %284 = vector.shape_cast %283 : vector<128xf32> to vector<1x1x1x128xf32>
    %285 = vector.extract_strided_slice %0 {offsets = [3, 384], sizes = [1, 128], strides = [1, 1]} : vector<9x512xf32> to vector<1x128xf32>
    %286 = vector.shape_cast %285 : vector<1x128xf32> to vector<128xf32>
    %287 = vector.shape_cast %286 : vector<128xf32> to vector<1x1x1x128xf32>
    %288 = vector.extract_strided_slice %0 {offsets = [4, 384], sizes = [1, 128], strides = [1, 1]} : vector<9x512xf32> to vector<1x128xf32>
    %289 = vector.shape_cast %288 : vector<1x128xf32> to vector<128xf32>
    %290 = vector.shape_cast %289 : vector<128xf32> to vector<1x1x1x128xf32>
    %291 = vector.extract_strided_slice %0 {offsets = [5, 384], sizes = [1, 128], strides = [1, 1]} : vector<9x512xf32> to vector<1x128xf32>
    %292 = vector.shape_cast %291 : vector<1x128xf32> to vector<128xf32>
    %293 = vector.shape_cast %292 : vector<128xf32> to vector<1x1x1x128xf32>
    %294 = vector.extract_strided_slice %0 {offsets = [6, 384], sizes = [1, 128], strides = [1, 1]} : vector<9x512xf32> to vector<1x128xf32>
    %295 = vector.shape_cast %294 : vector<1x128xf32> to vector<128xf32>
    %296 = vector.shape_cast %295 : vector<128xf32> to vector<1x1x1x128xf32>
    %297 = vector.extract_strided_slice %0 {offsets = [7, 384], sizes = [1, 128], strides = [1, 1]} : vector<9x512xf32> to vector<1x128xf32>
    %298 = vector.shape_cast %297 : vector<1x128xf32> to vector<128xf32>
    %299 = vector.shape_cast %298 : vector<128xf32> to vector<1x1x1x128xf32>
    %300 = vector.extract_strided_slice %0 {offsets = [8, 384], sizes = [1, 128], strides = [1, 1]} : vector<9x512xf32> to vector<1x128xf32>
    %301 = vector.shape_cast %300 : vector<1x128xf32> to vector<128xf32>
    %302 = vector.shape_cast %301 : vector<128xf32> to vector<1x1x1x128xf32>
    %cst_82 = arith.constant 0.000000e+00 : f32
    %303 = vector.broadcast %cst_82 : f32 to vector<1x14x16x128xf32>
    %c0_83 = arith.constant 0 : index
    %c0_84 = arith.constant 0 : index
    %c0_85 = arith.constant 0 : index
    %c384 = arith.constant 384 : index
    %304 = vector.load %arg1[%c0_83, %c0_84, %c0_85, %c384] : memref<1x16x16x512xf32, #tpu.memory_space<vmem>>, vector<1x14x16x128xf32>
    %305 = vector.broadcast %278 : vector<1x1x1x128xf32> to vector<1x14x16x128xf32>
    %306 = arith.mulf %304, %305 : vector<1x14x16x128xf32>
    %307 = arith.addf %303, %306 : vector<1x14x16x128xf32>
    %c15_i32_86 = arith.constant 15 : i32
    %308 = tpu.dynamic_rotate %304 by %c15_i32_86 dim 2 : vector<1x14x16x128xf32>, i32 -> vector<1x14x16x128xf32>
    %309 = vector.broadcast %281 : vector<1x1x1x128xf32> to vector<1x14x16x128xf32>
    %310 = arith.mulf %308, %309 : vector<1x14x16x128xf32>
    %311 = arith.addf %307, %310 : vector<1x14x16x128xf32>
    %c14_i32_87 = arith.constant 14 : i32
    %312 = tpu.dynamic_rotate %304 by %c14_i32_87 dim 2 : vector<1x14x16x128xf32>, i32 -> vector<1x14x16x128xf32>
    %313 = vector.broadcast %284 : vector<1x1x1x128xf32> to vector<1x14x16x128xf32>
    %314 = arith.mulf %312, %313 : vector<1x14x16x128xf32>
    %315 = arith.addf %311, %314 : vector<1x14x16x128xf32>
    %c0_88 = arith.constant 0 : index
    %c1_89 = arith.constant 1 : index
    %c0_90 = arith.constant 0 : index
    %c384_91 = arith.constant 384 : index
    %316 = vector.load %arg1[%c0_88, %c1_89, %c0_90, %c384_91] : memref<1x16x16x512xf32, #tpu.memory_space<vmem>>, vector<1x14x16x128xf32>
    %317 = vector.broadcast %287 : vector<1x1x1x128xf32> to vector<1x14x16x128xf32>
    %318 = arith.mulf %316, %317 : vector<1x14x16x128xf32>
    %319 = arith.addf %315, %318 : vector<1x14x16x128xf32>
    %c15_i32_92 = arith.constant 15 : i32
    %320 = tpu.dynamic_rotate %316 by %c15_i32_92 dim 2 : vector<1x14x16x128xf32>, i32 -> vector<1x14x16x128xf32>
    %321 = vector.broadcast %290 : vector<1x1x1x128xf32> to vector<1x14x16x128xf32>
    %322 = arith.mulf %320, %321 : vector<1x14x16x128xf32>
    %323 = arith.addf %319, %322 : vector<1x14x16x128xf32>
    %c14_i32_93 = arith.constant 14 : i32
    %324 = tpu.dynamic_rotate %316 by %c14_i32_93 dim 2 : vector<1x14x16x128xf32>, i32 -> vector<1x14x16x128xf32>
    %325 = vector.broadcast %293 : vector<1x1x1x128xf32> to vector<1x14x16x128xf32>
    %326 = arith.mulf %324, %325 : vector<1x14x16x128xf32>
    %327 = arith.addf %323, %326 : vector<1x14x16x128xf32>
    %c0_94 = arith.constant 0 : index
    %c2_95 = arith.constant 2 : index
    %c0_96 = arith.constant 0 : index
    %c384_97 = arith.constant 384 : index
    %328 = vector.load %arg1[%c0_94, %c2_95, %c0_96, %c384_97] : memref<1x16x16x512xf32, #tpu.memory_space<vmem>>, vector<1x14x16x128xf32>
    %329 = vector.broadcast %296 : vector<1x1x1x128xf32> to vector<1x14x16x128xf32>
    %330 = arith.mulf %328, %329 : vector<1x14x16x128xf32>
    %331 = arith.addf %327, %330 : vector<1x14x16x128xf32>
    %c15_i32_98 = arith.constant 15 : i32
    %332 = tpu.dynamic_rotate %328 by %c15_i32_98 dim 2 : vector<1x14x16x128xf32>, i32 -> vector<1x14x16x128xf32>
    %333 = vector.broadcast %299 : vector<1x1x1x128xf32> to vector<1x14x16x128xf32>
    %334 = arith.mulf %332, %333 : vector<1x14x16x128xf32>
    %335 = arith.addf %331, %334 : vector<1x14x16x128xf32>
    %c14_i32_99 = arith.constant 14 : i32
    %336 = tpu.dynamic_rotate %328 by %c14_i32_99 dim 2 : vector<1x14x16x128xf32>, i32 -> vector<1x14x16x128xf32>
    %337 = vector.broadcast %302 : vector<1x1x1x128xf32> to vector<1x14x16x128xf32>
    %338 = arith.mulf %336, %337 : vector<1x14x16x128xf32>
    %339 = arith.addf %335, %338 : vector<1x14x16x128xf32>
    %340 = vector.extract_strided_slice %339 {offsets = [0, 0, 0, 0], sizes = [1, 14, 14, 128], strides = [1, 1, 1, 1]} : vector<1x14x16x128xf32> to vector<1x14x14x128xf32>
    %cst_100 = arith.constant dense<0.000000e+00> : vector<128xf32>
    %341 = vector.multi_reduction <add>, %340, %cst_100 [0, 1, 2] : vector<1x14x14x128xf32> to vector<128xf32>
    %342 = vector.shape_cast %341 : vector<128xf32> to vector<1x1x1x128xf32>
    %cst_101 = arith.constant 0.00510204071 : f32
    %343 = vector.broadcast %cst_101 : f32 to vector<1x1x1x128xf32>
    %344 = arith.mulf %342, %343 : vector<1x1x1x128xf32>
    %345 = vector.broadcast %344 : vector<1x1x1x128xf32> to vector<1x14x14x128xf32>
    %346 = arith.subf %340, %345 : vector<1x14x14x128xf32>
    %347 = arith.mulf %346, %346 : vector<1x14x14x128xf32>
    %cst_102 = arith.constant dense<0.000000e+00> : vector<128xf32>
    %348 = vector.multi_reduction <add>, %347, %cst_102 [0, 1, 2] : vector<1x14x14x128xf32> to vector<128xf32>
    %349 = vector.shape_cast %348 : vector<128xf32> to vector<1x1x1x128xf32>
    %cst_103 = arith.constant 0.00510204071 : f32
    %350 = vector.broadcast %cst_103 : f32 to vector<1x1x1x128xf32>
    %351 = arith.mulf %349, %350 : vector<1x1x1x128xf32>
    %352 = vector.extract_strided_slice %1 {offsets = [0, 384], sizes = [1, 128], strides = [1, 1]} : vector<1x512xf32> to vector<1x128xf32>
    %353 = vector.shape_cast %352 : vector<1x128xf32> to vector<128xf32>
    %354 = vector.shape_cast %353 : vector<128xf32> to vector<1x1x1x128xf32>
    %cst_104 = arith.constant 1.000000e-03 : f32
    %355 = vector.broadcast %cst_104 : f32 to vector<1x1x1x128xf32>
    %356 = arith.addf %351, %355 : vector<1x1x1x128xf32>
    %357 = math.rsqrt %356 : vector<1x1x1x128xf32>
    %358 = arith.mulf %354, %357 : vector<1x1x1x128xf32>
    %359 = vector.extract_strided_slice %2 {offsets = [0, 384], sizes = [1, 128], strides = [1, 1]} : vector<1x512xf32> to vector<1x128xf32>
    %360 = vector.shape_cast %359 : vector<1x128xf32> to vector<128xf32>
    %361 = vector.shape_cast %360 : vector<128xf32> to vector<1x1x1x128xf32>
    %362 = vector.broadcast %358 : vector<1x1x1x128xf32> to vector<1x14x14x128xf32>
    %363 = arith.mulf %346, %362 : vector<1x14x14x128xf32>
    %364 = vector.broadcast %361 : vector<1x1x1x128xf32> to vector<1x14x14x128xf32>
    %365 = arith.addf %363, %364 : vector<1x14x14x128xf32>
    %c0_105 = arith.constant 0 : index
    %c0_106 = arith.constant 0 : index
    %c0_107 = arith.constant 0 : index
    %c384_108 = arith.constant 384 : index
    %366 = vector.load %arg5[%c0_105, %c0_106, %c0_107, %c384_108] : memref<1x14x14x512xf32, #tpu.memory_space<vmem>>, vector<1x14x14x128xf32>
    tpu.vector_store %arg5[%c0_105, %c0_106, %c0_107, %c384_108], %365 {strides = array<i32>} : memref<1x14x14x512xf32, #tpu.memory_space<vmem>>, vector<1x14x14x128xf32>,
    return
  }
  func.func @transform_0(%arg0: i32) -> (i32, i32, i32, i32) {
    %c0_i32 = arith.constant 0 : i32
    %c0_i32_0 = arith.constant 0 : i32
    %c0_i32_1 = arith.constant 0 : i32
    %c0_i32_2 = arith.constant 0 : i32
    return %c0_i32, %c0_i32_0, %c0_i32_1, %arg0 : i32, i32, i32, i32
  }
  func.func @transform_1(%arg0: i32) -> (i32, i32) {
    %c0_i32 = arith.constant 0 : i32
    %c0_i32_0 = arith.constant 0 : i32
    return %c0_i32, %arg0 : i32, i32
  }
  func.func @transform_2(%arg0: i32) -> (i32, i32) {
    %c0_i32 = arith.constant 0 : i32
    %c0_i32_0 = arith.constant 0 : i32
    return %c0_i32, %arg0 : i32, i32
  }
  func.func @transform_3(%arg0: i32) -> (i32, i32) {
    %c0_i32 = arith.constant 0 : i32
    %c0_i32_0 = arith.constant 0 : i32
    return %c0_i32, %arg0 : i32, i32
  }
  func.func @transform_4(%arg0: i32) -> (i32, i32, i32, i32) {
    %c0_i32 = arith.constant 0 : i32
    %c0_i32_0 = arith.constant 0 : i32
    %c0_i32_1 = arith.constant 0 : i32
    %c0_i32_2 = arith.constant 0 : i32
    return %c0_i32, %c0_i32_0, %c0_i32_1, %arg0 : i32, i32, i32, i32
  }
}

</mosaic_0001>

<bundles_post_ra>
// kernel: depthwise_conv_bn.1
= control target key start
LH: loop header
LB: loop body
LE: loop exit
PB: predicated region body
PF: predicated region fallthrough
CT: control target
= control target key end

     0   :  { %s6111_s15 = smov 0   ;;  %s6113_s16 = smov 0   ;;  %s15458_s0 = inlined_call_operand.vmem [shape: f32[1,16,16,1024], index: 0, kind: input, shape index: {}]   ;;  %s15459_s1 = inlined_call_operand.vmem [shape: f32[9,1024], index: 1, kind: input, shape index: {}]   ;;  %s15460_s2 = inlined_call_operand.vmem [shape: f32[1,1024], index: 2, kind: input, shape index: {}]   ;;  %s15461_s3 = inlined_call_operand.vmem [shape: f32[1,1024], index: 3, kind: input, shape index: {}]   ;;  %s15462_s4 = inlined_call_operand.vmem [shape: f32[1,14,14,1024], index: 4, kind: output, shape index: {}]  }
   0x1   :  { %s6115_s17 = smov 0  }
   0x2 LB: > { %s6127_s18 = sadd.s32 4294967295, %s6084_s17   ;;  %s6130_s19 = sadd.s32 1, %s6084_s17   ;;  %s6084_s17 = sphi %s6115_s17, %s18482_s17   ;;  %s6080_s16 = sphi %s6113_s16, %s18481_s16   ;;  %s6076_s15 = sphi %s6111_s15, %s18480_s15  }
   0x3   : > { %s18_s20 = ssub.s32 %s6084_s17, %s6130_s19  ;;  %s21_s21 = sadd.s32 1, %s6080_s16 }
   0x4   : > { %p19_p0 = scmp.eq.s32.totalorder %s18_s20, 0  ;;  %p28_p1 = scmp.ne.s32.totalorder %s6080_s16, %s6076_s15 }
   0x5   : > { %p29_p2 = scmp.eq.s32.totalorder %s6084_s17, 0  ;;  %p136_p3 = scmp.eq.s32.totalorder %s6127_s18, 1 }
   0x6   : > { %s6140_s22 = scalar_select %p19_p0, %s6080_s16, %s21_s21  }
   0x7   : > { %p6142_p4 = por %p29_p2, %p28_p1  ;;  %p6146_p5 = por %p136_p3, %p28_p1 }
   0x8   : > { %p5773_p6 = scmp.ge.s32.totalorder %s6084_s17, 2 }
   0xa   : > { %158 = sbr.rel (%p5773_p6) target bundleno = 93 (0x5d), region = 16 }
  0x11   : > { %161 = sbr.rel (!%p6142_p4) target bundleno = 85 (0x55), region = 20  ;;  %s163_s25 = sand.u32 (%p6142_p4), 1, %s6080_s16  }
  0x12   : > { %s6017_s26 = sshll.u32 (%p6142_p4), %s6084_s17, 5  ;;  %s5774_s27 = sshll.u32 (%p6142_p4), %s163_s25, 10 }
  0x13   : > { %s6158_s30 = scalar_lea.vmem (%p6142_p4), %s15458_s0, %s6017_s26  ;;  %s6163_s5 = scalar_lea.vmem (%p6142_p4), [#allocation2], %s5774_s27 }
  0x14   : > { %v181_v0 = vld [vmem:[%s6158_s30] sm:$0xff] (%p6142_p4)  ;;  %v183_v1 = vld [vmem:[%s6158_s30 + $0x8] sm:$0xff] (%p6142_p4)  ;;  %v185_v2 = vld [vmem:[%s6158_s30 + $0x10] sm:$0xff] (%p6142_p4) }
  0x15   : > { %182 = vst [vmem:[%s6163_s5] sm:$0xff] (%p6142_p4), %v181_v0  ;;  %184 = vst [vmem:[%s6163_s5 + $0x8] sm:$0xff] (%p6142_p4), %v183_v1  ;;  %v187_v3 = vld [vmem:[%s6158_s30 + $0x18] sm:$0xff] (%p6142_p4)  ;;  %v189_v4 = vld [vmem:[%s6158_s30 + $0x40] sm:$0xff] (%p6142_p4) }
  0x16   : > { %186 = vst [vmem:[%s6163_s5 + $0x10] sm:$0xff] (%p6142_p4), %v185_v2  ;;  %v191_v5 = vld [vmem:[%s6158_s30 + $0x48] sm:$0xff] (%p6142_p4)  ;;  %188 = vst [vmem:[%s6163_s5 + $0x18] sm:$0xff] (%p6142_p4), %v187_v3  ;;  %v193_v6 = vld [vmem:[%s6158_s30 + $0x50] sm:$0xff] (%p6142_p4) }
  0x17   : > { %190 = vst [vmem:[%s6163_s5 + $0x20] sm:$0xff] (%p6142_p4), %v189_v4  ;;  %192 = vst [vmem:[%s6163_s5 + $0x28] sm:$0xff] (%p6142_p4), %v191_v5  ;;  %v195_v7 = vld [vmem:[%s6158_s30 + $0x58] sm:$0xff] (%p6142_p4)  ;;  %v197_v8 = vld [vmem:[%s6158_s30 + $0x80] sm:$0xff] (%p6142_p4) }
  0x18   : > { %194 = vst [vmem:[%s6163_s5 + $0x30] sm:$0xff] %v193_v6  ;;  %196 = vst [vmem:[%s6163_s5 + $0x38] sm:$0xff] %v195_v7  ;;  %v199_v9 = vld [vmem:[%s6158_s30 + $0x88] sm:$0xff]  ;;  %v201_v10 = vld [vmem:[%s6158_s30 + $0x90] sm:$0xff] }
  0x19   : > { %198 = vst [vmem:[%s6163_s5 + $0x40] sm:$0xff] %v197_v8  ;;  %v203_v11 = vld [vmem:[%s6158_s30 + $0x98] sm:$0xff]  ;;  %200 = vst [vmem:[%s6163_s5 + $0x48] sm:$0xff] %v199_v9  ;;  %v205_v12 = vld [vmem:[%s6158_s30 + $0xc0] sm:$0xff] }
  0x1a   : > { %202 = vst [vmem:[%s6163_s5 + $0x50] sm:$0xff] %v201_v10  ;;  %204 = vst [vmem:[%s6163_s5 + $0x58] sm:$0xff] %v203_v11  ;;  %v207_v13 = vld [vmem:[%s6158_s30 + $0xc8] sm:$0xff]  ;;  %v209_v14 = vld [vmem:[%s6158_s30 + $0xd0] sm:$0xff] }
  0x1b   : > { %206 = vst [vmem:[%s6163_s5 + $0x60] sm:$0xff] %v205_v12  ;;  %208 = vst [vmem:[%s6163_s5 + $0x68] sm:$0xff] %v207_v13  ;;  %v211_v15 = vld [vmem:[%s6158_s30 + $0xd8] sm:$0xff]  ;;  %v213_v16 = vld [vmem:[%s6158_s30 + $0x100] sm:$0xff] }
  0x1c   : > { %210 = vst [vmem:[%s6163_s5 + $0x70] sm:$0xff] %v209_v14  ;;  %v215_v17 = vld [vmem:[%s6158_s30 + $0x108] sm:$0xff]  ;;  %212 = vst [vmem:[%s6163_s5 + $0x78] sm:$0xff] %v211_v15  ;;  %v217_v18 = vld [vmem:[%s6158_s30 + $0x110] sm:$0xff] }
  0x1d   : > { %214 = vst [vmem:[%s6163_s5 + $0x80] sm:$0xff] %v213_v16  ;;  %216 = vst [vmem:[%s6163_s5 + $0x88] sm:$0xff] %v215_v17  ;;  %v219_v19 = vld [vmem:[%s6158_s30 + $0x118] sm:$0xff]  ;;  %v221_v20 = vld [vmem:[%s6158_s30 + $0x140] sm:$0xff] }
  0x1e   : > { %218 = vst [vmem:[%s6163_s5 + $0x90] sm:$0xff] %v217_v18  ;;  %220 = vst [vmem:[%s6163_s5 + $0x98] sm:$0xff] %v219_v19  ;;  %v223_v21 = vld [vmem:[%s6158_s30 + $0x148] sm:$0xff]  ;;  %v225_v22 = vld [vmem:[%s6158_s30 + $0x150] sm:$0xff] }
  0x1f   : > { %222 = vst [vmem:[%s6163_s5 + $0xa0] sm:$0xff] %v221_v20  ;;  %v227_v23 = vld [vmem:[%s6158_s30 + $0x158] sm:$0xff]  ;;  %224 = vst [vmem:[%s6163_s5 + $0xa8] sm:$0xff] %v223_v21  ;;  %v229_v24 = vld [vmem:[%s6158_s30 + $0x180] sm:$0xff] }
  0x20   : > { %226 = vst [vmem:[%s6163_s5 + $0xb0] sm:$0xff] %v225_v22  ;;  %228 = vst [vmem:[%s6163_s5 + $0xb8] sm:$0xff] %v227_v23  ;;  %v231_v25 = vld [vmem:[%s6158_s30 + $0x188] sm:$0xff]  ;;  %v233_v26 = vld [vmem:[%s6158_s30 + $0x190] sm:$0xff] }
  0x21   : > { %230 = vst [vmem:[%s6163_s5 + $0xc0] sm:$0xff] %v229_v24  ;;  %232 = vst [vmem:[%s6163_s5 + $0xc8] sm:$0xff] %v231_v25  ;;  %v235_v27 = vld [vmem:[%s6158_s30 + $0x198] sm:$0xff]  ;;  %v237_v28 = vld [vmem:[%s6158_s30 + $0x1c0] sm:$0xff] }
  0x22   : > { %234 = vst [vmem:[%s6163_s5 + $0xd0] sm:$0xff] %v233_v26  ;;  %v239_v29 = vld [vmem:[%s6158_s30 + $0x1c8] sm:$0xff]  ;;  %236 = vst [vmem:[%s6163_s5 + $0xd8] sm:$0xff] %v235_v27  ;;  %v241_v30 = vld [vmem:[%s6158_s30 + $0x1d0] sm:$0xff] }
  0x23   : > { %238 = vst [vmem:[%s6163_s5 + $0xe0] sm:$0xff] %v237_v28  ;;  %240 = vst [vmem:[%s6163_s5 + $0xe8] sm:$0xff] %v239_v29  ;;  %v243_v31 = vld [vmem:[%s6158_s30 + $0x1d8] sm:$0xff]  ;;  %v245_v32 = vld [vmem:[%s6158_s30 + $0x200] sm:$0xff] }
  0x24   : > { %242 = vst [vmem:[%s6163_s5 + $0xf0] sm:$0xff] %v241_v30  ;;  %244 = vst [vmem:[%s6163_s5 + $0xf8] sm:$0xff] %v243_v31  ;;  %v247_v33 = vld [vmem:[%s6158_s30 + $0x208] sm:$0xff]  ;;  %v249_v34 = vld [vmem:[%s6158_s30 + $0x210] sm:$0xff] }
  0x25   : > { %246 = vst [vmem:[%s6163_s5 + $0x100] sm:$0xff] %v245_v32  ;;  %v251_v35 = vld [vmem:[%s6158_s30 + $0x218] sm:$0xff]  ;;  %248 = vst [vmem:[%s6163_s5 + $0x108] sm:$0xff] %v247_v33  ;;  %v253_v36 = vld [vmem:[%s6158_s30 + $0x240] sm:$0xff] }
  0x26   : > { %250 = vst [vmem:[%s6163_s5 + $0x110] sm:$0xff] %v249_v34  ;;  %252 = vst [vmem:[%s6163_s5 + $0x118] sm:$0xff] %v251_v35  ;;  %v255_v37 = vld [vmem:[%s6158_s30 + $0x248] sm:$0xff]  ;;  %v257_v38 = vld [vmem:[%s6158_s30 + $0x250] sm:$0xff] }
  0x27   : > { %254 = vst [vmem:[%s6163_s5 + $0x120] sm:$0xff] %v253_v36  ;;  %256 = vst [vmem:[%s6163_s5 + $0x128] sm:$0xff] %v255_v37  ;;  %v259_v39 = vld [vmem:[%s6158_s30 + $0x258] sm:$0xff]  ;;  %v261_v40 = vld [vmem:[%s6158_s30 + $0x280] sm:$0xff] }
  0x28   : > { %258 = vst [vmem:[%s6163_s5 + $0x130] sm:$0xff] %v257_v38  ;;  %v263_v41 = vld [vmem:[%s6158_s30 + $0x288] sm:$0xff]  ;;  %260 = vst [vmem:[%s6163_s5 + $0x138] sm:$0xff] %v259_v39  ;;  %v265_v42 = vld [vmem:[%s6158_s30 + $0x290] sm:$0xff] }
  0x29   : > { %262 = vst [vmem:[%s6163_s5 + $0x140] sm:$0xff] %v261_v40  ;;  %264 = vst [vmem:[%s6163_s5 + $0x148] sm:$0xff] %v263_v41  ;;  %v267_v43 = vld [vmem:[%s6158_s30 + $0x298] sm:$0xff]  ;;  %v269_v44 = vld [vmem:[%s6158_s30 + $0x2c0] sm:$0xff] }
  0x2a   : > { %266 = vst [vmem:[%s6163_s5 + $0x150] sm:$0xff] %v265_v42  ;;  %268 = vst [vmem:[%s6163_s5 + $0x158] sm:$0xff] %v267_v43  ;;  %v271_v45 = vld [vmem:[%s6158_s30 + $0x2c8] sm:$0xff]  ;;  %v273_v46 = vld [vmem:[%s6158_s30 + $0x2d0] sm:$0xff] }
  0x2b   : > { %270 = vst [vmem:[%s6163_s5 + $0x160] sm:$0xff] %v269_v44  ;;  %v275_v47 = vld [vmem:[%s6158_s30 + $0x2d8] sm:$0xff]  ;;  %272 = vst [vmem:[%s6163_s5 + $0x168] sm:$0xff] %v271_v45  ;;  %v277_v48 = vld [vmem:[%s6158_s30 + $0x300] sm:$0xff] }
  0x2c   : > { %274 = vst [vmem:[%s6163_s5 + $0x170] sm:$0xff] %v273_v46  ;;  %276 = vst [vmem:[%s6163_s5 + $0x178] sm:$0xff] %v275_v47  ;;  %v279_v49 = vld [vmem:[%s6158_s30 + $0x308] sm:$0xff]  ;;  %v281_v50 = vld [vmem:[%s6158_s30 + $0x310] sm:$0xff] }
  0x2d   : > { %278 = vst [vmem:[%s6163_s5 + $0x180] sm:$0xff] %v277_v48  ;;  %280 = vst [vmem:[%s6163_s5 + $0x188] sm:$0xff] %v279_v49  ;;  %v283_v51 = vld [vmem:[%s6158_s30 + $0x318] sm:$0xff]  ;;  %v285_v52 = vld [vmem:[%s6158_s30 + $0x340] sm:$0xff] }
  0x2e   : > { %282 = vst [vmem:[%s6163_s5 + $0x190] sm:$0xff] %v281_v50  ;;  %v287_v53 = vld [vmem:[%s6158_s30 + $0x348] sm:$0xff]  ;;  %284 = vst [vmem:[%s6163_s5 + $0x198] sm:$0xff] %v283_v51  ;;  %v289_v54 = vld [vmem:[%s6158_s30 + $0x350] sm:$0xff] }
  0x2f   : > { %286 = vst [vmem:[%s6163_s5 + $0x1a0] sm:$0xff] %v285_v52  ;;  %288 = vst [vmem:[%s6163_s5 + $0x1a8] sm:$0xff] %v287_v53  ;;  %v291_v55 = vld [vmem:[%s6158_s30 + $0x358] sm:$0xff]  ;;  %v293_v56 = vld [vmem:[%s6158_s30 + $0x380] sm:$0xff] }
  0x30   : > { %290 = vst [vmem:[%s6163_s5 + $0x1b0] sm:$0xff] %v289_v54  ;;  %292 = vst [vmem:[%s6163_s5 + $0x1b8] sm:$0xff] %v291_v55  ;;  %v295_v57 = vld [vmem:[%s6158_s30 + $0x388] sm:$0xff]  ;;  %v297_v58 = vld [vmem:[%s6158_s30 + $0x390] sm:$0xff] }
  0x31   : > { %294 = vst [vmem:[%s6163_s5 + $0x1c0] sm:$0xff] %v293_v56  ;;  %v299_v59 = vld [vmem:[%s6158_s30 + $0x398] sm:$0xff]  ;;  %296 = vst [vmem:[%s6163_s5 + $0x1c8] sm:$0xff] %v295_v57  ;;  %v301_v60 = vld [vmem:[%s6158_s30 + $0x3c0] sm:$0xff] }
  0x32   : > { %298 = vst [vmem:[%s6163_s5 + $0x1d0] sm:$0xff] %v297_v58  ;;  %300 = vst [vmem:[%s6163_s5 + $0x1d8] sm:$0xff] %v299_v59  ;;  %v303_v61 = vld [vmem:[%s6158_s30 + $0x3c8] sm:$0xff]  ;;  %v305_v62 = vld [vmem:[%s6158_s30 + $0x3d0] sm:$0xff] }
  0x33   : > { %302 = vst [vmem:[%s6163_s5 + $0x1e0] sm:$0xff] %v301_v60  ;;  %304 = vst [vmem:[%s6163_s5 + $0x1e8] sm:$0xff] %v303_v61  ;;  %v307_v63 = vld [vmem:[%s6158_s30 + $0x3d8] sm:$0xff]  ;;  %v309_v0 = vld [vmem:[%s6158_s30 + $0x400] sm:$0xff] }
  0x34   : > { %306 = vst [vmem:[%s6163_s5 + $0x1f0] sm:$0xff] %v305_v62  ;;  %v311_v1 = vld [vmem:[%s6158_s30 + $0x408] sm:$0xff]  ;;  %308 = vst [vmem:[%s6163_s5 + $0x1f8] sm:$0xff] %v307_v63  ;;  %v313_v2 = vld [vmem:[%s6158_s30 + $0x410] sm:$0xff] }
  0x35   : > { %310 = vst [vmem:[%s6163_s5 + $0x200] sm:$0xff] %v309_v0  ;;  %312 = vst [vmem:[%s6163_s5 + $0x208] sm:$0xff] %v311_v1  ;;  %v315_v3 = vld [vmem:[%s6158_s30 + $0x418] sm:$0xff]  ;;  %v317_v4 = vld [vmem:[%s6158_s30 + $0x440] sm:$0xff] }
  0x36   : > { %314 = vst [vmem:[%s6163_s5 + $0x210] sm:$0xff] %v313_v2  ;;  %316 = vst [vmem:[%s6163_s5 + $0x218] sm:$0xff] %v315_v3  ;;  %v319_v5 = vld [vmem:[%s6158_s30 + $0x448] sm:$0xff]  ;;  %v321_v6 = vld [vmem:[%s6158_s30 + $0x450] sm:$0xff] }
  0x37   : > { %318 = vst [vmem:[%s6163_s5 + $0x220] sm:$0xff] %v317_v4  ;;  %v323_v7 = vld [vmem:[%s6158_s30 + $0x458] sm:$0xff]  ;;  %320 = vst [vmem:[%s6163_s5 + $0x228] sm:$0xff] %v319_v5  ;;  %v325_v8 = vld [vmem:[%s6158_s30 + $0x480] sm:$0xff] }
  0x38   : > { %322 = vst [vmem:[%s6163_s5 + $0x230] sm:$0xff] %v321_v6  ;;  %324 = vst [vmem:[%s6163_s5 + $0x238] sm:$0xff] %v323_v7  ;;  %v327_v9 = vld [vmem:[%s6158_s30 + $0x488] sm:$0xff]  ;;  %v329_v10 = vld [vmem:[%s6158_s30 + $0x490] sm:$0xff] }
  0x39   : > { %326 = vst [vmem:[%s6163_s5 + $0x240] sm:$0xff] %v325_v8  ;;  %328 = vst [vmem:[%s6163_s5 + $0x248] sm:$0xff] %v327_v9  ;;  %v331_v11 = vld [vmem:[%s6158_s30 + $0x498] sm:$0xff]  ;;  %v333_v12 = vld [vmem:[%s6158_s30 + $0x4c0] sm:$0xff] }
  0x3a   : > { %330 = vst [vmem:[%s6163_s5 + $0x250] sm:$0xff] %v329_v10  ;;  %v335_v13 = vld [vmem:[%s6158_s30 + $0x4c8] sm:$0xff]  ;;  %332 = vst [vmem:[%s6163_s5 + $0x258] sm:$0xff] %v331_v11  ;;  %v337_v14 = vld [vmem:[%s6158_s30 + $0x4d0] sm:$0xff] }
  0x3b   : > { %334 = vst [vmem:[%s6163_s5 + $0x260] sm:$0xff] %v333_v12  ;;  %336 = vst [vmem:[%s6163_s5 + $0x268] sm:$0xff] %v335_v13  ;;  %v339_v15 = vld [vmem:[%s6158_s30 + $0x4d8] sm:$0xff]  ;;  %v341_v16 = vld [vmem:[%s6158_s30 + $0x500] sm:$0xff] }
  0x3c   : > { %338 = vst [vmem:[%s6163_s5 + $0x270] sm:$0xff] %v337_v14  ;;  %340 = vst [vmem:[%s6163_s5 + $0x278] sm:$0xff] %v339_v15  ;;  %v343_v17 = vld [vmem:[%s6158_s30 + $0x508] sm:$0xff]  ;;  %v345_v18 = vld [vmem:[%s6158_s30 + $0x510] sm:$0xff] }
  0x3d   : > { %342 = vst [vmem:[%s6163_s5 + $0x280] sm:$0xff] %v341_v16  ;;  %v347_v19 = vld [vmem:[%s6158_s30 + $0x518] sm:$0xff]  ;;  %344 = vst [vmem:[%s6163_s5 + $0x288] sm:$0xff] %v343_v17  ;;  %v349_v20 = vld [vmem:[%s6158_s30 + $0x540] sm:$0xff] }
  0x3e   : > { %346 = vst [vmem:[%s6163_s5 + $0x290] sm:$0xff] %v345_v18  ;;  %348 = vst [vmem:[%s6163_s5 + $0x298] sm:$0xff] %v347_v19  ;;  %v351_v21 = vld [vmem:[%s6158_s30 + $0x548] sm:$0xff]  ;;  %v353_v22 = vld [vmem:[%s6158_s30 + $0x550] sm:$0xff] }
  0x3f   : > { %350 = vst [vmem:[%s6163_s5 + $0x2a0] sm:$0xff] %v349_v20  ;;  %352 = vst [vmem:[%s6163_s5 + $0x2a8] sm:$0xff] %v351_v21  ;;  %v355_v23 = vld [vmem:[%s6158_s30 + $0x558] sm:$0xff]  ;;  %v357_v24 = vld [vmem:[%s6158_s30 + $0x580] sm:$0xff] }
  0x40   : > { %354 = vst [vmem:[%s6163_s5 + $0x2b0] sm:$0xff] %v353_v22  ;;  %v359_v25 = vld [vmem:[%s6158_s30 + $0x588] sm:$0xff]  ;;  %356 = vst [vmem:[%s6163_s5 + $0x2b8] sm:$0xff] %v355_v23  ;;  %v361_v26 = vld [vmem:[%s6158_s30 + $0x590] sm:$0xff] }
  0x41   : > { %358 = vst [vmem:[%s6163_s5 + $0x2c0] sm:$0xff] %v357_v24  ;;  %360 = vst [vmem:[%s6163_s5 + $0x2c8] sm:$0xff] %v359_v25  ;;  %v363_v27 = vld [vmem:[%s6158_s30 + $0x598] sm:$0xff]  ;;  %v365_v28 = vld [vmem:[%s6158_s30 + $0x5c0] sm:$0xff] }
  0x42   : > { %362 = vst [vmem:[%s6163_s5 + $0x2d0] sm:$0xff] %v361_v26  ;;  %364 = vst [vmem:[%s6163_s5 + $0x2d8] sm:$0xff] %v363_v27  ;;  %v367_v29 = vld [vmem:[%s6158_s30 + $0x5c8] sm:$0xff]  ;;  %v369_v30 = vld [vmem:[%s6158_s30 + $0x5d0] sm:$0xff] }
  0x43   : > { %366 = vst [vmem:[%s6163_s5 + $0x2e0] sm:$0xff] %v365_v28  ;;  %v371_v31 = vld [vmem:[%s6158_s30 + $0x5d8] sm:$0xff]  ;;  %368 = vst [vmem:[%s6163_s5 + $0x2e8] sm:$0xff] %v367_v29  ;;  %v373_v32 = vld [vmem:[%s6158_s30 + $0x600] sm:$0xff] }
  0x44   : > { %370 = vst [vmem:[%s6163_s5 + $0x2f0] sm:$0xff] %v369_v30  ;;  %372 = vst [vmem:[%s6163_s5 + $0x2f8] sm:$0xff] %v371_v31  ;;  %v375_v33 = vld [vmem:[%s6158_s30 + $0x608] sm:$0xff]  ;;  %v377_v34 = vld [vmem:[%s6158_s30 + $0x610] sm:$0xff] }
  0x45   : > { %374 = vst [vmem:[%s6163_s5 + $0x300] sm:$0xff] %v373_v32  ;;  %376 = vst [vmem:[%s6163_s5 + $0x308] sm:$0xff] %v375_v33  ;;  %v379_v35 = vld [vmem:[%s6158_s30 + $0x618] sm:$0xff]  ;;  %v381_v36 = vld [vmem:[%s6158_s30 + $0x640] sm:$0xff] }
  0x46   : > { %378 = vst [vmem:[%s6163_s5 + $0x310] sm:$0xff] %v377_v34  ;;  %v383_v37 = vld [vmem:[%s6158_s30 + $0x648] sm:$0xff]  ;;  %380 = vst [vmem:[%s6163_s5 + $0x318] sm:$0xff] %v379_v35  ;;  %v385_v38 = vld [vmem:[%s6158_s30 + $0x650] sm:$0xff] }
  0x47   : > { %382 = vst [vmem:[%s6163_s5 + $0x320] sm:$0xff] %v381_v36  ;;  %384 = vst [vmem:[%s6163_s5 + $0x328] sm:$0xff] %v383_v37  ;;  %v387_v39 = vld [vmem:[%s6158_s30 + $0x658] sm:$0xff]  ;;  %v389_v40 = vld [vmem:[%s6158_s30 + $0x680] sm:$0xff] }
  0x48   : > { %386 = vst [vmem:[%s6163_s5 + $0x330] sm:$0xff] %v385_v38  ;;  %388 = vst [vmem:[%s6163_s5 + $0x338] sm:$0xff] %v387_v39  ;;  %v391_v41 = vld [vmem:[%s6158_s30 + $0x688] sm:$0xff]  ;;  %v393_v42 = vld [vmem:[%s6158_s30 + $0x690] sm:$0xff] }
  0x49   : > { %390 = vst [vmem:[%s6163_s5 + $0x340] sm:$0xff] %v389_v40  ;;  %v395_v43 = vld [vmem:[%s6158_s30 + $0x698] sm:$0xff]  ;;  %392 = vst [vmem:[%s6163_s5 + $0x348] sm:$0xff] %v391_v41  ;;  %v397_v44 = vld [vmem:[%s6158_s30 + $0x6c0] sm:$0xff] }
  0x4a   : > { %394 = vst [vmem:[%s6163_s5 + $0x350] sm:$0xff] %v393_v42  ;;  %396 = vst [vmem:[%s6163_s5 + $0x358] sm:$0xff] %v395_v43  ;;  %v399_v45 = vld [vmem:[%s6158_s30 + $0x6c8] sm:$0xff]  ;;  %v401_v46 = vld [vmem:[%s6158_s30 + $0x6d0] sm:$0xff] }
  0x4b   : > { %398 = vst [vmem:[%s6163_s5 + $0x360] sm:$0xff] %v397_v44  ;;  %400 = vst [vmem:[%s6163_s5 + $0x368] sm:$0xff] %v399_v45  ;;  %v403_v47 = vld [vmem:[%s6158_s30 + $0x6d8] sm:$0xff]  ;;  %v405_v48 = vld [vmem:[%s6158_s30 + $0x700] sm:$0xff] }
  0x4c   : > { %402 = vst [vmem:[%s6163_s5 + $0x370] sm:$0xff] %v401_v46  ;;  %v407_v49 = vld [vmem:[%s6158_s30 + $0x708] sm:$0xff]  ;;  %404 = vst [vmem:[%s6163_s5 + $0x378] sm:$0xff] %v403_v47  ;;  %v409_v50 = vld [vmem:[%s6158_s30 + $0x710] sm:$0xff] }
  0x4d   : > { %406 = vst [vmem:[%s6163_s5 + $0x380] sm:$0xff] %v405_v48  ;;  %408 = vst [vmem:[%s6163_s5 + $0x388] sm:$0xff] %v407_v49  ;;  %v411_v51 = vld [vmem:[%s6158_s30 + $0x718] sm:$0xff]  ;;  %v413_v52 = vld [vmem:[%s6158_s30 + $0x740] sm:$0xff] }
  0x4e   : > { %410 = vst [vmem:[%s6163_s5 + $0x390] sm:$0xff] %v409_v50  ;;  %412 = vst [vmem:[%s6163_s5 + $0x398] sm:$0xff] %v411_v51  ;;  %v415_v53 = vld [vmem:[%s6158_s30 + $0x748] sm:$0xff]  ;;  %v417_v54 = vld [vmem:[%s6158_s30 + $0x750] sm:$0xff] }
  0x4f   : > { %414 = vst [vmem:[%s6163_s5 + $0x3a0] sm:$0xff] %v413_v52  ;;  %v419_v55 = vld [vmem:[%s6158_s30 + $0x758] sm:$0xff]  ;;  %416 = vst [vmem:[%s6163_s5 + $0x3a8] sm:$0xff] %v415_v53  ;;  %v421_v56 = vld [vmem:[%s6158_s30 + $0x780] sm:$0xff] }
  0x50   : > { %418 = vst [vmem:[%s6163_s5 + $0x3b0] sm:$0xff] %v417_v54  ;;  %420 = vst [vmem:[%s6163_s5 + $0x3b8] sm:$0xff] %v419_v55  ;;  %v423_v57 = vld [vmem:[%s6158_s30 + $0x788] sm:$0xff]  ;;  %v425_v58 = vld [vmem:[%s6158_s30 + $0x790] sm:$0xff] }
  0x51   : > { %422 = vst [vmem:[%s6163_s5 + $0x3c0] sm:$0xff] %v421_v56  ;;  %424 = vst [vmem:[%s6163_s5 + $0x3c8] sm:$0xff] %v423_v57  ;;  %v427_v59 = vld [vmem:[%s6158_s30 + $0x798] sm:$0xff]  ;;  %v429_v60 = vld [vmem:[%s6158_s30 + $0x7c0] sm:$0xff] }
  0x52   : > { %426 = vst [vmem:[%s6163_s5 + $0x3d0] sm:$0xff] %v425_v58  ;;  %v431_v61 = vld [vmem:[%s6158_s30 + $0x7c8] sm:$0xff]  ;;  %428 = vst [vmem:[%s6163_s5 + $0x3d8] sm:$0xff] %v427_v59  ;;  %v433_v62 = vld [vmem:[%s6158_s30 + $0x7d0] sm:$0xff] }
  0x53   : > { %430 = vst [vmem:[%s6163_s5 + $0x3e0] sm:$0xff] %v429_v60  ;;  %432 = vst [vmem:[%s6163_s5 + $0x3e8] sm:$0xff] %v431_v61  ;;  %v435_v63 = vld [vmem:[%s6158_s30 + $0x7d8] sm:$0xff] }
  0x54   : > { %434 = vst [vmem:[%s6163_s5 + $0x3f0] sm:$0xff] %v433_v62  ;;  %436 = vst [vmem:[%s6163_s5 + $0x3f8] sm:$0xff] %v435_v63 }
  0x55 PF: > { %442 = sbr.rel (!%p6142_p4) target bundleno = 93 (0x5d), region = 43  ;;  %s444_s6 = sand.u32 (%p6142_p4), 1, %s6080_s16  }
  0x56   : > { %s6018_s7 = sshll.u32 (%p6142_p4), %s6084_s17, 5  ;;  %s5777_s8 = sshll.u32 (%p6142_p4), %s444_s6, 6 }
  0x57   : > { %s449_s11 = scalar_lea.vmem (%p6142_p4), %s15459_s1, %s6018_s7  ;;  %s446_s12 = scalar_lea.vmem (%p6142_p4), [#allocation3], %s5777_s8 }
  0x58   : > { %v462_v0 = vld [vmem:[%s449_s11] sm:$0xff] (%p6142_p4)  ;;  %v464_v1 = vld [vmem:[%s449_s11 + $0x8] sm:$0xff] (%p6142_p4)  ;;  %v466_v2 = vld [vmem:[%s449_s11 + $0x10] sm:$0xff] (%p6142_p4) }
  0x59   : > { %463 = vst [vmem:[%s446_s12] sm:$0xff] (%p6142_p4), %v462_v0  ;;  %465 = vst [vmem:[%s446_s12 + $0x8] sm:$0xff] (%p6142_p4), %v464_v1  ;;  %v468_v3 = vld [vmem:[%s449_s11 + $0x18] sm:$0xff] (%p6142_p4)  ;;  %v470_v4 = vld [vmem:[%s449_s11 + $0x40] sm:$0xff] (%p6142_p4) }
  0x5a   : > { %467 = vst [vmem:[%s446_s12 + $0x10] sm:$0xff] (%p6142_p4), %v466_v2  ;;  %v472_v5 = vld [vmem:[%s449_s11 + $0x48] sm:$0xff] (%p6142_p4)  ;;  %469 = vst [vmem:[%s446_s12 + $0x18] sm:$0xff] (%p6142_p4), %v468_v3  ;;  %v474_v6 = vld [vmem:[%s449_s11 + $0x50] sm:$0xff] (%p6142_p4) }
  0x5b   : > { %471 = vst [vmem:[%s446_s12 + $0x20] sm:$0xff] (%p6142_p4), %v470_v4  ;;  %473 = vst [vmem:[%s446_s12 + $0x28] sm:$0xff] (%p6142_p4), %v472_v5  ;;  %v476_v7 = vld [vmem:[%s449_s11 + $0x58] sm:$0xff] (%p6142_p4) }
  0x5c   : > { %475 = vst [vmem:[%s446_s12 + $0x30] sm:$0xff] %v474_v6  ;;  %477 = vst [vmem:[%s446_s12 + $0x38] sm:$0xff] %v476_v7 }
  0x5d PF: > { %p5780_p7 = scmp.ge.s32.totalorder %s6084_s17, 1  ;;  %p498_p8 = scmp.lt.s32.totalorder %s6084_s17, 3 }
  0x5f   : > { %p499_p9 = pnand %p5780_p7, %p498_p8 }
  0x61   : > { %502 = sbr.rel (%p499_p9) target bundleno = 1326 (0x52e), region = 74 }
  0x68   : > { %s6428_s13 = sand.u32 1, %s6076_s15   ;;  %v599_v8 = vlaneseq  ;;  %vm1537_vm2 = vcmask 1045504   ;;  %s5783_s15 = sshll.u32 %s6127_s18, 2 }
  0x69   : > { %s5782_s14 = sshll.u32 %s6428_s13, 6  ;;  %s5781_s20 = sshll.u32 %s6428_s13, 10 }
  0x6a   : > { %v6431_v9 = vshrl.u32 %v599_v8, 7  ;;  %s6437_s21 = scalar_lea.vmem [#allocation3], %s5782_s14  ;;  %s6442_s17 = scalar_lea.vmem [#allocation2], %s5781_s20 }
  0x6b   : > { %v6440_v11 = vld [vmem:[%s6437_s21] sm:$0xff]  ;;  %p8446_p10 = scmp.lt.s32.totalorder %s5783_s15, 7  ;;  %s6020_s5 = smul.u32 896, %s6428_s13 }
  0x6c   : > { %16321 = vst [vmem:[#allocation5_spill] sm:$0xff] %v6431_v9  ;;  %v6435_v10 = vsub.s32 0, %v6431_v9  ;;  %16323 = vst [vmem:[#allocation7_spill] sm:$0xff] %v6440_v11  ;;  %v6445_v12 = vld [vmem:[%s6442_s17] sm:$0xff]  ;;  %v6462_v18 = vsub.s32 1, %v6431_v9  ;;  %vm689_vm0 = vcmp.lt.s32.totalorder %v6431_v9, 7 }
  0x6d   : > { %16324 = vst [vmem:[#allocation8_spill] sm:$0xff] %v6445_v12  ;;  %v6448_v13 = vld [vmem:[%s6442_s17 + $0x20] sm:$0xff]  ;;  %vm806_vm1 = vcmp.lt.s32.totalorder %v6431_v9, 6  ;;  %s18484_s15 = smov (!%p8446_p10, %s5783_s15), 7  ;;  %s9544_s6 = scalar_lea.vmem [#allocation4], %s6020_s5 }
  0x6e   : > { %16322 = vst [vmem:[#allocation6_spill] sm:$0xff] %v6435_v10  ;;  %16325 = vst [vmem:[#allocation9_spill] sm:$0xff] %v6448_v13  ;;  %v6451_v14 = vld [vmem:[%s6442_s17 + $0x40] sm:$0xff]  ;;  %v602_v17 = vrot.slane %v6440_v11, %v6435_v10  ;;  %v6493_v32 = vrot.slane %v6440_v11, %v6462_v18  ;;  %s8538_s27 = scalar_lea.vmem %s15461_s3, %s18484_s15  ;;  %s9426_s30 = scalar_lea.vmem %s15460_s2, %s18484_s15 }
  0x6f   : > { %16326 = vst [vmem:[#allocation10_spill] sm:$0xff] %v6451_v14  ;;  %v6454_v15 = vld [vmem:[%s6442_s17 + $0x80] sm:$0xff]  ;;  %16329 = vst [vmem:[#allocation13_spill] sm:$0xff] %v6462_v18  ;;  %s6019_s7 = sshll.u32 (%p6146_p5), %s6127_s18, 5 }
  0x70   : > { %16327 = vst [vmem:[#allocation11_spill] sm:$0xff] %v6454_v15  ;;  %v6457_v16 = vld [vmem:[%s6442_s17 + $0xc0] sm:$0xff]  ;;  %v6485_v29 = vmul.f32 %v602_v17, %v6445_v12  ;;  %v6488_v30 = vmul.f32 %v602_v17, %v6448_v13  ;;  %v6505_v36 = vmul.f32 %v602_v17, %v6451_v14  ;;  %v6511_v38 = vmul.f32 %v602_v17, %v6454_v15  ;;  %s15225_s10 = scalar_lea.vmem (%p6146_p5), %s15462_s4, %s6019_s7 }
  0x71   : > { %16328 = vst [vmem:[#allocation12_spill] sm:$0xff] %v6457_v16  ;;  %v6465_v19 = vld [vmem:[%s6442_s17 + $0x60] sm:$0xff]  ;;  %v6526_v43 = vmul.f32 %v602_v17, %v6457_v16 }
  0x72   : > { %16330 = vst [vmem:[#allocation14_spill] sm:$0xff] %v6465_v19  ;;  %v6469_v21 = vld [vmem:[%s6442_s17 + $0xa0] sm:$0xff]  ;;  %v6508_v37 = vmul.f32 %v602_v17, %v6465_v19 }
  0x73   : > { %16331 = vst [vmem:[#allocation15_spill] sm:$0xff] %v6469_v21  ;;  %v6476_v26 = vld [vmem:[%s6442_s17 + $0xe0] sm:$0xff]  ;;  %v6514_v39 = vmul.f32 %v602_v17, %v6469_v21 }
  0x74   : > { %16332 = vst [vmem:[#allocation16_spill] sm:$0xff] %v6476_v26  ;;  %v6479_v27 = vld [vmem:[%s6442_s17 + $0x100] sm:$0xff]  ;;  %v6529_v44 = vmul.f32 %v602_v17, %v6476_v26 }
  0x75   : > { %16333 = vst [vmem:[#allocation17_spill] sm:$0xff] %v6479_v27  ;;  %v6482_v28 = vld [vmem:[%s6442_s17 + $0x120] sm:$0xff]  ;;  %v6532_v45 = vmul.f32 %v602_v17, %v6479_v27  ;;  %v663_v23 = vrot.slane %v6479_v27, 1 }
  0x76   : > { %16334 = vst [vmem:[#allocation18_spill] sm:$0xff] %v6482_v28  ;;  %v6496_v33 = vld [vmem:[%s6442_s17 + $0x140] sm:$0xff]  ;;  %v6535_v46 = vmul.f32 %v602_v17, %v6482_v28 }
  0x77   : > { %16335 = vst [vmem:[#allocation19_spill] sm:$0xff] %v6496_v33  ;;  %v6499_v34 = vld [vmem:[%s6442_s17 + $0x160] sm:$0xff]  ;;  %v6548_v50 = vmul.f32 %v602_v17, %v6496_v33  ;;  %v664_v25 = vrot.slane %v6496_v33, 1 }
  0x78   : > { %16336 = vst [vmem:[#allocation20_spill] sm:$0xff] %v6499_v34  ;;  %v6502_v35 = vld [vmem:[%s6442_s17 + $0x180] sm:$0xff]  ;;  %v6551_v51 = vmul.f32 %v602_v17, %v6499_v34 }
  0x79   : > { %16337 = vst [vmem:[#allocation21_spill] sm:$0xff] %v6502_v35  ;;  %v6517_v40 = vld [vmem:[%s6442_s17 + $0x1a0] sm:$0xff]  ;;  %v6554_v52 = vmul.f32 %v602_v17, %v6502_v35  ;;  %v665_v18 = vrot.slane %v6502_v35, 1 }
  0x7a   : > { %16338 = vst [vmem:[#allocation22_spill] sm:$0xff] %v6517_v40  ;;  %v6520_v41 = vld [vmem:[%s6442_s17 + $0x1c0] sm:$0xff]  ;;  %v6557_v53 = vmul.f32 %v602_v17, %v6517_v40  ;;  %v679_v35 = vrot.slane %v6517_v40, 1  ;;  %v16369_v40 = vrot.slane %v6448_v13, 1 }
  0x7b   : > { %16339 = vst [vmem:[#allocation23_spill] sm:$0xff] %v6520_v41  ;;  %v6523_v42 = vld [vmem:[%s6442_s17 + $0x1e0] sm:$0xff]  ;;  %16344 = vst [vmem:[#allocation28_spill] sm:$0xff] %v6554_v52  ;;  %v6569_v57 = vmul.f32 %v602_v17, %v6520_v41  ;;  %v666_v10 = vrot.slane %v6520_v41, 1 }
  0x7c   : > { %16340 = vst [vmem:[#allocation24_spill] sm:$0xff] %v6523_v42  ;;  %v6539_v47 = vld [vmem:[%s6442_s17 + $0x200] sm:$0xff]  ;;  %16345 = vst [vmem:[#allocation29_spill] sm:$0xff] %v6557_v53  ;;  %v6572_v58 = vmul.f32 %v602_v17, %v6523_v42  ;;  %v680_v41 = vrot.slane %v6523_v42, 1  ;;  %v16370_v42 = vrot.slane %v6445_v12, 1  ;;  %v16393_v53 = vrot.slane %v6454_v15, 1 }
  0x7d   : > { %16341 = vst [vmem:[#allocation25_spill] sm:$0xff] %v6539_v47  ;;  %v6542_v48 = vld [vmem:[%s6442_s17 + $0x220] sm:$0xff]  ;;  %16349 = vst [vmem:[#allocation33_spill] sm:$0xff] %v6569_v57  ;;  %v6575_v59 = vmul.f32 %v602_v17, %v6539_v47  ;;  %v667_v11 = vrot.slane %v6539_v47, 1 }
  0x7e   : > { %16342 = vst [vmem:[#allocation26_spill] sm:$0xff] %v6542_v48  ;;  %v6545_v49 = vld [vmem:[%s6442_s17 + $0x240] sm:$0xff]  ;;  %16350 = vst [vmem:[#allocation34_spill] sm:$0xff] %v6572_v58  ;;  %v6578_v60 = vmul.f32 %v602_v17, %v6542_v48  ;;  %v681_v47 = vrot.slane %v6542_v48, 1  ;;  %v690_v48 = vsel %vm689_vm0, %v16370_v42, %v16369_v40  ;;  %v16391_v58 = vrot.slane %v6465_v19, 1 }
  0x7f   : > { %16343 = vst [vmem:[#allocation27_spill] sm:$0xff] %v6545_v49  ;;  %v6560_v54 = vld [vmem:[%s6442_s17 + $0x260] sm:$0xff]  ;;  %16351 = vst [vmem:[#allocation35_spill] sm:$0xff] %v6575_v59  ;;  %v6590_v0 = vmul.f32 %v602_v17, %v6545_v49  ;;  %v16390_v59 = vrot.slane %v6451_v14, 1 }
  0x80   : > { %16346 = vst [vmem:[#allocation30_spill] sm:$0xff] %v6560_v54  ;;  %v6563_v55 = vld [vmem:[%s6442_s17 + $0x280] sm:$0xff]  ;;  %16352 = vst [vmem:[#allocation36_spill] sm:$0xff] %v6578_v60  ;;  %v6593_v1 = vmul.f32 %v602_v17, %v6560_v54 }
  0x81   : > { %16347 = vst [vmem:[#allocation31_spill] sm:$0xff] %v6563_v55  ;;  %v6566_v56 = vld [vmem:[%s6442_s17 + $0x2a0] sm:$0xff]  ;;  %16356 = vst [vmem:[#allocation40_spill] sm:$0xff] %v6590_v0  ;;  %v6596_v2 = vmul.f32 %v602_v17, %v6563_v55  ;;  %v669_v27 = vrot.slane %v6563_v55, 1  ;;  %v16389_v0 = vrot.slane %v6448_v13, 1  ;;  %v6728_v57 = vsel %vm689_vm0, %v16391_v58, %v16390_v59 }
  0x82   : > { %16348 = vst [vmem:[#allocation32_spill] sm:$0xff] %v6566_v56  ;;  %v6581_v61 = vld [vmem:[%s6442_s17 + $0x2c0] sm:$0xff]  ;;  %16357 = vst [vmem:[#allocation41_spill] sm:$0xff] %v6593_v1  ;;  %v6599_v3 = vmul.f32 %v602_v17, %v6566_v56  ;;  %v683_v55 = vrot.slane %v6566_v56, 1  ;;  %v16372_v56 = vrot.slane %v6451_v14, 1  ;;  %v16388_v1 = vrot.slane %v6445_v12, 1 }
  0x83   : > { %16353 = vst [vmem:[#allocation37_spill] sm:$0xff] %v6581_v61  ;;  %v6584_v62 = vld [vmem:[%s6442_s17 + $0x2e0] sm:$0xff]  ;;  %16358 = vst [vmem:[#allocation42_spill] sm:$0xff] %v6596_v2  ;;  %v6611_v7 = vmul.f32 %v602_v17, %v6581_v61  ;;  %v16395_v12 = vrot.slane %v6457_v16, 1  ;;  %v6752_v59 = vsel %vm689_vm0, %v679_v35, %v665_v18 }
  0x84   : > { %16354 = vst [vmem:[#allocation38_spill] sm:$0xff] %v6584_v62  ;;  %v6587_v63 = vld [vmem:[%s6442_s17 + $0x300] sm:$0xff]  ;;  %16359 = vst [vmem:[#allocation43_spill] sm:$0xff] %v6599_v3  ;;  %v6614_v8 = vmul.f32 %v602_v17, %v6584_v62  ;;  %v6702_v33 = vsel %vm689_vm0, %v669_v27, %v683_v55  ;;  %v704_v60 = vsel %vm689_vm0, %v16389_v0, %v16388_v1 }
  0x85   : > { %16355 = vst [vmem:[#allocation39_spill] sm:$0xff] %v6587_v63  ;;  %v6602_v4 = vld [vmem:[%s6442_s17 + $0x320] sm:$0xff]  ;;  %16363 = vst [vmem:[#allocation47_spill] sm:$0xff] %v6611_v7  ;;  %v6617_v24 = vmul.f32 %v602_v17, %v6587_v63 }
  0x86   : > { %16360 = vst [vmem:[#allocation44_spill] sm:$0xff] %v6602_v4  ;;  %v6605_v5 = vld [vmem:[%s6442_s17 + $0x340] sm:$0xff]  ;;  %16364 = vst [vmem:[#allocation48_spill] sm:$0xff] %v6614_v8  ;;  %v6621_v22 = vmul.f32 %v602_v17, %v6602_v4  ;;  %v675_v8 = vrot.slane %v6469_v21, 1  ;;  %v671_v21 = vrot.slane %v6587_v63, 1 }
  0x87   : > { %16361 = vst [vmem:[#allocation45_spill] sm:$0xff] %v6605_v5  ;;  %v6608_v6 = vld [vmem:[%s6442_s17 + $0x360] sm:$0xff]  ;;  %16365 = vst [vmem:[#allocation49_spill] sm:$0xff] %v6617_v24  ;;  %v6624_v31 = vmul.f32 %v602_v17, %v6605_v5  ;;  %v668_v24 = vrot.slane %v6545_v49, 1  ;;  %v682_v49 = vrot.slane %v6560_v54, 1  ;;  %v16371_v54 = vrot.slane %v6465_v19, 1 }
  0x88   : > { %16362 = vst [vmem:[#allocation46_spill] sm:$0xff] %v6608_v6  ;;  %16366 = vst [vmem:[#allocation50_spill] sm:$0xff] %v6621_v22  ;;  %v6627_v20 = vmul.f32 %v602_v17, %v6608_v6  ;;  %v670_v22 = vrot.slane %v6581_v61, 1  ;;  %v677_v17 = vrot.slane %v6482_v28, 1  ;;  %v684_v61 = vrot.slane %v6584_v62, 1 }
  0x89   : > { %16367 = vst [vmem:[#allocation51_spill] sm:$0xff] %v6624_v31  ;;  %v676_v31 = vrot.slane %v6476_v26, 1  ;;  %v672_v26 = vrot.slane %v6605_v5, 1  ;;  %v685_v28 = vrot.slane %v6602_v4, 1  ;;  %v6662_v62 = vsel %vm689_vm0, %v16372_v56, %v16371_v54  ;;  %16384 = vst [vmem:[#allocation62_spill] sm:$0xff] %v6702_v33 }
  0x8a   : > { %16368 = vst [vmem:[#allocation52_spill] sm:$0xff] %v6627_v20  ;;  %v678_v20 = vrot.slane %v6499_v34, 1  ;;  %v686_v34 = vrot.slane %v6608_v6, 1  ;;  %16373 = vst [vmem:[#allocation53_spill] sm:$0xff] %v6662_v62  ;;  %v16374_v5 = vrot.slane %v6454_v15, 1  ;;  %v16376_v4 = vrot.slane %v6457_v16, 1 }
  0x8b   : > { %v6678_v40 = vsel %vm689_vm0, %v663_v23, %v677_v17  ;;  %v6686_v54 = vsel %vm689_vm0, %v665_v18, %v679_v35  ;;  %v6690_v56 = vsel %vm689_vm0, %v666_v10, %v680_v41  ;;  %v6706_v7 = vsel %vm689_vm0, %v670_v22, %v684_v61  ;;  %16392 = vst [vmem:[#allocation66_spill] sm:$0xff] %v6728_v57 }
  0x8c   : > { %v6668_v6 = vsel %vm689_vm0, %v16374_v5, %v675_v8  ;;  %v6674_v63 = vsel %vm689_vm0, %v16376_v4, %v676_v31  ;;  %16378 = vst [vmem:[#allocation56_spill] sm:$0xff] %v6678_v40  ;;  %v6682_v42 = vsel %vm689_vm0, %v664_v25, %v678_v20  ;;  %16380 = vst [vmem:[#allocation58_spill] sm:$0xff] %v6686_v54 }
  0x8d   : > { %16375 = vst [vmem:[#allocation54_spill] sm:$0xff] %v6668_v6  ;;  %16377 = vst [vmem:[#allocation55_spill] sm:$0xff] %v6674_v63  ;;  %v6694_v4 = vsel %vm689_vm0, %v667_v11, %v681_v47  ;;  %v6698_v5 = vsel %vm689_vm0, %v668_v24, %v682_v49  ;;  %v6710_v3 = vsel %vm689_vm0, %v671_v21, %v685_v28 }
  0x8e   : > { %16379 = vst [vmem:[#allocation57_spill] sm:$0xff] %v6682_v42  ;;  %16381 = vst [vmem:[#allocation59_spill] sm:$0xff] %v6690_v56  ;;  %v6714_v2 = vsel %vm689_vm0, %v672_v26, %v686_v34  ;;  %v6734_v52 = vsel %vm689_vm0, %v675_v8, %v16393_v53  ;;  %v6740_v13 = vsel %vm689_vm0, %v676_v31, %v16395_v12 }
  0x8f   : > { %16382 = vst [vmem:[#allocation60_spill] sm:$0xff] %v6694_v4  ;;  %16383 = vst [vmem:[#allocation61_spill] sm:$0xff] %v6698_v5  ;;  %v6744_v0 = vsel %vm689_vm0, %v677_v17, %v663_v23  ;;  %v6748_v58 = vsel %vm689_vm0, %v678_v20, %v664_v25  ;;  %v6756_v53 = vsel %vm689_vm0, %v680_v41, %v666_v10 }
  0x90   : > { %16385 = vst [vmem:[#allocation63_spill] sm:$0xff] %v6706_v7  ;;  %16386 = vst [vmem:[#allocation64_spill] sm:$0xff] %v6710_v3  ;;  %v6760_v12 = vsel %vm689_vm0, %v681_v47, %v667_v11  ;;  %v6764_v23 = vsel %vm689_vm0, %v682_v49, %v668_v24  ;;  %v6768_v20 = vsel %vm689_vm0, %v683_v55, %v669_v27 }
  0x91   : > { %16387 = vst [vmem:[#allocation65_spill] sm:$0xff] %v6714_v2  ;;  %16394 = vst [vmem:[#allocation67_spill] sm:$0xff] %v6734_v52  ;;  %v6772_v18 = vsel %vm689_vm0, %v684_v61, %v670_v22  ;;  %v6776_v10 = vsel %vm689_vm0, %v685_v28, %v671_v21  ;;  %v6780_v11 = vsel %vm689_vm0, %v686_v34, %v672_v26 }
  0x92   : > { %16396 = vst [vmem:[#allocation68_spill] sm:$0xff] %v6740_v13  ;;  %16397 = vst [vmem:[#allocation69_spill] sm:$0xff] %v6744_v0  ;;  %v722_v25 = vmul.f32 %v6493_v32, %v690_v48  ;;  %v723_v24 = vmul.f32 %v6493_v32, %v704_v60  ;;  %v724_v27 = vmul.f32 %v6493_v32, %v6662_v62 }
  0x93   : > { %16398 = vst [vmem:[#allocation70_spill] sm:$0xff] %v6748_v58  ;;  %16399 = vst [vmem:[#allocation71_spill] sm:$0xff] %v6752_v59  ;;  %v725_v31 = vmul.f32 %v6493_v32, %v6728_v57  ;;  %v726_v22 = vmul.f32 %v6493_v32, %v6668_v6  ;;  %v727_v21 = vmul.f32 %v6493_v32, %v6734_v52  ;;  %v16447_v52 = vld [vmem:[#allocation15_spill] sm:$0xff]  ;;  %v16448_v57 = vld [vmem:[#allocation16_spill] sm:$0xff] }
  0x94   : > { %16400 = vst [vmem:[#allocation72_spill] sm:$0xff] %v6756_v53  ;;  %16401 = vst [vmem:[#allocation73_spill] sm:$0xff] %v6760_v12  ;;  %v728_v26 = vmul.f32 %v6493_v32, %v6674_v63  ;;  %v729_v28 = vmul.f32 %v6493_v32, %v6740_v13  ;;  %v730_v34 = vmul.f32 %v6493_v32, %v6678_v40  ;;  %v16446_v40 = vld [vmem:[#allocation9_spill] sm:$0xff]  ;;  %v793_v63 = vrot.slane %v6465_v19, 2 }
  0x95   : > { %16402 = vst [vmem:[#allocation74_spill] sm:$0xff] %v6764_v23  ;;  %16403 = vst [vmem:[#allocation75_spill] sm:$0xff] %v6768_v20  ;;  %v731_v35 = vmul.f32 %v6493_v32, %v6744_v0  ;;  %v732_v41 = vmul.f32 %v6493_v32, %v6682_v42  ;;  %v733_v47 = vmul.f32 %v6493_v32, %v6748_v58  ;;  %v16445_v42 = vld [vmem:[#allocation45_spill] sm:$0xff]  ;;  %v792_v13 = vrot.slane %v16446_v40, 2 }
  0x96   : > { %16404 = vst [vmem:[#allocation76_spill] sm:$0xff] %v6772_v18  ;;  %16405 = vst [vmem:[#allocation77_spill] sm:$0xff] %v6776_v10  ;;  %v734_v48 = vmul.f32 %v6493_v32, %v6686_v54  ;;  %v735_v49 = vmul.f32 %v6493_v32, %v6752_v59  ;;  %v736_v55 = vmul.f32 %v6493_v32, %v6690_v56  ;;  %v16444_v54 = vld [vmem:[#allocation39_spill] sm:$0xff]  ;;  %v791_v0 = vrot.slane %v16445_v42, 2 }
  0x97   : > { %16406 = vst [vmem:[#allocation78_spill] sm:$0xff] %v6780_v11  ;;  %v737_v60 = vmul.f32 %v6493_v32, %v6756_v53  ;;  %v738_v61 = vmul.f32 %v6493_v32, %v6694_v4  ;;  %v739_v1 = vmul.f32 %v6493_v32, %v6760_v12  ;;  %v740_v8 = vmul.f32 %v6493_v32, %v6698_v5 }
  0x98   : > { %v741_v17 = vmul.f32 %v6493_v32, %v6764_v23  ;;  %v742_v59 = vmul.f32 %v6493_v32, %v6702_v33  ;;  %v743_v56 = vmul.f32 %v6493_v32, %v6768_v20  ;;  %v744_v53 = vmul.f32 %v6493_v32, %v6706_v7 }
  0x99   : > { %v745_v4 = vmul.f32 %v6493_v32, %v6772_v18  ;;  %v746_v12 = vmul.f32 %v6493_v32, %v6710_v3  ;;  %v747_v5 = vmul.f32 %v6493_v32, %v6776_v10  ;;  %v748_v23 = vmul.f32 %v6493_v32, %v6714_v2 }
  0x9a   : > { %v749_v33 = vmul.f32 %v6493_v32, %v6780_v11  ;;  %v6837_v20 = vadd.f32 %v722_v25, %v6485_v29  ;;  %v6840_v7 = vadd.f32 %v723_v24, %v6488_v30  ;;  %v6843_v18 = vadd.f32 %v724_v27, %v6505_v36 }
  0x9b   : > { %v6846_v3 = vadd.f32 %v725_v31, %v6508_v37  ;;  %v6849_v10 = vadd.f32 %v726_v22, %v6511_v38  ;;  %v6852_v2 = vadd.f32 %v727_v21, %v6514_v39  ;;  %v6855_v32 = vadd.f32 %v728_v26, %v6526_v43  ;;  %v16407_v39 = vld [vmem:[#allocation28_spill] sm:$0xff]  ;;  %v16408_v43 = vld [vmem:[#allocation29_spill] sm:$0xff] }
  0x9c   : > { %v6858_v29 = vadd.f32 %v729_v28, %v6529_v44  ;;  %v6861_v30 = vadd.f32 %v730_v34, %v6532_v45  ;;  %v6864_v36 = vadd.f32 %v731_v35, %v6535_v46  ;;  %v6867_v37 = vadd.f32 %v732_v41, %v6548_v50  ;;  %v16409_v44 = vld [vmem:[#allocation33_spill] sm:$0xff]  ;;  %v16411_v45 = vld [vmem:[#allocation34_spill] sm:$0xff]  ;;  %v16413_v46 = vld [vmem:[#allocation35_spill] sm:$0xff] }
  0x9d   : > { %v6870_v38 = vadd.f32 %v733_v47, %v6551_v51  ;;  %v6873_v25 = vadd.f32 %v734_v48, %v16407_v39  ;;  %v6876_v24 = vadd.f32 %v735_v49, %v16408_v43  ;;  %v6879_v27 = vadd.f32 %v736_v55, %v16409_v44  ;;  %v16415_v50 = vld [vmem:[#allocation36_spill] sm:$0xff]  ;;  %v16419_v28 = vld [vmem:[#allocation41_spill] sm:$0xff]  ;;  %v16421_v35 = vld [vmem:[#allocation42_spill] sm:$0xff] }
  0x9e   : > { %v6882_v31 = vadd.f32 %v737_v60, %v16411_v45  ;;  %v6885_v22 = vadd.f32 %v738_v61, %v16413_v46  ;;  %v6888_v21 = vadd.f32 %v739_v1, %v16415_v50  ;;  %v16417_v51 = vld [vmem:[#allocation40_spill] sm:$0xff]  ;;  %v6894_v34 = vadd.f32 %v741_v17, %v16419_v28  ;;  %v16423_v47 = vld [vmem:[#allocation43_spill] sm:$0xff]  ;;  %v16429_v1 = vld [vmem:[#allocation49_spill] sm:$0xff] }
  0x9f   : > { %16410 = vst [vmem:[#allocation28_spill] sm:$0xff] %v6879_v27  ;;  %v6891_v26 = vadd.f32 %v740_v8, %v16417_v51  ;;  %v6897_v41 = vadd.f32 %v742_v59, %v16421_v35  ;;  %v6900_v48 = vadd.f32 %v743_v56, %v16423_v47  ;;  %v16425_v49 = vld [vmem:[#allocation47_spill] sm:$0xff]  ;;  %v16427_v60 = vld [vmem:[#allocation48_spill] sm:$0xff]  ;;  %v6909_v39 = vadd.f32 %v746_v12, %v16429_v1  ;;  %v16431_v8 = vld [vmem:[#allocation50_spill] sm:$0xff] }
  0xa0   : > { %16412 = vst [vmem:[#allocation29_spill] sm:$0xff] %v6882_v31  ;;  %16414 = vst [vmem:[#allocation33_spill] sm:$0xff] %v6885_v22  ;;  %v6903_v55 = vadd.f32 %v744_v53, %v16425_v49  ;;  %v6906_v61 = vadd.f32 %v745_v4, %v16427_v60  ;;  %v6912_v43 = vadd.f32 %v747_v5, %v16431_v8  ;;  %v16433_v17 = vld [vmem:[#allocation51_spill] sm:$0xff]  ;;  %v16435_v59 = vld [vmem:[#allocation8_spill] sm:$0xff]  ;;  %v779_v56 = vrot.slane %v6451_v14, 2 }
  0xa1   : > { %16416 = vst [vmem:[#allocation34_spill] sm:$0xff] %v6888_v21  ;;  %16418 = vst [vmem:[#allocation35_spill] sm:$0xff] %v6891_v26  ;;  %v6915_v44 = vadd.f32 %v748_v23, %v16433_v17  ;;  %v778_v45 = vrot.slane %v16435_v59, 2  ;;  %v780_v46 = vrot.slane %v6454_v15, 2  ;;  %v781_v53 = vrot.slane %v6457_v16, 2  ;;  %v16436_v50 = vld [vmem:[#allocation17_spill] sm:$0xff] }
  0xa2   : > { %16420 = vst [vmem:[#allocation36_spill] sm:$0xff] %v6894_v34  ;;  %16422 = vst [vmem:[#allocation40_spill] sm:$0xff] %v6897_v41  ;;  %v782_v4 = vrot.slane %v16436_v50, 2  ;;  %v16437_v51 = vld [vmem:[#allocation19_spill] sm:$0xff]  ;;  %v16438_v12 = vld [vmem:[#allocation21_spill] sm:$0xff]  ;;  %v790_v58 = vrot.slane %v16444_v54, 2  ;;  %v7010_v26 = vsel %vm806_vm1, %v793_v63, %v779_v56 }
  0xa3   : > { %16424 = vst [vmem:[#allocation41_spill] sm:$0xff] %v6900_v48  ;;  %16426 = vst [vmem:[#allocation42_spill] sm:$0xff] %v6903_v55  ;;  %v783_v28 = vrot.slane %v16437_v51, 2  ;;  %v784_v35 = vrot.slane %v16438_v12, 2  ;;  %v16439_v47 = vld [vmem:[#allocation23_spill] sm:$0xff]  ;;  %v16440_v49 = vld [vmem:[#allocation25_spill] sm:$0xff]  ;;  %v821_v34 = vsel %vm806_vm1, %v792_v13, %v778_v45 }
  0xa4   : > { %16428 = vst [vmem:[#allocation43_spill] sm:$0xff] %v6906_v61  ;;  %16430 = vst [vmem:[#allocation47_spill] sm:$0xff] %v6909_v39  ;;  %v785_v5 = vrot.slane %v16439_v47, 2  ;;  %v786_v60 = vrot.slane %v16440_v49, 2  ;;  %v16441_v23 = vld [vmem:[#allocation27_spill] sm:$0xff]  ;;  %v16443_v59 = vld [vmem:[#allocation37_spill] sm:$0xff] }
  0xa5   : > { %16432 = vst [vmem:[#allocation48_spill] sm:$0xff] %v6912_v43  ;;  %16434 = vst [vmem:[#allocation49_spill] sm:$0xff] %v6915_v44  ;;  %v787_v1 = vrot.slane %v16441_v23, 2  ;;  %v16442_v8 = vld [vmem:[#allocation31_spill] sm:$0xff]  ;;  %v789_v11 = vrot.slane %v16443_v59, 2  ;;  %v794_v6 = vrot.slane %v16447_v52, 2 }
  0xa6   : > { %v788_v17 = vrot.slane %v16442_v8, 2  ;;  %v795_v62 = vrot.slane %v16448_v57, 2  ;;  %v16449_v47 = vld [vmem:[#allocation18_spill] sm:$0xff]  ;;  %v16450_v12 = vld [vmem:[#allocation20_spill] sm:$0xff]  ;;  %16475 = vst [vmem:[#allocation89_spill] sm:$0xff] %v7010_v26 }
  0xa7   : > { %v796_v49 = vrot.slane %v16449_v47, 2  ;;  %v797_v23 = vrot.slane %v16450_v12, 2  ;;  %v16451_v8 = vld [vmem:[#allocation22_spill] sm:$0xff]  ;;  %v16452_v51 = vld [vmem:[#allocation24_spill] sm:$0xff]  ;;  %v7014_v21 = vsel %vm806_vm1, %v794_v6, %v780_v46 }
  0xa8   : > { %v798_v59 = vrot.slane %v16451_v8, 2  ;;  %v799_v54 = vrot.slane %v16452_v51, 2  ;;  %v16453_v50 = vld [vmem:[#allocation26_spill] sm:$0xff]  ;;  %v16455_v15 = vld [vmem:[#allocation32_spill] sm:$0xff]  ;;  %v807_v8 = vsel %vm806_vm1, %v778_v45, %v792_v13  ;;  %v6953_v51 = vsel %vm806_vm1, %v779_v56, %v793_v63  ;;  %16476 = vst [vmem:[#allocation90_spill] sm:$0xff] %v7014_v21  ;;  %v16481_v63 = vld [vmem:[#allocation7_spill] sm:$0xff] }
  0xa9   : > { %v800_v42 = vrot.slane %v16453_v50, 2  ;;  %v16454_v16 = vld [vmem:[#allocation30_spill] sm:$0xff]  ;;  %v802_v19 = vrot.slane %v16455_v15, 2  ;;  %v16457_v44 = vld [vmem:[#allocation44_spill] sm:$0xff]  ;;  %16461 = vst [vmem:[#allocation51_spill] sm:$0xff] %v6953_v51  ;;  %v7018_v22 = vsel %vm806_vm1, %v795_v62, %v781_v53  ;;  %v7022_v31 = vsel %vm806_vm1, %v796_v49, %v782_v4  ;;  %v7035_v45 = vld [vmem:[%s6442_s17 + $0x380] sm:$0xff] }
  0xaa   : > { %v801_v40 = vrot.slane %v16454_v16, 2  ;;  %v16456_v14 = vld [vmem:[#allocation38_spill] sm:$0xff]  ;;  %v804_v57 = vrot.slane %v16457_v44, 2  ;;  %v16459_v39 = vld [vmem:[#allocation52_spill] sm:$0xff]  ;;  %v6956_v16 = vsub.s32 2, %v6431_v9  ;;  %v6976_v44 = vsel %vm806_vm1, %v784_v35, %v798_v59  ;;  %16477 = vst [vmem:[#allocation91_spill] sm:$0xff] %v7018_v22 }
  0xab   : > { %v803_v52 = vrot.slane %v16456_v14, 2  ;;  %v16458_v43 = vld [vmem:[#allocation46_spill] sm:$0xff]  ;;  %v6947_v12 = vadd.f32 %v749_v33, %v16459_v39  ;;  %v6960_v14 = vsel %vm806_vm1, %v780_v46, %v794_v6  ;;  %v6968_v33 = vsel %vm806_vm1, %v782_v4, %v796_v49  ;;  %16467 = vst [vmem:[#allocation81_spill] sm:$0xff] %v6976_v44  ;;  %16478 = vst [vmem:[#allocation92_spill] sm:$0xff] %v7022_v31  ;;  %v7038_v56 = vld [vmem:[%s6442_s17 + $0x3a0] sm:$0xff] }
  0xac   : > { %v805_v47 = vrot.slane %v16458_v43, 2  ;;  %16462 = vst [vmem:[#allocation8_spill] sm:$0xff] %v6956_v16  ;;  %16463 = vst [vmem:[#allocation9_spill] sm:$0xff] %v6960_v14  ;;  %v6964_v43 = vsel %vm806_vm1, %v781_v53, %v795_v62  ;;  %v6972_v39 = vsel %vm806_vm1, %v783_v28, %v797_v23  ;;  %v6980_v15 = vsel %vm806_vm1, %v785_v5, %v799_v54 }
  0xad   : > { %16460 = vst [vmem:[#allocation50_spill] sm:$0xff] %v6947_v12  ;;  %16464 = vst [vmem:[#allocation52_spill] sm:$0xff] %v6964_v43  ;;  %v6984_v50 = vsel %vm806_vm1, %v786_v60, %v800_v42  ;;  %v6988_v12 = vsel %vm806_vm1, %v787_v1, %v801_v40  ;;  %v6992_v61 = vsel %vm806_vm1, %v788_v17, %v802_v19  ;;  %v7074_v49 = vsub.s32 4, %v6431_v9 }
  0xae   : > { %16465 = vst [vmem:[#allocation79_spill] sm:$0xff] %v6968_v33  ;;  %16466 = vst [vmem:[#allocation80_spill] sm:$0xff] %v6972_v39  ;;  %v6996_v55 = vsel %vm806_vm1, %v789_v11, %v803_v52  ;;  %v7000_v48 = vsel %vm806_vm1, %v790_v58, %v804_v57  ;;  %v7004_v41 = vsel %vm806_vm1, %v791_v0, %v805_v47 }
  0xaf   : > { %16468 = vst [vmem:[#allocation82_spill] sm:$0xff] %v6980_v15  ;;  %16469 = vst [vmem:[#allocation83_spill] sm:$0xff] %v6984_v50  ;;  %v7026_v27 = vsel %vm806_vm1, %v797_v23, %v783_v28  ;;  %v7030_v13 = vsel %vm806_vm1, %v798_v59, %v784_v35  ;;  %v838_v6 = vrot.slane %v16481_v63, %v6956_v16  ;;  %v7069_v35 = vsub.s32 3, %v6431_v9 }
  0xb0   : > { %16470 = vst [vmem:[#allocation84_spill] sm:$0xff] %v6988_v12  ;;  %16471 = vst [vmem:[#allocation85_spill] sm:$0xff] %v6992_v61  ;;  %v7042_v62 = vsel %vm806_vm1, %v799_v54, %v785_v5  ;;  %v7046_v46 = vsel %vm806_vm1, %v800_v42, %v786_v60  ;;  %v7050_v53 = vsel %vm806_vm1, %v801_v40, %v787_v1 }
  0xb1   : > { %16472 = vst [vmem:[#allocation86_spill] sm:$0xff] %v6996_v55  ;;  %16473 = vst [vmem:[#allocation87_spill] sm:$0xff] %v7000_v48  ;;  %v7054_v4 = vsel %vm806_vm1, %v802_v19, %v788_v17  ;;  %v7058_v28 = vsel %vm806_vm1, %v803_v52, %v789_v11  ;;  %v7062_v54 = vsel %vm806_vm1, %v804_v57, %v790_v58  ;;  %v1127_v57 = vrot.slane %v7038_v56, 2 }
  0xb2   : > { %16474 = vst [vmem:[#allocation88_spill] sm:$0xff] %v7004_v41  ;;  %16479 = vst [vmem:[#allocation93_spill] sm:$0xff] %v7026_v27  ;;  %v7066_v42 = vsel %vm806_vm1, %v805_v47, %v791_v0  ;;  %v839_v11 = vmul.f32 %v838_v6, %v807_v8  ;;  %v840_v60 = vmul.f32 %v838_v6, %v821_v34  ;;  %v7079_v58 = vsub.s32 5, %v6431_v9 }
  0xb3   : > { %16480 = vst [vmem:[#allocation94_spill] sm:$0xff] %v7030_v13  ;;  %16482 = vst [vmem:[#allocation95_spill] sm:$0xff] %v7035_v45  ;;  %v841_v0 = vmul.f32 %v838_v6, %v6953_v51  ;;  %v842_v47 = vmul.f32 %v838_v6, %v7010_v26  ;;  %v843_v23 = vmul.f32 %v838_v6, %v6960_v14  ;;  %v16540_v14 = vld [vmem:[#allocation27_spill] sm:$0xff]  ;;  %v16541_v26 = vld [vmem:[#allocation30_spill] sm:$0xff] }
  0xb4   : > { %16483 = vst [vmem:[#allocation96_spill] sm:$0xff] %v7038_v56  ;;  %16484 = vst [vmem:[#allocation97_spill] sm:$0xff] %v7042_v62  ;;  %v844_v1 = vmul.f32 %v838_v6, %v7014_v21  ;;  %v845_v17 = vmul.f32 %v838_v6, %v6964_v43  ;;  %v846_v59 = vmul.f32 %v838_v6, %v7018_v22  ;;  %v16543_v51 = vld [vmem:[#allocation32_spill] sm:$0xff] }
  0xb5   : > { %16485 = vst [vmem:[#allocation98_spill] sm:$0xff] %v7046_v46  ;;  %16486 = vst [vmem:[#allocation99_spill] sm:$0xff] %v7050_v53  ;;  %v847_v8 = vmul.f32 %v838_v6, %v6968_v33  ;;  %v848_v34 = vmul.f32 %v838_v6, %v7022_v31  ;;  %v849_v40 = vmul.f32 %v838_v6, %v6972_v39 }
  0xb6   : > { %16487 = vst [vmem:[#allocation100_spill] sm:$0xff] %v7054_v4  ;;  %16488 = vst [vmem:[#allocation101_spill] sm:$0xff] %v7058_v28  ;;  %v850_v52 = vmul.f32 %v838_v6, %v7026_v27  ;;  %v851_v5 = vmul.f32 %v838_v6, %v6976_v44  ;;  %v852_v19 = vmul.f32 %v838_v6, %v7030_v13 }
  0xb7   : > { %16489 = vst [vmem:[#allocation102_spill] sm:$0xff] %v7062_v54  ;;  %16490 = vst [vmem:[#allocation103_spill] sm:$0xff] %v7066_v42  ;;  %v853_v16 = vmul.f32 %v838_v6, %v6980_v15  ;;  %v854_v21 = vmul.f32 %v838_v6, %v7042_v62  ;;  %v855_v43 = vmul.f32 %v838_v6, %v6984_v50 }
  0xb8   : > { %16491 = vst [vmem:[#allocation104_spill] sm:$0xff] %v7069_v35  ;;  %16492 = vst [vmem:[#allocation105_spill] sm:$0xff] %v7074_v49  ;;  %v856_v22 = vmul.f32 %v838_v6, %v7046_v46  ;;  %v857_v33 = vmul.f32 %v838_v6, %v6988_v12  ;;  %v858_v31 = vmul.f32 %v838_v6, %v7050_v53 }
  0xb9   : > { %16493 = vst [vmem:[#allocation106_spill] sm:$0xff] %v7079_v58  ;;  %v859_v39 = vmul.f32 %v838_v6, %v6992_v61  ;;  %v860_v27 = vmul.f32 %v838_v6, %v7054_v4  ;;  %v861_v44 = vmul.f32 %v838_v6, %v6996_v55  ;;  %v862_v13 = vmul.f32 %v838_v6, %v7058_v28  ;;  %v16538_v28 = vld [vmem:[#allocation25_spill] sm:$0xff]  ;;  %v16539_v61 = vld [vmem:[#allocation26_spill] sm:$0xff] }
  0xba   : > { %v863_v15 = vmul.f32 %v838_v6, %v7000_v48  ;;  %v864_v62 = vmul.f32 %v838_v6, %v7062_v54  ;;  %v865_v50 = vmul.f32 %v838_v6, %v7004_v41  ;;  %v866_v46 = vmul.f32 %v838_v6, %v7066_v42  ;;  %v16536_v42 = vld [vmem:[#allocation23_spill] sm:$0xff]  ;;  %v16537_v41 = vld [vmem:[#allocation24_spill] sm:$0xff] }
  0xbb   : > { %v7108_v12 = vadd.f32 %v839_v11, %v6837_v20  ;;  %v7111_v53 = vadd.f32 %v840_v60, %v6840_v7  ;;  %v7114_v4 = vadd.f32 %v841_v0, %v6843_v18  ;;  %v7117_v55 = vadd.f32 %v842_v47, %v6846_v3 }
  0xbc   : > { %v7120_v48 = vadd.f32 %v843_v23, %v6849_v10  ;;  %v7123_v54 = vadd.f32 %v844_v1, %v6852_v2  ;;  %v7126_v6 = vadd.f32 %v845_v17, %v6855_v32  ;;  %v7129_v20 = vadd.f32 %v846_v59, %v6858_v29  ;;  %v16494_v29 = vld [vmem:[#allocation28_spill] sm:$0xff] }
  0xbd   : > { %v7132_v7 = vadd.f32 %v847_v8, %v6861_v30  ;;  %v7135_v18 = vadd.f32 %v848_v34, %v6864_v36  ;;  %v7138_v3 = vadd.f32 %v849_v40, %v6867_v37  ;;  %v7141_v10 = vadd.f32 %v850_v52, %v6870_v38  ;;  %v16495_v30 = vld [vmem:[#allocation29_spill] sm:$0xff]  ;;  %v16497_v37 = vld [vmem:[#allocation34_spill] sm:$0xff]  ;;  %v16498_v38 = vld [vmem:[#allocation35_spill] sm:$0xff] }
  0xbe   : > { %v7144_v2 = vadd.f32 %v851_v5, %v6873_v25  ;;  %v7147_v32 = vadd.f32 %v852_v19, %v6876_v24  ;;  %v7150_v11 = vadd.f32 %v853_v16, %v16494_v29  ;;  %v7153_v60 = vadd.f32 %v854_v21, %v16495_v30  ;;  %v16496_v36 = vld [vmem:[#allocation33_spill] sm:$0xff]  ;;  %v16499_v25 = vld [vmem:[#allocation36_spill] sm:$0xff]  ;;  %v16509_v40 = vld [vmem:[#allocation50_spill] sm:$0xff] }
  0xbf   : > { %v7156_v0 = vadd.f32 %v855_v43, %v16496_v36  ;;  %v7159_v47 = vadd.f32 %v856_v22, %v16497_v37  ;;  %v7162_v52 = vadd.f32 %v857_v33, %v16498_v38  ;;  %v7165_v5 = vadd.f32 %v858_v31, %v16499_v25  ;;  %v16500_v24 = vld [vmem:[#allocation40_spill] sm:$0xff]  ;;  %v16501_v21 = vld [vmem:[#allocation41_spill] sm:$0xff]  ;;  %v16502_v43 = vld [vmem:[#allocation42_spill] sm:$0xff] }
  0xc0   : > { %v7168_v19 = vadd.f32 %v859_v39, %v16500_v24  ;;  %v927_v16 = vrot.slane %v16481_v63, %v7069_v35  ;;  %v7173_v23 = vadd.f32 %v860_v27, %v16501_v21  ;;  %v7176_v1 = vadd.f32 %v861_v44, %v16502_v43  ;;  %v16503_v22 = vld [vmem:[#allocation43_spill] sm:$0xff]  ;;  %v16505_v31 = vld [vmem:[#allocation48_spill] sm:$0xff]  ;;  %v16507_v39 = vld [vmem:[#allocation49_spill] sm:$0xff] }
  0xc1   : > { %v7179_v17 = vadd.f32 %v862_v13, %v16503_v22  ;;  %v16504_v33 = vld [vmem:[#allocation47_spill] sm:$0xff]  ;;  %v7185_v8 = vadd.f32 %v864_v62, %v16505_v31  ;;  %v7188_v34 = vadd.f32 %v865_v50, %v16507_v39  ;;  %v7191_v29 = vadd.f32 %v866_v46, %v16509_v40  ;;  %v16522_v25 = vld [vmem:[#allocation10_spill] sm:$0xff] }
  0xc2   : > { %v7182_v59 = vadd.f32 %v863_v15, %v16504_v33  ;;  %v16511_v27 = vrot.slane %v7038_v56, 1  ;;  %v16512_v44 = vrot.slane %v7035_v45, 1  ;;  %v7211_v50 = vrot.slane %v16481_v63, %v7074_v49  ;;  %v16523_v21 = vld [vmem:[#allocation14_spill] sm:$0xff]  ;;  %v16526_v31 = vld [vmem:[#allocation11_spill] sm:$0xff] }
  0xc3   : > { %16506 = vst [vmem:[#allocation28_spill] sm:$0xff] %v7185_v8  ;;  %16508 = vst [vmem:[#allocation29_spill] sm:$0xff] %v7188_v34  ;;  %v16518_v46 = vrot.slane %v7035_v45, 2  ;;  %v928_v24 = vmul.f32 %v927_v16, %v16522_v25  ;;  %v929_v43 = vmul.f32 %v927_v16, %v16523_v21  ;;  %v7229_v22 = vrot.slane %v16481_v63, %v7079_v58  ;;  %v16527_v40 = vld [vmem:[#allocation15_spill] sm:$0xff]  ;;  %v16531_v25 = vld [vmem:[#allocation18_spill] sm:$0xff] }
  0xc4   : > { %16510 = vst [vmem:[#allocation33_spill] sm:$0xff] %v7191_v29  ;;  %v7199_v13 = vsel %vm689_vm0, %v16512_v44, %v16511_v27  ;;  %v16514_v15 = vmov %v16512_v44  ;;  %v16515_v30 = vmov %v16511_v27  ;;  %16517 = vst [vmem:[#allocation36_spill] sm:$0xff] %v7211_v50  ;;  %v7232_v33 = vsub.s32 6, %v6431_v9  ;;  %v16528_v44 = vld [vmem:[#allocation12_spill] sm:$0xff]  ;;  %v16532_v21 = vld [vmem:[#allocation19_spill] sm:$0xff] }
  0xc5   : > { %16513 = vst [vmem:[#allocation34_spill] sm:$0xff] %v7199_v13  ;;  %v7207_v62 = vsel %vm689_vm0, %v16515_v30, %v16514_v15  ;;  %v7217_v36 = vsel %vm806_vm1, %v16518_v46, %v1127_v57  ;;  %v16520_v37 = vmov %v16518_v46  ;;  %16524 = vst [vmem:[#allocation42_spill] sm:$0xff] %v7229_v22  ;;  %v930_v39 = vmul.f32 %v927_v16, %v16526_v31  ;;  %v16529_v30 = vld [vmem:[#allocation16_spill] sm:$0xff]  ;;  %v16530_v46 = vld [vmem:[#allocation17_spill] sm:$0xff] }
  0xc6   : > { %16516 = vst [vmem:[#allocation35_spill] sm:$0xff] %v7207_v62  ;;  %16519 = vst [vmem:[#allocation40_spill] sm:$0xff] %v7217_v36  ;;  %v7223_v38 = vsel %vm806_vm1, %v1127_v57, %v16520_v37  ;;  %v931_v27 = vmul.f32 %v927_v16, %v16527_v40  ;;  %v932_v15 = vmul.f32 %v927_v16, %v16528_v44  ;;  %v16534_v63 = vld [vmem:[#allocation21_spill] sm:$0xff]  ;;  %v16535_v9 = vld [vmem:[#allocation22_spill] sm:$0xff] }
  0xc7   : > { %16521 = vst [vmem:[#allocation41_spill] sm:$0xff] %v7223_v38  ;;  %16525 = vst [vmem:[#allocation43_spill] sm:$0xff] %v7232_v33  ;;  %v933_v57 = vmul.f32 %v927_v16, %v16529_v30  ;;  %v934_v37 = vmul.f32 %v927_v16, %v16530_v46  ;;  %v935_v49 = vmul.f32 %v927_v16, %v16531_v25  ;;  %v16533_v38 = vld [vmem:[#allocation20_spill] sm:$0xff]  ;;  %v16542_v22 = vld [vmem:[#allocation31_spill] sm:$0xff] }
  0xc8   : > { %v936_v35 = vmul.f32 %v927_v16, %v16532_v21  ;;  %v937_v58 = vmul.f32 %v927_v16, %v16533_v38  ;;  %v938_v36 = vmul.f32 %v927_v16, %v16534_v63  ;;  %v939_v33 = vmul.f32 %v927_v16, %v16535_v9  ;;  %v16544_v62 = vld [vmem:[#allocation37_spill] sm:$0xff]  ;;  %v16545_v13 = vld [vmem:[#allocation38_spill] sm:$0xff]  ;;  %v16546_v50 = vld [vmem:[#allocation39_spill] sm:$0xff] }
  0xc9   : > { %v940_v31 = vmul.f32 %v927_v16, %v16536_v42  ;;  %v941_v40 = vmul.f32 %v927_v16, %v16537_v41  ;;  %v942_v44 = vmul.f32 %v927_v16, %v16538_v28  ;;  %v943_v30 = vmul.f32 %v927_v16, %v16539_v61  ;;  %v16547_v29 = vld [vmem:[#allocation44_spill] sm:$0xff]  ;;  %v16548_v34 = vld [vmem:[#allocation45_spill] sm:$0xff]  ;;  %v16549_v8 = vld [vmem:[#allocation46_spill] sm:$0xff] }
  0xca   : > { %v944_v46 = vmul.f32 %v927_v16, %v16540_v14  ;;  %v945_v25 = vmul.f32 %v927_v16, %v16541_v26  ;;  %v946_v21 = vmul.f32 %v927_v16, %v16542_v22  ;;  %v947_v38 = vmul.f32 %v927_v16, %v16543_v51 }
  0xcb   : > { %v948_v63 = vmul.f32 %v927_v16, %v16544_v62  ;;  %v949_v9 = vmul.f32 %v927_v16, %v16545_v13  ;;  %v950_v42 = vmul.f32 %v927_v16, %v16546_v50  ;;  %v951_v41 = vmul.f32 %v927_v16, %v16547_v29 }
  0xcc   : > { %v952_v28 = vmul.f32 %v927_v16, %v16548_v34  ;;  %v953_v61 = vmul.f32 %v927_v16, %v16549_v8  ;;  %v954_v14 = vmul.f32 %v7035_v45, %v927_v16  ;;  %v955_v26 = vmul.f32 %v7038_v56, %v927_v16 }
  0xcd   : > { %v956_v22 = vadd.f32 %v928_v24, %v7108_v12  ;;  %v957_v51 = vadd.f32 %v929_v43, %v7111_v53  ;;  %v958_v62 = vadd.f32 %v930_v39, %v7114_v4  ;;  %v959_v13 = vadd.f32 %v931_v27, %v7117_v55  ;;  %v16556_v43 = vld [vmem:[#allocation54_spill] sm:$0xff]  ;;  %v16559_v39 = vld [vmem:[#allocation68_spill] sm:$0xff]  ;;  %v16581_v56 = vld [vmem:[#allocation35_spill] sm:$0xff] }
  0xce   : > { %v960_v50 = vadd.f32 %v932_v15, %v7120_v48  ;;  %v961_v29 = vadd.f32 %v933_v57, %v7123_v54  ;;  %v962_v34 = vadd.f32 %v934_v37, %v7126_v6  ;;  %v963_v8 = vadd.f32 %v935_v49, %v7129_v20  ;;  %v16560_v15 = vld [vmem:[#allocation56_spill] sm:$0xff]  ;;  %v16561_v37 = vld [vmem:[#allocation69_spill] sm:$0xff] }
  0xcf   : > { %v964_v45 = vadd.f32 %v936_v35, %v7132_v7  ;;  %v965_v16 = vadd.f32 %v937_v58, %v7135_v18  ;;  %v966_v12 = vadd.f32 %v938_v36, %v7138_v3  ;;  %v967_v53 = vadd.f32 %v939_v33, %v7141_v10  ;;  %v16553_v36 = vld [vmem:[#allocation53_spill] sm:$0xff]  ;;  %v16558_v33 = vld [vmem:[#allocation55_spill] sm:$0xff] }
  0xd0   : > { %v968_v4 = vadd.f32 %v940_v31, %v7144_v2  ;;  %v969_v55 = vadd.f32 %v941_v40, %v7147_v32  ;;  %v970_v48 = vadd.f32 %v942_v44, %v7150_v11  ;;  %v971_v54 = vadd.f32 %v943_v30, %v7153_v60  ;;  %v16550_v2 = vld [vmem:[#allocation28_spill] sm:$0xff]  ;;  %v16551_v11 = vld [vmem:[#allocation29_spill] sm:$0xff]  ;;  %v16563_v30 = vld [vmem:[#allocation70_spill] sm:$0xff] }
  0xd1   : > { %v972_v6 = vadd.f32 %v944_v46, %v7156_v0  ;;  %v973_v49 = vadd.f32 %v945_v25, %v7159_v47  ;;  %v974_v35 = vadd.f32 %v946_v21, %v7162_v52  ;;  %v975_v58 = vadd.f32 %v947_v38, %v7165_v5  ;;  %v16552_v0 = vld [vmem:[#allocation33_spill] sm:$0xff]  ;;  %v16554_v52 = vld [vmem:[#allocation36_spill] sm:$0xff]  ;;  %v16555_v5 = vld [vmem:[#allocation66_spill] sm:$0xff] }
  0xd2   : > { %v976_v20 = vadd.f32 %v948_v63, %v7168_v19  ;;  %v977_v7 = vadd.f32 %v949_v9, %v7173_v23  ;;  %v978_v18 = vadd.f32 %v950_v42, %v7176_v1  ;;  %v979_v3 = vadd.f32 %v951_v41, %v7179_v17  ;;  %v16557_v1 = vld [vmem:[#allocation67_spill] sm:$0xff]  ;;  %v16562_v40 = vld [vmem:[#allocation57_spill] sm:$0xff]  ;;  %v16564_v25 = vld [vmem:[#allocation58_spill] sm:$0xff] }
  0xd3   : > { %v980_v10 = vadd.f32 %v952_v28, %v7182_v59  ;;  %v981_v32 = vadd.f32 %v953_v61, %v16550_v2  ;;  %v982_v60 = vadd.f32 %v954_v14, %v16551_v11  ;;  %v983_v47 = vadd.f32 %v955_v26, %v16552_v0  ;;  %v16565_v38 = vld [vmem:[#allocation71_spill] sm:$0xff]  ;;  %v16567_v41 = vld [vmem:[#allocation72_spill] sm:$0xff]  ;;  %v16569_v26 = vld [vmem:[#allocation73_spill] sm:$0xff] }
  0xd4   : > { %v1044_v24 = vmul.f32 %v16554_v52, %v16553_v36  ;;  %v1045_v19 = vmul.f32 %v16554_v52, %v16555_v5  ;;  %v1046_v23 = vmul.f32 %v16554_v52, %v16556_v43  ;;  %v1047_v17 = vmul.f32 %v16554_v52, %v16557_v1  ;;  %v16566_v9 = vld [vmem:[#allocation59_spill] sm:$0xff]  ;;  %v16568_v61 = vld [vmem:[#allocation60_spill] sm:$0xff]  ;;  %v16570_v11 = vld [vmem:[#allocation61_spill] sm:$0xff] }
  0xd5   : > { %v1048_v59 = vmul.f32 %v16554_v52, %v16558_v33  ;;  %v1049_v27 = vmul.f32 %v16554_v52, %v16559_v39  ;;  %v1050_v57 = vmul.f32 %v16554_v52, %v16560_v15  ;;  %v1051_v31 = vmul.f32 %v16554_v52, %v16561_v37  ;;  %v16571_v36 = vld [vmem:[#allocation74_spill] sm:$0xff]  ;;  %v16573_v33 = vld [vmem:[#allocation75_spill] sm:$0xff] }
  0xd6   : > { %v1052_v44 = vmul.f32 %v16554_v52, %v16562_v40  ;;  %v1053_v46 = vmul.f32 %v16554_v52, %v16563_v30  ;;  %v1054_v21 = vmul.f32 %v16554_v52, %v16564_v25  ;;  %v1055_v63 = vmul.f32 %v16554_v52, %v16565_v38  ;;  %v16572_v43 = vld [vmem:[#allocation62_spill] sm:$0xff]  ;;  %v16574_v15 = vld [vmem:[#allocation63_spill] sm:$0xff]  ;;  %v16575_v40 = vld [vmem:[#allocation76_spill] sm:$0xff] }
  0xd7   : > { %v1056_v42 = vmul.f32 %v16554_v52, %v16566_v9  ;;  %v1057_v28 = vmul.f32 %v16554_v52, %v16567_v41  ;;  %v1058_v14 = vmul.f32 %v16554_v52, %v16568_v61  ;;  %v1059_v2 = vmul.f32 %v16554_v52, %v16569_v26  ;;  %v16576_v25 = vld [vmem:[#allocation64_spill] sm:$0xff]  ;;  %v16577_v9 = vld [vmem:[#allocation77_spill] sm:$0xff] }
  0xd8   : > { %v1060_v0 = vmul.f32 %v16554_v52, %v16570_v11  ;;  %v1061_v5 = vmul.f32 %v16554_v52, %v16571_v36  ;;  %v1062_v1 = vmul.f32 %v16554_v52, %v16572_v43  ;;  %v1063_v39 = vmul.f32 %v16554_v52, %v16573_v33  ;;  %v16578_v61 = vld [vmem:[#allocation65_spill] sm:$0xff]  ;;  %v16579_v11 = vld [vmem:[#allocation78_spill] sm:$0xff] }
  0xd9   : > { %v1064_v37 = vmul.f32 %v16554_v52, %v16574_v15  ;;  %v1065_v30 = vmul.f32 %v16554_v52, %v16575_v40  ;;  %v1066_v38 = vmul.f32 %v16554_v52, %v16576_v25  ;;  %v1067_v41 = vmul.f32 %v16554_v52, %v16577_v9  ;;  %v16580_v43 = vld [vmem:[#allocation34_spill] sm:$0xff] }
  0xda   : > { %v1068_v26 = vmul.f32 %v16554_v52, %v16578_v61  ;;  %v1069_v36 = vmul.f32 %v16554_v52, %v16579_v11  ;;  %v1070_v33 = vmul.f32 %v16554_v52, %v16580_v43  ;;  %v1071_v15 = vmul.f32 %v16554_v52, %v16581_v56 }
  0xdb   : > { %v1072_v40 = vadd.f32 %v1044_v24, %v956_v22  ;;  %v1073_v25 = vadd.f32 %v1045_v19, %v957_v51  ;;  %v1074_v9 = vadd.f32 %v1046_v23, %v958_v62  ;;  %v1075_v61 = vadd.f32 %v1047_v17, %v959_v13 }
  0xdc   : > { %v1076_v11 = vadd.f32 %v1048_v59, %v960_v50  ;;  %v1077_v43 = vadd.f32 %v1049_v27, %v961_v29  ;;  %v1078_v52 = vadd.f32 %v1050_v57, %v962_v34  ;;  %v1079_v56 = vadd.f32 %v1051_v31, %v963_v8 }
  0xdd   : > { %v1080_v22 = vadd.f32 %v1052_v44, %v964_v45  ;;  %v1081_v24 = vadd.f32 %v1053_v46, %v965_v16  ;;  %v1082_v19 = vadd.f32 %v1054_v21, %v966_v12  ;;  %v1083_v51 = vadd.f32 %v1055_v63, %v967_v53  ;;  %v16584_v12 = vld [vmem:[#allocation51_spill] sm:$0xff]  ;;  %v16585_v53 = vld [vmem:[#allocation42_spill] sm:$0xff]  ;;  %v16594_v63 = vld [vmem:[#allocation93_spill] sm:$0xff] }
  0xde   : > { %v1084_v23 = vadd.f32 %v1056_v42, %v968_v4  ;;  %v1085_v62 = vadd.f32 %v1057_v28, %v969_v55  ;;  %v1086_v13 = vadd.f32 %v1058_v14, %v970_v48  ;;  %v1087_v17 = vadd.f32 %v1059_v2, %v971_v54  ;;  %v16586_v55 = vld [vmem:[#allocation89_spill] sm:$0xff]  ;;  %v16596_v2 = vld [vmem:[#allocation94_spill] sm:$0xff] }
  0xdf   : > { %v1088_v50 = vadd.f32 %v1060_v0, %v972_v6  ;;  %v1089_v59 = vadd.f32 %v1061_v5, %v973_v49  ;;  %v1090_v27 = vadd.f32 %v1062_v1, %v974_v35  ;;  %v1091_v29 = vadd.f32 %v1063_v39, %v975_v58  ;;  %v16587_v54 = vld [vmem:[#allocation9_spill] sm:$0xff]  ;;  %v16588_v49 = vld [vmem:[#allocation90_spill] sm:$0xff]  ;;  %v16589_v58 = vld [vmem:[#allocation52_spill] sm:$0xff] }
  0xe0   : > { %v1092_v34 = vadd.f32 %v1064_v37, %v976_v20  ;;  %v1093_v57 = vadd.f32 %v1065_v30, %v977_v7  ;;  %v1094_v8 = vadd.f32 %v1066_v38, %v978_v18  ;;  %v1095_v31 = vadd.f32 %v1067_v41, %v979_v3  ;;  %v16590_v7 = vld [vmem:[#allocation91_spill] sm:$0xff]  ;;  %v16595_v28 = vld [vmem:[#allocation81_spill] sm:$0xff]  ;;  %v16597_v5 = vld [vmem:[#allocation82_spill] sm:$0xff] }
  0xe1   : > { %v1096_v44 = vadd.f32 %v1068_v26, %v980_v10  ;;  %v7344_v45 = vadd.f32 %v1069_v36, %v981_v32  ;;  %v7346_v16 = vadd.f32 %v1070_v33, %v982_v60  ;;  %v7348_v46 = vadd.f32 %v1071_v15, %v983_v47  ;;  %v16591_v3 = vld [vmem:[#allocation79_spill] sm:$0xff]  ;;  %v16592_v32 = vld [vmem:[#allocation92_spill] sm:$0xff]  ;;  %v16598_v39 = vld [vmem:[#allocation97_spill] sm:$0xff] }
  0xe2   : > { %v1160_v4 = vmul.f32 %v16585_v53, %v16584_v12  ;;  %v1161_v48 = vmul.f32 %v16585_v53, %v16586_v55  ;;  %v1162_v6 = vmul.f32 %v16585_v53, %v16587_v54  ;;  %v1163_v35 = vmul.f32 %v16585_v53, %v16588_v49  ;;  %v16593_v47 = vld [vmem:[#allocation80_spill] sm:$0xff]  ;;  %v16599_v30 = vld [vmem:[#allocation83_spill] sm:$0xff]  ;;  %v16600_v41 = vld [vmem:[#allocation98_spill] sm:$0xff] }
  0xe3   : > { %16582 = vst [vmem:[#allocation47_spill] sm:$0xff] %v7346_v16  ;;  %16583 = vst [vmem:[#allocation48_spill] sm:$0xff] %v7348_v46  ;;  %v1164_v20 = vmul.f32 %v16585_v53, %v16589_v58  ;;  %v1165_v18 = vmul.f32 %v16585_v53, %v16590_v7  ;;  %v1166_v10 = vmul.f32 %v16585_v53, %v16591_v3  ;;  %v16601_v36 = vld [vmem:[#allocation84_spill] sm:$0xff]  ;;  %v16602_v15 = vld [vmem:[#allocation99_spill] sm:$0xff] }
  0xe4   : > { %v1167_v60 = vmul.f32 %v16585_v53, %v16592_v32  ;;  %v1168_v21 = vmul.f32 %v16585_v53, %v16593_v47  ;;  %v1169_v42 = vmul.f32 %v16585_v53, %v16594_v63  ;;  %v1170_v14 = vmul.f32 %v16585_v53, %v16595_v28  ;;  %v16603_v55 = vld [vmem:[#allocation85_spill] sm:$0xff]  ;;  %v16604_v49 = vld [vmem:[#allocation100_spill] sm:$0xff]  ;;  %v16605_v7 = vld [vmem:[#allocation86_spill] sm:$0xff] }
  0xe5   : > { %v1171_v0 = vmul.f32 %v16585_v53, %v16596_v2  ;;  %v1172_v1 = vmul.f32 %v16585_v53, %v16597_v5  ;;  %v1173_v37 = vmul.f32 %v16585_v53, %v16598_v39  ;;  %v1174_v38 = vmul.f32 %v16585_v53, %v16599_v30  ;;  %v16606_v32 = vld [vmem:[#allocation101_spill] sm:$0xff]  ;;  %v16607_v63 = vld [vmem:[#allocation87_spill] sm:$0xff]  ;;  %v16608_v2 = vld [vmem:[#allocation102_spill] sm:$0xff] }
  0xe6   : > { %v1175_v26 = vmul.f32 %v16585_v53, %v16600_v41  ;;  %v1176_v33 = vmul.f32 %v16585_v53, %v16601_v36  ;;  %v1177_v12 = vmul.f32 %v16585_v53, %v16602_v15  ;;  %v1178_v54 = vmul.f32 %v16585_v53, %v16603_v55  ;;  %v16609_v39 = vld [vmem:[#allocation88_spill] sm:$0xff]  ;;  %v16610_v41 = vld [vmem:[#allocation103_spill] sm:$0xff] }
  0xe7   : > { %v1179_v58 = vmul.f32 %v16585_v53, %v16604_v49  ;;  %v1180_v3 = vmul.f32 %v16585_v53, %v16605_v7  ;;  %v1181_v47 = vmul.f32 %v16585_v53, %v16606_v32  ;;  %v1182_v28 = vmul.f32 %v16585_v53, %v16607_v63  ;;  %v16611_v15 = vld [vmem:[#allocation40_spill] sm:$0xff]  ;;  %v16612_v49 = vld [vmem:[#allocation41_spill] sm:$0xff] }
  0xe8   : > { %v1183_v5 = vmul.f32 %v16585_v53, %v16608_v2  ;;  %v1184_v30 = vmul.f32 %v16585_v53, %v16609_v39  ;;  %v1185_v36 = vmul.f32 %v16585_v53, %v16610_v41  ;;  %v1186_v55 = vmul.f32 %v16585_v53, %v16611_v15 }
  0xe9   : > { %v1187_v7 = vmul.f32 %v16585_v53, %v16612_v49  ;;  %v7406_v46 = vadd.f32 %v1160_v4, %v1072_v40  ;;  %v7408_v32 = vadd.f32 %v1161_v48, %v1073_v25  ;;  %v7410_v63 = vadd.f32 %v1162_v6, %v1074_v9  ;;  %v16619_v4 = vld [vmem:[#allocation7_spill] sm:$0xff] }
  0xea   : > { %v7412_v2 = vadd.f32 %v1163_v35, %v1075_v61  ;;  %v7414_v39 = vadd.f32 %v1164_v20, %v1076_v11  ;;  %v7416_v16 = vadd.f32 %v1165_v18, %v1077_v43  ;;  %v7418_v41 = vadd.f32 %v1166_v10, %v1078_v52  ;;  %v7476_v35 = vld [vmem:[%s6442_s17 + $0xa0] sm:$0xff] }
  0xeb   : > { %v7420_v15 = vadd.f32 %v1167_v60, %v1079_v56  ;;  %v7422_v53 = vadd.f32 %v1168_v21, %v1080_v22  ;;  %v7424_v40 = vadd.f32 %v1169_v42, %v1081_v24  ;;  %v7426_v25 = vadd.f32 %v1170_v14, %v1082_v19  ;;  %v7443_v24 = vld [vmem:[%s6442_s17 + $0x80] sm:$0xff]  ;;  %16620 = vst [vmem:[#allocation15_spill] sm:$0xff] %v7476_v35 }
  0xec   : > { %v7428_v9 = vadd.f32 %v1171_v0, %v1083_v51  ;;  %v7430_v61 = vadd.f32 %v1172_v1, %v1084_v23  ;;  %v7432_v11 = vadd.f32 %v1173_v37, %v1085_v62  ;;  %v7434_v43 = vadd.f32 %v1174_v38, %v1086_v13  ;;  %16613 = vst [vmem:[#allocation49_spill] sm:$0xff] %v7443_v24  ;;  %v7446_v19 = vld [vmem:[%s6442_s17 + $0xc0] sm:$0xff] }
  0xed   : > { %v7436_v52 = vadd.f32 %v1175_v26, %v1087_v17  ;;  %v7438_v56 = vadd.f32 %v1176_v33, %v1088_v50  ;;  %v7440_v22 = vadd.f32 %v1177_v12, %v1089_v59  ;;  %16614 = vst [vmem:[#allocation50_spill] sm:$0xff] %v7446_v19  ;;  %v7448_v51 = vadd.f32 %v1178_v54, %v1090_v27  ;;  %v7455_v13 = vld [vmem:[%s6442_s17 + $0x100] sm:$0xff]  ;;  %v16618_v59 = vld [vmem:[#allocation43_spill] sm:$0xff] }
  0xee   : > { %v7450_v23 = vadd.f32 %v1179_v58, %v1091_v29  ;;  %v7452_v62 = vadd.f32 %v1180_v3, %v1092_v34  ;;  %16615 = vst [vmem:[#allocation10_spill] sm:$0xff] %v7455_v13  ;;  %v7458_v17 = vld [vmem:[%s6442_s17 + $0x140] sm:$0xff]  ;;  %v7465_v48 = vrot.slane %v16619_v4, %v16618_v59  ;;  %v7467_v6 = vadd.f32 %v1181_v47, %v1093_v57  ;;  %v16623_v57 = vld [vmem:[#allocation47_spill] sm:$0xff] }
  0xef   : > { %16616 = vst [vmem:[#allocation14_spill] sm:$0xff] %v7458_v17  ;;  %v7461_v50 = vld [vmem:[%s6442_s17 + $0x180] sm:$0xff]  ;;  %v7469_v27 = vadd.f32 %v1182_v28, %v1094_v8  ;;  %v7471_v29 = vadd.f32 %v1183_v5, %v1095_v31  ;;  %v7473_v34 = vadd.f32 %v1184_v30, %v1096_v44  ;;  %v7485_v10 = vadd.f32 %v1185_v36, %v7344_v45  ;;  %v16624_v8 = vld [vmem:[#allocation48_spill] sm:$0xff] }
  0xf0   : > { %16617 = vst [vmem:[#allocation11_spill] sm:$0xff] %v7461_v50  ;;  %v7479_v20 = vld [vmem:[%s6442_s17 + $0x1c0] sm:$0xff]  ;;  %v7488_v60 = vadd.f32 %v1186_v55, %v16623_v57  ;;  %v7491_v31 = vadd.f32 %v1187_v7, %v16624_v8  ;;  %v1249_v26 = vmul.f32 %v7443_v24, %v7465_v48  ;;  %v1250_v33 = vmul.f32 %v7476_v35, %v7465_v48  ;;  %v16643_v35 = vld [vmem:[#allocation95_spill] sm:$0xff] }
  0xf1   : > { %16621 = vst [vmem:[#allocation12_spill] sm:$0xff] %v7479_v20  ;;  %v7482_v18 = vld [vmem:[%s6442_s17 + $0x200] sm:$0xff]  ;;  %v1251_v28 = vmul.f32 %v7446_v19, %v7465_v48  ;;  %v1253_v30 = vmul.f32 %v7455_v13, %v7465_v48  ;;  %v1255_v57 = vmul.f32 %v7458_v17, %v7465_v48  ;;  %v1257_v54 = vmul.f32 %v7461_v50, %v7465_v48 }
  0xf2   : > { %16622 = vst [vmem:[#allocation16_spill] sm:$0xff] %v7482_v18  ;;  %v7495_v21 = vld [vmem:[%s6442_s17 + $0xe0] sm:$0xff]  ;;  %v1259_v42 = vmul.f32 %v7479_v20, %v7465_v48  ;;  %v1261_v59 = vmul.f32 %v7482_v18, %v7465_v48 }
  0xf3   : > { %16625 = vst [vmem:[#allocation17_spill] sm:$0xff] %v7495_v21  ;;  %v7502_v1 = vld [vmem:[%s6442_s17 + $0x120] sm:$0xff]  ;;  %v1252_v5 = vmul.f32 %v7495_v21, %v7465_v48 }
  0xf4   : > { %16626 = vst [vmem:[#allocation18_spill] sm:$0xff] %v7502_v1  ;;  %v7505_v37 = vld [vmem:[%s6442_s17 + $0x160] sm:$0xff]  ;;  %v1254_v36 = vmul.f32 %v7502_v1, %v7465_v48 }
  0xf5   : > { %16627 = vst [vmem:[#allocation19_spill] sm:$0xff] %v7505_v37  ;;  %v7508_v38 = vld [vmem:[%s6442_s17 + $0x1a0] sm:$0xff]  ;;  %v1256_v8 = vmul.f32 %v7505_v37, %v7465_v48 }
  0xf6   : > { %16628 = vst [vmem:[#allocation20_spill] sm:$0xff] %v7508_v38  ;;  %v7517_v58 = vld [vmem:[%s6442_s17 + $0x1e0] sm:$0xff]  ;;  %v1258_v12 = vmul.f32 %v7508_v38, %v7465_v48 }
  0xf7   : > { %16629 = vst [vmem:[#allocation21_spill] sm:$0xff] %v7517_v58  ;;  %v7520_v3 = vld [vmem:[%s6442_s17 + $0x240] sm:$0xff]  ;;  %v1260_v44 = vmul.f32 %v7517_v58, %v7465_v48 }
  0xf8   : > { %16630 = vst [vmem:[#allocation22_spill] sm:$0xff] %v7520_v3  ;;  %v7523_v47 = vld [vmem:[%s6442_s17 + $0x280] sm:$0xff]  ;;  %v1263_v19 = vmul.f32 %v7520_v3, %v7465_v48  ;;  %v7611_v3 = vadd.f32 %v1249_v26, %v7406_v46  ;;  %v7632_v46 = vadd.f32 %v1256_v8, %v7420_v15 }
  0xf9   : > { %16631 = vst [vmem:[#allocation23_spill] sm:$0xff] %v7523_v47  ;;  %v7534_v55 = vld [vmem:[%s6442_s17 + $0x220] sm:$0xff]  ;;  %v1265_v24 = vmul.f32 %v7523_v47, %v7465_v48  ;;  %v16644_v47 = vld [vmem:[#allocation96_spill] sm:$0xff] }
  0xfa   : > { %16632 = vst [vmem:[#allocation24_spill] sm:$0xff] %v7534_v55  ;;  %v7537_v7 = vld [vmem:[%s6442_s17 + $0x2c0] sm:$0xff]  ;;  %v1262_v49 = vmul.f32 %v7534_v55, %v7465_v48  ;;  %v7653_v15 = vadd.f32 %v1263_v19, %v7434_v43 }
  0xfb   : > { %16633 = vst [vmem:[#allocation25_spill] sm:$0xff] %v7537_v7  ;;  %v7540_v4 = vld [vmem:[%s6442_s17 + $0x300] sm:$0xff]  ;;  %v1267_v55 = vmul.f32 %v7537_v7, %v7465_v48  ;;  %v1273_v7 = vmul.f32 %v16643_v35, %v7465_v48  ;;  %v7620_v35 = vadd.f32 %v1252_v5, %v7412_v2  ;;  %v7641_v2 = vadd.f32 %v1259_v42, %v7426_v25 }
  0xfc   : > { %16634 = vst [vmem:[#allocation26_spill] sm:$0xff] %v7540_v4  ;;  %v7551_v0 = vld [vmem:[%s6442_s17 + $0x260] sm:$0xff]  ;;  %v1269_v37 = vmul.f32 %v7540_v4, %v7465_v48  ;;  %16648 = vst [vmem:[#allocation29_spill] sm:$0xff] %v7653_v15  ;;  %v16669_v42 = vld [vmem:[#allocation19_spill] sm:$0xff] }
  0xfd   : > { %16635 = vst [vmem:[#allocation27_spill] sm:$0xff] %v7551_v0  ;;  %v7554_v45 = vld [vmem:[%s6442_s17 + $0x2a0] sm:$0xff]  ;;  %v1264_v20 = vmul.f32 %v7551_v0, %v7465_v48 }
  0xfe   : > { %16636 = vst [vmem:[#allocation30_spill] sm:$0xff] %v7554_v45  ;;  %v7557_v14 = vld [vmem:[%s6442_s17 + $0x340] sm:$0xff]  ;;  %v1266_v18 = vmul.f32 %v7554_v45, %v7465_v48 }
  0xff   : > { %16637 = vst [vmem:[#allocation31_spill] sm:$0xff] %v7557_v14  ;;  %v7568_v50 = vld [vmem:[%s6442_s17 + $0x2e0] sm:$0xff]  ;;  %v1271_v21 = vmul.f32 %v7557_v14, %v7465_v48  ;;  %v7614_v14 = vadd.f32 %v1250_v33, %v7408_v32  ;;  %v7635_v32 = vadd.f32 %v1257_v54, %v7422_v53  ;;  %v7656_v53 = vadd.f32 %v1264_v20, %v7436_v52  ;;  %v16688_v20 = vld [vmem:[#allocation14_spill] sm:$0xff] }
 0x100   : > { %16638 = vst [vmem:[#allocation32_spill] sm:$0xff] %v7568_v50  ;;  %v7571_v17 = vld [vmem:[%s6442_s17 + $0x320] sm:$0xff]  ;;  %v1268_v38 = vmul.f32 %v7568_v50, %v7465_v48  ;;  %v1274_v50 = vmul.f32 %v16644_v47, %v7465_v48  ;;  %v7623_v47 = vadd.f32 %v1253_v30, %v7414_v39  ;;  %v7644_v39 = vadd.f32 %v1260_v44, %v7428_v9 }
 0x101   : > { %16639 = vst [vmem:[#allocation37_spill] sm:$0xff] %v7571_v17  ;;  %v7574_v13 = vld [vmem:[%s6442_s17 + $0x3c0] sm:$0xff]  ;;  %v1270_v0 = vmul.f32 %v7571_v17, %v7465_v48  ;;  %16649 = vst [vmem:[#allocation33_spill] sm:$0xff] %v7656_v53  ;;  %v7662_v25 = vadd.f32 %v1266_v18, %v7440_v22  ;;  %v7665_v9 = vadd.f32 %v1267_v55, %v7448_v51  ;;  %v16662_v51 = vld [vmem:[#allocation22_spill] sm:$0xff] }
 0x102   : > { %16640 = vst [vmem:[#allocation38_spill] sm:$0xff] %v7574_v13  ;;  %v7585_v58 = vld [vmem:[%s6442_s17 + $0x360] sm:$0xff]  ;;  %v1275_v4 = vmul.f32 %v7574_v13, %v7465_v48  ;;  %v7626_v13 = vadd.f32 %v1254_v36, %v7416_v16  ;;  %16645 = vst [vmem:[#allocation45_spill] sm:$0xff] %v7644_v39  ;;  %v7647_v16 = vadd.f32 %v1261_v59, %v7430_v61  ;;  %v16666_v18 = vld [vmem:[#allocation15_spill] sm:$0xff] }
 0x103   : > { %16641 = vst [vmem:[#allocation39_spill] sm:$0xff] %v7585_v58  ;;  %v7596_v1 = vld [vmem:[%s6442_s17 + $0x3e0] sm:$0xff]  ;;  %v1272_v45 = vmul.f32 %v7585_v58, %v7465_v48  ;;  %v7617_v58 = vadd.f32 %v1251_v28, %v7410_v63  ;;  %v7638_v63 = vadd.f32 %v1258_v12, %v7424_v40  ;;  %v7659_v40 = vadd.f32 %v1265_v24, %v7438_v56  ;;  %v16676_v28 = vld [vmem:[#allocation24_spill] sm:$0xff] }
 0x104   : > { %16642 = vst [vmem:[#allocation44_spill] sm:$0xff] %v7596_v1  ;;  %v1276_v17 = vmul.f32 %v7596_v1, %v7465_v48  ;;  %v7629_v48 = vadd.f32 %v1255_v57, %v7418_v41  ;;  %16646 = vst [vmem:[#allocation46_spill] sm:$0xff] %v7647_v16  ;;  %v7650_v41 = vadd.f32 %v1262_v49, %v7432_v11  ;;  %v16667_v44 = vld [vmem:[#allocation17_spill] sm:$0xff]  ;;  %v1325_v5 = vrot.slane %v16676_v28, 1  ;;  %v16677_v30 = vld [vmem:[#allocation27_spill] sm:$0xff] }
 0x105   : > { %16650 = vst [vmem:[#allocation53_spill] sm:$0xff] %v7659_v40  ;;  %16651 = vst [vmem:[#allocation36_spill] sm:$0xff] %v7662_v25  ;;  %v7668_v61 = vadd.f32 %v1268_v38, %v7450_v23  ;;  %v7671_v49 = vadd.f32 %v1269_v37, %v7452_v62  ;;  %v7674_v11 = vadd.f32 %v1270_v0, %v7467_v6  ;;  %v1312_v23 = vrot.slane %v16662_v51, 1  ;;  %v16663_v62 = vld [vmem:[#allocation23_spill] sm:$0xff]  ;;  %v16664_v6 = vld [vmem:[#allocation25_spill] sm:$0xff] }
 0x106   : > { %16647 = vst [vmem:[#allocation28_spill] sm:$0xff] %v7650_v41  ;;  %16652 = vst [vmem:[#allocation66_spill] sm:$0xff] %v7665_v9  ;;  %v7677_v43 = vadd.f32 %v1271_v21, %v7469_v27  ;;  %v7680_v52 = vadd.f32 %v1272_v45, %v7471_v29  ;;  %v7683_v56 = vadd.f32 %v1273_v7, %v7473_v34  ;;  %v1313_v59 = vrot.slane %v16663_v62, 1  ;;  %v16665_v29 = vld [vmem:[#allocation26_spill] sm:$0xff]  ;;  %v16670_v45 = vld [vmem:[#allocation20_spill] sm:$0xff] }
 0x107   : > { %16653 = vst [vmem:[#allocation54_spill] sm:$0xff] %v7668_v61  ;;  %16654 = vst [vmem:[#allocation67_spill] sm:$0xff] %v7671_v49  ;;  %v7686_v22 = vadd.f32 %v1274_v50, %v7485_v10  ;;  %v7689_v24 = vadd.f32 %v1275_v4, %v7488_v60  ;;  %v7692_v19 = vadd.f32 %v1276_v17, %v7491_v31  ;;  %v1319_v34 = vrot.slane %v16666_v18, 1  ;;  %v16668_v50 = vld [vmem:[#allocation18_spill] sm:$0xff]  ;;  %v16671_v17 = vld [vmem:[#allocation5_spill] sm:$0xff] }
 0x108   : > { %16655 = vst [vmem:[#allocation55_spill] sm:$0xff] %v7674_v11  ;;  %16656 = vst [vmem:[#allocation68_spill] sm:$0xff] %v7677_v43  ;;  %v1320_v21 = vrot.slane %v16667_v44, 1  ;;  %v1321_v10 = vrot.slane %v16668_v50, 1  ;;  %v1322_v60 = vrot.slane %v16669_v42, 1  ;;  %v1323_v0 = vrot.slane %v16670_v45, 1 }
 0x109   : > { %16657 = vst [vmem:[#allocation56_spill] sm:$0xff] %v7680_v52  ;;  %16658 = vst [vmem:[#allocation69_spill] sm:$0xff] %v7683_v56  ;;  %v7704_v31 = vsub.s32 7, %v16671_v17  ;;  %v16673_v37 = vld [vmem:[#allocation31_spill] sm:$0xff]  ;;  %v16674_v26 = vld [vmem:[#allocation38_spill] sm:$0xff]  ;;  %v1326_v36 = vrot.slane %v16677_v30, 1 }
 0x10a   : > { %16659 = vst [vmem:[#allocation57_spill] sm:$0xff] %v7686_v22  ;;  %16660 = vst [vmem:[#allocation70_spill] sm:$0xff] %v7689_v24  ;;  %v16675_v12 = vld [vmem:[#allocation21_spill] sm:$0xff]  ;;  %v16678_v55 = vld [vmem:[#allocation30_spill] sm:$0xff]  ;;  %v16689_v9 = vrot.slane %v16688_v20, 1  ;;  %v1436_v30 = vrot.slane %v16667_v44, 2 }
 0x10b   : > { %16661 = vst [vmem:[#allocation58_spill] sm:$0xff] %v7692_v19  ;;  %16672 = vst [vmem:[#allocation71_spill] sm:$0xff] %v7704_v31  ;;  %v1324_v54 = vrot.slane %v16675_v12, 1  ;;  %v1327_v7 = vrot.slane %v16678_v55, 1  ;;  %v16679_v4 = vld [vmem:[#allocation32_spill] sm:$0xff]  ;;  %v16680_v8 = vld [vmem:[#allocation37_spill] sm:$0xff] }
 0x10c   : > { %v1328_v57 = vrot.slane %v16679_v4, 1  ;;  %v16681_v27 = vld [vmem:[#allocation39_spill] sm:$0xff]  ;;  %v16682_v19 = vld [vmem:[#allocation49_spill] sm:$0xff]  ;;  %v16684_v22 = vld [vmem:[#allocation50_spill] sm:$0xff]  ;;  %v1336_v56 = vsel %vm689_vm0, %v16689_v9, %v1322_v60 }
 0x10d   : > { %v16683_v38 = vrot.slane %v16682_v19, 1  ;;  %v16685_v52 = vrot.slane %v16684_v22, 1  ;;  %v16686_v11 = vld [vmem:[#allocation10_spill] sm:$0xff]  ;;  %v16690_v24 = vld [vmem:[#allocation11_spill] sm:$0xff]  ;;  %v6053_v40 = vld [vmem:[%s6437_s21] sm:$0xff]  ;;  %v16694_v15 = vrot.slane %v16682_v19, 1 }
 0x10e   : > { %v16687_v49 = vrot.slane %v16686_v11, 1  ;;  %v16691_v25 = vrot.slane %v16690_v24, 1  ;;  %v7740_v4 = vrot.slane %v6053_v40, %v7704_v31  ;;  %v1421_v55 = vrot.slane %v16682_v19, 2  ;;  %v16695_v41 = vld [vmem:[#allocation16_spill] sm:$0xff] }
 0x10f   : > { %v1333_v33 = vsel %vm689_vm0, %v16683_v38, %v1319_v34  ;;  %v1334_v43 = vsel %vm689_vm0, %v16685_v52, %v1320_v21  ;;  %v16692_v52 = vld [vmem:[#allocation12_spill] sm:$0xff]  ;;  %v1347_v9 = vsel %vm689_vm0, %v1319_v34, %v16694_v15  ;;  %v16696_v16 = vrot.slane %v16695_v41, 1 }
 0x110   : > { %v1335_v61 = vsel %vm689_vm0, %v16687_v49, %v1321_v10  ;;  %v7736_v38 = vsel %vm689_vm0, %v16691_v25, %v1323_v0  ;;  %v16693_v53 = vrot.slane %v16692_v52, 1  ;;  %v1435_v25 = vrot.slane %v16666_v18, 2 }
 0x111   : > { %v7758_v40 = vsel %vm689_vm0, %v16696_v16, %v1325_v5  ;;  %v7766_v31 = vsel %vm689_vm0, %v1313_v59, %v1327_v7  ;;  %v16699_v15 = vrot.slane %v16664_v6, 1  ;;  %v16701_v18 = vrot.slane %v16680_v8, 1 }
 0x112   : > { %v7746_v49 = vsel %vm689_vm0, %v16693_v53, %v1324_v54  ;;  %v7762_v53 = vsel %vm689_vm0, %v1312_v23, %v1326_v36  ;;  %16698 = vst [vmem:[#allocation72_spill] sm:$0xff] %v7766_v31  ;;  %v16702_v34 = vrot.slane %v16665_v29, 1  ;;  %v16704_v62 = vrot.slane %v16684_v22, 1 }
 0x113   : > { %16697 = vst [vmem:[#allocation59_spill] sm:$0xff] %v7762_v53  ;;  %v7772_v19 = vsel %vm689_vm0, %v16699_v15, %v1328_v57  ;;  %v1422_v31 = vrot.slane %v16684_v22, 2  ;;  %v16705_v15 = vrot.slane %v16681_v27, 1  ;;  %v16711_v22 = vrot.slane %v16686_v11, 1 }
 0x114   : > { %16700 = vst [vmem:[#allocation60_spill] sm:$0xff] %v7772_v19  ;;  %v7780_v16 = vsel %vm689_vm0, %v16702_v34, %v16701_v18  ;;  %v1348_v53 = vsel %vm689_vm0, %v1320_v21, %v16704_v62  ;;  %v16706_v19 = vrot.slane %v16673_v37, 1  ;;  %v16708_v18 = vrot.slane %v7596_v1, 1  ;;  %v7810_v21 = vld [vmem:[%s6437_s21 + $0x20] ss:$0 sm:$0xff] }
 0x115   : > { %16703 = vst [vmem:[#allocation73_spill] sm:$0xff] %v7780_v16  ;;  %v16709_v34 = vrot.slane %v16674_v26, 1  ;;  %v1349_v62 = vsel %vm689_vm0, %v1321_v10, %v16711_v22  ;;  %v1366_v44 = vmul.f32 %v7740_v4, %v1347_v9  ;;  %v16714_v10 = vrot.slane %v16692_v52, 1 }
 0x116   : > { %v7794_v39 = vsel %vm689_vm0, %v16706_v19, %v16705_v15  ;;  %v16712_v19 = vrot.slane %v16688_v20, 1  ;;  %v16715_v22 = vrot.slane %v16695_v41, 1  ;;  %v1437_v1 = vrot.slane %v16668_v50, 2 }
 0x117   : > { %16707 = vst [vmem:[#allocation61_spill] sm:$0xff] %v7794_v39  ;;  %v7802_v16 = vsel %vm689_vm0, %v16709_v34, %v16708_v18  ;;  %v16713_v39 = vrot.slane %v16690_v24, 1  ;;  %v1365_v34 = vmul.f32 %v7740_v4, %v1333_v33  ;;  %v1352_v9 = vsel %vm689_vm0, %v1324_v54, %v16714_v10 }
 0x118   : > { %16710 = vst [vmem:[#allocation74_spill] sm:$0xff] %v7802_v16  ;;  %v1350_v15 = vsel %vm689_vm0, %v1322_v60, %v16712_v19  ;;  %v1463_v16 = vsel %vm806_vm1, %v1435_v25, %v1421_v55  ;;  %v7831_v60 = vsel %vm689_vm0, %v1325_v5, %v16715_v22  ;;  %v1368_v19 = vmul.f32 %v7740_v4, %v1348_v53 }
 0x119   : > { %v1351_v18 = vsel %vm689_vm0, %v1323_v0, %v16713_v39  ;;  %v1449_v39 = vsel %vm806_vm1, %v1421_v55, %v1435_v25  ;;  %v1367_v0 = vmul.f32 %v7740_v4, %v1334_v43  ;;  %v1423_v33 = vrot.slane %v16686_v11, 2 }
 0x11a   : > { %v1464_v54 = vsel %vm806_vm1, %v1436_v30, %v1422_v31  ;;  %v7843_v10 = vsel %vm689_vm0, %v1326_v36, %v1312_v23  ;;  %v1394_v5 = vadd.f32 %v1366_v44, %v7614_v14  ;;  %v1450_v53 = vsel %vm806_vm1, %v1422_v31, %v1436_v30 }
 0x11b   : > { %v1482_v55 = vmul.f32 %v7810_v21, %v1463_v16  ;;  %v7851_v43 = vsel %vm689_vm0, %v1327_v7, %v1313_v59  ;;  %v1369_v11 = vmul.f32 %v7740_v4, %v1335_v61  ;;  %v1393_v50 = vadd.f32 %v1365_v34, %v7611_v3 }
 0x11c   : > { %v1481_v25 = vmul.f32 %v7810_v21, %v1449_v39  ;;  %v1370_v23 = vmul.f32 %v7740_v4, %v1349_v62  ;;  %v1396_v36 = vadd.f32 %v1368_v19, %v7620_v35  ;;  %v1424_v14 = vrot.slane %v16688_v20, 2 }
 0x11d   : > { %v1484_v31 = vmul.f32 %v7810_v21, %v1464_v54  ;;  %v1395_v30 = vadd.f32 %v1367_v0, %v7617_v58  ;;  %v1438_v16 = vrot.slane %v16669_v42, 2  ;;  %v1465_v59 = vsel %vm806_vm1, %v1437_v1, %v1423_v33 }
 0x11e   : > { %v1483_v61 = vmul.f32 %v7810_v21, %v1450_v53  ;;  %v16716_v3 = vrot.slane %v16664_v6, 1  ;;  %v1425_v35 = vrot.slane %v16690_v24, 2  ;;  %v1451_v20 = vsel %vm806_vm1, %v1423_v33, %v1437_v1 }
 0x11f   : > { %v7874_v62 = vadd.f32 %v1482_v55, %v1394_v5  ;;  %v1371_v58 = vmul.f32 %v7740_v4, %v1336_v56  ;;  %v1372_v42 = vmul.f32 %v7740_v4, %v1350_v15  ;;  %v1397_v44 = vadd.f32 %v1369_v11, %v7623_v47 }
 0x120   : > { %v7869_v7 = vsel %vm689_vm0, %v1328_v57, %v16716_v3  ;;  %v7879_v34 = vadd.f32 %v1481_v25, %v1393_v50  ;;  %v1398_v22 = vadd.f32 %v1370_v23, %v7626_v13  ;;  %v1439_v57 = vrot.slane %v16670_v45, 2 }
 0x121   : > { %v1486_v19 = vmul.f32 %v7810_v21, %v1465_v59  ;;  %v7884_v24 = vadd.f32 %v1484_v31, %v1396_v36  ;;  %v1466_v1 = vsel %vm806_vm1, %v1438_v16, %v1424_v14  ;;  %v1485_v39 = vmul.f32 %v7810_v21, %v1451_v20 }
 0x122   : > { %v7889_v56 = vadd.f32 %v1483_v61, %v1395_v30  ;;  %v1373_v47 = vmul.f32 %v7740_v4, %v7736_v38  ;;  %v1426_v15 = vrot.slane %v16692_v52, 2  ;;  %v1452_v13 = vsel %vm806_vm1, %v1424_v14, %v1438_v16 }
 0x123   : > { %v1538_v45 = vsel %vm1537_vm2, %v7874_v62, 0.0  ;;  %v1374_v0 = vmul.f32 %v7740_v4, %v1351_v18  ;;  %v1399_v33 = vadd.f32 %v1371_v58, %v7629_v48  ;;  %v1400_v54 = vadd.f32 %v1372_v42, %v7632_v46 }
 0x124   : > { %v1539_v5 = vadd.f32 %v1538_v45, %v7879_v34  ;;  %v1440_v53 = vrot.slane %v16675_v12, 2  ;;  %v1488_v38 = vmul.f32 %v7810_v21, %v1466_v1  ;;  %v7904_v55 = vadd.f32 %v1486_v19, %v1398_v22  ;;  %v16725_v1 = vld [vmem:[#allocation45_spill] sm:$0xff] }
 0x125   : > { %v1541_v52 = vsel %vm1537_vm2, %v7884_v24, 0.0  ;;  %v1467_v11 = vsel %vm806_vm1, %v1439_v57, %v1425_v35  ;;  %v1487_v18 = vmul.f32 %v7810_v21, %v1452_v13  ;;  %v7911_v50 = vadd.f32 %v1485_v39, %v1397_v44  ;;  %v16726_v13 = vld [vmem:[#allocation27_spill] sm:$0xff] }
 0x126   : > { %16717 = vst [vmem:[#allocation62_spill] sm:$0xff] %v7904_v55  ;;  %v1540_v48 = vadd.f32 %v1539_v5, %v7889_v56  ;;  %v16719_v46 = vrot.slane %v16665_v29, 1  ;;  %v16720_v12 = vrot.slane %v16680_v8, 1  ;;  %v1375_v23 = vmul.f32 %v7740_v4, %v7746_v49  ;;  %v16730_v5 = vld [vmem:[#allocation44_spill] sm:$0xff] }
 0x127   : > { %16718 = vst [vmem:[#allocation75_spill] sm:$0xff] %v7911_v50  ;;  %v1427_v36 = vrot.slane %v16695_v41, 2  ;;  %v1453_v14 = vsel %vm806_vm1, %v1425_v35, %v1439_v57  ;;  %v1376_v31 = vmul.f32 %v7740_v4, %v1352_v9  ;;  %v1401_v30 = vadd.f32 %v1373_v47, %v7635_v32 }
 0x128   : > { %v7920_v25 = vsel %vm689_vm0, %v16720_v12, %v16719_v46  ;;  %v1402_v16 = vadd.f32 %v1374_v0, %v7638_v63  ;;  %v1542_v59 = vadd.f32 %v1541_v52, %v1540_v48  ;;  %v1441_v61 = vrot.slane %v16676_v28, 2  ;;  %v16732_v52 = vld [vmem:[#allocation59_spill] sm:$0xff] }
 0x129   : > { %v1490_v3 = vmul.f32 %v7810_v21, %v1467_v11  ;;  %v7932_v20 = vadd.f32 %v1488_v38, %v1400_v54  ;;  %v1544_v49 = vsel %vm1537_vm2, %v7904_v55, 0.0  ;;  %v1468_v41 = vsel %vm806_vm1, %v1440_v53, %v1426_v15 }
 0x12a   : > { %v1489_v35 = vmul.f32 %v7810_v21, %v1453_v14  ;;  %v7939_v9 = vadd.f32 %v1487_v18, %v1399_v33  ;;  %v1543_v32 = vadd.f32 %v1542_v59, %v7911_v50  ;;  %v16723_v63 = vrot.slane %v16673_v37, 1  ;;  %v16733_v18 = vld [vmem:[#allocation23_spill] sm:$0xff]  ;;  %v16736_v59 = vld [vmem:[#allocation30_spill] sm:$0xff] }
 0x12b   : > { %16721 = vst [vmem:[#allocation63_spill] sm:$0xff] %v7932_v20  ;;  %v16724_v28 = vrot.slane %v16681_v27, 1  ;;  %v1377_v42 = vmul.f32 %v7740_v4, %v7758_v40  ;;  %v1428_v44 = vrot.slane %v16662_v51, 2  ;;  %v1454_v22 = vsel %vm806_vm1, %v1426_v15, %v1440_v53 }
 0x12c   : > { %16722 = vst [vmem:[#allocation76_spill] sm:$0xff] %v7939_v9  ;;  %v1378_v57 = vmul.f32 %v7740_v4, %v7831_v60  ;;  %v1403_v19 = vadd.f32 %v1375_v23, %v7641_v2  ;;  %v1404_v39 = vadd.f32 %v1376_v31, %v16725_v1  ;;  %v1545_v47 = vadd.f32 %v1544_v49, %v1543_v32  ;;  %v16734_v23 = vld [vmem:[#allocation46_spill] sm:$0xff]  ;;  %v16735_v31 = vld [vmem:[#allocation28_spill] sm:$0xff] }
 0x12d   : > { %v7948_v58 = vsel %vm689_vm0, %v16724_v28, %v16723_v63  ;;  %v1442_v45 = vrot.slane %v16726_v13, 2  ;;  %v1492_v0 = vmul.f32 %v7810_v21, %v1468_v41  ;;  %v7961_v33 = vadd.f32 %v1490_v3, %v1402_v16  ;;  %v16739_v63 = vld [vmem:[#allocation72_spill] sm:$0xff]  ;;  %v16741_v13 = vld [vmem:[#allocation33_spill] sm:$0xff] }
 0x12e   : > { %v1547_v51 = vsel %vm1537_vm2, %v7932_v20, 0.0  ;;  %v1469_v40 = vsel %vm806_vm1, %v1441_v61, %v1427_v36  ;;  %v1491_v15 = vmul.f32 %v7810_v21, %v1454_v22  ;;  %v7968_v60 = vadd.f32 %v1489_v35, %v1401_v30 }
 0x12f   : > { %16727 = vst [vmem:[#allocation64_spill] sm:$0xff] %v7961_v33  ;;  %v1546_v2 = vadd.f32 %v1545_v47, %v7939_v9  ;;  %v16729_v54 = vrot.slane %v16674_v26, 1  ;;  %v16731_v53 = vrot.slane %v16730_v5, 1  ;;  %v1379_v11 = vmul.f32 %v7740_v4, %v16732_v52 }
 0x130   : > { %16728 = vst [vmem:[#allocation77_spill] sm:$0xff] %v7968_v60  ;;  %v1429_v48 = vrot.slane %v16733_v18, 2  ;;  %v1455_v46 = vsel %vm806_vm1, %v1427_v36, %v1441_v61  ;;  %v1380_v12 = vmul.f32 %v7740_v4, %v7843_v10  ;;  %v1405_v14 = vadd.f32 %v1377_v42, %v16734_v23 }
 0x131   : > { %v7977_v38 = vsel %vm689_vm0, %v16731_v53, %v16729_v54  ;;  %v1406_v30 = vadd.f32 %v1378_v57, %v16735_v31  ;;  %v1548_v16 = vadd.f32 %v1547_v51, %v1546_v2  ;;  %v1443_v3 = vrot.slane %v16736_v59, 2  ;;  %v16742_v51 = vld [vmem:[#allocation32_spill] sm:$0xff] }
 0x132   : > { %v1494_v49 = vmul.f32 %v7810_v21, %v1469_v40  ;;  %v7990_v41 = vadd.f32 %v1492_v0, %v1404_v39  ;;  %v1550_v35 = vsel %vm1537_vm2, %v7961_v33, 0.0  ;;  %v1470_v36 = vsel %vm806_vm1, %v1442_v45, %v1428_v44  ;;  %v16740_v39 = vld [vmem:[#allocation29_spill] sm:$0xff]  ;;  %v16745_v54 = vld [vmem:[#allocation60_spill] sm:$0xff] }
 0x133   : > { %v1493_v61 = vmul.f32 %v7810_v21, %v1455_v46  ;;  %v7997_v10 = vadd.f32 %v1491_v15, %v1403_v19  ;;  %v1549_v32 = vadd.f32 %v1548_v16, %v7968_v60  ;;  %v1381_v28 = vmul.f32 %v7740_v4, %v16739_v63  ;;  %v16747_v31 = vld [vmem:[#allocation36_spill] sm:$0xff] }
 0x134   : > { %16737 = vst [vmem:[#allocation65_spill] sm:$0xff] %v7990_v41  ;;  %v1430_v42 = vrot.slane %v16664_v6, 2  ;;  %v1431_v22 = vrot.slane %v16665_v29, 2  ;;  %v1456_v57 = vsel %vm806_vm1, %v1428_v44, %v1442_v45  ;;  %v1382_v1 = vmul.f32 %v7740_v4, %v7851_v43 }
 0x135   : > { %16738 = vst [vmem:[#allocation78_spill] sm:$0xff] %v7997_v10  ;;  %v1407_v47 = vadd.f32 %v1379_v11, %v16740_v39  ;;  %v1408_v19 = vadd.f32 %v1380_v12, %v16741_v13  ;;  %v1551_v0 = vadd.f32 %v1550_v35, %v1549_v32  ;;  %v1444_v40 = vrot.slane %v16742_v51, 2  ;;  %v16746_v12 = vld [vmem:[#allocation53_spill] sm:$0xff]  ;;  %v16753_v39 = vld [vmem:[#allocation54_spill] sm:$0xff] }
 0x136   : > { %v1496_v15 = vmul.f32 %v7810_v21, %v1470_v36  ;;  %v8012_v2 = vadd.f32 %v1494_v49, %v1406_v30  ;;  %v1553_v6 = vsel %vm1537_vm2, %v7990_v41, 0.0  ;;  %v1471_v29 = vsel %vm806_vm1, %v1443_v3, %v1429_v48  ;;  %v16750_v35 = vld [vmem:[#allocation73_spill] sm:$0xff] }
 0x137   : > { %v1495_v44 = vmul.f32 %v7810_v21, %v1456_v57  ;;  %v8019_v43 = vadd.f32 %v1493_v61, %v1405_v14  ;;  %v1552_v45 = vadd.f32 %v1551_v0, %v7997_v10  ;;  %v1383_v53 = vmul.f32 %v7740_v4, %v16745_v54  ;;  %v16751_v61 = vld [vmem:[#allocation61_spill] sm:$0xff]  ;;  %v16752_v57 = vld [vmem:[#allocation66_spill] sm:$0xff] }
 0x138   : > { %16743 = vst [vmem:[#allocation51_spill] sm:$0xff] %v8012_v2  ;;  %v1432_v52 = vrot.slane %v16673_v37, 2  ;;  %v1434_v11 = vrot.slane %v16674_v26, 2  ;;  %v1457_v18 = vsel %vm806_vm1, %v1429_v48, %v1443_v3  ;;  %v1384_v46 = vmul.f32 %v7740_v4, %v7869_v7  ;;  %v8333_v10 = vld [vmem:[%s6442_s17 + $0x308] sm:$0xff] }
 0x139   : > { %16744 = vst [vmem:[#allocation42_spill] sm:$0xff] %v8019_v43  ;;  %v1409_v23 = vadd.f32 %v1381_v28, %v16746_v12  ;;  %v1410_v14 = vadd.f32 %v1382_v1, %v16747_v31  ;;  %v1554_v30 = vadd.f32 %v1553_v6, %v1552_v45  ;;  %v1445_v16 = vrot.slane %v16680_v8, 2  ;;  %v16756_v6 = vld [vmem:[#allocation34_spill] sm:$0xff]  ;;  %v16759_v12 = vld [vmem:[#allocation67_spill] sm:$0xff]  ;;  %16833 = vst [vmem:[#allocation29_spill] sm:$0xff] %v8333_v10 }
 0x13a   : > { %v1498_v59 = vmul.f32 %v7810_v21, %v1471_v29  ;;  %v8034_v49 = vadd.f32 %v1496_v15, %v1408_v19  ;;  %v1556_v37 = vsel %vm1537_vm2, %v8012_v2, 0.0  ;;  %v1472_v26 = vsel %vm806_vm1, %v1444_v40, %v1430_v42 }
 0x13b   : > { %v1497_v48 = vmul.f32 %v7810_v21, %v1457_v18  ;;  %v8041_v7 = vadd.f32 %v1495_v44, %v1407_v47  ;;  %v1555_v3 = vadd.f32 %v1554_v30, %v8019_v43  ;;  %v1385_v36 = vmul.f32 %v7740_v4, %v16750_v35 }
 0x13c   : > { %16748 = vst [vmem:[#allocation89_spill] sm:$0xff] %v8034_v49  ;;  %v1386_v8 = vmul.f32 %v7740_v4, %v7920_v25  ;;  %v1387_v32 = vmul.f32 %v7740_v4, %v16751_v61  ;;  %v1458_v63 = vsel %vm806_vm1, %v1430_v42, %v1444_v40  ;;  %v1388_v28 = vmul.f32 %v7740_v4, %v7948_v58  ;;  %v16765_v61 = vld [vmem:[#allocation57_spill] sm:$0xff] }
 0x13d   : > { %16749 = vst [vmem:[#allocation9_spill] sm:$0xff] %v8041_v7  ;;  %v1411_v1 = vadd.f32 %v1383_v53, %v16752_v57  ;;  %v1412_v47 = vadd.f32 %v1384_v46, %v16753_v39  ;;  %v1557_v13 = vadd.f32 %v1556_v37, %v1555_v3  ;;  %v1446_v19 = vrot.slane %v16681_v27, 2  ;;  %v16757_v27 = vld [vmem:[#allocation35_spill] sm:$0xff]  ;;  %v16758_v53 = vld [vmem:[#allocation74_spill] sm:$0xff]  ;;  %v16764_v3 = vld [vmem:[#allocation56_spill] sm:$0xff] }
 0x13e   : > { %v1500_v0 = vmul.f32 %v7810_v21, %v1472_v26  ;;  %v8058_v51 = vadd.f32 %v1498_v59, %v1410_v14  ;;  %v1559_v25 = vsel %vm1537_vm2, %v8034_v49, 0.0  ;;  %v1473_v42 = vsel %vm806_vm1, %v1445_v16, %v1431_v22  ;;  %v16760_v14 = vld [vmem:[#allocation55_spill] sm:$0xff]  ;;  %v16766_v57 = vld [vmem:[#allocation58_spill] sm:$0xff] }
 0x13f   : > { %v1499_v40 = vmul.f32 %v7810_v21, %v1458_v63  ;;  %v8065_v58 = vadd.f32 %v1497_v48, %v1409_v23  ;;  %v1558_v15 = vadd.f32 %v1557_v13, %v8041_v7  ;;  %v1389_v29 = vmul.f32 %v7740_v4, %v16756_v6  ;;  %v16771_v6 = vld [vmem:[#allocation70_spill] sm:$0xff] }
 0x140   : > { %16754 = vst [vmem:[#allocation90_spill] sm:$0xff] %v8058_v51  ;;  %v1390_v44 = vmul.f32 %v7740_v4, %v16757_v27  ;;  %v1448_v45 = vrot.slane %v16730_v5, 2  ;;  %v1459_v54 = vsel %vm806_vm1, %v1431_v22, %v1445_v16  ;;  %v1391_v18 = vmul.f32 %v7740_v4, %v16758_v53  ;;  %v8318_v7 = vld [vmem:[%s6442_s17 + $0x2e8] sm:$0xff] }
 0x141   : > { %16755 = vst [vmem:[#allocation52_spill] sm:$0xff] %v8065_v58  ;;  %v1392_v46 = vmul.f32 %v7740_v4, %v7977_v38  ;;  %v1413_v23 = vadd.f32 %v1385_v36, %v16759_v12  ;;  %v1560_v31 = vadd.f32 %v1559_v25, %v1558_v15  ;;  %v1414_v30 = vadd.f32 %v1386_v8, %v16760_v14  ;;  %v16763_v38 = vld [vmem:[#allocation68_spill] sm:$0xff] }
 0x142   : > { %v1502_v59 = vmul.f32 %v7810_v21, %v1473_v42  ;;  %v8082_v37 = vadd.f32 %v1500_v0, %v1412_v47  ;;  %v1562_v5 = vsel %vm1537_vm2, %v8058_v51, 0.0  ;;  %v1474_v22 = vsel %vm806_vm1, %v1446_v19, %v1432_v52  ;;  %v16767_v0 = vld [vmem:[#allocation41_spill] sm:$0xff]  ;;  %v8315_v51 = vld [vmem:[%s6442_s17 + $0x2c8] sm:$0xff]  ;;  %16829 = vst [vmem:[#allocation46_spill] sm:$0xff] %v8318_v7 }
 0x143   : > { %v1501_v16 = vmul.f32 %v7810_v21, %v1459_v54  ;;  %v8089_v26 = vadd.f32 %v1499_v40, %v1411_v1  ;;  %v1561_v4 = vadd.f32 %v1560_v31, %v8065_v58  ;;  %v1415_v48 = vadd.f32 %v1387_v32, %v16763_v38  ;;  %v16770_v40 = vld [vmem:[#allocation69_spill] sm:$0xff]  ;;  %v562_v31 = vld [vmem:[%s6437_s21 + $0x8] sm:$0xff]  ;;  %16828 = vst [vmem:[#allocation23_spill] sm:$0xff] %v8315_v51 }
 0x144   : > { %16761 = vst [vmem:[#allocation91_spill] sm:$0xff] %v8082_v37  ;;  %v1416_v35 = vadd.f32 %v1388_v28, %v16764_v3  ;;  %v1460_v36 = vsel %vm806_vm1, %v1432_v52, %v1446_v19  ;;  %v1476_v8 = vsel %vm806_vm1, %v1448_v45, %v1434_v11  ;;  %v1418_v63 = vadd.f32 %v1390_v44, %v16765_v61  ;;  %v16772_v44 = vld [vmem:[#allocation40_spill] sm:$0xff]  ;;  %v8312_v58 = vld [vmem:[%s6442_s17 + $0x2a8] sm:$0xff] }
 0x145   : > { %16762 = vst [vmem:[#allocation79_spill] sm:$0xff] %v8089_v26  ;;  %v1420_v39 = vadd.f32 %v1392_v46, %v16766_v57  ;;  %v1462_v1 = vsel %vm806_vm1, %v1434_v11, %v1448_v45  ;;  %v1563_v47 = vadd.f32 %v1562_v5, %v1561_v4  ;;  %v1504_v13 = vmul.f32 %v7810_v21, %v1474_v22  ;;  %v16779_v4 = vld [vmem:[#allocation6_spill] sm:$0xff] }
 0x146   : > { %v1506_v32 = vmul.f32 %v7810_v21, %v16767_v0  ;;  %v8105_v28 = vadd.f32 %v1502_v59, %v1414_v30  ;;  %v1565_v52 = vsel %vm1537_vm2, %v8082_v37, 0.0  ;;  %v1503_v19 = vmul.f32 %v7810_v21, %v1460_v36  ;;  %v16789_v0 = vld [vmem:[#allocation43_spill] sm:$0xff]  ;;  %16827 = vst [vmem:[#allocation59_spill] sm:$0xff] %v8312_v58 }
 0x147   : > { %v1508_v25 = vmul.f32 %v7810_v21, %v1476_v8  ;;  %v8111_v42 = vadd.f32 %v1501_v16, %v1413_v23  ;;  %v1564_v11 = vadd.f32 %v1563_v47, %v8089_v26  ;;  %v1417_v15 = vadd.f32 %v1389_v29, %v16770_v40  ;;  %v16781_v8 = vld [vmem:[#allocation8_spill] sm:$0xff]  ;;  %v16787_v47 = vld [vmem:[#allocation106_spill] sm:$0xff]  ;;  %v16794_v40 = vld [vmem:[#allocation71_spill] sm:$0xff] }
 0x148   : > { %16768 = vst [vmem:[#allocation92_spill] sm:$0xff] %v8105_v28  ;;  %v1419_v27 = vadd.f32 %v1391_v18, %v16771_v6  ;;  %v1505_v45 = vmul.f32 %v7810_v21, %v16772_v44  ;;  %v1507_v53 = vmul.f32 %v7810_v21, %v1462_v1  ;;  %v8119_v46 = vadd.f32 %v1504_v13, %v1416_v35  ;;  %v563_v21 = vld [vmem:[%s6437_s21 + $0x10] sm:$0xff]  ;;  %v16780_v35 = vld [vmem:[#allocation13_spill] sm:$0xff]  ;;  %v8185_v44 = vld [vmem:[%s6442_s17 + $0x68] sm:$0xff] }
 0x149   : > { %16769 = vst [vmem:[#allocation80_spill] sm:$0xff] %v8111_v42  ;;  %v1566_v54 = vadd.f32 %v1565_v52, %v1564_v11  ;;  %v8121_v12 = vadd.f32 %v1506_v32, %v1418_v63  ;;  %v1568_v23 = vsel %vm1537_vm2, %v8105_v28, 0.0  ;;  %v8126_v14 = vadd.f32 %v1503_v19, %v1415_v48  ;;  %v16783_v63 = vld [vmem:[#allocation104_spill] sm:$0xff]  ;;  %v8167_v52 = vld [vmem:[%s6442_s17 + $0x8] sm:$0xff]  ;;  %16798 = vst [vmem:[#allocation7_spill] sm:$0xff] %v8185_v44 }
 0x14a   : > { %16773 = vst [vmem:[#allocation93_spill] sm:$0xff] %v8119_v46  ;;  %v8128_v30 = vadd.f32 %v1508_v25, %v1420_v39  ;;  %v8131_v18 = vadd.f32 %v1505_v45, %v1417_v15  ;;  %v8134_v5 = vadd.f32 %v1507_v53, %v1419_v27  ;;  %v1571_v22 = vsel %vm1537_vm2, %v8119_v46, 0.0  ;;  %v16785_v39 = vld [vmem:[#allocation105_spill] sm:$0xff]  ;;  %16791 = vst [vmem:[#allocation86_spill] sm:$0xff] %v8167_v52  ;;  %v8170_v19 = vld [vmem:[%s6442_s17 + $0x28] sm:$0xff] }
 0x14b   : > { %16774 = vst [vmem:[#allocation81_spill] sm:$0xff] %v8121_v12  ;;  %16775 = vst [vmem:[#allocation94_spill] sm:$0xff] %v8126_v14  ;;  %v1567_v29 = vadd.f32 %v1566_v54, %v8111_v42  ;;  %v1574_v16 = vsel %vm1537_vm2, %v8121_v12, 0.0  ;;  %v8141_v38 = vrot.slane %v562_v31, %v16779_v4  ;;  %v8149_v36 = vrot.slane %v562_v31, %v16780_v35  ;;  %v8173_v25 = vld [vmem:[%s6442_s17 + $0x48] sm:$0xff] }
 0x14c   : > { %16776 = vst [vmem:[#allocation82_spill] sm:$0xff] %v8128_v30  ;;  %16777 = vst [vmem:[#allocation97_spill] sm:$0xff] %v8131_v18  ;;  %v8146_v3 = vsel %vm1537_vm2, %v8128_v30, 0.0  ;;  %v8152_v61 = vrot.slane %v562_v31, %v16781_v8  ;;  %v8155_v57 = vrot.slane %v562_v31, %v16783_v63  ;;  %v8158_v1 = vrot.slane %v562_v31, %v16785_v39  ;;  %v8188_v45 = vld [vmem:[%s6442_s17 + $0x88] sm:$0xff] }
 0x14d   : > { %v1569_v59 = vadd.f32 %v1568_v23, %v1567_v29  ;;  %16778 = vst [vmem:[#allocation83_spill] sm:$0xff] %v8134_v5  ;;  %v8161_v13 = vrot.slane %v562_v31, %v16787_v47  ;;  %v8164_v32 = vrot.slane %v562_v31, %v16789_v0  ;;  %16792 = vst [vmem:[#allocation101_spill] sm:$0xff] %v8170_v19  ;;  %v8191_v54 = vld [vmem:[%s6442_s17 + $0xa8] sm:$0xff] }
 0x14e   : > { %16782 = vst [vmem:[#allocation98_spill] sm:$0xff] %v8152_v61  ;;  %16784 = vst [vmem:[#allocation84_spill] sm:$0xff] %v8155_v57  ;;  %v8176_v15 = vrot.slane %v562_v31, %v16794_v40  ;;  %v8179_v6 = vrot.slane %v563_v21, %v16779_v4  ;;  %v8182_v27 = vrot.slane %v563_v21, %v16780_v35  ;;  %v8197_v23 = vld [vmem:[%s6442_s17 + $0xc8] sm:$0xff] }
 0x14f   : > { %v1570_v48 = vadd.f32 %v1569_v59, %v8126_v14  ;;  %16786 = vst [vmem:[#allocation99_spill] sm:$0xff] %v8158_v1  ;;  %16788 = vst [vmem:[#allocation85_spill] sm:$0xff] %v8161_v13  ;;  %v8194_v53 = vrot.slane %v563_v21, %v16781_v8  ;;  %v8200_v31 = vld [vmem:[%s6442_s17 + $0xe8] sm:$0xff]  ;;  %v8207_v59 = vmul.f32 %v8141_v38, %v8167_v52 }
 0x150   : > { %16790 = vst [vmem:[#allocation100_spill] sm:$0xff] %v8164_v32  ;;  %16793 = vst [vmem:[#allocation87_spill] sm:$0xff] %v8173_v25  ;;  %v8203_v29 = vld [vmem:[%s6442_s17 + $0x108] sm:$0xff]  ;;  %v8250_v39 = vmul.f32 %v8141_v38, %v8197_v23  ;;  %v8254_v63 = vmul.f32 %v8141_v38, %v8200_v31  ;;  %v8347_v60 = vmul.f32 %v8141_v38, %v8312_v58 }
 0x151   : > { %v1572_v11 = vadd.f32 %v1571_v22, %v1570_v48  ;;  %16795 = vst [vmem:[#allocation102_spill] sm:$0xff] %v8176_v15  ;;  %16796 = vst [vmem:[#allocation88_spill] sm:$0xff] %v8179_v6  ;;  %v8211_v22 = vmul.f32 %v8141_v38, %v8170_v19  ;;  %v8215_v48 = vmul.f32 %v8141_v38, %v8173_v25  ;;  %v8219_v8 = vld [vmem:[%s6442_s17 + $0x128] sm:$0xff] }
 0x152   : > { %16797 = vst [vmem:[#allocation103_spill] sm:$0xff] %v8182_v27  ;;  %16799 = vst [vmem:[#allocation47_spill] sm:$0xff] %v8188_v45  ;;  %v8222_v35 = vld [vmem:[%s6442_s17 + $0x148] sm:$0xff]  ;;  %v8229_v27 = vmul.f32 %v8141_v38, %v8185_v44  ;;  %v8233_v6 = vmul.f32 %v8141_v38, %v8188_v45  ;;  %v8258_v15 = vmul.f32 %v8141_v38, %v8203_v29 }
 0x153   : > { %16800 = vst [vmem:[#allocation48_spill] sm:$0xff] %v8191_v54  ;;  %16801 = vst [vmem:[#allocation95_spill] sm:$0xff] %v8194_v53  ;;  %v1573_v21 = vadd.f32 %v1572_v11, %v8131_v18  ;;  %v8225_v53 = vld [vmem:[%s6442_s17 + $0x168] sm:$0xff]  ;;  %v8237_v11 = vmul.f32 %v8141_v38, %v8191_v54  ;;  %v8262_v32 = vmul.f32 %v8141_v38, %v8219_v8 }
 0x154   : > { %16802 = vst [vmem:[#allocation96_spill] sm:$0xff] %v8197_v23  ;;  %16803 = vst [vmem:[#allocation22_spill] sm:$0xff] %v8200_v31  ;;  %v8240_v40 = vld [vmem:[%s6442_s17 + $0x188] sm:$0xff]  ;;  %v8275_v18 = vmul.f32 %v8141_v38, %v8222_v35  ;;  %v8279_v14 = vmul.f32 %v8141_v38, %v8225_v53  ;;  %v8351_v33 = vmul.f32 %v8141_v38, %v8315_v51 }
 0x155   : > { %16804 = vst [vmem:[#allocation25_spill] sm:$0xff] %v8203_v29  ;;  %16805 = vst [vmem:[#allocation26_spill] sm:$0xff] %v8219_v8  ;;  %v8243_v0 = vld [vmem:[%s6442_s17 + $0x1a8] sm:$0xff]  ;;  %v1575_v13 = vadd.f32 %v1574_v16, %v1573_v21  ;;  %v8283_v16 = vmul.f32 %v8141_v38, %v8240_v40  ;;  %v8355_v9 = vmul.f32 %v8141_v38, %v8318_v7 }
 0x156   : > { %16806 = vst [vmem:[#allocation15_spill] sm:$0xff] %v8222_v35  ;;  %16807 = vst [vmem:[#allocation17_spill] sm:$0xff] %v8225_v53  ;;  %v8246_v47 = vld [vmem:[%s6442_s17 + $0x1c8] sm:$0xff]  ;;  %v8296_v12 = vmul.f32 %v8141_v38, %v8243_v0  ;;  %v8360_v20 = vmul.f32 %v8141_v38, %v8333_v10 }
 0x157   : > { %16808 = vst [vmem:[#allocation18_spill] sm:$0xff] %v8240_v40  ;;  %16809 = vst [vmem:[#allocation19_spill] sm:$0xff] %v8243_v0  ;;  %v8265_v1 = vld [vmem:[%s6442_s17 + $0x1e8] sm:$0xff]  ;;  %v8300_v46 = vmul.f32 %v8141_v38, %v8246_v47  ;;  %v1576_v37 = vadd.f32 %v1575_v13, %v8134_v5 }
 0x158   : > { %16810 = vst [vmem:[#allocation20_spill] sm:$0xff] %v8246_v47  ;;  %16811 = vst [vmem:[#allocation31_spill] sm:$0xff] %v8254_v63  ;;  %v8268_v57 = vld [vmem:[%s6442_s17 + $0x208] sm:$0xff]  ;;  %v8304_v28 = vmul.f32 %v8141_v38, %v8265_v1 }
 0x159   : > { %16812 = vst [vmem:[#allocation38_spill] sm:$0xff] %v8258_v15  ;;  %16813 = vst [vmem:[#allocation21_spill] sm:$0xff] %v8262_v32  ;;  %v8271_v61 = vld [vmem:[%s6442_s17 + $0x228] sm:$0xff]  ;;  %v8308_v26 = vmul.f32 %v8141_v38, %v8268_v57 }
 0x15a   : > { %16814 = vst [vmem:[#allocation24_spill] sm:$0xff] %v8265_v1  ;;  %16815 = vst [vmem:[#allocation37_spill] sm:$0xff] %v8268_v57  ;;  %v8286_v21 = vld [vmem:[%s6442_s17 + $0x248] sm:$0xff]  ;;  %v8322_v49 = vmul.f32 %v8141_v38, %v8271_v61 }
 0x15b   : > { %16816 = vst [vmem:[#allocation39_spill] sm:$0xff] %v8271_v61  ;;  %16817 = vst [vmem:[#allocation49_spill] sm:$0xff] %v8275_v18  ;;  %v8289_v42 = vld [vmem:[%s6442_s17 + $0x268] sm:$0xff]  ;;  %v8326_v43 = vmul.f32 %v8141_v38, %v8286_v21 }
 0x15c   : > { %16818 = vst [vmem:[#allocation50_spill] sm:$0xff] %v8279_v14  ;;  %16819 = vst [vmem:[#allocation10_spill] sm:$0xff] %v8283_v16  ;;  %v8292_v30 = vld [vmem:[%s6442_s17 + $0x288] sm:$0xff]  ;;  %v8330_v2 = vmul.f32 %v8141_v38, %v8289_v42 }
 0x15d   : > { %16820 = vst [vmem:[#allocation14_spill] sm:$0xff] %v8286_v21  ;;  %16821 = vst [vmem:[#allocation11_spill] sm:$0xff] %v8289_v42  ;;  %v8336_v13 = vld [vmem:[%s6442_s17 + $0x328] sm:$0xff]  ;;  %v8343_v41 = vmul.f32 %v8141_v38, %v8292_v30 }
 0x15e   : > { %16822 = vst [vmem:[#allocation12_spill] sm:$0xff] %v8292_v30  ;;  %16823 = vst [vmem:[#allocation16_spill] sm:$0xff] %v8296_v12  ;;  %v8339_v5 = vld [vmem:[%s6442_s17 + $0x348] sm:$0xff] }
 0x15f   : > { %16824 = vst [vmem:[#allocation45_spill] sm:$0xff] %v8300_v46  ;;  %16825 = vst [vmem:[#allocation27_spill] sm:$0xff] %v8304_v28  ;;  %v1887_v28 = vrot.slane %v8292_v30, 1  ;;  %v1890_v46 = vrot.slane %v8339_v5, 1  ;;  %v1901_v30 = vrot.slane %v8312_v58, 1 }
 0x160   : > { %16826 = vst [vmem:[#allocation44_spill] sm:$0xff] %v8308_v26  ;;  %16830 = vst [vmem:[#allocation28_spill] sm:$0xff] %v8322_v49  ;;  %v1882_v49 = vrot.slane %v8222_v35, 1  ;;  %v1884_v26 = vrot.slane %v8246_v47, 1  ;;  %v1891_v35 = vrot.slane %v8170_v19, 1  ;;  %v1892_v47 = vrot.slane %v8185_v44, 1 }
 0x161   : > { %16831 = vst [vmem:[#allocation30_spill] sm:$0xff] %v8326_v43  ;;  %16832 = vst [vmem:[#allocation72_spill] sm:$0xff] %v8330_v2  ;;  %v1578_v2 = vadd.f32 %v8146_v3, %v1576_v37  ;;  %v1878_v43 = vrot.slane %v8173_v25, 1  ;;  %v1880_v37 = vrot.slane %v8197_v23, 1  ;;  %v1889_v23 = vrot.slane %v8333_v10, 1 }
 0x162   : > { %16834 = vst [vmem:[#allocation33_spill] sm:$0xff] %v8336_v13  ;;  %16835 = vst [vmem:[#allocation32_spill] sm:$0xff] %v8339_v5  ;;  %v1897_v10 = vrot.slane %v8243_v0, 1  ;;  %v1900_v19 = vrot.slane %v8289_v42, 1 }
 0x163   : > { %16836 = vst [vmem:[#allocation60_spill] sm:$0xff] %v8343_v41  ;;  %16837 = vst [vmem:[#allocation53_spill] sm:$0xff] %v8347_v60  ;;  %v8364_v41 = vmul.f32 %v8141_v38, %v8336_v13  ;;  %v8368_v60 = vmul.f32 %v8141_v38, %v8339_v5  ;;  %v1579_v3 = vrot.slane %v1578_v2, 4  ;;  %v1898_v5 = vrot.slane %v8265_v1, 1 }
 0x164   : > { %16838 = vst [vmem:[#allocation36_spill] sm:$0xff] %v8351_v33  ;;  %16839 = vst [vmem:[#allocation73_spill] sm:$0xff] %v8355_v9  ;;  %v1877_v33 = vrot.slane %v8167_v52, 1  ;;  %v1879_v9 = vrot.slane %v8188_v45, 1  ;;  %v1886_v52 = vrot.slane %v8286_v21, 1  ;;  %v1888_v45 = vrot.slane %v8315_v51, 1 }
 0x165   : > { %16840 = vst [vmem:[#allocation61_spill] sm:$0xff] %v8360_v20  ;;  %16841 = vst [vmem:[#allocation66_spill] sm:$0xff] %v8364_v41  ;;  %v1881_v20 = vrot.slane %v8203_v29, 1  ;;  %v1883_v41 = vrot.slane %v8240_v40, 1  ;;  %v1580_v25 = vadd.f32 %v1579_v3, %v1578_v2  ;;  %v8385_v29 = vld [vmem:[%s6442_s17 + $0x368] sm:$0xff]  ;;  %v1894_v21 = vrot.slane %v8200_v31, 1 }
 0x166   : > { %16842 = vst [vmem:[#allocation54_spill] sm:$0xff] %v8368_v60  ;;  %v1885_v60 = vrot.slane %v8268_v57, 1  ;;  %16843 = vst [vmem:[#allocation34_spill] sm:$0xff] %v8385_v29  ;;  %v1893_v57 = vrot.slane %v8191_v54, 1  ;;  %v1895_v2 = vrot.slane %v8219_v8, 1  ;;  %v1896_v3 = vrot.slane %v8225_v53, 1 }
 0x167   : > { %v1581_v40 = vrot.slane %v1580_v25, 2  ;;  %v1899_v51 = vrot.slane %v8271_v61, 1  ;;  %v1902_v54 = vrot.slane %v8318_v7, 1  ;;  %v1903_v31 = vrot.slane %v8336_v13, 1 }
 0x168   : > { %v1904_v8 = vrot.slane %v8385_v29, 1  ;;  %v8404_v0 = vmul.f32 %v8141_v38, %v8385_v29  ;;  %v1905_v61 = vsel %vm689_vm0, %v1877_v33, %v1891_v35  ;;  %v8410_v42 = vsel %vm689_vm0, %v1878_v43, %v1892_v47 }
 0x169   : > { %v1582_v44 = vadd.f32 %v1581_v40, %v1580_v25  ;;  %16845 = vst [vmem:[#allocation74_spill] sm:$0xff] %v8410_v42  ;;  %v8414_v25 = vsel %vm689_vm0, %v1879_v9, %v1893_v57  ;;  %v8418_v13 = vsel %vm689_vm0, %v1880_v37, %v1894_v21  ;;  %v8422_v38 = vsel %vm689_vm0, %v1881_v20, %v1895_v2 }
 0x16a   : > { %16844 = vst [vmem:[#allocation35_spill] sm:$0xff] %v8404_v0  ;;  %16846 = vst [vmem:[#allocation67_spill] sm:$0xff] %v8414_v25  ;;  %v8426_v29 = vsel %vm689_vm0, %v1882_v49, %v1896_v3  ;;  %v8430_v7 = vsel %vm689_vm0, %v1883_v41, %v1897_v10  ;;  %v8434_v58 = vsel %vm689_vm0, %v1884_v26, %v1898_v5 }
 0x16b   : > { %v1583_v40 = vrot.slane %v1582_v44, 1  ;;  %16847 = vst [vmem:[#allocation55_spill] sm:$0xff] %v8418_v13  ;;  %16848 = vst [vmem:[#allocation68_spill] sm:$0xff] %v8422_v38  ;;  %v8438_v1 = vsel %vm689_vm0, %v1885_v60, %v1899_v51  ;;  %v8442_v53 = vsel %vm689_vm0, %v1886_v52, %v1900_v19  ;;  %v8452_v0 = vsel %vm689_vm0, %v1887_v28, %v1901_v30 }
 0x16c   : > { %16849 = vst [vmem:[#allocation56_spill] sm:$0xff] %v8426_v29  ;;  %16850 = vst [vmem:[#allocation57_spill] sm:$0xff] %v8430_v7  ;;  %v8456_v12 = vsel %vm689_vm0, %v1888_v45, %v1902_v54  ;;  %v8460_v16 = vsel %vm689_vm0, %v1889_v23, %v1903_v31  ;;  %v8464_v14 = vsel %vm689_vm0, %v1890_v46, %v1904_v8 }
 0x16d   : > { %16851 = vst [vmem:[#allocation58_spill] sm:$0xff] %v8434_v58  ;;  %16852 = vst [vmem:[#allocation41_spill] sm:$0xff] %v8438_v1  ;;  %v1919_v50 = vsel %vm689_vm0, %v1891_v35, %v1877_v33  ;;  %v8470_v18 = vsel %vm689_vm0, %v1892_v47, %v1878_v43  ;;  %v8474_v32 = vsel %vm689_vm0, %v1893_v57, %v1879_v9 }
 0x16e   : > { %16853 = vst [vmem:[#allocation69_spill] sm:$0xff] %v8442_v53  ;;  %16855 = vst [vmem:[#allocation70_spill] sm:$0xff] %v8452_v0  ;;  %v8478_v55 = vsel %vm689_vm0, %v1894_v21, %v1880_v37  ;;  %v1584_v15 = vadd.f32 %v1583_v40, %v1582_v44  ;;  %v8482_v63 = vsel %vm689_vm0, %v1895_v2, %v1881_v20 }
 0x16f   : > { %16856 = vst [vmem:[#allocation40_spill] sm:$0xff] %v8456_v12  ;;  %16857 = vst [vmem:[#allocation107_spill] sm:$0xff] %v8460_v16  ;;  %v8486_v33 = vsel %vm689_vm0, %v1896_v3, %v1882_v49  ;;  %v8490_v43 = vsel %vm689_vm0, %v1897_v10, %v1883_v41  ;;  %v8494_v9 = vsel %vm689_vm0, %v1898_v5, %v1884_v26 }
 0x170   : > { %16858 = vst [vmem:[#allocation108_spill] sm:$0xff] %v8464_v14  ;;  %16859 = vst [vmem:[#allocation109_spill] sm:$0xff] %v8470_v18  ;;  %v8498_v35 = vsel %vm689_vm0, %v1899_v51, %v1885_v60  ;;  %v8502_v20 = vsel %vm689_vm0, %v1900_v19, %v1886_v52  ;;  %v8506_v49 = vsel %vm689_vm0, %v1901_v30, %v1887_v28 }
 0x171   : > { %16860 = vst [vmem:[#allocation110_spill] sm:$0xff] %v8474_v32  ;;  %16861 = vst [vmem:[#allocation111_spill] sm:$0xff] %v8478_v55  ;;  %v8516_v41 = vsel %vm689_vm0, %v1902_v54, %v1888_v45  ;;  %v8520_v60 = vsel %vm689_vm0, %v1903_v31, %v1889_v23  ;;  %v8524_v10 = vsel %vm689_vm0, %v1904_v8, %v1890_v46  ;;  %v8540_v46 = vmul.f32 0.0051020407, %v1584_v15  ;;  %v570_v23 = vld [vmem:[%s8538_s27] sm:$0xf] }
 0x172   : > { %16862 = vst [vmem:[#allocation112_spill] sm:$0xff] %v8482_v63  ;;  %16863 = vst [vmem:[#allocation113_spill] sm:$0xff] %v8486_v33  ;;  %v1937_v51 = vmul.f32 %v8149_v36, %v1905_v61  ;;  %v1938_v26 = vmul.f32 %v8149_v36, %v1919_v50  ;;  %v1939_v28 = vmul.f32 %v8149_v36, %v8410_v42  ;;  %v16953_v42 = vld [vmem:[#allocation48_spill] sm:$0xff] }
 0x173   : > { %16864 = vst [vmem:[#allocation114_spill] sm:$0xff] %v8490_v43  ;;  %16865 = vst [vmem:[#allocation115_spill] sm:$0xff] %v8494_v9  ;;  %v1940_v30 = vmul.f32 %v8149_v36, %v8470_v18  ;;  %v1941_v5 = vmul.f32 %v8149_v36, %v8414_v25  ;;  %v1942_v50 = vmul.f32 %v8149_v36, %v8474_v32  ;;  %v16951_v32 = vld [vmem:[#allocation101_spill] sm:$0xff] }
 0x174   : > { %16866 = vst [vmem:[#allocation116_spill] sm:$0xff] %v8498_v35  ;;  %16867 = vst [vmem:[#allocation117_spill] sm:$0xff] %v8502_v20  ;;  %v1943_v8 = vmul.f32 %v8149_v36, %v8418_v13  ;;  %v1944_v61 = vmul.f32 %v8149_v36, %v8478_v55  ;;  %v1945_v57 = vmul.f32 %v8149_v36, %v8422_v38  ;;  %v16949_v38 = vld [vmem:[#allocation29_spill] sm:$0xff]  ;;  %v16950_v13 = vld [vmem:[#allocation32_spill] sm:$0xff] }
 0x175   : > { %16868 = vst [vmem:[#allocation118_spill] sm:$0xff] %v8506_v49  ;;  %16869 = vst [vmem:[#allocation119_spill] sm:$0xff] %v8516_v41  ;;  %v1946_v47 = vmul.f32 %v8149_v36, %v8482_v63  ;;  %v1947_v52 = vmul.f32 %v8149_v36, %v8426_v29  ;;  %v1948_v19 = vmul.f32 %v8149_v36, %v8486_v33  ;;  %v16940_v33 = vld [vmem:[#allocation20_spill] sm:$0xff]  ;;  %v16941_v29 = vld [vmem:[#allocation37_spill] sm:$0xff] }
 0x176   : > { %16870 = vst [vmem:[#allocation120_spill] sm:$0xff] %v8520_v60  ;;  %16871 = vst [vmem:[#allocation121_spill] sm:$0xff] %v8524_v10  ;;  %v1949_v15 = vmul.f32 %v8149_v36, %v8430_v7  ;;  %v1950_v44 = vmul.f32 %v8149_v36, %v8490_v43  ;;  %v1951_v45 = vmul.f32 %v8149_v36, %v8434_v58  ;;  %v16947_v63 = vld [vmem:[#allocation12_spill] sm:$0xff] }
 0x177   : > { %v1952_v54 = vmul.f32 %v8149_v36, %v8494_v9  ;;  %v1953_v31 = vmul.f32 %v8149_v36, %v8438_v1  ;;  %v1954_v21 = vmul.f32 %v8149_v36, %v8498_v35  ;;  %v1955_v37 = vmul.f32 %v8149_v36, %v8442_v53  ;;  %v16923_v53 = vld [vmem:[#allocation66_spill] sm:$0xff] }
 0x178   : > { %v1956_v2 = vmul.f32 %v8149_v36, %v8502_v20  ;;  %v8575_v3 = vsub.f32 %v7874_v62, %v8540_v46  ;;  %v8578_v40 = vrot.slane %v570_v23, %v16779_v4  ;;  %v1957_v9 = vmul.f32 %v8149_v36, %v8452_v0  ;;  %v16901_v0 = vld [vmem:[#allocation44_spill] sm:$0xff] }
 0x179   : > { %v1958_v1 = vmul.f32 %v8149_v36, %v8506_v49  ;;  %v8586_v35 = vsub.f32 %v7879_v34, %v8540_v46  ;;  %v1959_v20 = vmul.f32 %v8149_v36, %v8456_v12  ;;  %v1960_v62 = vmul.f32 %v8149_v36, %v8516_v41 }
 0x17a   : > { %16872 = vst [vmem:[#allocation122_spill] sm:$0xff] %v8575_v3  ;;  %16873 = vst [vmem:[#allocation123_spill] sm:$0xff] %v8578_v40  ;;  %v1961_v23 = vmul.f32 %v8149_v36, %v8460_v16  ;;  %v8596_v40 = vsub.f32 %v7884_v24, %v8540_v46  ;;  %v1962_v4 = vmul.f32 %v8149_v36, %v8520_v60 }
 0x17b   : > { %16874 = vst [vmem:[#allocation124_spill] sm:$0xff] %v8586_v35  ;;  %v1963_v34 = vmul.f32 %v8149_v36, %v8464_v14  ;;  %v1964_v49 = vmul.f32 %v8149_v36, %v8524_v10  ;;  %v8606_v12 = vsub.f32 %v7889_v56, %v8540_v46  ;;  %v8609_v41 = vadd.f32 %v1937_v51, %v8207_v59 }
 0x17c   : > { %16875 = vst [vmem:[#allocation125_spill] sm:$0xff] %v8596_v40  ;;  %v8612_v16 = vadd.f32 %v1938_v26, %v8211_v22  ;;  %v8615_v24 = vadd.f32 %v1939_v28, %v8215_v48  ;;  %v1615_v60 = vmul.f32 %v8575_v3, %v8575_v3  ;;  %v8620_v14 = vadd.f32 %v1940_v30, %v8229_v27  ;;  %v16879_v48 = vld [vmem:[#allocation31_spill] sm:$0xff]  ;;  %v16881_v26 = vld [vmem:[#allocation38_spill] sm:$0xff] }
 0x17d   : > { %16876 = vst [vmem:[#allocation126_spill] sm:$0xff] %v8606_v12  ;;  %v8623_v36 = vadd.f32 %v1941_v5, %v8233_v6  ;;  %v8626_v56 = vadd.f32 %v1942_v50, %v8237_v11  ;;  %v1614_v59 = vmul.f32 %v8586_v35, %v8586_v35  ;;  %v8631_v22 = vadd.f32 %v1943_v8, %v8250_v39  ;;  %v16883_v27 = vld [vmem:[#allocation62_spill] sm:$0xff]  ;;  %v16885_v11 = vld [vmem:[#allocation21_spill] sm:$0xff]  ;;  %v16889_v39 = vld [vmem:[#allocation75_spill] sm:$0xff] }
 0x17e   : > { %v8634_v51 = vadd.f32 %v1944_v61, %v16879_v48  ;;  %v8637_v28 = vadd.f32 %v1945_v57, %v16881_v26  ;;  %v8641_v30 = vsub.f32 %v16883_v27, %v8540_v46  ;;  %v1617_v6 = vmul.f32 %v8596_v40, %v8596_v40  ;;  %v16887_v50 = vld [vmem:[#allocation49_spill] sm:$0xff]  ;;  %v16891_v57 = vld [vmem:[#allocation50_spill] sm:$0xff]  ;;  %v16899_v35 = vld [vmem:[#allocation27_spill] sm:$0xff] }
 0x17f   : > { %16877 = vst [vmem:[#allocation127_spill] sm:$0xff] %v8626_v56  ;;  %16878 = vst [vmem:[#allocation128_spill] sm:$0xff] %v8631_v22  ;;  %v8646_v5 = vadd.f32 %v1946_v47, %v16885_v11  ;;  %v8649_v3 = vadd.f32 %v1947_v52, %v16887_v50  ;;  %v8653_v8 = vsub.f32 %v16889_v39, %v8540_v46  ;;  %v16893_v26 = vld [vmem:[#allocation10_spill] sm:$0xff]  ;;  %v1642_v40 = vsel %vm1537_vm2, %v1615_v60, 0.0  ;;  %v16895_v47 = vld [vmem:[#allocation16_spill] sm:$0xff] }
 0x180   : > { %16880 = vst [vmem:[#allocation31_spill] sm:$0xff] %v8634_v51  ;;  %16882 = vst [vmem:[#allocation38_spill] sm:$0xff] %v8637_v28  ;;  %v1616_v61 = vmul.f32 %v8606_v12, %v8606_v12  ;;  %v8658_v48 = vadd.f32 %v1948_v19, %v16891_v57  ;;  %v8661_v27 = vadd.f32 %v1949_v15, %v16893_v26  ;;  %v16897_v52 = vld [vmem:[#allocation45_spill] sm:$0xff]  ;;  %v16903_v19 = vld [vmem:[#allocation28_spill] sm:$0xff] }
 0x181   : > { %16884 = vst [vmem:[#allocation62_spill] sm:$0xff] %v8641_v30  ;;  %16886 = vst [vmem:[#allocation21_spill] sm:$0xff] %v8646_v5  ;;  %v8665_v11 = vadd.f32 %v1950_v44, %v16895_v47  ;;  %v8668_v50 = vadd.f32 %v1951_v45, %v16897_v52  ;;  %v8671_v39 = vadd.f32 %v1952_v54, %v16899_v35  ;;  %v16905_v15 = vld [vmem:[#allocation30_spill] sm:$0xff]  ;;  %v16907_v60 = vld [vmem:[#allocation63_spill] sm:$0xff]  ;;  %v1645_v35 = vsel %vm1537_vm2, %v1617_v6, 0.0 }
 0x182   : > { %16888 = vst [vmem:[#allocation49_spill] sm:$0xff] %v8649_v3  ;;  %16890 = vst [vmem:[#allocation75_spill] sm:$0xff] %v8653_v8  ;;  %v1643_v10 = vadd.f32 %v1642_v40, %v1614_v59  ;;  %v8674_v12 = vadd.f32 %v1953_v31, %v16901_v0  ;;  %v8677_v57 = vadd.f32 %v1954_v21, %v16903_v19  ;;  %v16909_v54 = vld [vmem:[#allocation72_spill] sm:$0xff]  ;;  %v16915_v52 = vld [vmem:[#allocation53_spill] sm:$0xff]  ;;  %v16997_v3 = vrot.slane %v16947_v63, 2 }
 0x183   : > { %16892 = vst [vmem:[#allocation50_spill] sm:$0xff] %v8658_v48  ;;  %16894 = vst [vmem:[#allocation10_spill] sm:$0xff] %v8661_v27  ;;  %v8680_v26 = vadd.f32 %v1955_v37, %v16905_v15  ;;  %v8684_v44 = vsub.f32 %v16907_v60, %v8540_v46  ;;  %v1619_v45 = vmul.f32 %v8641_v30, %v8641_v30  ;;  %v16911_v0 = vld [vmem:[#allocation76_spill] sm:$0xff]  ;;  %v16919_v6 = vld [vmem:[#allocation73_spill] sm:$0xff] }
 0x184   : > { %16896 = vst [vmem:[#allocation16_spill] sm:$0xff] %v8665_v11  ;;  %16898 = vst [vmem:[#allocation45_spill] sm:$0xff] %v8668_v50  ;;  %v8690_v40 = vadd.f32 %v1956_v2, %v16909_v54  ;;  %v8694_v31 = vsub.f32 %v16911_v0, %v8540_v46  ;;  %v1618_v21 = vmul.f32 %v8653_v8, %v8653_v8  ;;  %v16913_v59 = vld [vmem:[#allocation60_spill] sm:$0xff]  ;;  %v16921_v54 = vld [vmem:[#allocation61_spill] sm:$0xff]  ;;  %v16990_v50 = vrot.slane %v16941_v29, 2 }
 0x185   : > { %16900 = vst [vmem:[#allocation27_spill] sm:$0xff] %v8671_v39  ;;  %16902 = vst [vmem:[#allocation44_spill] sm:$0xff] %v8674_v12  ;;  %v1644_v37 = vadd.f32 %v1643_v10, %v1616_v61  ;;  %v8699_v47 = vadd.f32 %v1957_v9, %v16913_v59  ;;  %v8702_v19 = vadd.f32 %v1958_v1, %v16915_v52  ;;  %v16917_v15 = vld [vmem:[#allocation36_spill] sm:$0xff]  ;;  %v16925_v10 = vld [vmem:[#allocation54_spill] sm:$0xff] }
 0x186   : > { %16904 = vst [vmem:[#allocation28_spill] sm:$0xff] %v8677_v57  ;;  %16906 = vst [vmem:[#allocation30_spill] sm:$0xff] %v8680_v26  ;;  %v8705_v60 = vadd.f32 %v1959_v20, %v16917_v15  ;;  %v8708_v2 = vadd.f32 %v1960_v62, %v16919_v6  ;;  %v8711_v30 = vadd.f32 %v1961_v23, %v16921_v54  ;;  %v16927_v9 = vld [vmem:[#allocation35_spill] sm:$0xff]  ;;  %v16929_v1 = vld [vmem:[#allocation64_spill] sm:$0xff]  ;;  %v1648_v23 = vsel %vm1537_vm2, %v1619_v45, 0.0 }
 0x187   : > { %16908 = vst [vmem:[#allocation63_spill] sm:$0xff] %v8684_v44  ;;  %16910 = vst [vmem:[#allocation72_spill] sm:$0xff] %v8690_v40  ;;  %v1646_v0 = vadd.f32 %v1645_v35, %v1644_v37  ;;  %v8714_v58 = vadd.f32 %v1962_v4, %v16923_v53  ;;  %v8717_v61 = vadd.f32 %v1963_v34, %v16925_v10  ;;  %v16931_v52 = vld [vmem:[#allocation86_spill] sm:$0xff]  ;;  %v16932_v4 = vld [vmem:[#allocation77_spill] sm:$0xff] }
 0x188   : > { %16912 = vst [vmem:[#allocation76_spill] sm:$0xff] %v8694_v31  ;;  %16914 = vst [vmem:[#allocation60_spill] sm:$0xff] %v8699_v47  ;;  %v8720_v59 = vadd.f32 %v1964_v49, %v16927_v9  ;;  %v8724_v20 = vsub.f32 %v16929_v1, %v8540_v46  ;;  %v1621_v62 = vmul.f32 %v8684_v44, %v8684_v44  ;;  %v16934_v37 = vld [vmem:[#allocation87_spill] sm:$0xff]  ;;  %v16936_v10 = vld [vmem:[#allocation96_spill] sm:$0xff]  ;;  %v16973_v57 = vrot.slane %v16931_v52, 2 }
 0x189   : > { %16916 = vst [vmem:[#allocation53_spill] sm:$0xff] %v8702_v19  ;;  %16918 = vst [vmem:[#allocation36_spill] sm:$0xff] %v8705_v60  ;;  %v8732_v53 = vsub.f32 %v16932_v4, %v8540_v46  ;;  %v1620_v34 = vmul.f32 %v8694_v31, %v8694_v31  ;;  %v1647_v49 = vadd.f32 %v1646_v0, %v1618_v21  ;;  %v16935_v6 = vld [vmem:[#allocation47_spill] sm:$0xff]  ;;  %v16937_v1 = vld [vmem:[#allocation25_spill] sm:$0xff]  ;;  %v16974_v47 = vrot.slane %v16934_v37, 2 }
 0x18a   : > { %16920 = vst [vmem:[#allocation73_spill] sm:$0xff] %v8708_v2  ;;  %16922 = vst [vmem:[#allocation61_spill] sm:$0xff] %v8711_v30  ;;  %v16938_v8 = vld [vmem:[#allocation15_spill] sm:$0xff]  ;;  %v16939_v35 = vld [vmem:[#allocation18_spill] sm:$0xff]  ;;  %v1623_v0 = vmul.f32 %v8724_v20, %v8724_v20  ;;  %v1651_v9 = vsel %vm1537_vm2, %v1621_v62, 0.0  ;;  %v2007_v62 = vrot.slane %v16951_v32, 2 }
 0x18b   : > { %16924 = vst [vmem:[#allocation66_spill] sm:$0xff] %v8714_v58  ;;  %16926 = vst [vmem:[#allocation54_spill] sm:$0xff] %v8717_v61  ;;  %v1649_v43 = vadd.f32 %v1648_v23, %v1647_v49  ;;  %v16942_v31 = vld [vmem:[#allocation65_spill] sm:$0xff]  ;;  %v16944_v54 = vld [vmem:[#allocation14_spill] sm:$0xff]  ;;  %v1622_v49 = vmul.f32 %v8732_v53, %v8732_v53  ;;  %v17009_v22 = vrot.slane %v16934_v37, 2 }
 0x18c   : > { %16928 = vst [vmem:[#allocation35_spill] sm:$0xff] %v8720_v59  ;;  %16930 = vst [vmem:[#allocation64_spill] sm:$0xff] %v8724_v20  ;;  %v8746_v21 = vsub.f32 %v16942_v31, %v8540_v46  ;;  %v16945_v45 = vld [vmem:[#allocation78_spill] sm:$0xff]  ;;  %v16948_v15 = vld [vmem:[#allocation23_spill] sm:$0xff]  ;;  %v1654_v55 = vsel %vm1537_vm2, %v1623_v0, 0.0  ;;  %v16994_v48 = vrot.slane %v16944_v54, 2 }
 0x18d   : > { %16933 = vst [vmem:[#allocation86_spill] sm:$0xff] %v8732_v53  ;;  %v8754_v23 = vsub.f32 %v16945_v45, %v8540_v46  ;;  %v1650_v4 = vadd.f32 %v1649_v43, %v1620_v34  ;;  %v16952_v44 = vld [vmem:[#allocation7_spill] sm:$0xff]  ;;  %v2009_v45 = vrot.slane %v16953_v42, 2  ;;  %v16954_v59 = vld [vmem:[#allocation22_spill] sm:$0xff]  ;;  %v16962_v58 = vld [vmem:[#allocation24_spill] sm:$0xff]  ;;  %v17000_v5 = vrot.slane %v16948_v15, 2 }
 0x18e   : > { %16943 = vst [vmem:[#allocation77_spill] sm:$0xff] %v8746_v21  ;;  %v2008_v18 = vrot.slane %v16952_v44, 2  ;;  %v2010_v61 = vrot.slane %v16954_v59, 2  ;;  %v16955_v53 = vld [vmem:[#allocation51_spill] sm:$0xff]  ;;  %v1625_v34 = vmul.f32 %v8746_v21, %v8746_v21  ;;  %v16957_v31 = vld [vmem:[#allocation26_spill] sm:$0xff]  ;;  %v16960_v59 = vld [vmem:[#allocation17_spill] sm:$0xff] }
 0x18f   : > { %16946 = vst [vmem:[#allocation87_spill] sm:$0xff] %v8754_v23  ;;  %v1652_v25 = vadd.f32 %v1651_v9, %v1650_v4  ;;  %v8768_v43 = vsub.f32 %v16955_v53, %v8540_v46  ;;  %v2011_v20 = vrot.slane %v16957_v31, 2  ;;  %v16958_v32 = vld [vmem:[#allocation42_spill] sm:$0xff]  ;;  %v1624_v4 = vmul.f32 %v8754_v23, %v8754_v23  ;;  %v16961_v44 = vld [vmem:[#allocation19_spill] sm:$0xff]  ;;  %v16967_v26 = vld [vmem:[#allocation33_spill] sm:$0xff] }
 0x190   : > { %v8776_v9 = vsub.f32 %v16958_v32, %v8540_v46  ;;  %v2012_v42 = vrot.slane %v16960_v59, 2  ;;  %v2013_v53 = vrot.slane %v16961_v44, 2  ;;  %v2014_v30 = vrot.slane %v16962_v58, 2  ;;  %v16963_v2 = vld [vmem:[#allocation39_spill] sm:$0xff]  ;;  %v16966_v40 = vld [vmem:[#allocation46_spill] sm:$0xff]  ;;  %v16968_v23 = vld [vmem:[#allocation89_spill] sm:$0xff] }
 0x191   : > { %16956 = vst [vmem:[#allocation47_spill] sm:$0xff] %v8768_v43  ;;  %v1653_v7 = vadd.f32 %v1652_v25, %v1622_v49  ;;  %v2015_v21 = vrot.slane %v16963_v2, 2  ;;  %v16964_v60 = vld [vmem:[#allocation11_spill] sm:$0xff]  ;;  %v8790_v25 = vsub.f32 %v16968_v23, %v8540_v46  ;;  %v1627_v49 = vmul.f32 %v8768_v43, %v8768_v43  ;;  %v16970_v44 = vld [vmem:[#allocation34_spill] sm:$0xff]  ;;  %v16992_v11 = vld [vmem:[#allocation52_spill] sm:$0xff] }
 0x192   : > { %16959 = vst [vmem:[#allocation96_spill] sm:$0xff] %v8776_v9  ;;  %v2016_v0 = vrot.slane %v16964_v60, 2  ;;  %v16965_v31 = vld [vmem:[#allocation59_spill] sm:$0xff]  ;;  %v1657_v58 = vsel %vm1537_vm2, %v1625_v34, 0.0  ;;  %v16971_v60 = vld [vmem:[#allocation9_spill] sm:$0xff]  ;;  %v8806_v23 = vsel %vm806_vm1, %v16973_v57, %v2007_v62  ;;  %v8812_v34 = vsel %vm806_vm1, %v16974_v47, %v2008_v18 }
 0x193   : > { %v1655_v19 = vadd.f32 %v1654_v55, %v1653_v7  ;;  %16969 = vst [vmem:[#allocation18_spill] sm:$0xff] %v8790_v25  ;;  %v8798_v55 = vsub.f32 %v16971_v60, %v8540_v46  ;;  %v1626_v7 = vmul.f32 %v8776_v9, %v8776_v9  ;;  %16975 = vst [vmem:[#allocation65_spill] sm:$0xff] %v8812_v34  ;;  %v16976_v2 = vrot.slane %v16935_v6, 2 }
 0x194   : > { %v16980_v57 = vrot.slane %v16937_v1, 2  ;;  %v16982_v9 = vrot.slane %v16938_v8, 2  ;;  %v8865_v27 = vsub.f32 %v16992_v11, %v8540_v46  ;;  %v16999_v11 = vrot.slane %v16966_v40, 2 }
 0x195   : > { %16972 = vst [vmem:[#allocation20_spill] sm:$0xff] %v8798_v55  ;;  %v1656_v32 = vadd.f32 %v1655_v19, %v1624_v4  ;;  %v8818_v60 = vsel %vm806_vm1, %v16976_v2, %v2009_v45  ;;  %v16978_v19 = vrot.slane %v16936_v10, 2  ;;  %v16984_v2 = vrot.slane %v16939_v35, 2 }
 0x196   : > { %16977 = vst [vmem:[#allocation78_spill] sm:$0xff] %v8818_v60  ;;  %v8830_v43 = vsel %vm806_vm1, %v16980_v57, %v2011_v20  ;;  %v8836_v59 = vsel %vm806_vm1, %v16982_v9, %v2012_v42  ;;  %v1629_v9 = vmul.f32 %v8790_v25, %v8790_v25  ;;  %v1660_v57 = vsel %vm1537_vm2, %v1627_v49, 0.0  ;;  %16993 = vst [vmem:[#allocation89_spill] sm:$0xff] %v8865_v27 }
 0x197   : > { %v8824_v4 = vsel %vm806_vm1, %v16978_v19, %v2010_v61  ;;  %16981 = vst [vmem:[#allocation23_spill] sm:$0xff] %v8830_v43  ;;  %v1658_v47 = vadd.f32 %v1657_v58, %v1656_v32  ;;  %16983 = vst [vmem:[#allocation32_spill] sm:$0xff] %v8836_v59  ;;  %v8842_v12 = vsel %vm806_vm1, %v16984_v2, %v2013_v53  ;;  %v16986_v19 = vrot.slane %v16940_v33, 2  ;;  %v16988_v58 = vld [vmem:[#allocation90_spill] sm:$0xff] }
 0x198   : > { %16979 = vst [vmem:[#allocation12_spill] sm:$0xff] %v8824_v4  ;;  %16985 = vst [vmem:[#allocation101_spill] sm:$0xff] %v8842_v12  ;;  %v8852_v32 = vsub.f32 %v16988_v58, %v8540_v46  ;;  %v8861_v2 = vsel %vm806_vm1, %v16990_v50, %v2015_v21  ;;  %v8873_v25 = vsel %vm806_vm1, %v16994_v48, %v2016_v0  ;;  %v16996_v49 = vrot.slane %v16965_v31, 2 }
 0x199   : > { %v8848_v39 = vsel %vm806_vm1, %v16986_v19, %v2014_v30  ;;  %16991 = vst [vmem:[#allocation59_spill] sm:$0xff] %v8861_v2  ;;  %v1628_v19 = vmul.f32 %v8798_v55, %v8798_v55  ;;  %v1659_v58 = vadd.f32 %v1658_v47, %v1626_v7  ;;  %16995 = vst [vmem:[#allocation9_spill] sm:$0xff] %v8873_v25  ;;  %v17002_v47 = vrot.slane %v16967_v26, 2 }
 0x19a   : > { %16987 = vst [vmem:[#allocation51_spill] sm:$0xff] %v8848_v39  ;;  %16989 = vst [vmem:[#allocation42_spill] sm:$0xff] %v8852_v32  ;;  %v8881_v50 = vsel %vm806_vm1, %v16997_v3, %v16996_v49  ;;  %v8889_v7 = vsel %vm806_vm1, %v17000_v5, %v16999_v11  ;;  %v17003_v48 = vrot.slane %v16949_v38, 2  ;;  %v17005_v28 = vrot.slane %v16970_v44, 2 }
 0x19b   : > { %16998 = vst [vmem:[#allocation90_spill] sm:$0xff] %v8881_v50  ;;  %17001 = vst [vmem:[#allocation52_spill] sm:$0xff] %v8889_v7  ;;  %v17006_v3 = vrot.slane %v16950_v13, 2  ;;  %v1661_v51 = vadd.f32 %v1660_v57, %v1659_v58  ;;  %v17008_v5 = vrot.slane %v16931_v52, 2  ;;  %v1631_v52 = vmul.f32 %v8852_v32, %v8852_v32 }
 0x19c   : > { %v8897_v55 = vsel %vm806_vm1, %v17003_v48, %v17002_v47  ;;  %v8915_v47 = vsel %vm806_vm1, %v2008_v18, %v17009_v22  ;;  %v17011_v48 = vrot.slane %v16935_v6, 2  ;;  %v17015_v58 = vrot.slane %v16936_v10, 2  ;;  %v17017_v22 = vld [vmem:[#allocation79_spill] sm:$0xff] }
 0x19d   : > { %17004 = vst [vmem:[#allocation129_spill] sm:$0xff] %v8897_v55  ;;  %v8905_v49 = vsel %vm806_vm1, %v17006_v3, %v17005_v28  ;;  %v2035_v11 = vsel %vm806_vm1, %v2007_v62, %v17008_v5  ;;  %17010 = vst [vmem:[#allocation131_spill] sm:$0xff] %v8915_v47  ;;  %v17013_v28 = vld [vmem:[#allocation91_spill] sm:$0xff]  ;;  %v1663_v62 = vsel %vm1537_vm2, %v1629_v9, 0.0  ;;  %v8938_v3 = vsub.f32 %v17017_v22, %v8540_v46  ;;  %v17021_v9 = vld [vmem:[#allocation92_spill] sm:$0xff] }
 0x19e   : > { %17007 = vst [vmem:[#allocation130_spill] sm:$0xff] %v8905_v49  ;;  %v8921_v56 = vsel %vm806_vm1, %v2009_v45, %v17011_v48  ;;  %v8925_v57 = vsub.f32 %v17013_v28, %v8540_v46  ;;  %v8934_v18 = vsel %vm806_vm1, %v2010_v61, %v17015_v58  ;;  %v1630_v45 = vmul.f32 %v8865_v27, %v8865_v27  ;;  %v17023_v61 = vld [vmem:[#allocation93_spill] sm:$0xff] }
 0x19f   : > { %17012 = vst [vmem:[#allocation132_spill] sm:$0xff] %v8921_v56  ;;  %17016 = vst [vmem:[#allocation133_spill] sm:$0xff] %v8934_v18  ;;  %v1662_v5 = vadd.f32 %v1661_v51, %v1628_v19  ;;  %v17019_v48 = vrot.slane %v16937_v1, 2  ;;  %v8950_v32 = vsub.f32 %v17021_v9, %v8540_v46  ;;  %v8954_v58 = vsub.f32 %v17023_v61, %v8540_v46  ;;  %v17029_v19 = vld [vmem:[#allocation81_spill] sm:$0xff]  ;;  %v17031_v9 = vld [vmem:[#allocation82_spill] sm:$0xff] }
 0x1a0   : > { %17014 = vst [vmem:[#allocation91_spill] sm:$0xff] %v8925_v57  ;;  %17018 = vst [vmem:[#allocation79_spill] sm:$0xff] %v8938_v3  ;;  %v17025_v22 = vrot.slane %v16938_v8, 2  ;;  %v17027_v51 = vrot.slane %v16939_v35, 2  ;;  %v8974_v61 = vsub.f32 %v17031_v9, %v8540_v46  ;;  %v17033_v8 = vrot.slane %v16940_v33, 2 }
 0x1a1   : > { %v8946_v28 = vsel %vm806_vm1, %v2011_v20, %v17019_v48  ;;  %17022 = vst [vmem:[#allocation92_spill] sm:$0xff] %v8950_v32  ;;  %17024 = vst [vmem:[#allocation93_spill] sm:$0xff] %v8954_v58  ;;  %v8970_v48 = vsub.f32 %v17029_v19, %v8540_v46  ;;  %v1664_v1 = vadd.f32 %v1663_v62, %v1662_v5  ;;  %v17037_v9 = vrot.slane %v16944_v54, 2  ;;  %v17041_v5 = vld [vmem:[#allocation94_spill] sm:$0xff]  ;;  %v17045_v54 = vld [vmem:[#allocation83_spill] sm:$0xff] }
 0x1a2   : > { %17020 = vst [vmem:[#allocation134_spill] sm:$0xff] %v8946_v28  ;;  %v8960_v27 = vsel %vm806_vm1, %v2012_v42, %v17025_v22  ;;  %v8966_v20 = vsel %vm806_vm1, %v2013_v53, %v17027_v51  ;;  %17032 = vst [vmem:[#allocation82_spill] sm:$0xff] %v8974_v61  ;;  %v8980_v42 = vsel %vm806_vm1, %v2014_v30, %v17033_v8  ;;  %v1666_v53 = vsel %vm1537_vm2, %v1631_v52, 0.0  ;;  %v17039_v30 = vld [vmem:[#allocation80_spill] sm:$0xff] }
 0x1a3   : > { %17026 = vst [vmem:[#allocation135_spill] sm:$0xff] %v8960_v27  ;;  %17028 = vst [vmem:[#allocation136_spill] sm:$0xff] %v8966_v20  ;;  %v1633_v22 = vmul.f32 %v8925_v57, %v8925_v57  ;;  %v17035_v51 = vrot.slane %v16941_v29, 2  ;;  %v8995_v62 = vsel %vm806_vm1, %v2016_v0, %v17037_v9  ;;  %v8999_v8 = vsub.f32 %v17039_v30, %v8540_v46 }
 0x1a4   : > { %17030 = vst [vmem:[#allocation81_spill] sm:$0xff] %v8970_v48  ;;  %17034 = vst [vmem:[#allocation137_spill] sm:$0xff] %v8980_v42  ;;  %v9003_v57 = vsub.f32 %v17041_v5, %v8540_v46  ;;  %v1632_v52 = vmul.f32 %v8938_v3, %v8938_v3  ;;  %v1665_v29 = vadd.f32 %v1664_v1, %v1630_v45  ;;  %v17048_v3 = vrot.slane %v16965_v31, 2 }
 0x1a5   : > { %v8989_v19 = vsel %vm806_vm1, %v2015_v21, %v17035_v51  ;;  %17038 = vst [vmem:[#allocation139_spill] sm:$0xff] %v8995_v62  ;;  %17040 = vst [vmem:[#allocation80_spill] sm:$0xff] %v8999_v8  ;;  %v17043_v21 = vld [vmem:[#allocation97_spill] sm:$0xff]  ;;  %v9013_v0 = vsub.f32 %v17045_v54, %v8540_v46  ;;  %v1635_v9 = vmul.f32 %v8950_v32, %v8950_v32  ;;  %v1669_v54 = vsel %vm1537_vm2, %v1633_v22, 0.0 }
 0x1a6   : > { %17036 = vst [vmem:[#allocation138_spill] sm:$0xff] %v8989_v19  ;;  %17042 = vst [vmem:[#allocation94_spill] sm:$0xff] %v9003_v57  ;;  %v9009_v51 = vsub.f32 %v17043_v21, %v8540_v46  ;;  %v1637_v30 = vmul.f32 %v8954_v58, %v8954_v58  ;;  %v1639_v5 = vmul.f32 %v8970_v48, %v8970_v48  ;;  %v17047_v21 = vrot.slane %v16947_v63, 2 }
 0x1a7   : > { %17046 = vst [vmem:[#allocation83_spill] sm:$0xff] %v9013_v0  ;;  %v1641_v1 = vmul.f32 %v8974_v61, %v8974_v61  ;;  %v1667_v45 = vadd.f32 %v1666_v53, %v1665_v29  ;;  %v17050_v32 = vrot.slane %v16948_v15, 2  ;;  %v17051_v58 = vrot.slane %v16966_v40, 2 }
 0x1a8   : > { %17044 = vst [vmem:[#allocation97_spill] sm:$0xff] %v9009_v51  ;;  %v9029_v46 = vsel %vm806_vm1, %v17048_v3, %v17047_v21  ;;  %v17053_v29 = vrot.slane %v16949_v38, 2  ;;  %v17054_v53 = vrot.slane %v16967_v26, 2  ;;  %v17056_v3 = vrot.slane %v16950_v13, 2  ;;  %v17059_v26 = vld [vmem:[#allocation98_spill] sm:$0xff] }
 0x1a9   : > { %17049 = vst [vmem:[#allocation140_spill] sm:$0xff] %v9029_v46  ;;  %v9038_v48 = vsel %vm806_vm1, %v17051_v58, %v17050_v32  ;;  %v17057_v22 = vrot.slane %v16970_v44, 2  ;;  %v1634_v32 = vmul.f32 %v8999_v8, %v8999_v8  ;;  %v1636_v58 = vmul.f32 %v9003_v57, %v9003_v57 }
 0x1aa   : > { %17052 = vst [vmem:[#allocation141_spill] sm:$0xff] %v9038_v48  ;;  %v9046_v61 = vsel %vm806_vm1, %v17054_v53, %v17053_v29  ;;  %v1668_v38 = vadd.f32 %v1667_v45, %v1632_v52  ;;  %v2053_v40 = vmul.f32 %v17059_v26, %v8806_v23  ;;  %v1638_v29 = vmul.f32 %v9009_v51, %v9009_v51 }
 0x1ab   : > { %17055 = vst [vmem:[#allocation142_spill] sm:$0xff] %v9046_v61  ;;  %v9054_v21 = vsel %vm806_vm1, %v17057_v22, %v17056_v3  ;;  %v1640_v53 = vmul.f32 %v9013_v0, %v9013_v0  ;;  %v1672_v17 = vsel %vm1537_vm2, %v1635_v9, 0.0  ;;  %v1675_v3 = vsel %vm1537_vm2, %v1637_v30, 0.0 }
 0x1ac   : > { %17058 = vst [vmem:[#allocation143_spill] sm:$0xff] %v9054_v21  ;;  %v1670_v22 = vadd.f32 %v1669_v54, %v1668_v38  ;;  %v1678_v8 = vsel %vm1537_vm2, %v1639_v5, 0.0  ;;  %v1681_v44 = vsel %vm1537_vm2, %v1641_v1, 0.0  ;;  %v2054_v52 = vmul.f32 %v17059_v26, %v2035_v11 }
 0x1ad   : > { %v2055_v23 = vmul.f32 %v17059_v26, %v8812_v34  ;;  %v2056_v45 = vmul.f32 %v17059_v26, %v8915_v47  ;;  %v2057_v0 = vmul.f32 %v17059_v26, %v8818_v60  ;;  %v2058_v9 = vmul.f32 %v17059_v26, %v8921_v56  ;;  %v17100_v47 = vld [vmem:[#allocation11_spill] sm:$0xff]  ;;  %v17104_v34 = vld [vmem:[#allocation33_spill] sm:$0xff] }
 0x1ae   : > { %v1671_v30 = vadd.f32 %v1670_v22, %v1634_v32  ;;  %v2059_v38 = vmul.f32 %v17059_v26, %v8824_v4  ;;  %v2060_v5 = vmul.f32 %v17059_v26, %v8934_v18  ;;  %v2061_v11 = vmul.f32 %v17059_v26, %v8830_v43 }
 0x1af   : > { %v2062_v1 = vmul.f32 %v17059_v26, %v8946_v28  ;;  %v2063_v54 = vmul.f32 %v17059_v26, %v8836_v59  ;;  %v2064_v60 = vmul.f32 %v17059_v26, %v8960_v27  ;;  %v2065_v32 = vmul.f32 %v17059_v26, %v8842_v12 }
 0x1b0   : > { %v1673_v22 = vadd.f32 %v1672_v17, %v1671_v30  ;;  %v2066_v4 = vmul.f32 %v17059_v26, %v8966_v20  ;;  %v2067_v18 = vmul.f32 %v17059_v26, %v8848_v39  ;;  %v2068_v43 = vmul.f32 %v17059_v26, %v8980_v42 }
 0x1b1   : > { %v2069_v28 = vmul.f32 %v17059_v26, %v8861_v2  ;;  %v2070_v59 = vmul.f32 %v17059_v26, %v8989_v19  ;;  %v2071_v27 = vmul.f32 %v17059_v26, %v8873_v25  ;;  %v2072_v17 = vmul.f32 %v17059_v26, %v8995_v62 }
 0x1b2   : > { %v1674_v30 = vadd.f32 %v1673_v22, %v1636_v58  ;;  %v2073_v20 = vmul.f32 %v17059_v26, %v8881_v50  ;;  %v2074_v39 = vmul.f32 %v17059_v26, %v9029_v46  ;;  %v2075_v42 = vmul.f32 %v17059_v26, %v8889_v7 }
 0x1b3   : > { %v2076_v2 = vmul.f32 %v17059_v26, %v9038_v48  ;;  %v2077_v19 = vmul.f32 %v17059_v26, %v8897_v55  ;;  %v2078_v25 = vmul.f32 %v17059_v26, %v9046_v61  ;;  %v2079_v58 = vmul.f32 %v17059_v26, %v8905_v49  ;;  %v17060_v49 = vld [vmem:[#allocation127_spill] sm:$0xff] }
 0x1b4   : > { %v1676_v22 = vadd.f32 %v1675_v3, %v1674_v30  ;;  %v2080_v50 = vmul.f32 %v17059_v26, %v9054_v21  ;;  %v9124_v46 = vadd.f32 %v2053_v40, %v8609_v41  ;;  %v9127_v7 = vadd.f32 %v2054_v52, %v8612_v16  ;;  %v17061_v26 = vld [vmem:[#allocation128_spill] sm:$0xff]  ;;  %v17062_v41 = vld [vmem:[#allocation31_spill] sm:$0xff]  ;;  %v17063_v16 = vld [vmem:[#allocation38_spill] sm:$0xff] }
 0x1b5   : > { %v9130_v48 = vadd.f32 %v2055_v23, %v8615_v24  ;;  %v9133_v55 = vadd.f32 %v2056_v45, %v8620_v14  ;;  %v9136_v61 = vadd.f32 %v2057_v0, %v8623_v36  ;;  %v9139_v3 = vadd.f32 %v2058_v9, %v17060_v49  ;;  %v17064_v24 = vld [vmem:[#allocation21_spill] sm:$0xff]  ;;  %v17066_v36 = vld [vmem:[#allocation50_spill] sm:$0xff] }
 0x1b6   : > { %v1677_v30 = vadd.f32 %v1676_v22, %v1638_v29  ;;  %v9142_v21 = vadd.f32 %v2059_v38, %v17061_v26  ;;  %v9145_v40 = vadd.f32 %v2060_v5, %v17062_v41  ;;  %v9148_v52 = vadd.f32 %v2061_v11, %v17063_v16  ;;  %v17065_v14 = vld [vmem:[#allocation49_spill] sm:$0xff]  ;;  %v17067_v49 = vld [vmem:[#allocation10_spill] sm:$0xff]  ;;  %v17068_v38 = vld [vmem:[#allocation16_spill] sm:$0xff] }
 0x1b7   : > { %v9151_v23 = vadd.f32 %v2062_v1, %v17064_v24  ;;  %v9154_v45 = vadd.f32 %v2063_v54, %v17065_v14  ;;  %v9157_v0 = vadd.f32 %v2064_v60, %v17066_v36  ;;  %v9160_v29 = vadd.f32 %v2065_v32, %v17067_v49  ;;  %v17069_v5 = vld [vmem:[#allocation45_spill] sm:$0xff]  ;;  %v17070_v11 = vld [vmem:[#allocation27_spill] sm:$0xff]  ;;  %v17071_v1 = vld [vmem:[#allocation44_spill] sm:$0xff] }
 0x1b8   : > { %v1679_v9 = vadd.f32 %v1678_v8, %v1677_v30  ;;  %v9163_v22 = vadd.f32 %v2066_v4, %v17068_v38  ;;  %v9166_v26 = vadd.f32 %v2067_v18, %v17069_v5  ;;  %v9169_v41 = vadd.f32 %v2068_v43, %v17070_v11  ;;  %v17072_v54 = vld [vmem:[#allocation28_spill] sm:$0xff]  ;;  %v17073_v60 = vld [vmem:[#allocation30_spill] sm:$0xff]  ;;  %v17076_v18 = vld [vmem:[#allocation53_spill] sm:$0xff] }
 0x1b9   : > { %v9172_v16 = vadd.f32 %v2069_v28, %v17071_v1  ;;  %v9175_v24 = vadd.f32 %v2070_v59, %v17072_v54  ;;  %v9178_v14 = vadd.f32 %v2071_v27, %v17073_v60  ;;  %v17074_v32 = vld [vmem:[#allocation72_spill] sm:$0xff]  ;;  %v9187_v49 = vadd.f32 %v2074_v39, %v17076_v18  ;;  %v17078_v28 = vld [vmem:[#allocation73_spill] sm:$0xff]  ;;  %v17080_v27 = vld [vmem:[#allocation66_spill] sm:$0xff] }
 0x1ba   : > { %v9181_v8 = vadd.f32 %v2072_v17, %v17074_v32  ;;  %v1680_v4 = vadd.f32 %v1679_v9, %v1640_v53  ;;  %v17075_v30 = vld [vmem:[#allocation60_spill] sm:$0xff]  ;;  %v9193_v5 = vadd.f32 %v2076_v2, %v17078_v28  ;;  %v17079_v59 = vld [vmem:[#allocation61_spill] sm:$0xff]  ;;  %v9199_v1 = vadd.f32 %v2078_v25, %v17080_v27  ;;  %v17082_v17 = vld [vmem:[#allocation54_spill] sm:$0xff] }
 0x1bb   : > { %v9184_v36 = vadd.f32 %v2073_v20, %v17075_v30  ;;  %v17077_v43 = vld [vmem:[#allocation36_spill] sm:$0xff]  ;;  %v9196_v11 = vadd.f32 %v2077_v19, %v17079_v59  ;;  %v9202_v53 = vadd.f32 %v2079_v58, %v17082_v17  ;;  %v17084_v9 = vld [vmem:[#allocation35_spill] sm:$0xff]  ;;  %v17090_v30 = vld [vmem:[#allocation25_spill] sm:$0xff] }
 0x1bc   : > { %v9190_v38 = vadd.f32 %v2075_v42, %v17077_v43  ;;  %17081 = vst [vmem:[#allocation98_spill] sm:$0xff] %v9199_v1  ;;  %v1682_v20 = vadd.f32 %v1681_v44, %v1680_v4  ;;  %v9205_v54 = vadd.f32 %v2080_v50, %v17084_v9  ;;  %v17086_v39 = vld [vmem:[#allocation84_spill] sm:$0xff]  ;;  %v17087_v60 = vld [vmem:[#allocation7_spill] sm:$0xff]  ;;  %v17089_v44 = vld [vmem:[#allocation22_spill] sm:$0xff] }
 0x1bd   : > { %17083 = vst [vmem:[#allocation127_spill] sm:$0xff] %v9202_v53  ;;  %v2141_v42 = vmul.f32 %v17086_v39, %v16934_v37  ;;  %v2142_v2 = vmul.f32 %v17086_v39, %v17087_v60  ;;  %v2143_v19 = vmul.f32 %v17086_v39, %v16935_v6  ;;  %v17088_v32 = vld [vmem:[#allocation48_spill] sm:$0xff]  ;;  %v2145_v58 = vmul.f32 %v17086_v39, %v16936_v10  ;;  %v17091_v37 = vld [vmem:[#allocation26_spill] sm:$0xff]  ;;  %v17092_v28 = vld [vmem:[#allocation15_spill] sm:$0xff] }
 0x1be   : > { %17085 = vst [vmem:[#allocation128_spill] sm:$0xff] %v9205_v54  ;;  %v2144_v25 = vmul.f32 %v17086_v39, %v17088_v32  ;;  %v2146_v50 = vmul.f32 %v17086_v39, %v17089_v44  ;;  %v1683_v4 = vrot.slane %v1682_v20, 4  ;;  %v2147_v18 = vmul.f32 %v17086_v39, %v17090_v30  ;;  %v17093_v6 = vld [vmem:[#allocation17_spill] sm:$0xff]  ;;  %v17094_v10 = vld [vmem:[#allocation19_spill] sm:$0xff]  ;;  %v9234_v44 = vld [vmem:[%s6442_s17 + $0x388] sm:$0xff] }
 0x1bf   : > { %v2148_v43 = vmul.f32 %v17086_v39, %v17091_v37  ;;  %v2149_v59 = vmul.f32 %v17086_v39, %v17092_v28  ;;  %v2150_v27 = vmul.f32 %v17086_v39, %v17093_v6  ;;  %v2151_v17 = vmul.f32 %v17086_v39, %v16939_v35  ;;  %17095 = vst [vmem:[#allocation31_spill] sm:$0xff] %v9234_v44  ;;  %v17096_v30 = vld [vmem:[#allocation24_spill] sm:$0xff]  ;;  %v17097_v28 = vld [vmem:[#allocation37_spill] sm:$0xff]  ;;  %v17098_v6 = vld [vmem:[#allocation39_spill] sm:$0xff] }
 0x1c0   : > { %v2152_v9 = vmul.f32 %v17086_v39, %v17094_v10  ;;  %v2153_v60 = vmul.f32 %v17086_v39, %v16940_v33  ;;  %v1684_v32 = vadd.f32 %v1683_v4, %v1682_v20  ;;  %v2154_v37 = vmul.f32 %v17086_v39, %v17096_v30  ;;  %v17099_v35 = vld [vmem:[#allocation14_spill] sm:$0xff] }
 0x1c1   : > { %v2155_v62 = vmul.f32 %v17086_v39, %v17097_v28  ;;  %v2156_v12 = vmul.f32 %v17086_v39, %v17098_v6  ;;  %v2157_v56 = vmul.f32 %v17086_v39, %v17099_v35  ;;  %v2158_v10 = vmul.f32 %v17086_v39, %v17100_v47  ;;  %v17101_v28 = vld [vmem:[#allocation46_spill] sm:$0xff]  ;;  %v17102_v6 = vld [vmem:[#allocation29_spill] sm:$0xff] }
 0x1c2   : > { %v2159_v33 = vmul.f32 %v17086_v39, %v16947_v63  ;;  %v2160_v20 = vmul.f32 %v17086_v39, %v16965_v31  ;;  %v1685_v4 = vrot.slane %v1684_v32, 2  ;;  %v2161_v30 = vmul.f32 %v17086_v39, %v16948_v15  ;;  %v9257_v35 = vld [vmem:[%s6442_s17 + $0x3a8] sm:$0xff] }
 0x1c3   : > { %v2162_v51 = vmul.f32 %v17086_v39, %v17101_v28  ;;  %v2163_v57 = vmul.f32 %v17086_v39, %v17102_v6  ;;  %17103 = vst [vmem:[#allocation38_spill] sm:$0xff] %v9257_v35  ;;  %v2164_v47 = vmul.f32 %v17086_v39, %v17104_v34  ;;  %v2165_v63 = vmul.f32 %v17086_v39, %v16950_v13  ;;  %v17105_v54 = vld [vmem:[#allocation34_spill] sm:$0xff] }
 0x1c4   : > { %v2166_v31 = vmul.f32 %v17086_v39, %v17105_v54  ;;  %v2167_v15 = vmul.f32 %v9234_v44, %v17086_v39  ;;  %v1686_v53 = vadd.f32 %v1685_v4, %v1684_v32  ;;  %v2168_v28 = vmul.f32 %v9257_v35, %v17086_v39 }
 0x1c5   : > { %v9270_v6 = vadd.f32 %v2141_v42, %v9124_v46  ;;  %v9273_v1 = vadd.f32 %v2142_v2, %v9127_v7  ;;  %v9276_v34 = vadd.f32 %v2143_v19, %v9130_v48  ;;  %v9279_v13 = vadd.f32 %v2144_v25, %v9133_v55  ;;  %v17108_v19 = vld [vmem:[#allocation128_spill] sm:$0xff] }
 0x1c6   : > { %v9282_v54 = vadd.f32 %v2145_v58, %v9136_v61  ;;  %v9285_v32 = vadd.f32 %v2146_v50, %v9139_v3  ;;  %v1687_v4 = vrot.slane %v1686_v53, 1  ;;  %v9288_v39 = vadd.f32 %v2147_v18, %v9142_v21  ;;  %v17112_v58 = vld [vmem:[#allocation67_spill] sm:$0xff]  ;;  %v17113_v50 = vld [vmem:[#allocation110_spill] sm:$0xff] }
 0x1c7   : > { %v9291_v46 = vadd.f32 %v2148_v43, %v9145_v40  ;;  %v9294_v7 = vadd.f32 %v2149_v59, %v9148_v52  ;;  %v9297_v48 = vadd.f32 %v2150_v27, %v9151_v23  ;;  %v9300_v55 = vadd.f32 %v2151_v17, %v9154_v45  ;;  %v17116_v27 = vld [vmem:[#allocation55_spill] sm:$0xff]  ;;  %v17136_v43 = vld [vmem:[#allocation120_spill] sm:$0xff] }
 0x1c8   : > { %v9303_v61 = vadd.f32 %v2152_v9, %v9157_v0  ;;  %v9306_v3 = vadd.f32 %v2153_v60, %v9160_v29  ;;  %v1688_v21 = vadd.f32 %v1687_v4, %v1686_v53  ;;  %v9309_v42 = vadd.f32 %v2154_v37, %v9163_v22  ;;  %v17117_v9 = vld [vmem:[#allocation111_spill] sm:$0xff] }
 0x1c9   : > { %v9312_v40 = vadd.f32 %v2155_v62, %v9166_v26  ;;  %v9315_v52 = vadd.f32 %v2156_v12, %v9169_v41  ;;  %v9318_v23 = vadd.f32 %v2157_v56, %v9172_v16  ;;  %v9321_v45 = vadd.f32 %v2158_v10, %v9175_v24  ;;  %v17119_v10 = vld [vmem:[#allocation68_spill] sm:$0xff] }
 0x1ca   : > { %v9324_v0 = vadd.f32 %v2159_v33, %v9178_v14  ;;  %v9327_v29 = vadd.f32 %v2160_v20, %v9181_v8  ;;  %v1689_v22 = vmul.f32 0.0051020407, %v1688_v21  ;;  %v9330_v53 = vadd.f32 %v2161_v30, %v9184_v36  ;;  %v17106_v14 = vld [vmem:[#allocation98_spill] sm:$0xff]  ;;  %v17107_v36 = vld [vmem:[#allocation127_spill] sm:$0xff]  ;;  %v17120_v20 = vld [vmem:[#allocation112_spill] sm:$0xff] }
 0x1cb   : > { %v2210_v62 = vrot.slane %v9234_v44, 1  ;;  %v2224_v12 = vrot.slane %v9257_v35, 1  ;;  %v9335_v56 = vadd.f32 %v2162_v51, %v9187_v49  ;;  %v9338_v26 = vadd.f32 %v2163_v57, %v9190_v38  ;;  %v17109_v51 = vld [vmem:[#allocation74_spill] sm:$0xff]  ;;  %v17110_v49 = vld [vmem:[#allocation99_spill] sm:$0xff]  ;;  %v17111_v38 = vld [vmem:[#allocation109_spill] sm:$0xff] }
 0x1cc   : > { %v9341_v41 = vadd.f32 %v2164_v47, %v9193_v5  ;;  %v9344_v16 = vadd.f32 %v2165_v63, %v9196_v11  ;;  %v1690_v24 = vadd.f32 0.001, %v1689_v22  ;;  %v9347_v8 = vadd.f32 %v2166_v31, %v17106_v14  ;;  %v17121_v47 = vld [vmem:[#allocation56_spill] sm:$0xff]  ;;  %v17122_v31 = vld [vmem:[#allocation113_spill] sm:$0xff]  ;;  %v17124_v21 = vld [vmem:[#allocation114_spill] sm:$0xff] }
 0x1cd   : > { %v9350_v2 = vadd.f32 %v2167_v15, %v17107_v36  ;;  %v9353_v25 = vadd.f32 %v2168_v28, %v17108_v19  ;;  %v2257_v57 = vmul.f32 %v17110_v49, %v17109_v51  ;;  %v2258_v5 = vmul.f32 %v17110_v49, %v17111_v38  ;;  %v17123_v28 = vld [vmem:[#allocation57_spill] sm:$0xff]  ;;  %v17128_v51 = vld [vmem:[#allocation116_spill] sm:$0xff] }
 0x1ce   : > { %v2259_v11 = vmul.f32 %v17110_v49, %v17112_v58  ;;  %v2260_v18 = vmul.f32 %v17110_v49, %v17113_v50  ;;  %6045 = vrsqrt.f32 %v1690_v24  ;;  %v9365_v59 = vsel %vm689_vm0, %v2210_v62, %v2224_v12  ;;  %v17126_v24 = vld [vmem:[#allocation115_spill] sm:$0xff]  ;;  %v17127_v36 = vld [vmem:[#allocation41_spill] sm:$0xff]  ;;  %v17137_v35 = vld [vmem:[#allocation108_spill] sm:$0xff] }
 0x1cf   : > { %17115 = vst [vmem:[#allocation21_spill] sm:$0xff] %v9365_v59  ;;  %v2261_v17 = vmul.f32 %v17110_v49, %v17116_v27  ;;  %v2262_v60 = vmul.f32 %v17110_v49, %v17117_v9  ;;  %v9373_v37 = vsel %vm689_vm0, %v2224_v12, %v2210_v62  ;;  %v2263_v33 = vmul.f32 %v17110_v49, %v17119_v10  ;;  %v17125_v62 = vld [vmem:[#allocation58_spill] sm:$0xff]  ;;  %v17129_v58 = vld [vmem:[#allocation69_spill] sm:$0xff] }
 0x1d0   : > { %17118 = vst [vmem:[#allocation49_spill] sm:$0xff] %v9373_v37  ;;  %v2264_v30 = vmul.f32 %v17110_v49, %v17120_v20  ;;  %v2265_v63 = vmul.f32 %v17110_v49, %v17121_v47  ;;  %v2266_v15 = vmul.f32 %v17110_v49, %v17122_v31  ;;  %v2267_v4 = vmul.f32 %v17110_v49, %v17123_v28  ;;  %v17130_v27 = vld [vmem:[#allocation117_spill] sm:$0xff]  ;;  %v17131_v10 = vld [vmem:[#allocation70_spill] sm:$0xff]  ;;  %v17133_v28 = vld [vmem:[#allocation40_spill] sm:$0xff] }
 0x1d1   : > { %v2268_v22 = vmul.f32 %v17110_v49, %v17124_v21  ;;  %v2269_v12 = vmul.f32 %v17110_v49, %v17125_v62  ;;  %v2270_v14 = vmul.f32 %v17110_v49, %v17126_v24  ;;  %v2271_v19 = vmul.f32 %v17110_v49, %v17127_v36  ;;  %v17132_v47 = vld [vmem:[#allocation118_spill] sm:$0xff]  ;;  %v17134_v62 = vld [vmem:[#allocation119_spill] sm:$0xff]  ;;  %v17138_v44 = vld [vmem:[#allocation121_spill] sm:$0xff] }
 0x1d2   : > { %v2272_v38 = vmul.f32 %v17110_v49, %v17128_v51  ;;  %v2273_v50 = vmul.f32 %v17110_v49, %v17129_v58  ;;  %v2274_v9 = vmul.f32 %v17110_v49, %v17130_v27  ;;  %v2275_v20 = vmul.f32 %v17110_v49, %v17131_v10  ;;  %v17135_v36 = vld [vmem:[#allocation107_spill] sm:$0xff] }
 0x1d3   : > { %v2276_v31 = vmul.f32 %v17110_v49, %v17132_v47  ;;  %v2277_v21 = vmul.f32 %v17110_v49, %v17133_v28  ;;  %v2278_v24 = vmul.f32 %v17110_v49, %v17134_v62  ;;  %v2279_v51 = vmul.f32 %v17110_v49, %v17135_v36 }
 0x1d4   : > { %v2280_v58 = vmul.f32 %v17110_v49, %v17136_v43  ;;  %v2281_v27 = vmul.f32 %v17110_v49, %v17137_v35  ;;  %v2282_v10 = vmul.f32 %v17110_v49, %v17138_v44  ;;  %v2283_v47 = vmul.f32 %v17110_v49, %v9365_v59  ;;  %v17197_v59 = vld [vmem:[#allocation129_spill] sm:$0xff] }
 0x1d5   : > { %v2284_v28 = vmul.f32 %v17110_v49, %v9373_v37  ;;  %v9420_v62 = vadd.f32 %v2257_v57, %v9270_v6  ;;  %v9429_v35 = vadd.f32 %v2258_v5, %v9273_v1  ;;  %v9432_v44 = vadd.f32 %v2259_v11, %v9276_v34  ;;  %v569_v5 = vld [vmem:[%s9426_s30] sm:$0xf] }
 0x1d6   : > { %v9435_v43 = vadd.f32 %v2260_v18, %v9279_v13  ;;  %v9438_v49 = vadd.f32 %v2261_v17, %v9282_v54  ;;  %v9441_v6 = vadd.f32 %v2262_v60, %v9285_v32  ;;  %v9444_v57 = vadd.f32 %v2263_v33, %v9288_v39  ;;  %v17141_v33 = vld [vmem:[#allocation38_spill] sm:$0xff]  ;;  %v17196_v37 = vld [vmem:[#allocation141_spill] sm:$0xff] }
 0x1d7   : > { %v9447_v36 = vadd.f32 %v2264_v30, %v9291_v46  ;;  %v9450_v1 = vadd.f32 %v2265_v63, %v9294_v7  ;;  %v9453_v34 = vadd.f32 %v2266_v15, %v9297_v48  ;;  %v9456_v13 = vadd.f32 %v2267_v4, %v9300_v55  ;;  %v17142_v30 = vld [vmem:[#allocation65_spill] sm:$0xff]  ;;  %v17144_v4 = vld [vmem:[#allocation124_spill] sm:$0xff] }
 0x1d8   : > { %v9459_v54 = vadd.f32 %v2268_v22, %v9303_v61  ;;  %v9462_v32 = vadd.f32 %v2269_v12, %v9306_v3  ;;  %v6046_v39 = vpop.eup %6045  ;;  %v9466_v46 = vadd.f32 %v2270_v14, %v9309_v42  ;;  %v9469_v7 = vadd.f32 %v2271_v19, %v9312_v40  ;;  %v17143_v63 = vld [vmem:[#allocation85_spill] sm:$0xff]  ;;  %v17145_v22 = vld [vmem:[#allocation122_spill] sm:$0xff]  ;;  %v17148_v19 = vld [vmem:[#allocation75_spill] sm:$0xff] }
 0x1d9   : > { %v9472_v48 = vadd.f32 %v2272_v38, %v9315_v52  ;;  %v9475_v55 = vadd.f32 %v2273_v50, %v9318_v23  ;;  %v1692_v11 = vmul.f32 %v6046_v39, %v569_v5  ;;  %v9478_v61 = vadd.f32 %v2274_v9, %v9321_v45  ;;  %v17139_v45 = vld [vmem:[#allocation6_spill] sm:$0xff]  ;;  %v17147_v14 = vld [vmem:[#allocation125_spill] sm:$0xff] }
 0x1da   : > { %v9481_v3 = vadd.f32 %v2275_v20, %v9324_v0  ;;  %v9484_v18 = vadd.f32 %v2276_v31, %v9327_v29  ;;  %v9488_v42 = vadd.f32 %v2277_v21, %v9330_v53  ;;  %v9491_v40 = vadd.f32 %v2278_v24, %v9335_v56  ;;  %v17146_v12 = vld [vmem:[#allocation126_spill] sm:$0xff]  ;;  %v17150_v20 = vld [vmem:[#allocation76_spill] sm:$0xff]  ;;  %v17151_v21 = vld [vmem:[#allocation63_spill] sm:$0xff] }
 0x1db   : > { %v9494_v52 = vadd.f32 %v2279_v51, %v9338_v26  ;;  %v9497_v23 = vadd.f32 %v2280_v58, %v9341_v41  ;;  %v9500_v17 = vrot.slane %v1692_v11, %v17139_v45  ;;  %v9503_v0 = vadd.f32 %v2281_v27, %v9344_v16  ;;  %v17140_v26 = vld [vmem:[#allocation31_spill] sm:$0xff]  ;;  %v17149_v50 = vld [vmem:[#allocation62_spill] sm:$0xff]  ;;  %v17195_v45 = vld [vmem:[#allocation52_spill] sm:$0xff] }
 0x1dc   : > { %v9506_v29 = vadd.f32 %v2282_v10, %v9347_v8  ;;  %v9509_v53 = vadd.f32 %v2283_v47, %v9350_v2  ;;  %v9512_v56 = vadd.f32 %v2284_v28, %v9353_v25  ;;  %v2326_v60 = vrot.slane %v17140_v26, 2  ;;  %v17152_v51 = vld [vmem:[#allocation123_spill] sm:$0xff] }
 0x1dd   : > { %v2340_v41 = vrot.slane %v17141_v33, 2  ;;  %v9518_v15 = vmul.f32 %v17143_v63, %v17142_v30  ;;  %v1699_v16 = vmul.f32 %v9500_v17, %v17144_v4  ;;  %v1700_v8 = vmul.f32 %v9500_v17, %v17145_v22  ;;  %v17153_v30 = vld [vmem:[#allocation86_spill] sm:$0xff]  ;;  %v17200_v26 = vld [vmem:[#allocation143_spill] sm:$0xff] }
 0x1de   : > { %v1701_v2 = vmul.f32 %v9500_v17, %v17146_v12  ;;  %v1702_v25 = vmul.f32 %v9500_v17, %v17147_v14  ;;  %v1703_v38 = vmul.f32 %v9500_v17, %v17148_v19  ;;  %v1704_v9 = vmul.f32 %v9500_v17, %v17149_v50  ;;  %v17199_v33 = vld [vmem:[#allocation130_spill] sm:$0xff] }
 0x1df   : > { %v1705_v31 = vmul.f32 %v9500_v17, %v17150_v20  ;;  %v1706_v24 = vmul.f32 %v9500_v17, %v17151_v21  ;;  %v1733_v58 = vadd.f32 %v17152_v51, %v1699_v16  ;;  %v1734_v27 = vadd.f32 %v17152_v51, %v1700_v8  ;;  %v17154_v16 = vld [vmem:[#allocation64_spill] sm:$0xff]  ;;  %v17155_v8 = vld [vmem:[#allocation87_spill] sm:$0xff] }
 0x1e0   : > { %v1735_v10 = vadd.f32 %v17152_v51, %v1701_v2  ;;  %v1736_v47 = vadd.f32 %v17152_v51, %v1702_v25  ;;  %v1737_v28 = vadd.f32 %v17152_v51, %v1703_v38  ;;  %v1738_v39 = vadd.f32 %v17152_v51, %v1704_v9  ;;  %v17156_v2 = vld [vmem:[#allocation77_spill] sm:$0xff]  ;;  %v17157_v25 = vld [vmem:[#allocation96_spill] sm:$0xff]  ;;  %v17158_v38 = vld [vmem:[#allocation47_spill] sm:$0xff] }
 0x1e1   : > { %v1739_v5 = vadd.f32 %v17152_v51, %v1705_v31  ;;  %v1740_v11 = vadd.f32 %v17152_v51, %v1706_v24  ;;  %1761 = vst [vmem:[%s9544_s6] sm:$0xff] %v1733_v58  ;;  %1762 = vst [vmem:[%s9544_s6 + $0x20] sm:$0x3f] %v1734_v27  ;;  %v1707_v4 = vmul.f32 %v9500_v17, %v17153_v30  ;;  %v17159_v9 = vld [vmem:[#allocation20_spill] sm:$0xff]  ;;  %v17160_v31 = vld [vmem:[#allocation18_spill] sm:$0xff] }
 0x1e2   : > { %1763 = vst [vmem:[%s9544_s6 + $0x40] sm:$0xff] %v1735_v10  ;;  %1764 = vst [vmem:[%s9544_s6 + $0x60] sm:$0x3f] %v1736_v47  ;;  %v1708_v22 = vmul.f32 %v9500_v17, %v17154_v16  ;;  %v1709_v12 = vmul.f32 %v9500_v17, %v17155_v8  ;;  %v1710_v14 = vmul.f32 %v9500_v17, %v17156_v2 }
 0x1e3   : > { %1765 = vst [vmem:[%s9544_s6 + $0x80] sm:$0xff] %v1737_v28  ;;  %1766 = vst [vmem:[%s9544_s6 + $0xa0] sm:$0x3f] %v1738_v39  ;;  %v1711_v19 = vmul.f32 %v9500_v17, %v17157_v25  ;;  %v1712_v50 = vmul.f32 %v9500_v17, %v17158_v38  ;;  %v1713_v20 = vmul.f32 %v9500_v17, %v17159_v9 }
 0x1e4   : > { %1767 = vst [vmem:[%s9544_s6 + $0xc0] sm:$0xff] %v1739_v5  ;;  %1768 = vst [vmem:[%s9544_s6 + $0xe0] sm:$0x3f] %v1740_v11  ;;  %v1714_v21 = vmul.f32 %v9500_v17, %v17160_v31  ;;  %v1741_v24 = vadd.f32 %v17152_v51, %v1707_v4  ;;  %v1742_v58 = vadd.f32 %v17152_v51, %v1708_v22  ;;  %v17161_v11 = vld [vmem:[#allocation89_spill] sm:$0xff]  ;;  %v17162_v4 = vld [vmem:[#allocation42_spill] sm:$0xff] }
 0x1e5   : > { %v1743_v27 = vadd.f32 %v17152_v51, %v1709_v12  ;;  %v1744_v10 = vadd.f32 %v17152_v51, %v1710_v14  ;;  %v1745_v47 = vadd.f32 %v17152_v51, %v1711_v19  ;;  %v1746_v28 = vadd.f32 %v17152_v51, %v1712_v50  ;;  %v17163_v22 = vld [vmem:[#allocation79_spill] sm:$0xff]  ;;  %v17165_v14 = vld [vmem:[#allocation80_spill] sm:$0xff]  ;;  %v17167_v50 = vld [vmem:[#allocation94_spill] sm:$0xff] }
 0x1e6   : > { %v1747_v39 = vadd.f32 %v17152_v51, %v1713_v20  ;;  %v1748_v5 = vadd.f32 %v17152_v51, %v1714_v21  ;;  %1769 = vst [vmem:[%s9544_s6 + $0x100] sm:$0xff] %v1741_v24  ;;  %1770 = vst [vmem:[%s9544_s6 + $0x120] sm:$0x3f] %v1742_v58  ;;  %v1715_v30 = vmul.f32 %v9500_v17, %v17161_v11  ;;  %v17164_v12 = vld [vmem:[#allocation91_spill] sm:$0xff]  ;;  %v17166_v19 = vld [vmem:[#allocation92_spill] sm:$0xff] }
 0x1e7   : > { %1771 = vst [vmem:[%s9544_s6 + $0x140] sm:$0xff] %v1743_v27  ;;  %1772 = vst [vmem:[%s9544_s6 + $0x160] sm:$0x3f] %v1744_v10  ;;  %v1716_v16 = vmul.f32 %v9500_v17, %v17162_v4  ;;  %v1717_v8 = vmul.f32 %v9500_v17, %v17163_v22  ;;  %v1718_v2 = vmul.f32 %v9500_v17, %v17164_v12  ;;  %v17168_v20 = vld [vmem:[#allocation93_spill] sm:$0xff] }
 0x1e8   : > { %1773 = vst [vmem:[%s9544_s6 + $0x180] sm:$0xff] %v1745_v47  ;;  %1774 = vst [vmem:[%s9544_s6 + $0x1a0] sm:$0x3f] %v1746_v28  ;;  %v1719_v25 = vmul.f32 %v9500_v17, %v17165_v14  ;;  %v1720_v38 = vmul.f32 %v9500_v17, %v17166_v19  ;;  %v1721_v9 = vmul.f32 %v9500_v17, %v17167_v50 }
 0x1e9   : > { %1775 = vst [vmem:[%s9544_s6 + $0x1c0] sm:$0xff] %v1747_v39  ;;  %1776 = vst [vmem:[%s9544_s6 + $0x1e0] sm:$0x3f] %v1748_v5  ;;  %v1722_v31 = vmul.f32 %v9500_v17, %v17168_v20  ;;  %v1749_v21 = vadd.f32 %v17152_v51, %v1715_v30  ;;  %v1750_v24 = vadd.f32 %v17152_v51, %v1716_v16  ;;  %v17169_v5 = vld [vmem:[#allocation97_spill] sm:$0xff]  ;;  %v17171_v16 = vld [vmem:[#allocation83_spill] sm:$0xff] }
 0x1ea   : > { %v1751_v58 = vadd.f32 %v17152_v51, %v1717_v8  ;;  %v1752_v27 = vadd.f32 %v17152_v51, %v1718_v2  ;;  %v1753_v10 = vadd.f32 %v17152_v51, %v1719_v25  ;;  %v1754_v47 = vadd.f32 %v17152_v51, %v1720_v38  ;;  %v17170_v30 = vld [vmem:[#allocation81_spill] sm:$0xff]  ;;  %v17172_v8 = vld [vmem:[#allocation82_spill] sm:$0xff]  ;;  %v17173_v2 = vld [vmem:[#allocation131_spill] sm:$0xff] }
 0x1eb   : > { %v1755_v28 = vadd.f32 %v17152_v51, %v1721_v9  ;;  %v1756_v39 = vadd.f32 %v17152_v51, %v1722_v31  ;;  %1777 = vst [vmem:[%s9544_s6 + $0x200] sm:$0xff] %v1749_v21  ;;  %1778 = vst [vmem:[%s9544_s6 + $0x220] sm:$0x3f] %v1750_v24  ;;  %v1723_v11 = vmul.f32 %v9500_v17, %v17169_v5  ;;  %v17174_v25 = vld [vmem:[#allocation78_spill] sm:$0xff]  ;;  %v17175_v38 = vld [vmem:[#allocation132_spill] sm:$0xff] }
 0x1ec   : > { %1779 = vst [vmem:[%s9544_s6 + $0x240] sm:$0xff] %v1751_v58  ;;  %1780 = vst [vmem:[%s9544_s6 + $0x260] sm:$0x3f] %v1752_v27  ;;  %v1724_v4 = vmul.f32 %v9500_v17, %v17170_v30  ;;  %v1725_v22 = vmul.f32 %v9500_v17, %v17171_v16  ;;  %v1726_v12 = vmul.f32 %v9500_v17, %v17172_v8  ;;  %v17176_v9 = vld [vmem:[#allocation12_spill] sm:$0xff]  ;;  %v17182_v5 = vld [vmem:[#allocation134_spill] sm:$0xff] }
 0x1ed   : > { %1781 = vst [vmem:[%s9544_s6 + $0x280] sm:$0xff] %v1753_v10  ;;  %1782 = vst [vmem:[%s9544_s6 + $0x2a0] sm:$0x3f] %v1754_v47  ;;  %v2374_v14 = vmul.f32 %v17143_v63, %v17173_v2  ;;  %v2375_v19 = vmul.f32 %v17143_v63, %v17174_v25  ;;  %v2376_v50 = vmul.f32 %v17143_v63, %v17175_v38  ;;  %v17180_v47 = vld [vmem:[#allocation133_spill] sm:$0xff]  ;;  %v17183_v30 = vld [vmem:[#allocation32_spill] sm:$0xff] }
 0x1ee   : > { %1783 = vst [vmem:[%s9544_s6 + $0x2c0] sm:$0xff] %v1755_v28  ;;  %1784 = vst [vmem:[%s9544_s6 + $0x2e0] sm:$0x3f] %v1756_v39  ;;  %v2377_v17 = vmul.f32 %v17143_v63, %v17176_v9  ;;  %v1757_v20 = vadd.f32 %v17152_v51, %v1723_v11  ;;  %v1758_v31 = vadd.f32 %v17152_v51, %v1724_v4  ;;  %v17184_v16 = vld [vmem:[#allocation135_spill] sm:$0xff]  ;;  %v17186_v8 = vld [vmem:[#allocation136_spill] sm:$0xff] }
 0x1ef   : > { %v1759_v21 = vadd.f32 %v17152_v51, %v1725_v22  ;;  %v1760_v24 = vadd.f32 %v17152_v51, %v1726_v12  ;;  %v9644_v27 = vsel %vm806_vm1, %v2326_v60, %v2340_v41  ;;  %v9652_v10 = vsel %vm806_vm1, %v2340_v41, %v2326_v60  ;;  %v17181_v51 = vld [vmem:[#allocation23_spill] sm:$0xff]  ;;  %v17185_v41 = vld [vmem:[#allocation101_spill] sm:$0xff]  ;;  %v17198_v58 = vld [vmem:[#allocation142_spill] sm:$0xff] }
 0x1f0   : > { %17178 = vst [vmem:[#allocation50_spill] sm:$0xff] %v9644_v27  ;;  %17179 = vst [vmem:[#allocation10_spill] sm:$0xff] %v9652_v10  ;;  %v2378_v28 = vmul.f32 %v17143_v63, %v17180_v47  ;;  %v2379_v39 = vmul.f32 %v17143_v63, %v17181_v51  ;;  %v2380_v11 = vmul.f32 %v17143_v63, %v17182_v5  ;;  %v17187_v2 = vld [vmem:[#allocation51_spill] sm:$0xff]  ;;  %v17188_v38 = vld [vmem:[#allocation137_spill] sm:$0xff] }
 0x1f1   : > { %1785 = vst [vmem:[%s9544_s6 + $0x300] sm:$0xff] %v1757_v20  ;;  %1786 = vst [vmem:[%s9544_s6 + $0x320] sm:$0x3f] %v1758_v31  ;;  %v2381_v4 = vmul.f32 %v17143_v63, %v17183_v30  ;;  %v2382_v60 = vmul.f32 %v17143_v63, %v17184_v16  ;;  %v2383_v22 = vmul.f32 %v17143_v63, %v17185_v41  ;;  %v17189_v20 = vld [vmem:[#allocation59_spill] sm:$0xff]  ;;  %v17191_v47 = vld [vmem:[#allocation9_spill] sm:$0xff] }
 0x1f2   : > { %1787 = vst [vmem:[%s9544_s6 + $0x340] sm:$0xff] %v1759_v21  ;;  %1788 = vst [vmem:[%s9544_s6 + $0x360] sm:$0x3f] %v1760_v24  ;;  %v2384_v12 = vmul.f32 %v17143_v63, %v17186_v8  ;;  %v2385_v25 = vmul.f32 %v17143_v63, %v17187_v2  ;;  %v2386_v9 = vmul.f32 %v17143_v63, %v17188_v38  ;;  %v17190_v21 = vld [vmem:[#allocation138_spill] sm:$0xff]  ;;  %v17192_v5 = vld [vmem:[#allocation139_spill] sm:$0xff] }
 0x1f3   : > { %v2387_v31 = vmul.f32 %v17143_v63, %v17189_v20  ;;  %v2388_v24 = vmul.f32 %v17143_v63, %v17190_v21  ;;  %v2389_v51 = vmul.f32 %v17143_v63, %v17191_v47  ;;  %v2390_v30 = vmul.f32 %v17143_v63, %v17192_v5  ;;  %v17193_v16 = vld [vmem:[#allocation90_spill] sm:$0xff]  ;;  %v17194_v8 = vld [vmem:[#allocation140_spill] sm:$0xff] }
 0x1f4   : > { %v2391_v41 = vmul.f32 %v17143_v63, %v17193_v16  ;;  %v2392_v2 = vmul.f32 %v17143_v63, %v17194_v8  ;;  %v2393_v38 = vmul.f32 %v17143_v63, %v17195_v45  ;;  %v2394_v20 = vmul.f32 %v17143_v63, %v17196_v37 }
 0x1f5   : > { %v2395_v21 = vmul.f32 %v17143_v63, %v17197_v59  ;;  %v2396_v47 = vmul.f32 %v17143_v63, %v17198_v58  ;;  %v2397_v5 = vmul.f32 %v17143_v63, %v17199_v33  ;;  %v2398_v16 = vmul.f32 %v17143_v63, %v17200_v26 }
 0x1f6   : > { %v2399_v8 = vmul.f32 %v17143_v63, %v9644_v27  ;;  %v2400_v45 = vmul.f32 %v17143_v63, %v9652_v10  ;;  %v9706_v37 = vadd.f32 %v9518_v15, %v9420_v62  ;;  %v9709_v59 = vadd.f32 %v2374_v14, %v9429_v35  ;;  %v9763_v15 = vld [vmem:[%s6442_s17 + $0x88] sm:$0xff] }
 0x1f7   : > { %v9712_v58 = vadd.f32 %v2375_v19, %v9432_v44  ;;  %v9715_v33 = vadd.f32 %v2376_v50, %v9435_v43  ;;  %v9718_v26 = vadd.f32 %v2377_v17, %v9438_v49  ;;  %v9721_v63 = vadd.f32 %v2378_v28, %v9441_v6  ;;  %17201 = vst [vmem:[#allocation16_spill] sm:$0xff] %v9763_v15  ;;  %v9784_v14 = vld [vmem:[%s6442_s17 + $0xe8] sm:$0xff] }
 0x1f8   : > { %v9724_v62 = vadd.f32 %v2379_v39, %v9444_v57  ;;  %v9727_v35 = vadd.f32 %v2380_v11, %v9447_v36  ;;  %v9730_v44 = vadd.f32 %v2381_v4, %v9450_v1  ;;  %v9733_v43 = vadd.f32 %v2382_v60, %v9453_v34  ;;  %17204 = vst [vmem:[#allocation44_spill] sm:$0xff] %v9784_v14  ;;  %v9787_v19 = vld [vmem:[%s6442_s17 + $0x108] sm:$0xff] }
 0x1f9   : > { %v9736_v49 = vadd.f32 %v2383_v22, %v9456_v13  ;;  %v9739_v6 = vadd.f32 %v2384_v12, %v9459_v54  ;;  %v9742_v57 = vadd.f32 %v2385_v25, %v9462_v32  ;;  %v9745_v36 = vadd.f32 %v2386_v9, %v9466_v46  ;;  %v9766_v46 = vld [vmem:[%s6442_s17 + $0xa8] sm:$0xff]  ;;  %17205 = vst [vmem:[#allocation28_spill] sm:$0xff] %v9787_v19 }
 0x1fa   : > { %v9748_v1 = vadd.f32 %v2387_v31, %v9469_v7  ;;  %v9751_v34 = vadd.f32 %v2388_v24, %v9472_v48  ;;  %v9754_v13 = vadd.f32 %v2389_v51, %v9475_v55  ;;  %v9757_v54 = vadd.f32 %v2390_v30, %v9478_v61  ;;  %17202 = vst [vmem:[#allocation45_spill] sm:$0xff] %v9766_v46  ;;  %v9769_v7 = vld [vmem:[%s6442_s17 + $0xc8] sm:$0xff] }
 0x1fb   : > { %v9760_v32 = vadd.f32 %v2391_v41, %v9481_v3  ;;  %17203 = vst [vmem:[#allocation27_spill] sm:$0xff] %v9769_v7  ;;  %v9772_v48 = vadd.f32 %v2392_v2, %v9484_v18  ;;  %v9775_v55 = vadd.f32 %v2393_v38, %v9488_v42  ;;  %v9778_v61 = vadd.f32 %v2394_v20, %v9491_v40  ;;  %v9790_v50 = vld [vmem:[%s6442_s17 + $0x128] sm:$0xff] }
 0x1fc   : > { %v9781_v3 = vadd.f32 %v2395_v21, %v9494_v52  ;;  %17206 = vst [vmem:[#allocation30_spill] sm:$0xff] %v9790_v50  ;;  %v9793_v18 = vld [vmem:[%s6442_s17 + $0x148] sm:$0xff]  ;;  %v9796_v42 = vadd.f32 %v2396_v47, %v9497_v23  ;;  %v9799_v40 = vadd.f32 %v2397_v5, %v9503_v0  ;;  %v9802_v52 = vadd.f32 %v2398_v16, %v9506_v29 }
 0x1fd   : > { %17207 = vst [vmem:[#allocation72_spill] sm:$0xff] %v9793_v18  ;;  %v9805_v17 = vadd.f32 %v2399_v8, %v9509_v53  ;;  %v9808_v28 = vld [vmem:[%s6442_s17 + $0x168] sm:$0xff]  ;;  %v9817_v23 = vadd.f32 %v2400_v45, %v9512_v56  ;;  %v17214_v53 = vld [vmem:[#allocation100_spill] sm:$0xff] }
 0x1fe   : > { %17208 = vst [vmem:[#allocation60_spill] sm:$0xff] %v9808_v28  ;;  %v9811_v39 = vld [vmem:[%s6442_s17 + $0x188] sm:$0xff]  ;;  %v2461_v60 = vmul.f32 %v9763_v15, %v17214_v53  ;;  %v2462_v22 = vmul.f32 %v9766_v46, %v17214_v53  ;;  %v2463_v12 = vmul.f32 %v9769_v7, %v17214_v53  ;;  %v2464_v31 = vmul.f32 %v9784_v14, %v17214_v53 }
 0x1ff   : > { %17209 = vst [vmem:[#allocation53_spill] sm:$0xff] %v9811_v39  ;;  %v9814_v11 = vld [vmem:[%s6442_s17 + $0x1c8] sm:$0xff]  ;;  %v2465_v24 = vmul.f32 %v9787_v19, %v17214_v53  ;;  %v2466_v51 = vmul.f32 %v9790_v50, %v17214_v53  ;;  %v2467_v30 = vmul.f32 %v9793_v18, %v17214_v53  ;;  %v2468_v20 = vmul.f32 %v9808_v28, %v17214_v53 }
 0x200   : > { %17210 = vst [vmem:[#allocation36_spill] sm:$0xff] %v9814_v11  ;;  %v9820_v0 = vld [vmem:[%s6442_s17 + $0x1a8] sm:$0xff]  ;;  %v2469_v21 = vmul.f32 %v9811_v39, %v17214_v53  ;;  %v2471_v5 = vmul.f32 %v9814_v11, %v17214_v53  ;;  %v9924_v15 = vadd.f32 %v2461_v60, %v9706_v37 }
 0x201   : > { %17211 = vst [vmem:[#allocation73_spill] sm:$0xff] %v9820_v0  ;;  %v9823_v4 = vld [vmem:[%s6442_s17 + $0x208] sm:$0xff]  ;;  %v2470_v47 = vmul.f32 %v9820_v0, %v17214_v53  ;;  %v9945_v37 = vadd.f32 %v2468_v20, %v9727_v35 }
 0x202   : > { %17212 = vst [vmem:[#allocation61_spill] sm:$0xff] %v9823_v4  ;;  %v9826_v29 = vld [vmem:[%s6442_s17 + $0x248] sm:$0xff]  ;;  %v2473_v10 = vmul.f32 %v9823_v4, %v17214_v53 }
 0x203   : > { %17213 = vst [vmem:[#allocation66_spill] sm:$0xff] %v9826_v29  ;;  %v9835_v56 = vld [vmem:[%s6442_s17 + $0x1e8] sm:$0xff]  ;;  %v2475_v0 = vmul.f32 %v9826_v29, %v17214_v53 }
 0x204   : > { %17215 = vst [vmem:[#allocation54_spill] sm:$0xff] %v9835_v56  ;;  %v9838_v25 = vld [vmem:[%s6442_s17 + $0x288] sm:$0xff]  ;;  %v2472_v27 = vmul.f32 %v9835_v56, %v17214_v53 }
 0x205   : > { %17216 = vst [vmem:[#allocation35_spill] sm:$0xff] %v9838_v25  ;;  %v9841_v9 = vld [vmem:[%s6442_s17 + $0x2c8] sm:$0xff]  ;;  %v2477_v11 = vmul.f32 %v9838_v25, %v17214_v53  ;;  %v9966_v35 = vadd.f32 %v2475_v0, %v9748_v1 }
 0x206   : > { %17217 = vst [vmem:[#allocation84_spill] sm:$0xff] %v9841_v9  ;;  %v9852_v41 = vld [vmem:[%s6442_s17 + $0x228] sm:$0xff]  ;;  %v2479_v4 = vmul.f32 %v9841_v9, %v17214_v53  ;;  %v17228_v9 = vld [vmem:[#allocation31_spill] sm:$0xff] }
 0x207   : > { %17218 = vst [vmem:[#allocation7_spill] sm:$0xff] %v9852_v41  ;;  %v9855_v2 = vld [vmem:[%s6442_s17 + $0x308] sm:$0xff]  ;;  %v2474_v28 = vmul.f32 %v9852_v41, %v17214_v53  ;;  %v2485_v19 = vmul.f32 %v17228_v9, %v17214_v53  ;;  %v9933_v9 = vadd.f32 %v2464_v31, %v9715_v33  ;;  %v9954_v33 = vadd.f32 %v2471_v5, %v9736_v49 }
 0x208   : > { %17219 = vst [vmem:[#allocation48_spill] sm:$0xff] %v9855_v2  ;;  %v9858_v38 = vld [vmem:[%s6442_s17 + $0x348] sm:$0xff]  ;;  %v2481_v39 = vmul.f32 %v9855_v2, %v17214_v53  ;;  %17234 = vst [vmem:[#allocation29_spill] sm:$0xff] %v9966_v35 }
 0x209   : > { %17220 = vst [vmem:[#allocation22_spill] sm:$0xff] %v9858_v38  ;;  %v9869_v16 = vld [vmem:[%s6442_s17 + $0x268] sm:$0xff]  ;;  %v2483_v25 = vmul.f32 %v9858_v38, %v17214_v53  ;;  %v9927_v38 = vadd.f32 %v2462_v22, %v9709_v59  ;;  %v9948_v59 = vadd.f32 %v2469_v21, %v9730_v44  ;;  %17230 = vst [vmem:[#allocation39_spill] sm:$0xff] %v9954_v33  ;;  %v17258_v22 = vld [vmem:[#allocation45_spill] sm:$0xff] }
 0x20a   : > { %17221 = vst [vmem:[#allocation25_spill] sm:$0xff] %v9869_v16  ;;  %v9872_v8 = vld [vmem:[%s6442_s17 + $0x2a8] sm:$0xff]  ;;  %v2476_v46 = vmul.f32 %v9869_v16, %v17214_v53  ;;  %v2647_v33 = vrot.slane %v17258_v22, 2 }
 0x20b   : > { %17222 = vst [vmem:[#allocation26_spill] sm:$0xff] %v9872_v8  ;;  %v9875_v45 = vld [vmem:[%s6442_s17 + $0x3c8] sm:$0xff]  ;;  %v2478_v56 = vmul.f32 %v9872_v8, %v17214_v53 }
 0x20c   : > { %17223 = vst [vmem:[#allocation15_spill] sm:$0xff] %v9875_v45  ;;  %v9886_v50 = vld [vmem:[%s6442_s17 + $0x2e8] sm:$0xff]  ;;  %v2487_v2 = vmul.f32 %v9875_v45, %v17214_v53  ;;  %v9939_v45 = vadd.f32 %v2466_v51, %v9721_v63  ;;  %v9960_v63 = vadd.f32 %v2473_v10, %v9742_v57  ;;  %v9969_v44 = vadd.f32 %v2476_v46, %v9751_v34  ;;  %v17248_v46 = vld [vmem:[#allocation16_spill] sm:$0xff] }
 0x20d   : > { %17224 = vst [vmem:[#allocation17_spill] sm:$0xff] %v9886_v50  ;;  %v9889_v14 = vld [vmem:[%s6442_s17 + $0x328] sm:$0xff]  ;;  %v2480_v29 = vmul.f32 %v9886_v50, %v17214_v53  ;;  %v9975_v49 = vadd.f32 %v2478_v56, %v9757_v54  ;;  %v9996_v34 = vadd.f32 %v2485_v19, %v9799_v40  ;;  %v17253_v40 = vld [vmem:[#allocation36_spill] sm:$0xff] }
 0x20e   : > { %17225 = vst [vmem:[#allocation19_spill] sm:$0xff] %v9889_v14  ;;  %v9900_v41 = vld [vmem:[%s6442_s17 + $0x368] sm:$0xff]  ;;  %v2482_v16 = vmul.f32 %v9889_v14, %v17214_v53  ;;  %17232 = vst [vmem:[#allocation11_spill] sm:$0xff] %v9960_v63  ;;  %v10002_v54 = vadd.f32 %v2487_v2, %v9805_v17  ;;  %v2522_v0 = vrot.slane %v17253_v40, 1  ;;  %v17259_v56 = vld [vmem:[#allocation44_spill] sm:$0xff] }
 0x20f   : > { %17226 = vst [vmem:[#allocation24_spill] sm:$0xff] %v9900_v41  ;;  %v9911_v18 = vld [vmem:[%s6442_s17 + $0x3e8] sm:$0xff]  ;;  %v2484_v8 = vmul.f32 %v9900_v41, %v17214_v53  ;;  %v9930_v41 = vadd.f32 %v2463_v12, %v9712_v58  ;;  %v9951_v58 = vadd.f32 %v2470_v47, %v9733_v43  ;;  %17235 = vst [vmem:[#allocation33_spill] sm:$0xff] %v9969_v44  ;;  %v2531_v12 = vrot.slane %v17258_v22, 1  ;;  %v17261_v51 = vld [vmem:[#allocation60_spill] sm:$0xff] }
 0x210   : > { %17227 = vst [vmem:[#allocation37_spill] sm:$0xff] %v9911_v18  ;;  %v17229_v7 = vld [vmem:[#allocation38_spill] sm:$0xff]  ;;  %v2488_v14 = vmul.f32 %v9911_v18, %v17214_v53  ;;  %v9972_v43 = vadd.f32 %v2477_v11, %v9754_v13  ;;  %17237 = vst [vmem:[#allocation98_spill] sm:$0xff] %v9975_v49  ;;  %v9981_v10 = vadd.f32 %v2480_v29, %v9772_v48  ;;  %v2517_v48 = vrot.slane %v17248_v46, 1  ;;  %v17252_v11 = vld [vmem:[#allocation53_spill] sm:$0xff] }
 0x211   : > { %v2486_v50 = vmul.f32 %v17229_v7, %v17214_v53  ;;  %v9936_v7 = vadd.f32 %v2465_v24, %v9718_v26  ;;  %v9942_v53 = vadd.f32 %v2467_v30, %v9724_v62  ;;  %v9957_v26 = vadd.f32 %v2472_v27, %v9739_v6  ;;  %17244 = vst [vmem:[#allocation110_spill] sm:$0xff] %v9996_v34  ;;  %v17256_v29 = vld [vmem:[#allocation35_spill] sm:$0xff]  ;;  %v17260_v31 = vld [vmem:[#allocation30_spill] sm:$0xff]  ;;  %v17262_v2 = vld [vmem:[#allocation73_spill] sm:$0xff] }
 0x212   : > { %v9963_v62 = vadd.f32 %v2474_v28, %v9745_v36  ;;  %17236 = vst [vmem:[#allocation34_spill] sm:$0xff] %v9972_v43  ;;  %v9978_v27 = vadd.f32 %v2479_v4, %v9760_v32  ;;  %17239 = vst [vmem:[#allocation128_spill] sm:$0xff] %v9981_v10  ;;  %v9984_v6 = vadd.f32 %v2481_v39, %v9775_v55  ;;  %v17249_v55 = vld [vmem:[#allocation27_spill] sm:$0xff]  ;;  %v2521_v19 = vrot.slane %v17252_v11, 1  ;;  %v17255_v4 = vld [vmem:[#allocation66_spill] sm:$0xff] }
 0x213   : > { %17231 = vst [vmem:[#allocation14_spill] sm:$0xff] %v9957_v26  ;;  %v9987_v57 = vadd.f32 %v2482_v16, %v9778_v61  ;;  %v9990_v36 = vadd.f32 %v2483_v25, %v9781_v3  ;;  %v9993_v1 = vadd.f32 %v2484_v8, %v9796_v42  ;;  %v9999_v13 = vadd.f32 %v2486_v50, %v9802_v52  ;;  %v17250_v3 = vld [vmem:[#allocation28_spill] sm:$0xff]  ;;  %v17254_v50 = vld [vmem:[#allocation61_spill] sm:$0xff]  ;;  %v17263_v21 = vld [vmem:[#allocation54_spill] sm:$0xff] }
 0x214   : > { %17233 = vst [vmem:[#allocation46_spill] sm:$0xff] %v9963_v62  ;;  %17238 = vst [vmem:[#allocation127_spill] sm:$0xff] %v9978_v27  ;;  %v10005_v32 = vadd.f32 %v2488_v14, %v9817_v23  ;;  %v2518_v61 = vrot.slane %v17249_v55, 1  ;;  %v2519_v28 = vrot.slane %v17250_v3, 1  ;;  %v17251_v42 = vld [vmem:[#allocation72_spill] sm:$0xff]  ;;  %v2523_v52 = vrot.slane %v17254_v50, 1 }
 0x215   : > { %17240 = vst [vmem:[#allocation74_spill] sm:$0xff] %v9984_v6  ;;  %17241 = vst [vmem:[#allocation99_spill] sm:$0xff] %v9987_v57  ;;  %v2520_v39 = vrot.slane %v17251_v42, 1  ;;  %v2524_v17 = vrot.slane %v17255_v4, 1  ;;  %v2525_v60 = vrot.slane %v17256_v29, 1  ;;  %v17257_v14 = vld [vmem:[#allocation84_spill] sm:$0xff]  ;;  %v2545_v63 = vsel %vm689_vm0, %v2517_v48, %v2531_v12 }
 0x216   : > { %17242 = vst [vmem:[#allocation109_spill] sm:$0xff] %v9990_v36  ;;  %17243 = vst [vmem:[#allocation67_spill] sm:$0xff] %v9993_v1  ;;  %v2526_v23 = vrot.slane %v17257_v14, 1  ;;  %v2532_v25 = vrot.slane %v17259_v56, 1  ;;  %v2533_v24 = vrot.slane %v17260_v31, 1  ;;  %v2534_v30 = vrot.slane %v17261_v51, 1 }
 0x217   : > { %17245 = vst [vmem:[#allocation55_spill] sm:$0xff] %v9999_v13  ;;  %17246 = vst [vmem:[#allocation111_spill] sm:$0xff] %v10002_v54  ;;  %v2535_v20 = vrot.slane %v17262_v2, 1  ;;  %v2536_v47 = vrot.slane %v17263_v21, 1  ;;  %v17264_v5 = vld [vmem:[#allocation7_spill] sm:$0xff]  ;;  %v17265_v8 = vld [vmem:[#allocation25_spill] sm:$0xff]  ;;  %v2559_v4 = vsel %vm689_vm0, %v2531_v12, %v2517_v48 }
 0x218   : > { %17247 = vst [vmem:[#allocation68_spill] sm:$0xff] %v10005_v32  ;;  %v2537_v16 = vrot.slane %v17264_v5, 1  ;;  %v2538_v54 = vrot.slane %v17265_v8, 1  ;;  %v17266_v34 = vld [vmem:[#allocation26_spill] sm:$0xff]  ;;  %v17267_v32 = vld [vmem:[#allocation48_spill] sm:$0xff]  ;;  %v17269_v6 = vld [vmem:[#allocation15_spill] sm:$0xff]  ;;  %v2562_v48 = vsel %vm689_vm0, %v2534_v30, %v2520_v39 }
 0x219   : > { %v2539_v36 = vrot.slane %v17266_v34, 1  ;;  %v2527_v13 = vrot.slane %v17267_v32, 1  ;;  %v17268_v1 = vld [vmem:[#allocation22_spill] sm:$0xff]  ;;  %v2530_v10 = vrot.slane %v17269_v6, 1  ;;  %v17270_v27 = vld [vmem:[#allocation17_spill] sm:$0xff]  ;;  %v17271_v43 = vld [vmem:[#allocation19_spill] sm:$0xff]  ;;  %v2546_v34 = vsel %vm689_vm0, %v2518_v61, %v2532_v25 }
 0x21a   : > { %v2528_v57 = vrot.slane %v17268_v1, 1  ;;  %v2540_v49 = vrot.slane %v17270_v27, 1  ;;  %v2541_v14 = vrot.slane %v17271_v43, 1  ;;  %v17272_v44 = vld [vmem:[#allocation24_spill] sm:$0xff]  ;;  %v2544_v29 = vrot.slane %v9911_v18, 1 }
 0x21b   : > { %v2542_v35 = vrot.slane %v17272_v44, 1  ;;  %v2547_v32 = vsel %vm689_vm0, %v2519_v28, %v2533_v24  ;;  %v2548_v6 = vsel %vm689_vm0, %v2520_v39, %v2534_v30  ;;  %v2549_v1 = vsel %vm689_vm0, %v2521_v19, %v2535_v20 }
 0x21c   : > { %v10045_v44 = vsel %vm689_vm0, %v2522_v0, %v2536_v47  ;;  %v10049_v18 = vsel %vm689_vm0, %v2523_v52, %v2537_v16  ;;  %v10053_v43 = vsel %vm689_vm0, %v2524_v17, %v2538_v54  ;;  %v10057_v27 = vsel %vm689_vm0, %v2525_v60, %v2539_v36 }
 0x21d   : > { %17274 = vst [vmem:[#allocation112_spill] sm:$0xff] %v10057_v27  ;;  %v10061_v8 = vsel %vm689_vm0, %v2526_v23, %v2540_v49  ;;  %v2633_v26 = vrot.slane %v17248_v46, 2  ;;  %v10069_v5 = vsel %vm689_vm0, %v2527_v13, %v2541_v14  ;;  %v10073_v50 = vsel %vm689_vm0, %v2528_v57, %v2542_v35 }
 0x21e   : > { %17275 = vst [vmem:[#allocation56_spill] sm:$0xff] %v10061_v8  ;;  %17276 = vst [vmem:[#allocation113_spill] sm:$0xff] %v10069_v5  ;;  %v10077_v27 = vsel %vm689_vm0, %v2530_v10, %v2544_v29  ;;  %v2560_v8 = vsel %vm689_vm0, %v2532_v25, %v2518_v61  ;;  %v2561_v46 = vsel %vm689_vm0, %v2533_v24, %v2519_v28  ;;  %v2634_v22 = vrot.slane %v17249_v55, 2  ;;  %v17279_v61 = vld [vmem:[#allocation102_spill] sm:$0xff] }
 0x21f   : > { %17277 = vst [vmem:[#allocation57_spill] sm:$0xff] %v10073_v50  ;;  %17278 = vst [vmem:[#allocation114_spill] sm:$0xff] %v10077_v27  ;;  %v2648_v12 = vrot.slane %v17259_v56, 2  ;;  %v2563_v50 = vsel %vm689_vm0, %v2535_v20, %v2521_v19  ;;  %v2564_v5 = vsel %vm689_vm0, %v2536_v47, %v2522_v0  ;;  %v10093_v27 = vsel %vm689_vm0, %v2537_v16, %v2523_v52  ;;  %v10097_v28 = vld [vmem:[%s6437_s21 + $0x28] ss:$0 sm:$0xff] }
 0x220   : > { %v2578_v25 = vmul.f32 %v17279_v61, %v2559_v4  ;;  %v10101_v39 = vsel %vm689_vm0, %v2538_v54, %v2524_v17  ;;  %v10105_v55 = vsel %vm689_vm0, %v2539_v36, %v2525_v60  ;;  %v2577_v19 = vmul.f32 %v17279_v61, %v2545_v63 }
 0x221   : > { %v2675_v0 = vsel %vm806_vm1, %v2647_v33, %v2633_v26  ;;  %v10112_v52 = vsel %vm689_vm0, %v2540_v49, %v2526_v23  ;;  %v2579_v4 = vmul.f32 %v17279_v61, %v2546_v34  ;;  %v2580_v56 = vmul.f32 %v17279_v61, %v2560_v8 }
 0x222   : > { %v2661_v54 = vsel %vm806_vm1, %v2633_v26, %v2647_v33  ;;  %v10120_v36 = vsel %vm689_vm0, %v2541_v14, %v2527_v13  ;;  %v2635_v63 = vrot.slane %v17250_v3, 2  ;;  %v2649_v17 = vrot.slane %v17260_v31, 2 }
 0x223   : > { %v2676_v60 = vsel %vm806_vm1, %v2648_v12, %v2634_v22  ;;  %v10128_v49 = vsel %vm689_vm0, %v2542_v35, %v2528_v57  ;;  %v2606_v34 = vadd.f32 %v2578_v25, %v9927_v38  ;;  %v2662_v33 = vsel %vm806_vm1, %v2634_v22, %v2648_v12 }
 0x224   : > { %v2694_v26 = vmul.f32 %v10097_v28, %v2675_v0  ;;  %v10136_v13 = vsel %vm689_vm0, %v2544_v29, %v2530_v10  ;;  %v2581_v3 = vmul.f32 %v17279_v61, %v2547_v32  ;;  %v2605_v14 = vadd.f32 %v2577_v19, %v9924_v15 }
 0x225   : > { %v2693_v23 = vmul.f32 %v10097_v28, %v2661_v54  ;;  %v2582_v35 = vmul.f32 %v17279_v61, %v2561_v46  ;;  %v2607_v57 = vadd.f32 %v2579_v4, %v9930_v41  ;;  %v2608_v38 = vadd.f32 %v2580_v56, %v9933_v9 }
 0x226   : > { %v2696_v31 = vmul.f32 %v10097_v28, %v2676_v60  ;;  %v2636_v24 = vrot.slane %v17251_v42, 2  ;;  %v2650_v30 = vrot.slane %v17261_v51, 2  ;;  %v2677_v10 = vsel %vm806_vm1, %v2649_v17, %v2635_v63 }
 0x227   : > { %v2695_v32 = vmul.f32 %v10097_v28, %v2662_v33  ;;  %v2583_v15 = vmul.f32 %v17279_v61, %v2548_v6  ;;  %v2584_v29 = vmul.f32 %v17279_v61, %v2562_v48  ;;  %v2663_v41 = vsel %vm806_vm1, %v2635_v63, %v2649_v17 }
 0x228   : > { %v10154_v20 = vadd.f32 %v2694_v26, %v2606_v34  ;;  %v2585_v9 = vmul.f32 %v17279_v61, %v2549_v1  ;;  %v2586_v42 = vmul.f32 %v17279_v61, %v2563_v50  ;;  %v2609_v51 = vadd.f32 %v2581_v3, %v9936_v7  ;;  %v17284_v26 = vld [vmem:[#allocation61_spill] sm:$0xff] }
 0x229   : > { %v10159_v47 = vadd.f32 %v2693_v23, %v2605_v14  ;;  %v2610_v16 = vadd.f32 %v2582_v35, %v9939_v45  ;;  %v2637_v8 = vrot.slane %v17252_v11, 2  ;;  %v2698_v6 = vmul.f32 %v10097_v28, %v2677_v10  ;;  %v17285_v23 = vld [vmem:[#allocation7_spill] sm:$0xff] }
 0x22a   : > { %v10164_v46 = vadd.f32 %v2696_v31, %v2608_v38  ;;  %v2651_v48 = vrot.slane %v17262_v2, 2  ;;  %v2678_v22 = vsel %vm806_vm1, %v2650_v30, %v2636_v24  ;;  %v2697_v1 = vmul.f32 %v10097_v28, %v2663_v41  ;;  %v17289_v41 = vld [vmem:[#allocation14_spill] sm:$0xff] }
 0x22b   : > { %17280 = vst [vmem:[#allocation58_spill] sm:$0xff] %v10159_v47  ;;  %v10170_v50 = vadd.f32 %v2695_v32, %v2607_v57  ;;  %v2587_v7 = vmul.f32 %v17279_v61, %v10045_v44  ;;  %v2588_v45 = vmul.f32 %v17279_v61, %v2564_v5  ;;  %v2664_v11 = vsel %vm806_vm1, %v2636_v24, %v2650_v30  ;;  %v17287_v24 = vld [vmem:[#allocation112_spill] sm:$0xff] }
 0x22c   : > { %17281 = vst [vmem:[#allocation115_spill] sm:$0xff] %v10164_v46  ;;  %v2749_v12 = vsel %vm1537_vm2, %v10154_v20, 0.0  ;;  %v2611_v2 = vadd.f32 %v2583_v15, %v9942_v53  ;;  %v2612_v25 = vadd.f32 %v2584_v29, %v9945_v37  ;;  %v2638_v19 = vrot.slane %v17253_v40, 2  ;;  %v17288_v15 = vld [vmem:[#allocation39_spill] sm:$0xff] }
 0x22d   : > { %17282 = vst [vmem:[#allocation41_spill] sm:$0xff] %v10170_v50  ;;  %v2750_v0 = vadd.f32 %v2749_v12, %v10159_v47  ;;  %v2652_v4 = vrot.slane %v17263_v21, 2  ;;  %v2700_v44 = vmul.f32 %v10097_v28, %v2678_v22  ;;  %v10185_v56 = vadd.f32 %v2698_v6, %v2610_v16 }
 0x22e   : > { %v2752_v5 = vsel %vm1537_vm2, %v10164_v46, 0.0  ;;  %v2679_v54 = vsel %vm806_vm1, %v2651_v48, %v2637_v8  ;;  %v2699_v53 = vmul.f32 %v10097_v28, %v2664_v11  ;;  %v10192_v63 = vadd.f32 %v2697_v1, %v2609_v51  ;;  %v17293_v11 = vld [vmem:[#allocation56_spill] sm:$0xff] }
 0x22f   : > { %17283 = vst [vmem:[#allocation116_spill] sm:$0xff] %v10185_v56  ;;  %v2751_v37 = vadd.f32 %v2750_v0, %v10170_v50  ;;  %v2589_v40 = vmul.f32 %v17279_v61, %v10049_v18  ;;  %v2590_v21 = vmul.f32 %v17279_v61, %v10093_v27  ;;  %v2591_v17 = vmul.f32 %v17279_v61, %v10053_v43 }
 0x230   : > { %v2665_v60 = vsel %vm806_vm1, %v2637_v8, %v2651_v48  ;;  %v2613_v34 = vadd.f32 %v2585_v9, %v9948_v59  ;;  %v2614_v33 = vadd.f32 %v2586_v42, %v9951_v58  ;;  %v2639_v3 = vrot.slane %v17284_v26, 2  ;;  %v17290_v42 = vld [vmem:[#allocation66_spill] sm:$0xff]  ;;  %v17291_v8 = vld [vmem:[#allocation25_spill] sm:$0xff] }
 0x231   : > { %v2753_v14 = vadd.f32 %v2752_v5, %v2751_v37  ;;  %v2653_v35 = vrot.slane %v17285_v23, 2  ;;  %v2702_v18 = vmul.f32 %v10097_v28, %v2679_v54  ;;  %v10208_v57 = vadd.f32 %v2700_v44, %v2612_v25  ;;  %v17294_v25 = vld [vmem:[#allocation113_spill] sm:$0xff]  ;;  %v17296_v5 = vld [vmem:[#allocation46_spill] sm:$0xff] }
 0x232   : > { %v2755_v27 = vsel %vm1537_vm2, %v10185_v56, 0.0  ;;  %v2680_v43 = vsel %vm806_vm1, %v2652_v4, %v2638_v19  ;;  %v2701_v38 = vmul.f32 %v10097_v28, %v2665_v60  ;;  %v10215_v59 = vadd.f32 %v2699_v53, %v2611_v2  ;;  %v17297_v53 = vld [vmem:[#allocation35_spill] sm:$0xff] }
 0x233   : > { %17286 = vst [vmem:[#allocation69_spill] sm:$0xff] %v10208_v57  ;;  %v2754_v58 = vadd.f32 %v2753_v14, %v10192_v63  ;;  %v2592_v31 = vmul.f32 %v17279_v61, %v10101_v39  ;;  %v2593_v30 = vmul.f32 %v17279_v61, %v17287_v24  ;;  %v2594_v10 = vmul.f32 %v17279_v61, %v10105_v55  ;;  %v10569_v56 = vld [vmem:[%s6442_s17 + $0x310] sm:$0xff] }
 0x234   : > { %v2666_v32 = vsel %vm806_vm1, %v2638_v19, %v2652_v4  ;;  %v2615_v29 = vadd.f32 %v2587_v7, %v17288_v15  ;;  %v2616_v9 = vadd.f32 %v2588_v45, %v17289_v41  ;;  %v2640_v51 = vrot.slane %v17290_v42, 2  ;;  %v17295_v4 = vld [vmem:[#allocation11_spill] sm:$0xff]  ;;  %v17304_v42 = vld [vmem:[#allocation17_spill] sm:$0xff]  ;;  %17392 = vst [vmem:[#allocation52_spill] sm:$0xff] %v10569_v56 }
 0x235   : > { %v2756_v16 = vadd.f32 %v2755_v27, %v2754_v58  ;;  %v2654_v6 = vrot.slane %v17291_v8, 2  ;;  %v2704_v39 = vmul.f32 %v10097_v28, %v2680_v43  ;;  %v10231_v48 = vadd.f32 %v2702_v18, %v2614_v33  ;;  %v17300_v18 = vld [vmem:[#allocation57_spill] sm:$0xff] }
 0x236   : > { %v2758_v22 = vsel %vm1537_vm2, %v10208_v57, 0.0  ;;  %v2681_v55 = vsel %vm806_vm1, %v2653_v35, %v2639_v3  ;;  %v2703_v1 = vmul.f32 %v10097_v28, %v2666_v32  ;;  %v10238_v7 = vadd.f32 %v2701_v38, %v2613_v34  ;;  %v17298_v34 = vld [vmem:[#allocation26_spill] sm:$0xff]  ;;  %v17301_v58 = vld [vmem:[#allocation29_spill] sm:$0xff] }
 0x237   : > { %17292 = vst [vmem:[#allocation117_spill] sm:$0xff] %v10231_v48  ;;  %v2757_v45 = vadd.f32 %v2756_v16, %v10215_v59  ;;  %v2595_v12 = vmul.f32 %v17279_v61, %v17293_v11  ;;  %v2596_v2 = vmul.f32 %v17279_v61, %v10112_v52  ;;  %v2597_v19 = vmul.f32 %v17279_v61, %v17294_v25  ;;  %v17302_v32 = vld [vmem:[#allocation33_spill] sm:$0xff] }
 0x238   : > { %v2667_v0 = vsel %vm806_vm1, %v2639_v3, %v2653_v35  ;;  %v2617_v44 = vadd.f32 %v2589_v40, %v17295_v4  ;;  %v2618_v54 = vadd.f32 %v2590_v21, %v17296_v5  ;;  %v2641_v37 = vrot.slane %v17297_v53, 2  ;;  %v17310_v5 = vld [vmem:[#allocation98_spill] sm:$0xff] }
 0x239   : > { %v2759_v60 = vadd.f32 %v2758_v22, %v2757_v45  ;;  %v2655_v33 = vrot.slane %v17298_v34, 2  ;;  %v2706_v26 = vmul.f32 %v10097_v28, %v2681_v55  ;;  %v10254_v14 = vadd.f32 %v2704_v39, %v2616_v9  ;;  %v17307_v55 = vld [vmem:[#allocation49_spill] sm:$0xff]  ;;  %v17308_v45 = vld [vmem:[#allocation114_spill] sm:$0xff]  ;;  %v17312_v34 = vld [vmem:[#allocation19_spill] sm:$0xff] }
 0x23a   : > { %v2761_v52 = vsel %vm1537_vm2, %v10231_v48, 0.0  ;;  %v2682_v23 = vsel %vm806_vm1, %v2654_v6, %v2640_v51  ;;  %v2705_v3 = vmul.f32 %v10097_v28, %v2667_v0  ;;  %v10261_v40 = vadd.f32 %v2703_v1, %v2615_v29  ;;  %v17303_v29 = vld [vmem:[#allocation84_spill] sm:$0xff]  ;;  %v17309_v0 = vld [vmem:[#allocation34_spill] sm:$0xff] }
 0x23b   : > { %17299 = vst [vmem:[#allocation70_spill] sm:$0xff] %v10254_v14  ;;  %v2760_v21 = vadd.f32 %v2759_v60, %v10238_v7  ;;  %v2598_v35 = vmul.f32 %v17279_v61, %v10120_v36  ;;  %v10268_v27 = vmul.f32 %v17279_v61, %v17300_v18  ;;  %v2600_v43 = vmul.f32 %v17279_v61, %v10128_v49  ;;  %v17314_v18 = vld [vmem:[#allocation127_spill] sm:$0xff]  ;;  %v17662_v62 = vld [vmem:[#allocation52_spill] sm:$0xff] }
 0x23c   : > { %v2668_v38 = vsel %vm806_vm1, %v2640_v51, %v2654_v6  ;;  %v2619_v24 = vadd.f32 %v2591_v17, %v17301_v58  ;;  %v2620_v15 = vadd.f32 %v2592_v31, %v17302_v32  ;;  %v2642_v41 = vrot.slane %v17303_v29, 2  ;;  %v17306_v6 = vld [vmem:[#allocation21_spill] sm:$0xff]  ;;  %v17315_v58 = vld [vmem:[#allocation22_spill] sm:$0xff]  ;;  %v17316_v29 = vld [vmem:[#allocation15_spill] sm:$0xff] }
 0x23d   : > { %v2762_v9 = vadd.f32 %v2761_v52, %v2760_v21  ;;  %v2656_v16 = vrot.slane %v17304_v42, 2  ;;  %v2708_v36 = vmul.f32 %v10097_v28, %v2682_v23  ;;  %v10279_v8 = vadd.f32 %v2706_v26, %v2618_v54  ;;  %v17317_v42 = vld [vmem:[#allocation24_spill] sm:$0xff] }
 0x23e   : > { %v2764_v39 = vsel %vm1537_vm2, %v10254_v14, 0.0  ;;  %v2683_v49 = vsel %vm806_vm1, %v2655_v33, %v2641_v37  ;;  %v2707_v51 = vmul.f32 %v10097_v28, %v2668_v38  ;;  %v10286_v17 = vadd.f32 %v2705_v3, %v2617_v44  ;;  %v17311_v44 = vld [vmem:[#allocation48_spill] sm:$0xff] }
 0x23f   : > { %17305 = vst [vmem:[#allocation118_spill] sm:$0xff] %v10279_v8  ;;  %v2763_v31 = vadd.f32 %v2762_v9, %v10261_v40  ;;  %v2601_v22 = vmul.f32 %v17279_v61, %v17306_v6  ;;  %v2602_v1 = vmul.f32 %v17279_v61, %v17307_v55  ;;  %v2603_v11 = vmul.f32 %v17279_v61, %v17308_v45  ;;  %v17321_v45 = vld [vmem:[#allocation74_spill] sm:$0xff] }
 0x240   : > { %v2669_v25 = vsel %vm806_vm1, %v2641_v37, %v2655_v33  ;;  %v2621_v4 = vadd.f32 %v2593_v30, %v17309_v0  ;;  %v2622_v54 = vadd.f32 %v2594_v10, %v17310_v5  ;;  %v2643_v53 = vrot.slane %v17311_v44, 2  ;;  %v17322_v0 = vld [vmem:[#allocation99_spill] sm:$0xff] }
 0x241   : > { %v2765_v60 = vadd.f32 %v2764_v39, %v2763_v31  ;;  %v2657_v26 = vrot.slane %v17312_v34, 2  ;;  %v2710_v52 = vmul.f32 %v10097_v28, %v2683_v49  ;;  %v10302_v23 = vadd.f32 %v2708_v36, %v2620_v15  ;;  %v17318_v39 = vld [vmem:[#allocation37_spill] sm:$0xff]  ;;  %v17323_v5 = vld [vmem:[#allocation67_spill] sm:$0xff] }
 0x242   : > { %v2767_v3 = vsel %vm1537_vm2, %v10279_v8, 0.0  ;;  %v2684_v21 = vsel %vm806_vm1, %v2656_v16, %v2642_v41  ;;  %v2709_v37 = vmul.f32 %v10097_v28, %v2669_v25  ;;  %v10309_v30 = vadd.f32 %v2707_v51, %v2619_v24  ;;  %v17319_v51 = vld [vmem:[#allocation128_spill] sm:$0xff]  ;;  %v10548_v8 = vld [vmem:[%s6442_s17 + $0x2b0] sm:$0xff] }
 0x243   : > { %17313 = vst [vmem:[#allocation40_spill] sm:$0xff] %v10302_v23  ;;  %v2766_v10 = vadd.f32 %v2765_v60, %v10286_v17  ;;  %v2604_v33 = vmul.f32 %v17279_v61, %v10136_v13  ;;  %v2623_v38 = vadd.f32 %v2595_v12, %v17314_v18  ;;  %v2644_v32 = vrot.slane %v17315_v58, 2  ;;  %v17324_v60 = vld [vmem:[#allocation55_spill] sm:$0xff]  ;;  %v17327_v58 = vld [vmem:[#allocation10_spill] sm:$0xff]  ;;  %17386 = vst [vmem:[#allocation59_spill] sm:$0xff] %v10548_v8 }
 0x244   : > { %v2670_v15 = vsel %vm806_vm1, %v2642_v41, %v2656_v16  ;;  %v2646_v9 = vrot.slane %v17316_v29, 2  ;;  %v2658_v36 = vrot.slane %v17317_v42, 2  ;;  %v2660_v49 = vrot.slane %v17318_v39, 2  ;;  %v6054_v42 = vld [vmem:[%s8538_s27] sm:$0xf] }
 0x245   : > { %v2768_v24 = vadd.f32 %v2767_v3, %v2766_v10  ;;  %v2624_v31 = vadd.f32 %v2596_v2, %v17319_v51  ;;  %v2712_v6 = vmul.f32 %v10097_v28, %v2684_v21  ;;  %v10323_v55 = vadd.f32 %v2710_v52, %v2622_v54  ;;  %v17325_v21 = vld [vmem:[#allocation68_spill] sm:$0xff] }
 0x246   : > { %v2770_v61 = vsel %vm1537_vm2, %v10302_v23, 0.0  ;;  %v2685_v13 = vsel %vm806_vm1, %v2657_v26, %v2643_v53  ;;  %v2711_v12 = vmul.f32 %v10097_v28, %v2670_v15  ;;  %v10330_v41 = vadd.f32 %v2709_v37, %v2621_v4  ;;  %v10545_v23 = vld [vmem:[%s6442_s17 + $0x290] sm:$0xff] }
 0x247   : > { %17320 = vst [vmem:[#allocation119_spill] sm:$0xff] %v10323_v55  ;;  %v2769_v16 = vadd.f32 %v2768_v24, %v10309_v30  ;;  %v2625_v25 = vadd.f32 %v2597_v19, %v17321_v45  ;;  %v2626_v2 = vadd.f32 %v2598_v35, %v17322_v0  ;;  %v2628_v44 = vadd.f32 %v2600_v43, %v17323_v5  ;;  %v6055_v0 = vld [vmem:[%s6437_s21 + $0x10] sm:$0xff] }
 0x248   : > { %v2671_v54 = vsel %vm806_vm1, %v2643_v53, %v2657_v26  ;;  %v2630_v34 = vadd.f32 %v2602_v1, %v17324_v60  ;;  %v2686_v52 = vsel %vm806_vm1, %v2658_v36, %v2644_v32  ;;  %v2688_v4 = vsel %vm806_vm1, %v2660_v49, %v2646_v9  ;;  %17385 = vst [vmem:[#allocation137_spill] sm:$0xff] %v10545_v23 }
 0x249   : > { %v2771_v3 = vadd.f32 %v2770_v61, %v2769_v16  ;;  %v2632_v37 = vadd.f32 %v2604_v33, %v17325_v21  ;;  %v2714_v19 = vmul.f32 %v10097_v28, %v2685_v13  ;;  %v10345_v35 = vadd.f32 %v2712_v6, %v2624_v31  ;;  %v17330_v31 = vld [vmem:[#allocation111_spill] sm:$0xff]  ;;  %v564_v13 = vld [vmem:[%s6437_s21 + $0x18] sm:$0xff] }
 0x24a   : > { %v2773_v43 = vsel %vm1537_vm2, %v10323_v55, 0.0  ;;  %v2672_v1 = vsel %vm806_vm1, %v2644_v32, %v2658_v36  ;;  %v2713_v53 = vmul.f32 %v10097_v28, %v2671_v54  ;;  %v10352_v26 = vadd.f32 %v2711_v12, %v2623_v38  ;;  %v17328_v36 = vld [vmem:[#allocation109_spill] sm:$0xff]  ;;  %v17329_v38 = vld [vmem:[#allocation110_spill] sm:$0xff]  ;;  %v10542_v55 = vld [vmem:[%s6442_s17 + $0x270] sm:$0xff] }
 0x24b   : > { %17326 = vst [vmem:[#allocation107_spill] sm:$0xff] %v10345_v35  ;;  %v2772_v10 = vadd.f32 %v2771_v3, %v10330_v41  ;;  %v2674_v33 = vsel %vm806_vm1, %v2646_v9, %v2660_v49  ;;  %v2716_v18 = vmul.f32 %v10097_v28, %v2686_v52  ;;  %v2718_v15 = vmul.f32 %v10097_v28, %v17327_v58  ;;  %v17332_v12 = vld [vmem:[#allocation50_spill] sm:$0xff]  ;;  %v17338_v52 = vld [vmem:[#allocation105_spill] sm:$0xff]  ;;  %v17342_v3 = vld [vmem:[#allocation43_spill] sm:$0xff] }
 0x24c   : > { %v2720_v29 = vmul.f32 %v10097_v28, %v2688_v4  ;;  %v2941_v32 = vrot.slane %v6054_v42, 1  ;;  %v2627_v39 = vadd.f32 %v10268_v27, %v17328_v36  ;;  %v2629_v24 = vadd.f32 %v2601_v22, %v17329_v38  ;;  %v10422_v42 = vld [vmem:[%s6442_s17 + $0x50] sm:$0xff]  ;;  %17384 = vst [vmem:[#allocation51_spill] sm:$0xff] %v10542_v55 }
 0x24d   : > { %v2774_v51 = vadd.f32 %v2773_v43, %v2772_v10  ;;  %v2631_v6 = vadd.f32 %v2603_v11, %v17330_v31  ;;  %v2715_v9 = vmul.f32 %v10097_v28, %v2672_v1  ;;  %v10367_v49 = vadd.f32 %v2714_v19, %v2626_v2  ;;  %v17333_v11 = vld [vmem:[#allocation104_spill] sm:$0xff]  ;;  %v17344_v43 = vld [vmem:[#allocation6_spill] sm:$0xff]  ;;  %v10409_v10 = vld [vmem:[%s6442_s17 + $0x10] sm:$0xff]  ;;  %17351 = vst [vmem:[#allocation123_spill] sm:$0xff] %v10422_v42 }
 0x24e   : > { %v2776_v61 = vsel %vm1537_vm2, %v10345_v35, 0.0  ;;  %v2717_v16 = vmul.f32 %v10097_v28, %v17332_v12  ;;  %v2719_v45 = vmul.f32 %v10097_v28, %v2674_v33  ;;  %v10375_v27 = vadd.f32 %v2713_v53, %v2625_v25  ;;  %v17340_v25 = vld [vmem:[#allocation106_spill] sm:$0xff]  ;;  %17349 = vst [vmem:[#allocation76_spill] sm:$0xff] %v10409_v10  ;;  %v10442_v31 = vld [vmem:[%s6442_s17 + $0xd0] sm:$0xff] }
 0x24f   : > { %17331 = vst [vmem:[#allocation120_spill] sm:$0xff] %v10367_v49  ;;  %v2775_v22 = vadd.f32 %v2774_v51, %v10352_v26  ;;  %v10380_v5 = vrot.slane %v6055_v0, %v17333_v11  ;;  %v10382_v2 = vadd.f32 %v2716_v18, %v2628_v44  ;;  %v10384_v54 = vadd.f32 %v2718_v15, %v2630_v34  ;;  %v17346_v34 = vld [vmem:[#allocation71_spill] sm:$0xff] }
 0x250   : > { %v10386_v60 = vadd.f32 %v2720_v29, %v2632_v37  ;;  %v10389_v28 = vrot.slane %v6055_v0, %v17338_v52  ;;  %v10392_v4 = vrot.slane %v6055_v0, %v17340_v25  ;;  %v10395_v21 = vrot.slane %v6055_v0, %v17342_v3  ;;  %v10419_v29 = vld [vmem:[%s6442_s17 + $0x30] sm:$0xff]  ;;  %17355 = vst [vmem:[#allocation77_spill] sm:$0xff] %v10442_v31 }
 0x251   : > { %17334 = vst [vmem:[#allocation108_spill] sm:$0xff] %v10380_v5  ;;  %17335 = vst [vmem:[#allocation121_spill] sm:$0xff] %v10382_v2  ;;  %v2777_v19 = vadd.f32 %v2776_v61, %v2775_v22  ;;  %v10398_v44 = vrot.slane %v2941_v32, %v17344_v43  ;;  %v10401_v1 = vrot.slane %v6055_v0, %v17346_v34  ;;  %v2779_v53 = vsel %vm1537_vm2, %v10367_v49, 0.0  ;;  %v10425_v32 = vld [vmem:[%s6442_s17 + $0x70] sm:$0xff] }
 0x252   : > { %17336 = vst [vmem:[#allocation65_spill] sm:$0xff] %v10384_v54  ;;  %17337 = vst [vmem:[#allocation85_spill] sm:$0xff] %v10386_v60  ;;  %v10404_v37 = vrot.slane %v564_v13, %v17344_v43  ;;  %v10411_v33 = vadd.f32 %v2715_v9, %v2627_v39  ;;  %v10413_v18 = vadd.f32 %v2717_v16, %v2629_v24  ;;  %v2782_v36 = vsel %vm1537_vm2, %v10382_v2, 0.0  ;;  %v10436_v24 = vld [vmem:[%s6442_s17 + $0x90] sm:$0xff] }
 0x253   : > { %17339 = vst [vmem:[#allocation124_spill] sm:$0xff] %v10389_v28  ;;  %17341 = vst [vmem:[#allocation122_spill] sm:$0xff] %v10392_v4  ;;  %v10415_v58 = vadd.f32 %v2719_v45, %v2631_v6  ;;  %v2778_v15 = vadd.f32 %v2777_v19, %v10375_v27  ;;  %v2785_v39 = vsel %vm1537_vm2, %v10384_v54, 0.0  ;;  %v10433_v38 = vsel %vm1537_vm2, %v10386_v60, 0.0  ;;  %v10439_v51 = vld [vmem:[%s6442_s17 + $0xb0] sm:$0xff]  ;;  %v17356_v6 = vld [vmem:[#allocation88_spill] sm:$0xff] }
 0x254   : > { %17343 = vst [vmem:[#allocation126_spill] sm:$0xff] %v10395_v21  ;;  %17345 = vst [vmem:[#allocation125_spill] sm:$0xff] %v10398_v44  ;;  %v10446_v9 = vmul.f32 %v17356_v6, %v10409_v10  ;;  %v10449_v13 = vld [vmem:[%s6442_s17 + $0xf0] sm:$0xff]  ;;  %v10459_v45 = vmul.f32 %v17356_v6, %v10419_v29  ;;  %v10463_v22 = vmul.f32 %v17356_v6, %v10422_v42 }
 0x255   : > { %17347 = vst [vmem:[#allocation75_spill] sm:$0xff] %v10401_v1  ;;  %17348 = vst [vmem:[#allocation62_spill] sm:$0xff] %v10404_v37  ;;  %v2780_v61 = vadd.f32 %v2779_v53, %v2778_v15  ;;  %v10452_v12 = vld [vmem:[%s6442_s17 + $0x110] sm:$0xff]  ;;  %v10467_v0 = vmul.f32 %v17356_v6, %v10425_v32  ;;  %v10480_v37 = vmul.f32 %v17356_v6, %v10436_v24 }
 0x256   : > { %17350 = vst [vmem:[#allocation63_spill] sm:$0xff] %v10419_v29  ;;  %17352 = vst [vmem:[#allocation86_spill] sm:$0xff] %v10425_v32  ;;  %v10455_v16 = vld [vmem:[%s6442_s17 + $0x130] sm:$0xff]  ;;  %v10484_v34 = vmul.f32 %v17356_v6, %v10439_v51  ;;  %v10488_v3 = vmul.f32 %v17356_v6, %v10442_v31  ;;  %v10492_v25 = vmul.f32 %v17356_v6, %v10449_v13  ;;  %v3095_v50 = vrot.slane %v10452_v12, 1 }
 0x257   : > { %17353 = vst [vmem:[#allocation64_spill] sm:$0xff] %v10436_v24  ;;  %17354 = vst [vmem:[#allocation87_spill] sm:$0xff] %v10439_v51  ;;  %v10470_v19 = vld [vmem:[%s6442_s17 + $0x150] sm:$0xff]  ;;  %v2781_v52 = vadd.f32 %v2780_v61, %v10411_v33  ;;  %v10506_v44 = vmul.f32 %v17356_v6, %v10452_v12  ;;  %v10510_v43 = vmul.f32 %v17356_v6, %v10455_v16 }
 0x258   : > { %17357 = vst [vmem:[#allocation96_spill] sm:$0xff] %v10446_v9  ;;  %17358 = vst [vmem:[#allocation47_spill] sm:$0xff] %v10449_v13  ;;  %v10473_v53 = vld [vmem:[%s6442_s17 + $0x170] sm:$0xff]  ;;  %v10514_v61 = vmul.f32 %v17356_v6, %v10470_v19 }
 0x259   : > { %17359 = vst [vmem:[#allocation20_spill] sm:$0xff] %v10452_v12  ;;  %17360 = vst [vmem:[#allocation18_spill] sm:$0xff] %v10455_v16  ;;  %v10476_v15 = vld [vmem:[%s6442_s17 + $0x190] sm:$0xff]  ;;  %v10527_v60 = vmul.f32 %v17356_v6, %v10473_v53  ;;  %v2783_v35 = vadd.f32 %v2782_v36, %v2781_v52 }
 0x25a   : > { %17361 = vst [vmem:[#allocation89_spill] sm:$0xff] %v10459_v45  ;;  %17362 = vst [vmem:[#allocation42_spill] sm:$0xff] %v10463_v22  ;;  %v10496_v11 = vld [vmem:[%s6442_s17 + $0x1b0] sm:$0xff]  ;;  %v10531_v54 = vmul.f32 %v17356_v6, %v10476_v15 }
 0x25b   : > { %17363 = vst [vmem:[#allocation79_spill] sm:$0xff] %v10467_v0  ;;  %17364 = vst [vmem:[#allocation91_spill] sm:$0xff] %v10470_v19  ;;  %v10499_v1 = vld [vmem:[%s6442_s17 + $0x1d0] sm:$0xff]  ;;  %v10535_v2 = vmul.f32 %v17356_v6, %v10496_v11 }
 0x25c   : > { %17365 = vst [vmem:[#allocation80_spill] sm:$0xff] %v10473_v53  ;;  %17366 = vst [vmem:[#allocation92_spill] sm:$0xff] %v10476_v15  ;;  %v10502_v21 = vld [vmem:[%s6442_s17 + $0x1f0] sm:$0xff]  ;;  %v10539_v49 = vmul.f32 %v17356_v6, %v10499_v1 }
 0x25d   : > { %17367 = vst [vmem:[#allocation94_spill] sm:$0xff] %v10480_v37  ;;  %17368 = vst [vmem:[#allocation93_spill] sm:$0xff] %v10484_v34  ;;  %v10517_v4 = vld [vmem:[%s6442_s17 + $0x210] sm:$0xff]  ;;  %v10552_v14 = vmul.f32 %v17356_v6, %v10502_v21 }
 0x25e   : > { %17369 = vst [vmem:[#allocation97_spill] sm:$0xff] %v10488_v3  ;;  %17370 = vst [vmem:[#allocation81_spill] sm:$0xff] %v10492_v25  ;;  %v10520_v28 = vld [vmem:[%s6442_s17 + $0x230] sm:$0xff]  ;;  %v10556_v48 = vmul.f32 %v17356_v6, %v10517_v4  ;;  %v3093_v25 = vrot.slane %v10436_v24, 1  ;;  %v3097_v3 = vrot.slane %v10476_v15, 1 }
 0x25f   : > { %17371 = vst [vmem:[#allocation83_spill] sm:$0xff] %v10496_v11  ;;  %17372 = vst [vmem:[#allocation82_spill] sm:$0xff] %v10499_v1  ;;  %v10523_v5 = vld [vmem:[%s6442_s17 + $0x250] sm:$0xff]  ;;  %v10560_v57 = vmul.f32 %v17356_v6, %v10520_v28 }
 0x260   : > { %17373 = vst [vmem:[#allocation131_spill] sm:$0xff] %v10502_v21  ;;  %17374 = vst [vmem:[#allocation78_spill] sm:$0xff] %v10506_v44  ;;  %v10563_v52 = vld [vmem:[%s6442_s17 + $0x2d0] sm:$0xff] }
 0x261   : > { %17375 = vst [vmem:[#allocation132_spill] sm:$0xff] %v10510_v43  ;;  %17376 = vst [vmem:[#allocation12_spill] sm:$0xff] %v10514_v61  ;;  %v10566_v36 = vld [vmem:[%s6442_s17 + $0x2f0] sm:$0xff]  ;;  %v3102_v24 = vrot.slane %v10563_v52, 1 }
 0x262   : > { %17377 = vst [vmem:[#allocation133_spill] sm:$0xff] %v10517_v4  ;;  %17378 = vst [vmem:[#allocation23_spill] sm:$0xff] %v10520_v28  ;;  %v10595_v61 = vld [vmem:[%s6442_s17 + $0x370] sm:$0xff] }
 0x263   : > { %17379 = vst [vmem:[#allocation134_spill] sm:$0xff] %v10523_v5  ;;  %17380 = vst [vmem:[#allocation32_spill] sm:$0xff] %v10527_v60  ;;  %v10592_v60 = vld [vmem:[%s6442_s17 + $0x350] sm:$0xff]  ;;  %v10619_v43 = vmul.f32 %v17356_v6, %v10595_v61 }
 0x264   : > { %17381 = vst [vmem:[#allocation135_spill] sm:$0xff] %v10531_v54  ;;  %17382 = vst [vmem:[#allocation101_spill] sm:$0xff] %v10535_v2  ;;  %v2784_v2 = vadd.f32 %v2783_v35, %v10413_v18  ;;  %v10589_v54 = vld [vmem:[%s6442_s17 + $0x330] sm:$0xff]  ;;  %v3104_v12 = vrot.slane %v10592_v60, 1 }
 0x265   : > { %17383 = vst [vmem:[#allocation136_spill] sm:$0xff] %v10539_v49  ;;  %17387 = vst [vmem:[#allocation138_spill] sm:$0xff] %v10552_v14  ;;  %v10573_v49 = vmul.f32 %v17356_v6, %v10523_v5  ;;  %v10577_v14 = vmul.f32 %v17356_v6, %v10542_v55  ;;  %v10611_v35 = vmul.f32 %v17356_v6, %v10589_v54 }
 0x266   : > { %17388 = vst [vmem:[#allocation9_spill] sm:$0xff] %v10556_v48  ;;  %17389 = vst [vmem:[#allocation139_spill] sm:$0xff] %v10560_v57  ;;  %v10581_v48 = vmul.f32 %v17356_v6, %v10545_v23  ;;  %v10585_v57 = vmul.f32 %v17356_v6, %v10548_v8  ;;  %v2786_v44 = vadd.f32 %v2785_v39, %v2784_v2  ;;  %v3100_v2 = vrot.slane %v10523_v5, 1 }
 0x267   : > { %17390 = vst [vmem:[#allocation90_spill] sm:$0xff] %v10563_v52  ;;  %17391 = vst [vmem:[#allocation140_spill] sm:$0xff] %v10566_v36  ;;  %v3101_v39 = vrot.slane %v10545_v23, 1  ;;  %v3109_v5 = vrot.slane %v10455_v16, 1  ;;  %v3110_v23 = vrot.slane %v10473_v53, 1  ;;  %v3118_v16 = vrot.slane %v10595_v61, 1 }
 0x268   : > { %17393 = vst [vmem:[#allocation141_spill] sm:$0xff] %v10573_v49  ;;  %17394 = vst [vmem:[#allocation129_spill] sm:$0xff] %v10577_v14  ;;  %v10599_v49 = vmul.f32 %v17356_v6, %v10563_v52  ;;  %v10603_v14 = vmul.f32 %v17356_v6, %v10566_v36  ;;  %v3111_v52 = vrot.slane %v10496_v11, 1 }
 0x269   : > { %17395 = vst [vmem:[#allocation142_spill] sm:$0xff] %v10581_v48  ;;  %17396 = vst [vmem:[#allocation130_spill] sm:$0xff] %v10585_v57  ;;  %v10607_v48 = vmul.f32 %v17356_v6, %v10569_v56  ;;  %v10615_v57 = vmul.f32 %v17356_v6, %v10592_v60  ;;  %v2787_v6 = vadd.f32 %v2786_v44, %v10415_v58  ;;  %v3107_v44 = vrot.slane %v10439_v51, 1 }
 0x26a   : > { %17397 = vst [vmem:[#allocation143_spill] sm:$0xff] %v10589_v54  ;;  %17398 = vst [vmem:[#allocation100_spill] sm:$0xff] %v10592_v60  ;;  %v3116_v51 = vrot.slane %v10566_v36, 1  ;;  %v10666_v36 = vld [vmem:[%s9426_s30] sm:$0xf]  ;;  %v10707_v37 = vsel %vm689_vm0, %v3104_v12, %v3118_v16  ;;  %v10725_v9 = vsel %vm689_vm0, %v3109_v5, %v3095_v50 }
 0x26b   : > { %17399 = vst [vmem:[#allocation31_spill] sm:$0xff] %v10595_v61  ;;  %17400 = vst [vmem:[#allocation38_spill] sm:$0xff] %v10599_v49  ;;  %v3091_v49 = vrot.slane %v10409_v10, 1  ;;  %v2789_v15 = vadd.f32 %v10433_v38, %v2787_v6  ;;  %v3114_v38 = vrot.slane %v10542_v55, 1  ;;  %v3115_v6 = vrot.slane %v10548_v8, 1 }
 0x26c   : > { %17401 = vst [vmem:[#allocation16_spill] sm:$0xff] %v10603_v14  ;;  %17402 = vst [vmem:[#allocation27_spill] sm:$0xff] %v10607_v48  ;;  %v3092_v14 = vrot.slane %v10422_v42, 1  ;;  %v3094_v48 = vrot.slane %v10442_v31, 1  ;;  %v3103_v31 = vrot.slane %v10569_v56, 1  ;;  %v3112_v56 = vrot.slane %v10502_v21, 1 }
 0x26d   : > { %17403 = vst [vmem:[#allocation28_spill] sm:$0xff] %v10611_v35  ;;  %17404 = vst [vmem:[#allocation72_spill] sm:$0xff] %v10615_v57  ;;  %v3096_v35 = vrot.slane %v10470_v19, 1  ;;  %v3098_v57 = vrot.slane %v10499_v1, 1  ;;  %v3105_v19 = vrot.slane %v10419_v29, 1  ;;  %v3106_v1 = vrot.slane %v10425_v32, 1 }
 0x26e   : > { %17405 = vst [vmem:[#allocation53_spill] sm:$0xff] %v10619_v43  ;;  %v3099_v43 = vrot.slane %v10517_v4, 1  ;;  %v3108_v4 = vrot.slane %v10449_v13, 1  ;;  %v2790_v60 = vrot.slane %v2789_v15, 4  ;;  %v3113_v29 = vrot.slane %v10520_v28, 1  ;;  %17409 = vst [vmem:[#allocation30_spill] sm:$0xff] %v10666_v36 }
 0x26f   : > { %v3117_v13 = vrot.slane %v10589_v54, 1  ;;  %v3119_v53 = vsel %vm689_vm0, %v3091_v49, %v3105_v19  ;;  %v10655_v21 = vsel %vm689_vm0, %v3092_v14, %v3106_v1  ;;  %v10659_v28 = vsel %vm689_vm0, %v3093_v25, %v3107_v44  ;;  %17419 = vst [vmem:[#allocation66_spill] sm:$0xff] %v10707_v37  ;;  %17423 = vst [vmem:[#allocation11_spill] sm:$0xff] %v10725_v9 }
 0x270   : > { %v2791_v32 = vadd.f32 %v2790_v60, %v2789_v15  ;;  %17406 = vst [vmem:[#allocation36_spill] sm:$0xff] %v10655_v21  ;;  %17407 = vst [vmem:[#allocation45_spill] sm:$0xff] %v10659_v28  ;;  %v10663_v8 = vsel %vm689_vm0, %v3094_v48, %v3108_v4  ;;  %v10671_v54 = vsel %vm689_vm0, %v3095_v50, %v3109_v5 }
 0x271   : > { %17408 = vst [vmem:[#allocation44_spill] sm:$0xff] %v10663_v8  ;;  %17410 = vst [vmem:[#allocation60_spill] sm:$0xff] %v10671_v54  ;;  %v10675_v60 = vsel %vm689_vm0, %v3096_v35, %v3110_v23  ;;  %v10679_v15 = vsel %vm689_vm0, %v3097_v3, %v3111_v52  ;;  %v10683_v11 = vsel %vm689_vm0, %v3098_v57, %v3112_v56 }
 0x272   : > { %17411 = vst [vmem:[#allocation73_spill] sm:$0xff] %v10675_v60  ;;  %17412 = vst [vmem:[#allocation54_spill] sm:$0xff] %v10679_v15  ;;  %v2792_v55 = vrot.slane %v2791_v32, 2  ;;  %v10687_v61 = vsel %vm689_vm0, %v3099_v43, %v3113_v29  ;;  %v10691_v36 = vsel %vm689_vm0, %v3100_v2, %v3114_v38  ;;  %v10695_v42 = vsel %vm689_vm0, %v3101_v39, %v3115_v6 }
 0x273   : > { %17413 = vst [vmem:[#allocation102_spill] sm:$0xff] %v10683_v11  ;;  %17414 = vst [vmem:[#allocation61_spill] sm:$0xff] %v10687_v61  ;;  %v10699_v10 = vsel %vm689_vm0, %v3102_v24, %v3116_v51  ;;  %v10703_v34 = vsel %vm689_vm0, %v3103_v31, %v3117_v13  ;;  %v3133_v0 = vsel %vm689_vm0, %v3105_v19, %v3091_v49 }
 0x274   : > { %17415 = vst [vmem:[#allocation7_spill] sm:$0xff] %v10691_v36  ;;  %17416 = vst [vmem:[#allocation112_spill] sm:$0xff] %v10695_v42  ;;  %v2793_v46 = vadd.f32 %v2792_v55, %v2791_v32  ;;  %v10713_v22 = vsel %vm689_vm0, %v3106_v1, %v3092_v14  ;;  %v10717_v45 = vsel %vm689_vm0, %v3107_v44, %v3093_v25 }
 0x275   : > { %17417 = vst [vmem:[#allocation39_spill] sm:$0xff] %v10699_v10  ;;  %17418 = vst [vmem:[#allocation14_spill] sm:$0xff] %v10703_v34  ;;  %v10721_v47 = vsel %vm689_vm0, %v3108_v4, %v3094_v48  ;;  %v10729_v55 = vsel %vm689_vm0, %v3110_v23, %v3096_v35  ;;  %v10733_v14 = vsel %vm689_vm0, %v3111_v52, %v3097_v3  ;;  %v17433_v3 = vld [vmem:[#allocation103_spill] sm:$0xff] }
 0x276   : > { %17420 = vst [vmem:[#allocation25_spill] sm:$0xff] %v10713_v22  ;;  %17421 = vst [vmem:[#allocation56_spill] sm:$0xff] %v10717_v45  ;;  %v2794_v49 = vrot.slane %v2793_v46, 1  ;;  %v10737_v25 = vsel %vm689_vm0, %v3112_v56, %v3098_v57  ;;  %v10741_v48 = vsel %vm689_vm0, %v3113_v29, %v3099_v43  ;;  %v10745_v50 = vsel %vm689_vm0, %v3114_v38, %v3100_v2 }
 0x277   : > { %17422 = vst [vmem:[#allocation113_spill] sm:$0xff] %v10721_v47  ;;  %17424 = vst [vmem:[#allocation46_spill] sm:$0xff] %v10729_v55  ;;  %v10749_v23 = vsel %vm689_vm0, %v3115_v6, %v3101_v39  ;;  %v10753_v5 = vsel %vm689_vm0, %v3116_v51, %v3102_v24  ;;  %v10757_v56 = vsel %vm689_vm0, %v3117_v13, %v3103_v31 }
 0x278   : > { %17425 = vst [vmem:[#allocation35_spill] sm:$0xff] %v10733_v14  ;;  %17426 = vst [vmem:[#allocation26_spill] sm:$0xff] %v10737_v25  ;;  %v10761_v57 = vsel %vm689_vm0, %v3118_v16, %v3104_v12  ;;  %v2795_v4 = vadd.f32 %v2794_v49, %v2793_v46  ;;  %v3151_v43 = vmul.f32 %v17433_v3, %v3119_v53 }
 0x279   : > { %17427 = vst [vmem:[#allocation57_spill] sm:$0xff] %v10741_v48  ;;  %17428 = vst [vmem:[#allocation29_spill] sm:$0xff] %v10745_v50  ;;  %v3152_v1 = vmul.f32 %v17433_v3, %v3133_v0  ;;  %v3153_v29 = vmul.f32 %v17433_v3, %v10655_v21  ;;  %v3154_v32 = vmul.f32 %v17433_v3, %v10713_v22  ;;  %v17532_v22 = vld [vmem:[#allocation47_spill] sm:$0xff] }
 0x27a   : > { %17429 = vst [vmem:[#allocation33_spill] sm:$0xff] %v10749_v23  ;;  %17430 = vst [vmem:[#allocation84_spill] sm:$0xff] %v10753_v5  ;;  %v3155_v24 = vmul.f32 %v17433_v3, %v10659_v28  ;;  %v3156_v51 = vmul.f32 %v17433_v3, %v10717_v45  ;;  %v3157_v31 = vmul.f32 %v17433_v3, %v10663_v8  ;;  %v10783_v0 = vmul.f32 0.0051020407, %v2795_v4  ;;  %v17497_v8 = vld [vmem:[#allocation130_spill] sm:$0xff]  ;;  %v17517_v28 = vld [vmem:[#allocation20_spill] sm:$0xff] }
 0x27b   : > { %17431 = vst [vmem:[#allocation17_spill] sm:$0xff] %v10757_v56  ;;  %17432 = vst [vmem:[#allocation21_spill] sm:$0xff] %v10761_v57  ;;  %v3158_v46 = vmul.f32 %v17433_v3, %v10721_v47  ;;  %v3159_v13 = vmul.f32 %v17433_v3, %v10671_v54  ;;  %v3160_v12 = vmul.f32 %v17433_v3, %v10725_v9  ;;  %v17537_v21 = vld [vmem:[#allocation83_spill] sm:$0xff] }
 0x27c   : > { %v3161_v16 = vmul.f32 %v17433_v3, %v10675_v60  ;;  %v3162_v19 = vmul.f32 %v17433_v3, %v10729_v55  ;;  %v3163_v53 = vmul.f32 %v17433_v3, %v10679_v15  ;;  %v3164_v52 = vmul.f32 %v17433_v3, %v10733_v14  ;;  %v17455_v15 = vld [vmem:[#allocation79_spill] sm:$0xff]  ;;  %v17459_v60 = vld [vmem:[#allocation94_spill] sm:$0xff] }
 0x27d   : > { %v3165_v35 = vmul.f32 %v17433_v3, %v10683_v11  ;;  %v3166_v2 = vmul.f32 %v17433_v3, %v10737_v25  ;;  %v3167_v39 = vmul.f32 %v17433_v3, %v10687_v61  ;;  %v3168_v44 = vmul.f32 %v17433_v3, %v10741_v48  ;;  %v17457_v55 = vld [vmem:[#allocation115_spill] sm:$0xff] }
 0x27e   : > { %v10801_v38 = vsub.f32 %v10192_v63, %v10783_v0  ;;  %v10805_v6 = vsub.f32 %v10215_v59, %v10783_v0  ;;  %v3169_v49 = vmul.f32 %v17433_v3, %v10691_v36  ;;  %v3170_v4 = vmul.f32 %v17433_v3, %v10745_v50 }
 0x27f   : > { %v10813_v61 = vsub.f32 %v10238_v7, %v10783_v0  ;;  %v10817_v48 = vsub.f32 %v10261_v40, %v10783_v0  ;;  %v3171_v63 = vmul.f32 %v17433_v3, %v10695_v42  ;;  %v3172_v59 = vmul.f32 %v17433_v3, %v10749_v23 }
 0x280   : > { %17434 = vst [vmem:[#allocation49_spill] sm:$0xff] %v10801_v38  ;;  %17435 = vst [vmem:[#allocation114_spill] sm:$0xff] %v10805_v6  ;;  %v10825_v36 = vsub.f32 %v10286_v17, %v10783_v0  ;;  %v10829_v50 = vsub.f32 %v10309_v30, %v10783_v0  ;;  %v3173_v7 = vmul.f32 %v17433_v3, %v10699_v10 }
 0x281   : > { %17436 = vst [vmem:[#allocation34_spill] sm:$0xff] %v10813_v61  ;;  %17437 = vst [vmem:[#allocation98_spill] sm:$0xff] %v10817_v48  ;;  %v3174_v40 = vmul.f32 %v17433_v3, %v10753_v5  ;;  %v10837_v42 = vsub.f32 %v10330_v41, %v10783_v0  ;;  %v10841_v23 = vsub.f32 %v10352_v26, %v10783_v0 }
 0x282   : > { %17438 = vst [vmem:[#allocation48_spill] sm:$0xff] %v10825_v36  ;;  %17439 = vst [vmem:[#allocation19_spill] sm:$0xff] %v10829_v50  ;;  %v3175_v17 = vmul.f32 %v17433_v3, %v10703_v34  ;;  %v3176_v30 = vmul.f32 %v17433_v3, %v10757_v56  ;;  %v10849_v10 = vsub.f32 %v10375_v27, %v10783_v0 }
 0x283   : > { %17440 = vst [vmem:[#allocation127_spill] sm:$0xff] %v10837_v42  ;;  %17441 = vst [vmem:[#allocation22_spill] sm:$0xff] %v10841_v23  ;;  %v10853_v5 = vsub.f32 %v10411_v33, %v10783_v0  ;;  %v3177_v41 = vmul.f32 %v17433_v3, %v10707_v37  ;;  %v3178_v26 = vmul.f32 %v17433_v3, %v10761_v57  ;;  %v17447_v33 = vld [vmem:[#allocation96_spill] sm:$0xff]  ;;  %v17449_v37 = vld [vmem:[#allocation58_spill] sm:$0xff] }
 0x284   : > { %17442 = vst [vmem:[#allocation15_spill] sm:$0xff] %v10849_v10  ;;  %v10861_v34 = vsub.f32 %v10154_v20, %v10783_v0  ;;  %v10865_v56 = vsub.f32 %v10413_v18, %v10783_v0  ;;  %v10869_v27 = vsub.f32 %v10415_v58, %v10783_v0  ;;  %v10872_v25 = vadd.f32 %v3151_v43, %v17447_v33  ;;  %v17451_v3 = vld [vmem:[#allocation89_spill] sm:$0xff]  ;;  %v17453_v20 = vld [vmem:[#allocation42_spill] sm:$0xff] }
 0x285   : > { %17443 = vst [vmem:[#allocation24_spill] sm:$0xff] %v10853_v5  ;;  %v10876_v11 = vsub.f32 %v17449_v37, %v10783_v0  ;;  %v10879_v57 = vadd.f32 %v3152_v1, %v17451_v3  ;;  %v10882_v14 = vadd.f32 %v3153_v29, %v17453_v20  ;;  %v10885_v18 = vadd.f32 %v3154_v32, %v17455_v15  ;;  %v17461_v33 = vld [vmem:[#allocation93_spill] sm:$0xff]  ;;  %v17469_v32 = vld [vmem:[#allocation78_spill] sm:$0xff] }
 0x286   : > { %17444 = vst [vmem:[#allocation37_spill] sm:$0xff] %v10861_v34  ;;  %17445 = vst [vmem:[#allocation128_spill] sm:$0xff] %v10865_v56  ;;  %v10889_v58 = vsub.f32 %v17457_v55, %v10783_v0  ;;  %v10892_v43 = vadd.f32 %v3155_v24, %v17459_v60  ;;  %v10895_v9 = vadd.f32 %v3156_v51, %v17461_v33  ;;  %v17463_v37 = vld [vmem:[#allocation97_spill] sm:$0xff]  ;;  %v17471_v55 = vld [vmem:[#allocation132_spill] sm:$0xff] }
 0x287   : > { %17446 = vst [vmem:[#allocation74_spill] sm:$0xff] %v10869_v27  ;;  %17448 = vst [vmem:[#allocation99_spill] sm:$0xff] %v10872_v25  ;;  %v10898_v54 = vadd.f32 %v3157_v31, %v17463_v37  ;;  %v17465_v1 = vld [vmem:[#allocation41_spill] sm:$0xff]  ;;  %v10908_v20 = vadd.f32 %v3159_v13, %v17469_v32  ;;  %v10911_v47 = vadd.f32 %v3160_v12, %v17471_v55  ;;  %v17473_v24 = vld [vmem:[#allocation12_spill] sm:$0xff] }
 0x288   : > { %17450 = vst [vmem:[#allocation67_spill] sm:$0xff] %v10876_v11  ;;  %17452 = vst [vmem:[#allocation55_spill] sm:$0xff] %v10879_v57  ;;  %v10902_v29 = vsub.f32 %v17465_v1, %v10783_v0  ;;  %v17467_v3 = vld [vmem:[#allocation81_spill] sm:$0xff]  ;;  %v2826_v60 = vmul.f32 %v10861_v34, %v10861_v34  ;;  %v10916_v51 = vadd.f32 %v3161_v16, %v17473_v24  ;;  %v17475_v31 = vld [vmem:[#allocation32_spill] sm:$0xff] }
 0x289   : > { %17454 = vst [vmem:[#allocation68_spill] sm:$0xff] %v10882_v14  ;;  %17456 = vst [vmem:[#allocation10_spill] sm:$0xff] %v10885_v18  ;;  %v10905_v15 = vadd.f32 %v3158_v46, %v17467_v3  ;;  %v10919_v33 = vadd.f32 %v3162_v19, %v17475_v31  ;;  %v17477_v37 = vld [vmem:[#allocation135_spill] sm:$0xff]  ;;  %v2825_v46 = vmul.f32 %v10876_v11, %v10876_v11  ;;  %v17479_v13 = vld [vmem:[#allocation101_spill] sm:$0xff] }
 0x28a   : > { %17458 = vst [vmem:[#allocation109_spill] sm:$0xff] %v10889_v58  ;;  %17460 = vst [vmem:[#allocation110_spill] sm:$0xff] %v10892_v43  ;;  %v10922_v1 = vadd.f32 %v3163_v53, %v17477_v37  ;;  %v10927_v3 = vadd.f32 %v3164_v52, %v17479_v13  ;;  %v17481_v12 = vld [vmem:[#allocation136_spill] sm:$0xff]  ;;  %v17483_v55 = vld [vmem:[#allocation138_spill] sm:$0xff]  ;;  %v2828_v19 = vmul.f32 %v10889_v58, %v10889_v58  ;;  %v2853_v58 = vsel %vm1537_vm2, %v2826_v60, 0.0 }
 0x28b   : > { %17462 = vst [vmem:[#allocation111_spill] sm:$0xff] %v10895_v9  ;;  %17464 = vst [vmem:[#allocation50_spill] sm:$0xff] %v10898_v54  ;;  %v10930_v32 = vadd.f32 %v3165_v35, %v17481_v12  ;;  %v10933_v34 = vadd.f32 %v3166_v2, %v17483_v55  ;;  %v17485_v16 = vld [vmem:[#allocation116_spill] sm:$0xff]  ;;  %v17487_v53 = vld [vmem:[#allocation9_spill] sm:$0xff]  ;;  %v2827_v52 = vmul.f32 %v10902_v29, %v10902_v29 }
 0x28c   : > { %17466 = vst [vmem:[#allocation88_spill] sm:$0xff] %v10902_v29  ;;  %17468 = vst [vmem:[#allocation103_spill] sm:$0xff] %v10905_v15  ;;  %v10937_v24 = vsub.f32 %v17485_v16, %v10783_v0  ;;  %v10942_v31 = vadd.f32 %v3167_v39, %v17487_v53  ;;  %v17489_v37 = vld [vmem:[#allocation139_spill] sm:$0xff]  ;;  %v17491_v35 = vld [vmem:[#allocation141_spill] sm:$0xff]  ;;  %v10960_v39 = vadd.f32 %v3172_v59, %v17497_v8 }
 0x28d   : > { %17470 = vst [vmem:[#allocation96_spill] sm:$0xff] %v10908_v20  ;;  %17472 = vst [vmem:[#allocation58_spill] sm:$0xff] %v10911_v47  ;;  %v10945_v11 = vadd.f32 %v3168_v44, %v17489_v37  ;;  %v10950_v13 = vadd.f32 %v3169_v49, %v17491_v35  ;;  %v17493_v2 = vld [vmem:[#allocation129_spill] sm:$0xff]  ;;  %v17495_v55 = vld [vmem:[#allocation142_spill] sm:$0xff]  ;;  %v2854_v29 = vadd.f32 %v2853_v58, %v2825_v46 }
 0x28e   : > { %17474 = vst [vmem:[#allocation89_spill] sm:$0xff] %v10916_v51  ;;  %17476 = vst [vmem:[#allocation42_spill] sm:$0xff] %v10919_v33  ;;  %v10953_v12 = vadd.f32 %v3170_v4, %v17493_v2  ;;  %v10956_v16 = vadd.f32 %v3171_v63, %v17495_v55  ;;  %v17499_v53 = vld [vmem:[#allocation38_spill] sm:$0xff]  ;;  %v17501_v37 = vld [vmem:[#allocation16_spill] sm:$0xff]  ;;  %v2830_v59 = vmul.f32 %v10937_v24, %v10937_v24 }
 0x28f   : > { %17478 = vst [vmem:[#allocation79_spill] sm:$0xff] %v10922_v1  ;;  %17480 = vst [vmem:[#allocation115_spill] sm:$0xff] %v10927_v3  ;;  %v10963_v44 = vadd.f32 %v3173_v7, %v17499_v53  ;;  %v10966_v45 = vadd.f32 %v3174_v40, %v17501_v37  ;;  %v17503_v49 = vld [vmem:[#allocation27_spill] sm:$0xff]  ;;  %v17505_v4 = vld [vmem:[#allocation28_spill] sm:$0xff]  ;;  %v2856_v7 = vsel %vm1537_vm2, %v2828_v19, 0.0  ;;  %v2837_v18 = vmul.f32 %v10825_v36, %v10825_v36 }
 0x290   : > { %17482 = vst [vmem:[#allocation94_spill] sm:$0xff] %v10930_v32  ;;  %17484 = vst [vmem:[#allocation93_spill] sm:$0xff] %v10933_v34  ;;  %v10969_v35 = vadd.f32 %v3175_v17, %v17503_v49  ;;  %v10972_v2 = vadd.f32 %v3176_v30, %v17505_v4  ;;  %v17507_v63 = vld [vmem:[#allocation72_spill] sm:$0xff]  ;;  %v17509_v60 = vld [vmem:[#allocation69_spill] sm:$0xff]  ;;  %v2829_v17 = vmul.f32 %v10801_v38, %v10801_v38 }
 0x291   : > { %17486 = vst [vmem:[#allocation97_spill] sm:$0xff] %v10937_v24  ;;  %17488 = vst [vmem:[#allocation41_spill] sm:$0xff] %v10942_v31  ;;  %v10975_v55 = vadd.f32 %v3177_v41, %v17507_v63  ;;  %v10979_v8 = vsub.f32 %v17509_v60, %v10783_v0  ;;  %v17511_v40 = vld [vmem:[#allocation53_spill] sm:$0xff]  ;;  %v2855_v30 = vadd.f32 %v2854_v29, %v2827_v52  ;;  %v17513_v46 = vld [vmem:[#allocation76_spill] sm:$0xff]  ;;  %v2859_v60 = vsel %vm1537_vm2, %v2830_v59, 0.0 }
 0x292   : > { %17490 = vst [vmem:[#allocation81_spill] sm:$0xff] %v10945_v11  ;;  %17492 = vst [vmem:[#allocation78_spill] sm:$0xff] %v10950_v13  ;;  %v10985_v58 = vadd.f32 %v3178_v26, %v17511_v40  ;;  %v17514_v41 = vld [vmem:[#allocation123_spill] sm:$0xff]  ;;  %v17515_v49 = vld [vmem:[#allocation64_spill] sm:$0xff]  ;;  %v3224_v11 = vrot.slane %v17532_v22, 2  ;;  %v17576_v57 = vrot.slane %v17513_v46, 2 }
 0x293   : > { %17494 = vst [vmem:[#allocation132_spill] sm:$0xff] %v10953_v12  ;;  %17496 = vst [vmem:[#allocation12_spill] sm:$0xff] %v10956_v16  ;;  %v17516_v63 = vld [vmem:[#allocation77_spill] sm:$0xff]  ;;  %v17518_v24 = vld [vmem:[#allocation91_spill] sm:$0xff]  ;;  %v2857_v19 = vadd.f32 %v2856_v7, %v2855_v30  ;;  %v2832_v4 = vmul.f32 %v10979_v8, %v10979_v8  ;;  %v2831_v7 = vmul.f32 %v10805_v6, %v10805_v6  ;;  %v17577_v36 = vrot.slane %v17514_v41, 2 }
 0x294   : > { %17498 = vst [vmem:[#allocation32_spill] sm:$0xff] %v10960_v39  ;;  %17500 = vst [vmem:[#allocation135_spill] sm:$0xff] %v10963_v44  ;;  %v17520_v40 = vld [vmem:[#allocation82_spill] sm:$0xff]  ;;  %v17522_v29 = vld [vmem:[#allocation117_spill] sm:$0xff] }
 0x295   : > { %17502 = vst [vmem:[#allocation101_spill] sm:$0xff] %v10966_v45  ;;  %17504 = vst [vmem:[#allocation136_spill] sm:$0xff] %v10969_v35  ;;  %v11000_v52 = vsub.f32 %v17522_v29, %v10783_v0  ;;  %v17524_v37 = vld [vmem:[#allocation134_spill] sm:$0xff]  ;;  %v2858_v30 = vadd.f32 %v2857_v19, %v2829_v17  ;;  %v17525_v26 = vld [vmem:[#allocation137_spill] sm:$0xff]  ;;  %v2862_v29 = vsel %vm1537_vm2, %v2832_v4, 0.0 }
 0x296   : > { %17506 = vst [vmem:[#allocation138_spill] sm:$0xff] %v10972_v2  ;;  %17508 = vst [vmem:[#allocation116_spill] sm:$0xff] %v10975_v55  ;;  %v17519_v55 = vld [vmem:[#allocation92_spill] sm:$0xff]  ;;  %v17521_v2 = vld [vmem:[#allocation133_spill] sm:$0xff] }
 0x297   : > { %17510 = vst [vmem:[#allocation9_spill] sm:$0xff] %v10979_v8  ;;  %17512 = vst [vmem:[#allocation139_spill] sm:$0xff] %v10985_v58  ;;  %v17526_v58 = vld [vmem:[#allocation90_spill] sm:$0xff]  ;;  %v17527_v38 = vld [vmem:[#allocation52_spill] sm:$0xff]  ;;  %v2860_v12 = vadd.f32 %v2859_v60, %v2858_v30  ;;  %v2834_v35 = vmul.f32 %v11000_v52, %v11000_v52  ;;  %v2833_v60 = vmul.f32 %v10813_v61, %v10813_v61  ;;  %v17545_v61 = vrot.slane %v17513_v46, 2 }
 0x298   : > { %17523 = vst [vmem:[#allocation141_spill] sm:$0xff] %v11000_v52  ;;  %v17528_v45 = vld [vmem:[#allocation100_spill] sm:$0xff]  ;;  %v17529_v44 = vld [vmem:[#allocation63_spill] sm:$0xff]  ;;  %v17530_v16 = vld [vmem:[#allocation86_spill] sm:$0xff]  ;;  %v17570_v43 = vrot.slane %v17526_v58, 2  ;;  %v17572_v14 = vrot.slane %v17527_v38, 2 }
 0x299   : > { %v3221_v39 = vrot.slane %v17529_v44, 2  ;;  %v3222_v8 = vrot.slane %v17530_v16, 2  ;;  %v17531_v59 = vld [vmem:[#allocation87_spill] sm:$0xff]  ;;  %v17533_v31 = vld [vmem:[#allocation18_spill] sm:$0xff]  ;;  %v17536_v53 = vld [vmem:[#allocation80_spill] sm:$0xff]  ;;  %v2861_v30 = vadd.f32 %v2860_v12, %v2831_v7 }
 0x29a   : > { %v3223_v13 = vrot.slane %v17531_v59, 2  ;;  %v3225_v6 = vrot.slane %v17533_v31, 2  ;;  %v17534_v17 = vld [vmem:[#allocation70_spill] sm:$0xff]  ;;  %v3226_v44 = vrot.slane %v17536_v53, 2  ;;  %v3227_v59 = vrot.slane %v17537_v21, 2  ;;  %v17538_v22 = vld [vmem:[#allocation131_spill] sm:$0xff] }
 0x29b   : > { %v11019_v19 = vsub.f32 %v17534_v17, %v10783_v0  ;;  %v3228_v16 = vrot.slane %v17538_v22, 2  ;;  %v17539_v31 = vld [vmem:[#allocation23_spill] sm:$0xff]  ;;  %v17542_v33 = vld [vmem:[#allocation140_spill] sm:$0xff]  ;;  %v2863_v51 = vadd.f32 %v2862_v29, %v2861_v30  ;;  %v3235_v12 = vsel %vm806_vm1, %v17545_v61, %v3221_v39  ;;  %v17546_v7 = vld [vmem:[#allocation118_spill] sm:$0xff] }
 0x29c   : > { %v3229_v34 = vrot.slane %v17539_v31, 2  ;;  %v17540_v32 = vld [vmem:[#allocation51_spill] sm:$0xff]  ;;  %v3232_v52 = vrot.slane %v17542_v33, 2  ;;  %v11041_v22 = vsub.f32 %v17546_v7, %v10783_v0  ;;  %v17548_v29 = vrot.slane %v17514_v41, 2 }
 0x29d   : > { %17535 = vst [vmem:[#allocation129_spill] sm:$0xff] %v11019_v19  ;;  %v3230_v17 = vrot.slane %v17540_v32, 2  ;;  %v17541_v3 = vld [vmem:[#allocation59_spill] sm:$0xff]  ;;  %v2836_v32 = vmul.f32 %v11019_v19, %v11019_v19  ;;  %v17550_v61 = vrot.slane %v17515_v49, 2  ;;  %v17552_v19 = vrot.slane %v17516_v63, 2 }
 0x29e   : > { %v3231_v1 = vrot.slane %v17541_v3, 2  ;;  %v17543_v4 = vld [vmem:[#allocation143_spill] sm:$0xff]  ;;  %17547 = vst [vmem:[#allocation142_spill] sm:$0xff] %v11041_v22  ;;  %v2865_v3 = vsel %vm1537_vm2, %v2834_v35, 0.0  ;;  %v11050_v30 = vsel %vm806_vm1, %v17548_v29, %v3222_v8  ;;  %v17554_v33 = vrot.slane %v17517_v28, 2 }
 0x29f   : > { %v3233_v47 = vrot.slane %v17543_v4, 2  ;;  %v17544_v53 = vld [vmem:[#allocation31_spill] sm:$0xff]  ;;  %17549 = vst [vmem:[#allocation130_spill] sm:$0xff] %v11050_v30  ;;  %v2864_v4 = vadd.f32 %v2863_v51, %v2833_v60  ;;  %v11058_v7 = vsel %vm806_vm1, %v17550_v61, %v3223_v13  ;;  %v11064_v35 = vsel %vm806_vm1, %v17552_v19, %v3224_v11 }
 0x2a0   : > { %v3234_v20 = vrot.slane %v17544_v53, 2  ;;  %v2835_v53 = vmul.f32 %v10817_v48, %v10817_v48  ;;  %17551 = vst [vmem:[#allocation38_spill] sm:$0xff] %v11058_v7  ;;  %17553 = vst [vmem:[#allocation16_spill] sm:$0xff] %v11064_v35  ;;  %v11070_v29 = vsel %vm806_vm1, %v17554_v33, %v3225_v6  ;;  %v17556_v51 = vrot.slane %v17518_v24, 2 }
 0x2a1   : > { %17555 = vst [vmem:[#allocation27_spill] sm:$0xff] %v11070_v29  ;;  %v17558_v61 = vrot.slane %v17519_v55, 2  ;;  %v17560_v19 = vrot.slane %v17520_v40, 2  ;;  %v2866_v33 = vadd.f32 %v2865_v3, %v2864_v4  ;;  %v17562_v21 = vrot.slane %v17521_v2, 2  ;;  %v17568_v3 = vld [vmem:[#allocation40_spill] sm:$0xff] }
 0x2a2   : > { %v11076_v60 = vsel %vm806_vm1, %v17556_v51, %v3226_v44  ;;  %v17564_v51 = vrot.slane %v17524_v37, 2  ;;  %v11110_v4 = vsub.f32 %v17568_v3, %v10783_v0  ;;  %v11127_v3 = vsel %vm806_vm1, %v17572_v14, %v3233_v47 }
 0x2a3   : > { %17557 = vst [vmem:[#allocation28_spill] sm:$0xff] %v11076_v60  ;;  %v11082_v48 = vsel %vm806_vm1, %v17558_v61, %v3227_v59  ;;  %v11088_v31 = vsel %vm806_vm1, %v17560_v19, %v3228_v16  ;;  %v11094_v15 = vsel %vm806_vm1, %v17562_v21, %v3229_v34  ;;  %v17566_v61 = vrot.slane %v17525_v26, 2  ;;  %17573 = vst [vmem:[#allocation20_spill] sm:$0xff] %v11127_v3 }
 0x2a4   : > { %17559 = vst [vmem:[#allocation72_spill] sm:$0xff] %v11082_v48  ;;  %17561 = vst [vmem:[#allocation69_spill] sm:$0xff] %v11088_v31  ;;  %v11100_v54 = vsel %vm806_vm1, %v17564_v51, %v3230_v17  ;;  %v2838_v21 = vmul.f32 %v11041_v22, %v11041_v22  ;;  %v2868_v19 = vsel %vm1537_vm2, %v2836_v32, 0.0  ;;  %v11119_v51 = vsel %vm806_vm1, %v17570_v43, %v3232_v52 }
 0x2a5   : > { %17563 = vst [vmem:[#allocation53_spill] sm:$0xff] %v11094_v15  ;;  %17565 = vst [vmem:[#allocation76_spill] sm:$0xff] %v11100_v54  ;;  %v11106_v9 = vsel %vm806_vm1, %v17566_v61, %v3231_v1  ;;  %v2867_v61 = vadd.f32 %v2866_v33, %v2835_v53  ;;  %v17574_v22 = vrot.slane %v17528_v45, 2  ;;  %v3249_v43 = vsel %vm806_vm1, %v3221_v39, %v17576_v57 }
 0x2a6   : > { %17567 = vst [vmem:[#allocation123_spill] sm:$0xff] %v11106_v9  ;;  %17569 = vst [vmem:[#allocation64_spill] sm:$0xff] %v11110_v4  ;;  %v11143_v53 = vsel %vm806_vm1, %v3222_v8, %v17577_v36  ;;  %v17579_v14 = vrot.slane %v17515_v49, 2  ;;  %v17583_v57 = vrot.slane %v17517_v28, 2  ;;  %v17585_v36 = vrot.slane %v17518_v24, 2 }
 0x2a7   : > { %17571 = vst [vmem:[#allocation77_spill] sm:$0xff] %v11119_v51  ;;  %v11133_v32 = vsel %vm806_vm1, %v17574_v22, %v3234_v20  ;;  %17578 = vst [vmem:[#allocation92_spill] sm:$0xff] %v11143_v53  ;;  %v17581_v22 = vrot.slane %v17516_v63, 2  ;;  %v2869_v25 = vadd.f32 %v2868_v19, %v2867_v61  ;;  %v2871_v61 = vsel %vm1537_vm2, %v2838_v21, 0.0 }
 0x2a8   : > { %17575 = vst [vmem:[#allocation91_spill] sm:$0xff] %v11133_v32  ;;  %v11149_v33 = vsel %vm806_vm1, %v3223_v13, %v17579_v14  ;;  %v11161_v39 = vsel %vm806_vm1, %v3225_v6, %v17583_v57  ;;  %v11167_v8 = vsel %vm806_vm1, %v3226_v44, %v17585_v36  ;;  %v17587_v13 = vrot.slane %v17519_v55, 2 }
 0x2a9   : > { %17580 = vst [vmem:[#allocation82_spill] sm:$0xff] %v11149_v33  ;;  %v11155_v46 = vsel %vm806_vm1, %v3224_v11, %v17581_v22  ;;  %17584 = vst [vmem:[#allocation117_spill] sm:$0xff] %v11161_v39  ;;  %v17589_v11 = vld [vmem:[#allocation119_spill] sm:$0xff]  ;;  %v2840_v6 = vmul.f32 %v11110_v4, %v11110_v4  ;;  %v17591_v22 = vrot.slane %v17520_v40, 2  ;;  %v2839_v57 = vmul.f32 %v10829_v50, %v10829_v50 }
 0x2aa   : > { %17582 = vst [vmem:[#allocation133_spill] sm:$0xff] %v11155_v46  ;;  %17586 = vst [vmem:[#allocation134_spill] sm:$0xff] %v11167_v8  ;;  %v11173_v14 = vsel %vm806_vm1, %v3227_v59, %v17587_v13  ;;  %v11177_v19 = vsub.f32 %v17589_v11, %v10783_v0  ;;  %v2870_v59 = vadd.f32 %v2869_v25, %v2837_v18  ;;  %v17593_v36 = vrot.slane %v17521_v2, 2 }
 0x2ab   : > { %17588 = vst [vmem:[#allocation137_spill] sm:$0xff] %v11173_v14  ;;  %v11186_v44 = vsel %vm806_vm1, %v3228_v16, %v17591_v22  ;;  %v17595_v11 = vrot.slane %v17524_v37, 2  ;;  %v17597_v4 = vrot.slane %v17525_v26, 2  ;;  %v17599_v25 = vrot.slane %v17526_v58, 2 }
 0x2ac   : > { %17590 = vst [vmem:[#allocation90_spill] sm:$0xff] %v11177_v19  ;;  %17592 = vst [vmem:[#allocation100_spill] sm:$0xff] %v11186_v44  ;;  %v11194_v13 = vsel %vm806_vm1, %v3229_v34, %v17593_v36  ;;  %v17601_v34 = vrot.slane %v17527_v38, 2 }
 0x2ad   : > { %17594 = vst [vmem:[#allocation63_spill] sm:$0xff] %v11194_v13  ;;  %v11200_v21 = vsel %vm806_vm1, %v3230_v17, %v17595_v11  ;;  %v11206_v16 = vsel %vm806_vm1, %v3231_v1, %v17597_v4  ;;  %v11212_v18 = vsel %vm806_vm1, %v3232_v52, %v17599_v25  ;;  %v17603_v17 = vrot.slane %v17528_v45, 2  ;;  %v17605_v4 = vld [vmem:[#allocation95_spill] sm:$0xff] }
 0x2ae   : > { %17596 = vst [vmem:[#allocation70_spill] sm:$0xff] %v11200_v21  ;;  %17598 = vst [vmem:[#allocation118_spill] sm:$0xff] %v11206_v16  ;;  %v11218_v22 = vsel %vm806_vm1, %v3233_v47, %v17601_v34  ;;  %v2872_v1 = vadd.f32 %v2871_v61, %v2870_v59  ;;  %v3267_v11 = vmul.f32 %v17605_v4, %v3235_v12  ;;  %v17606_v25 = vld [vmem:[#allocation107_spill] sm:$0xff]  ;;  %v2874_v34 = vsel %vm1537_vm2, %v2840_v6, 0.0 }
 0x2af   : > { %17600 = vst [vmem:[#allocation40_spill] sm:$0xff] %v11212_v18  ;;  %17602 = vst [vmem:[#allocation119_spill] sm:$0xff] %v11218_v22  ;;  %v11224_v36 = vsel %vm806_vm1, %v3234_v20, %v17603_v17  ;;  %v3268_v50 = vmul.f32 %v17605_v4, %v3249_v43  ;;  %v3269_v52 = vmul.f32 %v17605_v4, %v11050_v30 }
 0x2b0   : > { %17604 = vst [vmem:[#allocation144_spill] sm:$0xff] %v11224_v36  ;;  %v11232_v38 = vsub.f32 %v17606_v25, %v10783_v0  ;;  %v2842_v47 = vmul.f32 %v11177_v19, %v11177_v19  ;;  %v3270_v20 = vmul.f32 %v17605_v4, %v11143_v53  ;;  %v2841_v12 = vmul.f32 %v10837_v42, %v10837_v42 }
 0x2b1   : > { %v2873_v61 = vadd.f32 %v2872_v1, %v2839_v57  ;;  %v3271_v43 = vmul.f32 %v17605_v4, %v11058_v7  ;;  %v3272_v59 = vmul.f32 %v17605_v4, %v11149_v33  ;;  %v3273_v17 = vmul.f32 %v17605_v4, %v11064_v35  ;;  %v17608_v35 = vld [vmem:[#allocation120_spill] sm:$0xff] }
 0x2b2   : > { %17607 = vst [vmem:[#allocation95_spill] sm:$0xff] %v11232_v38  ;;  %v3274_v25 = vmul.f32 %v17605_v4, %v11155_v46  ;;  %v3275_v6 = vmul.f32 %v17605_v4, %v11070_v29  ;;  %v3276_v19 = vmul.f32 %v17605_v4, %v11161_v39  ;;  %v3277_v57 = vmul.f32 %v17605_v4, %v11076_v60  ;;  %v17610_v46 = vld [vmem:[#allocation121_spill] sm:$0xff] }
 0x2b3   : > { %v2875_v42 = vadd.f32 %v2874_v34, %v2873_v61  ;;  %v3278_v1 = vmul.f32 %v17605_v4, %v11167_v8  ;;  %v3279_v33 = vmul.f32 %v17605_v4, %v11082_v48  ;;  %v11261_v7 = vsub.f32 %v17608_v35, %v10783_v0  ;;  %v17612_v60 = vld [vmem:[#allocation65_spill] sm:$0xff] }
 0x2b4   : > { %v11265_v29 = vsub.f32 %v17610_v46, %v10783_v0  ;;  %v2844_v34 = vmul.f32 %v11232_v38, %v11232_v38  ;;  %v2877_v61 = vsel %vm1537_vm2, %v2842_v47, 0.0  ;;  %v11272_v39 = vsub.f32 %v17612_v60, %v10783_v0  ;;  %v17614_v8 = vld [vmem:[#allocation85_spill] sm:$0xff] }
 0x2b5   : > { %17609 = vst [vmem:[#allocation107_spill] sm:$0xff] %v11261_v7  ;;  %v11276_v48 = vsub.f32 %v17614_v8, %v10783_v0  ;;  %v2843_v35 = vmul.f32 %v10841_v23, %v10841_v23  ;;  %v2876_v53 = vadd.f32 %v2875_v42, %v2841_v12  ;;  %v3280_v46 = vmul.f32 %v17605_v4, %v11173_v14 }
 0x2b6   : > { %17611 = vst [vmem:[#allocation120_spill] sm:$0xff] %v11265_v29  ;;  %17613 = vst [vmem:[#allocation121_spill] sm:$0xff] %v11272_v39  ;;  %v3281_v38 = vmul.f32 %v17605_v4, %v11088_v31  ;;  %v3282_v47 = vmul.f32 %v17605_v4, %v11186_v44  ;;  %v3283_v60 = vmul.f32 %v17605_v4, %v11094_v15  ;;  %v2880_v44 = vsel %vm1537_vm2, %v2844_v34, 0.0  ;;  %v17618_v15 = vld [vmem:[#allocation68_spill] sm:$0xff]  ;;  %v17619_v31 = vld [vmem:[#allocation10_spill] sm:$0xff] }
 0x2b7   : > { %17615 = vst [vmem:[#allocation65_spill] sm:$0xff] %v11276_v48  ;;  %v2878_v30 = vadd.f32 %v2877_v61, %v2876_v53  ;;  %v3284_v0 = vmul.f32 %v17605_v4, %v11194_v13  ;;  %v3285_v8 = vmul.f32 %v17605_v4, %v11100_v54  ;;  %v3286_v42 = vmul.f32 %v17605_v4, %v11200_v21 }
 0x2b8   : > { %v2845_v12 = vmul.f32 %v10849_v10, %v10849_v10  ;;  %v2846_v23 = vmul.f32 %v11261_v7, %v11261_v7  ;;  %v3287_v53 = vmul.f32 %v17605_v4, %v11106_v9  ;;  %v2848_v61 = vmul.f32 %v11265_v29, %v11265_v29 }
 0x2b9   : > { %v2850_v54 = vmul.f32 %v11272_v39, %v11272_v39  ;;  %v2852_v21 = vmul.f32 %v11276_v48, %v11276_v48  ;;  %v2879_v13 = vadd.f32 %v2878_v30, %v2843_v35  ;;  %v3288_v10 = vmul.f32 %v17605_v4, %v11206_v16  ;;  %v17616_v16 = vld [vmem:[#allocation99_spill] sm:$0xff] }
 0x2ba   : > { %v3289_v7 = vmul.f32 %v17605_v4, %v11119_v51  ;;  %v3290_v34 = vmul.f32 %v17605_v4, %v11212_v18  ;;  %v3291_v9 = vmul.f32 %v17605_v4, %v11127_v3  ;;  %v3292_v39 = vmul.f32 %v17605_v4, %v11218_v22 }
 0x2bb   : > { %v2881_v29 = vadd.f32 %v2880_v44, %v2879_v13  ;;  %v3293_v48 = vmul.f32 %v17605_v4, %v11133_v32  ;;  %v3294_v30 = vmul.f32 %v17605_v4, %v11224_v36  ;;  %v2847_v35 = vmul.f32 %v10853_v5, %v10853_v5  ;;  %v17617_v36 = vld [vmem:[#allocation55_spill] sm:$0xff] }
 0x2bc   : > { %v2849_v51 = vmul.f32 %v10865_v56, %v10865_v56  ;;  %v2851_v18 = vmul.f32 %v10869_v27, %v10869_v27  ;;  %v2883_v44 = vsel %vm1537_vm2, %v2846_v23, 0.0  ;;  %v2886_v22 = vsel %vm1537_vm2, %v2848_v61, 0.0  ;;  %v17621_v61 = vld [vmem:[#allocation111_spill] sm:$0xff] }
 0x2bd   : > { %v2882_v13 = vadd.f32 %v2881_v29, %v2845_v12  ;;  %v2889_v3 = vsel %vm1537_vm2, %v2850_v54, 0.0  ;;  %v2892_v32 = vsel %vm1537_vm2, %v2852_v21, 0.0  ;;  %v11332_v4 = vadd.f32 %v3267_v11, %v17616_v16  ;;  %v17620_v29 = vld [vmem:[#allocation110_spill] sm:$0xff]  ;;  %v17623_v16 = vld [vmem:[#allocation103_spill] sm:$0xff] }
 0x2be   : > { %v11335_v5 = vadd.f32 %v3268_v50, %v17617_v36  ;;  %v11338_v56 = vadd.f32 %v3269_v52, %v17618_v15  ;;  %v11341_v27 = vadd.f32 %v3270_v20, %v17619_v31  ;;  %v11344_v12 = vadd.f32 %v3271_v43, %v17620_v29  ;;  %v17622_v21 = vld [vmem:[#allocation50_spill] sm:$0xff]  ;;  %v17624_v50 = vld [vmem:[#allocation96_spill] sm:$0xff]  ;;  %v17626_v31 = vld [vmem:[#allocation89_spill] sm:$0xff] }
 0x2bf   : > { %v2884_v23 = vadd.f32 %v2883_v44, %v2882_v13  ;;  %v11347_v54 = vadd.f32 %v3272_v59, %v17621_v61  ;;  %v11350_v14 = vadd.f32 %v3273_v17, %v17622_v21  ;;  %v11353_v11 = vadd.f32 %v3274_v25, %v17623_v16  ;;  %v17625_v15 = vld [vmem:[#allocation58_spill] sm:$0xff]  ;;  %v17628_v59 = vld [vmem:[#allocation79_spill] sm:$0xff] }
 0x2c0   : > { %v11356_v36 = vadd.f32 %v3275_v6, %v17624_v50  ;;  %v11359_v52 = vadd.f32 %v3276_v19, %v17625_v15  ;;  %v11362_v20 = vadd.f32 %v3277_v57, %v17626_v31  ;;  %v17627_v44 = vld [vmem:[#allocation42_spill] sm:$0xff]  ;;  %v11368_v29 = vadd.f32 %v3279_v33, %v17628_v59  ;;  %v17629_v17 = vld [vmem:[#allocation115_spill] sm:$0xff]  ;;  %v17631_v6 = vld [vmem:[#allocation93_spill] sm:$0xff] }
 0x2c1   : > { %v2885_v43 = vadd.f32 %v2884_v23, %v2847_v35  ;;  %v11365_v13 = vadd.f32 %v3278_v1, %v17627_v44  ;;  %v11371_v61 = vadd.f32 %v3280_v46, %v17629_v17  ;;  %v17630_v25 = vld [vmem:[#allocation94_spill] sm:$0xff]  ;;  %v11377_v16 = vadd.f32 %v3282_v47, %v17631_v6  ;;  %v17632_v19 = vld [vmem:[#allocation41_spill] sm:$0xff]  ;;  %v17635_v33 = vld [vmem:[#allocation132_spill] sm:$0xff] }
 0x2c2   : > { %v11374_v21 = vadd.f32 %v3281_v38, %v17630_v25  ;;  %v11380_v50 = vadd.f32 %v3283_v60, %v17632_v19  ;;  %v17633_v57 = vld [vmem:[#allocation81_spill] sm:$0xff]  ;;  %v17634_v23 = vld [vmem:[#allocation78_spill] sm:$0xff]  ;;  %v11389_v31 = vadd.f32 %v3286_v42, %v17635_v33  ;;  %v17636_v46 = vld [vmem:[#allocation12_spill] sm:$0xff] }
 0x2c3   : > { %v11383_v35 = vadd.f32 %v3284_v0, %v17633_v57  ;;  %v2887_v1 = vadd.f32 %v2886_v22, %v2885_v43  ;;  %v11386_v15 = vadd.f32 %v3285_v8, %v17634_v23  ;;  %v11392_v44 = vadd.f32 %v3287_v53, %v17636_v46  ;;  %v17637_v38 = vld [vmem:[#allocation32_spill] sm:$0xff]  ;;  %v17638_v47 = vld [vmem:[#allocation135_spill] sm:$0xff]  ;;  %v17639_v60 = vld [vmem:[#allocation101_spill] sm:$0xff] }
 0x2c4   : > { %v11395_v59 = vadd.f32 %v3288_v10, %v17637_v38  ;;  %v11398_v17 = vadd.f32 %v3289_v7, %v17638_v47  ;;  %v11401_v25 = vadd.f32 %v3290_v34, %v17639_v60  ;;  %v17640_v0 = vld [vmem:[#allocation136_spill] sm:$0xff]  ;;  %v17642_v43 = vld [vmem:[#allocation138_spill] sm:$0xff]  ;;  %v17646_v53 = vld [vmem:[#allocation139_spill] sm:$0xff] }
 0x2c5   : > { %v11404_v22 = vadd.f32 %v3291_v9, %v17640_v0  ;;  %v2888_v8 = vadd.f32 %v2887_v1, %v2849_v51  ;;  %v11407_v6 = vadd.f32 %v3292_v39, %v17642_v43  ;;  %v17644_v42 = vld [vmem:[#allocation116_spill] sm:$0xff]  ;;  %v11413_v57 = vadd.f32 %v3294_v30, %v17646_v53  ;;  %v17649_v23 = vld [vmem:[#allocation86_spill] sm:$0xff]  ;;  %v17650_v51 = vld [vmem:[#allocation87_spill] sm:$0xff] }
 0x2c6   : > { %v11410_v19 = vadd.f32 %v3293_v48, %v17644_v42  ;;  %v17648_v10 = vld [vmem:[#allocation108_spill] sm:$0xff]  ;;  %v17651_v33 = vld [vmem:[#allocation47_spill] sm:$0xff]  ;;  %v17652_v46 = vld [vmem:[#allocation18_spill] sm:$0xff] }
 0x2c7   : > { %17641 = vst [vmem:[#allocation85_spill] sm:$0xff] %v11404_v22  ;;  %17643 = vst [vmem:[#allocation99_spill] sm:$0xff] %v11407_v6  ;;  %v3355_v7 = vmul.f32 %v17648_v10, %v17514_v41  ;;  %v3356_v34 = vmul.f32 %v17648_v10, %v17649_v23  ;;  %v3357_v9 = vmul.f32 %v17648_v10, %v17515_v49  ;;  %v17653_v49 = vld [vmem:[#allocation80_spill] sm:$0xff]  ;;  %v17654_v0 = vld [vmem:[#allocation83_spill] sm:$0xff] }
 0x2c8   : > { %17645 = vst [vmem:[#allocation55_spill] sm:$0xff] %v11410_v19  ;;  %17647 = vst [vmem:[#allocation68_spill] sm:$0xff] %v11413_v57  ;;  %v3358_v39 = vmul.f32 %v17648_v10, %v17650_v51  ;;  %v2890_v1 = vadd.f32 %v2889_v3, %v2888_v8  ;;  %v3359_v48 = vmul.f32 %v17648_v10, %v17516_v63  ;;  %v17655_v43 = vld [vmem:[#allocation131_spill] sm:$0xff] }
 0x2c9   : > { %v3360_v30 = vmul.f32 %v17648_v10, %v17651_v33  ;;  %v3361_v41 = vmul.f32 %v17648_v10, %v17517_v28  ;;  %v3362_v38 = vmul.f32 %v17648_v10, %v17652_v46  ;;  %v3363_v47 = vmul.f32 %v17648_v10, %v17518_v24  ;;  %v11444_v53 = vld [vmem:[%s6442_s17 + $0x390] sm:$0xff] }
 0x2ca   : > { %v3364_v60 = vmul.f32 %v17648_v10, %v17653_v49  ;;  %v3365_v3 = vmul.f32 %v17648_v10, %v17519_v55  ;;  %v2891_v63 = vadd.f32 %v2890_v1, %v2851_v18  ;;  %v3366_v8 = vmul.f32 %v17648_v10, %v17654_v0  ;;  %17656 = vst [vmem:[#allocation10_spill] sm:$0xff] %v11444_v53  ;;  %v17657_v23 = vld [vmem:[#allocation23_spill] sm:$0xff] }
 0x2cb   : > { %v3367_v28 = vmul.f32 %v17648_v10, %v17520_v40  ;;  %v3368_v42 = vmul.f32 %v17648_v10, %v17655_v43  ;;  %v3369_v24 = vmul.f32 %v17648_v10, %v17521_v2  ;;  %v3370_v51 = vmul.f32 %v17648_v10, %v17657_v23  ;;  %v17658_v18 = vld [vmem:[#allocation51_spill] sm:$0xff]  ;;  %v17661_v43 = vld [vmem:[#allocation140_spill] sm:$0xff] }
 0x2cc   : > { %v3371_v55 = vmul.f32 %v17648_v10, %v17524_v37  ;;  %v3372_v1 = vmul.f32 %v17648_v10, %v17658_v18  ;;  %v2893_v33 = vadd.f32 %v2892_v32, %v2891_v63  ;;  %v3373_v40 = vmul.f32 %v17648_v10, %v17525_v26  ;;  %v17659_v46 = vld [vmem:[#allocation59_spill] sm:$0xff] }
 0x2cd   : > { %v3374_v49 = vmul.f32 %v17648_v10, %v17659_v46  ;;  %v3375_v0 = vmul.f32 %v17648_v10, %v17526_v58  ;;  %v11461_v2 = vld [vmem:[%s6442_s17 + $0x3b0] sm:$0xff]  ;;  %v3376_v23 = vmul.f32 %v17648_v10, %v17661_v43  ;;  %v3377_v37 = vmul.f32 %v17648_v10, %v17662_v62 }
 0x2ce   : > { %17660 = vst [vmem:[#allocation110_spill] sm:$0xff] %v11461_v2  ;;  %v17663_v57 = vld [vmem:[#allocation143_spill] sm:$0xff]  ;;  %v3379_v26 = vmul.f32 %v17648_v10, %v17528_v45  ;;  %v2894_v63 = vrot.slane %v2893_v33, 4  ;;  %v3381_v58 = vmul.f32 %v11444_v53, %v17648_v10  ;;  %v3382_v19 = vmul.f32 %v11461_v2, %v17648_v10 }
 0x2cf   : > { %v3378_v32 = vmul.f32 %v17648_v10, %v17663_v57  ;;  %v17664_v18 = vld [vmem:[#allocation31_spill] sm:$0xff]  ;;  %v11478_v43 = vadd.f32 %v3355_v7, %v11332_v4  ;;  %v11481_v62 = vadd.f32 %v3356_v34, %v11335_v5  ;;  %v11484_v57 = vadd.f32 %v3357_v9, %v11338_v56  ;;  %v17665_v9 = vld [vmem:[#allocation85_spill] sm:$0xff] }
 0x2d0   : > { %v3380_v46 = vmul.f32 %v17648_v10, %v17664_v18  ;;  %v11487_v45 = vadd.f32 %v3358_v39, %v11341_v27  ;;  %v2895_v6 = vadd.f32 %v2894_v63, %v2893_v33  ;;  %v11490_v18 = vadd.f32 %v3359_v48, %v11344_v12  ;;  %v17666_v39 = vld [vmem:[#allocation99_spill] sm:$0xff]  ;;  %v17684_v63 = vld [vmem:[#allocation73_spill] sm:$0xff] }
 0x2d1   : > { %v11493_v22 = vadd.f32 %v3360_v30, %v11347_v54  ;;  %v11496_v10 = vadd.f32 %v3361_v41, %v11350_v14  ;;  %v11499_v4 = vadd.f32 %v3362_v38, %v11353_v11  ;;  %v11502_v5 = vadd.f32 %v3363_v47, %v11356_v36  ;;  %v17668_v48 = vld [vmem:[#allocation55_spill] sm:$0xff]  ;;  %v17670_v30 = vld [vmem:[#allocation68_spill] sm:$0xff] }
 0x2d2   : > { %v11505_v56 = vadd.f32 %v3364_v60, %v11359_v52  ;;  %v11508_v27 = vadd.f32 %v3365_v3, %v11362_v20  ;;  %v2896_v12 = vrot.slane %v2895_v6, 2  ;;  %v11511_v7 = vadd.f32 %v3366_v8, %v11365_v13  ;;  %v17672_v41 = vld [vmem:[#allocation36_spill] sm:$0xff]  ;;  %v17674_v60 = vld [vmem:[#allocation25_spill] sm:$0xff] }
 0x2d3   : > { %v11514_v54 = vadd.f32 %v3367_v28, %v11368_v29  ;;  %v11517_v14 = vadd.f32 %v3368_v42, %v11371_v61  ;;  %v11520_v11 = vadd.f32 %v3369_v24, %v11374_v21  ;;  %v11523_v36 = vadd.f32 %v3370_v51, %v11377_v16  ;;  %v17673_v38 = vld [vmem:[#allocation124_spill] sm:$0xff]  ;;  %v17675_v8 = vld [vmem:[#allocation45_spill] sm:$0xff] }
 0x2d4   : > { %v11526_v52 = vadd.f32 %v3371_v55, %v11380_v50  ;;  %v11529_v20 = vadd.f32 %v3372_v1, %v11383_v35  ;;  %v2897_v13 = vadd.f32 %v2896_v12, %v2895_v6  ;;  %v11532_v34 = vadd.f32 %v3373_v40, %v11386_v15  ;;  %v17676_v42 = vld [vmem:[#allocation56_spill] sm:$0xff]  ;;  %v17681_v40 = vld [vmem:[#allocation113_spill] sm:$0xff] }
 0x2d5   : > { %v11535_v29 = vadd.f32 %v3374_v49, %v11389_v31  ;;  %v11538_v61 = vadd.f32 %v3375_v0, %v11392_v44  ;;  %v11541_v21 = vadd.f32 %v3376_v23, %v11395_v59  ;;  %v11544_v16 = vadd.f32 %v3377_v37, %v11398_v17  ;;  %v17677_v51 = vld [vmem:[#allocation44_spill] sm:$0xff] }
 0x2d6   : > { %v3424_v50 = vrot.slane %v11444_v53, 1  ;;  %v3438_v35 = vrot.slane %v11461_v2, 1  ;;  %v2898_v6 = vrot.slane %v2897_v13, 1  ;;  %v11549_v15 = vadd.f32 %v3378_v32, %v11401_v25  ;;  %v17682_v0 = vld [vmem:[#allocation60_spill] sm:$0xff]  ;;  %v17683_v32 = vld [vmem:[#allocation11_spill] sm:$0xff] }
 0x2d7   : > { %v11552_v31 = vadd.f32 %v3379_v26, %v17665_v9  ;;  %v11555_v44 = vadd.f32 %v3380_v46, %v17666_v39  ;;  %v11558_v59 = vadd.f32 %v3381_v58, %v17668_v48  ;;  %v11561_v17 = vadd.f32 %v3382_v19, %v17670_v30  ;;  %v17685_v58 = vld [vmem:[#allocation46_spill] sm:$0xff] }
 0x2d8   : > { %v3471_v47 = vmul.f32 %v17673_v38, %v17672_v41  ;;  %v3472_v3 = vmul.f32 %v17673_v38, %v17674_v60  ;;  %v2899_v25 = vadd.f32 %v2898_v6, %v2897_v13  ;;  %v3473_v28 = vmul.f32 %v17673_v38, %v17675_v8  ;;  %v17686_v13 = vld [vmem:[#allocation54_spill] sm:$0xff]  ;;  %v17690_v60 = vld [vmem:[#allocation61_spill] sm:$0xff] }
 0x2d9   : > { %17667 = vst [vmem:[#allocation111_spill] sm:$0xff] %v11555_v44  ;;  %17669 = vst [vmem:[#allocation50_spill] sm:$0xff] %v11558_v59  ;;  %v3474_v24 = vmul.f32 %v17673_v38, %v17676_v42  ;;  %v3475_v55 = vmul.f32 %v17673_v38, %v17677_v51  ;;  %v11575_v19 = vsel %vm689_vm0, %v3424_v50, %v3438_v35  ;;  %v17688_v9 = vld [vmem:[#allocation102_spill] sm:$0xff]  ;;  %v17691_v8 = vld [vmem:[#allocation57_spill] sm:$0xff] }
 0x2da   : > { %17671 = vst [vmem:[#allocation103_spill] sm:$0xff] %v11561_v17  ;;  %17679 = vst [vmem:[#allocation96_spill] sm:$0xff] %v11575_v19  ;;  %v11579_v33 = vsel %vm689_vm0, %v3438_v35, %v3424_v50  ;;  %v3476_v49 = vmul.f32 %v17673_v38, %v17681_v40  ;;  %v3477_v23 = vmul.f32 %v17673_v38, %v17682_v0  ;;  %v2900_v37 = vmul.f32 0.0051020407, %v2899_v25  ;;  %v17687_v35 = vld [vmem:[#allocation35_spill] sm:$0xff]  ;;  %v17689_v48 = vld [vmem:[#allocation26_spill] sm:$0xff] }
 0x2db   : > { %17680 = vst [vmem:[#allocation58_spill] sm:$0xff] %v11579_v33  ;;  %v3478_v26 = vmul.f32 %v17673_v38, %v17683_v32  ;;  %v3479_v46 = vmul.f32 %v17673_v38, %v17684_v63  ;;  %v3480_v12 = vmul.f32 %v17673_v38, %v17685_v58  ;;  %v3481_v50 = vmul.f32 %v17673_v38, %v17686_v13  ;;  %v17692_v51 = vld [vmem:[#allocation7_spill] sm:$0xff]  ;;  %v17693_v0 = vld [vmem:[#allocation29_spill] sm:$0xff]  ;;  %v17694_v63 = vld [vmem:[#allocation112_spill] sm:$0xff] }
 0x2dc   : > { %v3482_v6 = vmul.f32 %v17673_v38, %v17687_v35  ;;  %v3483_v39 = vmul.f32 %v17673_v38, %v17688_v9  ;;  %v3484_v30 = vmul.f32 %v17673_v38, %v17689_v48  ;;  %v2904_v41 = vadd.f32 0.001, %v2900_v37  ;;  %v17695_v13 = vld [vmem:[#allocation33_spill] sm:$0xff]  ;;  %v17696_v9 = vld [vmem:[#allocation39_spill] sm:$0xff]  ;;  %v17697_v48 = vld [vmem:[#allocation84_spill] sm:$0xff] }
 0x2dd   : > { %v3485_v25 = vmul.f32 %v17673_v38, %v17690_v60  ;;  %v3486_v42 = vmul.f32 %v17673_v38, %v17691_v8  ;;  %v3487_v40 = vmul.f32 %v17673_v38, %v17692_v51  ;;  %v3488_v32 = vmul.f32 %v17673_v38, %v17693_v0  ;;  %v17698_v8 = vld [vmem:[#allocation14_spill] sm:$0xff]  ;;  %v17699_v51 = vld [vmem:[#allocation17_spill] sm:$0xff] }
 0x2de   : > { %v3489_v58 = vmul.f32 %v17673_v38, %v17694_v63  ;;  %v3490_v35 = vmul.f32 %v17673_v38, %v17695_v13  ;;  %v3491_v37 = vmul.f32 %v17673_v38, %v17696_v9  ;;  %6047 = vrsqrt.f32 %v2904_v41  ;;  %v17700_v0 = vld [vmem:[#allocation66_spill] sm:$0xff]  ;;  %v17701_v63 = vld [vmem:[#allocation21_spill] sm:$0xff] }
 0x2df   : > { %v3492_v60 = vmul.f32 %v17673_v38, %v17697_v48  ;;  %v3493_v1 = vmul.f32 %v17673_v38, %v17698_v8  ;;  %v3494_v17 = vmul.f32 %v17673_v38, %v17699_v51  ;;  %v3495_v59 = vmul.f32 %v17673_v38, %v17700_v0 }
 0x2e0   : > { %v3496_v44 = vmul.f32 %v17673_v38, %v17701_v63  ;;  %v3497_v13 = vmul.f32 %v17673_v38, %v11575_v19  ;;  %v3498_v41 = vmul.f32 %v17673_v38, %v11579_v33  ;;  %v11628_v9 = vadd.f32 %v3471_v47, %v11478_v43  ;;  %v17740_v33 = vld [vmem:[#allocation49_spill] sm:$0xff] }
 0x2e1   : > { %v11631_v48 = vadd.f32 %v3472_v3, %v11481_v62  ;;  %v11634_v8 = vadd.f32 %v3473_v28, %v11484_v57  ;;  %v11637_v51 = vadd.f32 %v3474_v24, %v11487_v45  ;;  %v11640_v0 = vadd.f32 %v3475_v55, %v11490_v18  ;;  %v17741_v19 = vld [vmem:[#allocation97_spill] sm:$0xff] }
 0x2e2   : > { %v11643_v63 = vadd.f32 %v3476_v49, %v11493_v22  ;;  %v11646_v38 = vadd.f32 %v3477_v23, %v11496_v10  ;;  %v11649_v43 = vadd.f32 %v3478_v26, %v11499_v4  ;;  %v11652_v62 = vadd.f32 %v3479_v46, %v11502_v5  ;;  %v17712_v49 = vld [vmem:[#allocation122_spill] sm:$0xff] }
 0x2e3   : > { %v11655_v57 = vadd.f32 %v3480_v12, %v11505_v56  ;;  %v11658_v45 = vadd.f32 %v3481_v50, %v11508_v27  ;;  %v11661_v18 = vadd.f32 %v3482_v6, %v11511_v7  ;;  %v11664_v22 = vadd.f32 %v3483_v39, %v11514_v54  ;;  %v17717_v26 = vld [vmem:[#allocation82_spill] sm:$0xff]  ;;  %v17718_v12 = vld [vmem:[#allocation16_spill] sm:$0xff] }
 0x2e4   : > { %v11667_v10 = vadd.f32 %v3484_v30, %v11517_v14  ;;  %v11670_v4 = vadd.f32 %v3485_v25, %v11520_v11  ;;  %v11673_v5 = vadd.f32 %v3486_v42, %v11523_v36  ;;  %v11676_v56 = vadd.f32 %v3487_v40, %v11526_v52  ;;  %v17719_v6 = vld [vmem:[#allocation30_spill] sm:$0xff]  ;;  %v17722_v42 = vld [vmem:[#allocation133_spill] sm:$0xff] }
 0x2e5   : > { %v11679_v27 = vadd.f32 %v3488_v32, %v11529_v20  ;;  %v3540_v7 = vrot.slane %v11444_v53, 2  ;;  %v3554_v54 = vrot.slane %v11461_v2, 2  ;;  %v11684_v47 = vadd.f32 %v3489_v58, %v11532_v34  ;;  %v17705_v34 = vld [vmem:[#allocation111_spill] sm:$0xff]  ;;  %v17743_v53 = vld [vmem:[#allocation9_spill] sm:$0xff] }
 0x2e6   : > { %v11687_v14 = vadd.f32 %v3490_v35, %v11535_v29  ;;  %v11690_v11 = vadd.f32 %v3491_v37, %v11538_v61  ;;  %v11693_v36 = vadd.f32 %v3492_v60, %v11541_v21  ;;  %v11696_v52 = vadd.f32 %v3493_v1, %v11544_v16  ;;  %v17707_v29 = vld [vmem:[#allocation50_spill] sm:$0xff]  ;;  %v17709_v61 = vld [vmem:[#allocation103_spill] sm:$0xff]  ;;  %v17713_v16 = vld [vmem:[#allocation92_spill] sm:$0xff] }
 0x2e7   : > { %v11699_v20 = vadd.f32 %v3494_v17, %v11549_v15  ;;  %v11702_v3 = vadd.f32 %v3495_v59, %v11552_v31  ;;  %v11705_v28 = vadd.f32 %v3496_v44, %v17705_v34  ;;  %v11708_v24 = vadd.f32 %v3497_v13, %v17707_v29  ;;  %v17711_v21 = vld [vmem:[#allocation130_spill] sm:$0xff]  ;;  %v17723_v32 = vld [vmem:[#allocation27_spill] sm:$0xff]  ;;  %v17724_v35 = vld [vmem:[#allocation117_spill] sm:$0xff] }
 0x2e8   : > { %17702 = vst [vmem:[#allocation89_spill] sm:$0xff] %v11696_v52  ;;  %v11711_v55 = vadd.f32 %v3498_v41, %v17709_v61  ;;  %v11715_v23 = vmul.f32 %v17712_v49, %v17711_v21  ;;  %v11719_v15 = vmul.f32 %v17712_v49, %v17713_v16  ;;  %v6048_v17 = vpop.eup %6047  ;;  %v11723_v59 = vsel %vm806_vm1, %v3540_v7, %v3554_v54  ;;  %v17716_v44 = vld [vmem:[#allocation38_spill] sm:$0xff]  ;;  %v17725_v60 = vld [vmem:[#allocation28_spill] sm:$0xff]  ;;  %v17729_v21 = vld [vmem:[#allocation137_spill] sm:$0xff] }
 0x2e9   : > { %17703 = vst [vmem:[#allocation42_spill] sm:$0xff] %v11699_v20  ;;  %17704 = vst [vmem:[#allocation79_spill] sm:$0xff] %v11702_v3  ;;  %v11727_v1 = vmul.f32 %v17712_v49, %v17716_v44  ;;  %v11731_v46 = vmul.f32 %v17712_v49, %v17717_v26  ;;  %v11735_v50 = vmul.f32 %v17712_v49, %v17718_v12  ;;  %v17720_v39 = vrot.slane %v17719_v6, 1  ;;  %v17726_v41 = vld [vmem:[#allocation134_spill] sm:$0xff]  ;;  %v17731_v26 = vld [vmem:[#allocation100_spill] sm:$0xff] }
 0x2ea   : > { %17706 = vst [vmem:[#allocation115_spill] sm:$0xff] %v11705_v28  ;;  %17708 = vst [vmem:[#allocation94_spill] sm:$0xff] %v11708_v24  ;;  %v11741_v25 = vsel %vm806_vm1, %v3554_v54, %v3540_v7  ;;  %v11745_v40 = vmul.f32 %v17712_v49, %v17722_v42  ;;  %v11749_v58 = vmul.f32 %v17712_v49, %v17723_v32  ;;  %v17727_v54 = vld [vmem:[#allocation72_spill] sm:$0xff]  ;;  %v17728_v29 = vld [vmem:[#allocation6_spill] sm:$0xff] }
 0x2eb   : > { %17710 = vst [vmem:[#allocation93_spill] sm:$0xff] %v11711_v55  ;;  %17715 = vst [vmem:[#allocation41_spill] sm:$0xff] %v11723_v59  ;;  %v2906_v30 = vmul.f32 %v6048_v17, %v17720_v39  ;;  %v11753_v37 = vmul.f32 %v17712_v49, %v17724_v35  ;;  %v11757_v13 = vmul.f32 %v17712_v49, %v17725_v60  ;;  %v17730_v17 = vld [vmem:[#allocation69_spill] sm:$0xff]  ;;  %v17733_v42 = vld [vmem:[#allocation63_spill] sm:$0xff] }
 0x2ec   : > { %17721 = vst [vmem:[#allocation81_spill] sm:$0xff] %v11741_v25  ;;  %v11761_v7 = vmul.f32 %v17712_v49, %v17726_v41  ;;  %v11765_v34 = vmul.f32 %v17712_v49, %v17727_v54  ;;  %v11772_v16 = vmul.f32 %v17712_v49, %v17729_v21  ;;  %v11776_v44 = vmul.f32 %v17712_v49, %v17730_v17  ;;  %v17732_v6 = vld [vmem:[#allocation53_spill] sm:$0xff]  ;;  %v17734_v32 = vld [vmem:[#allocation76_spill] sm:$0xff]  ;;  %v17735_v60 = vld [vmem:[#allocation70_spill] sm:$0xff] }
 0x2ed   : > { %v11768_v61 = vrot.slane %v2906_v30, %v17728_v29  ;;  %v11780_v12 = vmul.f32 %v17712_v49, %v17731_v26  ;;  %v11784_v39 = vmul.f32 %v17712_v49, %v17732_v6  ;;  %v11788_v30 = vmul.f32 %v17712_v49, %v17733_v42  ;;  %v17736_v54 = vld [vmem:[#allocation67_spill] sm:$0xff]  ;;  %v17737_v17 = vld [vmem:[#allocation37_spill] sm:$0xff]  ;;  %v17738_v6 = vld [vmem:[#allocation88_spill] sm:$0xff] }
 0x2ee   : > { %v11792_v35 = vmul.f32 %v17712_v49, %v17734_v32  ;;  %v11796_v41 = vmul.f32 %v17712_v49, %v17735_v60  ;;  %v17739_v29 = vld [vmem:[#allocation109_spill] sm:$0xff]  ;;  %v17772_v52 = vld [vmem:[#allocation144_spill] sm:$0xff] }
 0x2ef   : > { %v2913_v21 = vmul.f32 %v11768_v61, %v17736_v54  ;;  %v2914_v26 = vmul.f32 %v11768_v61, %v17737_v17  ;;  %v2915_v42 = vmul.f32 %v11768_v61, %v17738_v6  ;;  %v2916_v32 = vmul.f32 %v11768_v61, %v17739_v29  ;;  %v17742_v54 = vld [vmem:[#allocation114_spill] sm:$0xff]  ;;  %v17744_v55 = vld [vmem:[#allocation125_spill] sm:$0xff] }
 0x2f0   : > { %v2917_v60 = vmul.f32 %v11768_v61, %v17740_v33  ;;  %v2918_v31 = vmul.f32 %v11768_v61, %v17741_v19  ;;  %v2919_v2 = vmul.f32 %v11768_v61, %v17742_v54  ;;  %v2920_v17 = vmul.f32 %v11768_v61, %v17743_v53 }
 0x2f1   : > { %v2947_v24 = vadd.f32 %v17744_v55, %v2913_v21  ;;  %v2948_v6 = vadd.f32 %v17744_v55, %v2914_v26  ;;  %v2949_v29 = vadd.f32 %v17744_v55, %v2915_v42  ;;  %v2950_v33 = vadd.f32 %v17744_v55, %v2916_v32  ;;  %v17745_v21 = vld [vmem:[#allocation34_spill] sm:$0xff]  ;;  %v17746_v42 = vld [vmem:[#allocation141_spill] sm:$0xff] }
 0x2f2   : > { %v2951_v19 = vadd.f32 %v17744_v55, %v2917_v60  ;;  %v2952_v28 = vadd.f32 %v17744_v55, %v2918_v31  ;;  %v2953_v54 = vadd.f32 %v17744_v55, %v2919_v2  ;;  %v2954_v53 = vadd.f32 %v17744_v55, %v2920_v17  ;;  %v17747_v32 = vld [vmem:[#allocation98_spill] sm:$0xff]  ;;  %v17748_v60 = vld [vmem:[#allocation129_spill] sm:$0xff]  ;;  %v17749_v2 = vld [vmem:[#allocation48_spill] sm:$0xff] }
 0x2f3   : > { %2975 = vst [vmem:[%s9544_s6 + $0x8] sm:$0xff] %v2947_v24  ;;  %2976 = vst [vmem:[%s9544_s6 + $0x28] sm:$0x3f] %v2948_v6  ;;  %v2921_v26 = vmul.f32 %v11768_v61, %v17745_v21  ;;  %v2922_v3 = vmul.f32 %v11768_v61, %v17746_v42  ;;  %v2923_v20 = vmul.f32 %v11768_v61, %v17747_v32  ;;  %v17750_v17 = vld [vmem:[#allocation142_spill] sm:$0xff]  ;;  %v17752_v21 = vld [vmem:[#allocation64_spill] sm:$0xff] }
 0x2f4   : > { %2977 = vst [vmem:[%s9544_s6 + $0x48] sm:$0xff] %v2949_v29  ;;  %2978 = vst [vmem:[%s9544_s6 + $0x68] sm:$0x3f] %v2950_v33  ;;  %v2924_v31 = vmul.f32 %v11768_v61, %v17748_v60  ;;  %v2925_v24 = vmul.f32 %v11768_v61, %v17749_v2  ;;  %v2926_v6 = vmul.f32 %v11768_v61, %v17750_v17  ;;  %v17751_v29 = vld [vmem:[#allocation19_spill] sm:$0xff] }
 0x2f5   : > { %2979 = vst [vmem:[%s9544_s6 + $0x88] sm:$0xff] %v2951_v19  ;;  %2980 = vst [vmem:[%s9544_s6 + $0xa8] sm:$0x3f] %v2952_v28  ;;  %v2927_v33 = vmul.f32 %v11768_v61, %v17751_v29  ;;  %v2928_v42 = vmul.f32 %v11768_v61, %v17752_v21  ;;  %v2955_v19 = vadd.f32 %v17744_v55, %v2921_v26 }
 0x2f6   : > { %2981 = vst [vmem:[%s9544_s6 + $0xc8] sm:$0xff] %v2953_v54  ;;  %2982 = vst [vmem:[%s9544_s6 + $0xe8] sm:$0x3f] %v2954_v53  ;;  %v2956_v28 = vadd.f32 %v17744_v55, %v2922_v3  ;;  %v2957_v54 = vadd.f32 %v17744_v55, %v2923_v20  ;;  %v2958_v53 = vadd.f32 %v17744_v55, %v2924_v31  ;;  %v17753_v3 = vld [vmem:[#allocation127_spill] sm:$0xff]  ;;  %v17754_v20 = vld [vmem:[#allocation90_spill] sm:$0xff] }
 0x2f7   : > { %v2959_v32 = vadd.f32 %v17744_v55, %v2925_v24  ;;  %v2960_v60 = vadd.f32 %v17744_v55, %v2926_v6  ;;  %v2961_v2 = vadd.f32 %v17744_v55, %v2927_v33  ;;  %v2962_v17 = vadd.f32 %v17744_v55, %v2928_v42  ;;  %2983 = vst [vmem:[%s9544_s6 + $0x108] sm:$0xff] %v2955_v19  ;;  %v17755_v31 = vld [vmem:[#allocation22_spill] sm:$0xff]  ;;  %v17756_v24 = vld [vmem:[#allocation95_spill] sm:$0xff] }
 0x2f8   : > { %2984 = vst [vmem:[%s9544_s6 + $0x128] sm:$0x3f] %v2956_v28  ;;  %2985 = vst [vmem:[%s9544_s6 + $0x148] sm:$0xff] %v2957_v54  ;;  %v2929_v26 = vmul.f32 %v11768_v61, %v17753_v3  ;;  %v2930_v29 = vmul.f32 %v11768_v61, %v17754_v20  ;;  %v2931_v21 = vmul.f32 %v11768_v61, %v17755_v31  ;;  %v17757_v33 = vld [vmem:[#allocation15_spill] sm:$0xff]  ;;  %v17759_v54 = vld [vmem:[#allocation24_spill] sm:$0xff] }
 0x2f9   : > { %2986 = vst [vmem:[%s9544_s6 + $0x168] sm:$0x3f] %v2958_v53  ;;  %v2932_v6 = vmul.f32 %v11768_v61, %v17756_v24  ;;  %2987 = vst [vmem:[%s9544_s6 + $0x188] sm:$0xff] %v2959_v32  ;;  %v2933_v42 = vmul.f32 %v11768_v61, %v17757_v33  ;;  %v17758_v19 = vld [vmem:[#allocation107_spill] sm:$0xff]  ;;  %v2935_v53 = vmul.f32 %v11768_v61, %v17759_v54  ;;  %v17760_v3 = vld [vmem:[#allocation120_spill] sm:$0xff] }
 0x2fa   : > { %2988 = vst [vmem:[%s9544_s6 + $0x1a8] sm:$0x3f] %v2960_v60  ;;  %2989 = vst [vmem:[%s9544_s6 + $0x1c8] sm:$0xff] %v2961_v2  ;;  %v2934_v28 = vmul.f32 %v11768_v61, %v17758_v19  ;;  %v2936_v20 = vmul.f32 %v11768_v61, %v17760_v3  ;;  %v2963_v32 = vadd.f32 %v17744_v55, %v2929_v26  ;;  %v17761_v26 = vld [vmem:[#allocation128_spill] sm:$0xff] }
 0x2fb   : > { %2990 = vst [vmem:[%s9544_s6 + $0x1e8] sm:$0x3f] %v2962_v17  ;;  %v2964_v60 = vadd.f32 %v17744_v55, %v2930_v29  ;;  %v2965_v2 = vadd.f32 %v17744_v55, %v2931_v21  ;;  %v2966_v17 = vadd.f32 %v17744_v55, %v2932_v6  ;;  %v2967_v31 = vadd.f32 %v17744_v55, %v2933_v42  ;;  %v17762_v21 = vld [vmem:[#allocation121_spill] sm:$0xff]  ;;  %v17763_v6 = vld [vmem:[#allocation74_spill] sm:$0xff] }
 0x2fc   : > { %v2968_v24 = vadd.f32 %v17744_v55, %v2934_v28  ;;  %v2969_v33 = vadd.f32 %v17744_v55, %v2935_v53  ;;  %v2970_v19 = vadd.f32 %v17744_v55, %v2936_v20  ;;  %2991 = vst [vmem:[%s9544_s6 + $0x208] sm:$0xff] %v2963_v32  ;;  %v2937_v29 = vmul.f32 %v11768_v61, %v17761_v26  ;;  %v17764_v42 = vld [vmem:[#allocation65_spill] sm:$0xff]  ;;  %v17765_v53 = vld [vmem:[#allocation123_spill] sm:$0xff]  ;;  %v17766_v32 = vld [vmem:[#allocation118_spill] sm:$0xff] }
 0x2fd   : > { %2992 = vst [vmem:[%s9544_s6 + $0x228] sm:$0x3f] %v2964_v60  ;;  %2993 = vst [vmem:[%s9544_s6 + $0x248] sm:$0xff] %v2965_v2  ;;  %v2938_v54 = vmul.f32 %v11768_v61, %v17762_v21  ;;  %v2939_v3 = vmul.f32 %v11768_v61, %v17763_v6  ;;  %v2940_v28 = vmul.f32 %v11768_v61, %v17764_v42  ;;  %v17767_v2 = vld [vmem:[#allocation77_spill] sm:$0xff]  ;;  %v17768_v26 = vld [vmem:[#allocation40_spill] sm:$0xff] }
 0x2fe   : > { %2994 = vst [vmem:[%s9544_s6 + $0x268] sm:$0x3f] %v2966_v17  ;;  %2995 = vst [vmem:[%s9544_s6 + $0x288] sm:$0xff] %v2967_v31  ;;  %v3605_v20 = vmul.f32 %v17712_v49, %v17765_v53  ;;  %v3606_v60 = vmul.f32 %v17712_v49, %v17766_v32  ;;  %v3607_v17 = vmul.f32 %v17712_v49, %v17767_v2  ;;  %v17769_v21 = vld [vmem:[#allocation20_spill] sm:$0xff]  ;;  %v17770_v42 = vld [vmem:[#allocation119_spill] sm:$0xff] }
 0x2ff   : > { %2996 = vst [vmem:[%s9544_s6 + $0x2a8] sm:$0x3f] %v2968_v24  ;;  %2997 = vst [vmem:[%s9544_s6 + $0x2c8] sm:$0xff] %v2969_v33  ;;  %v3608_v61 = vmul.f32 %v17712_v49, %v17768_v26  ;;  %v2971_v31 = vadd.f32 %v17744_v55, %v2937_v29  ;;  %v2972_v24 = vadd.f32 %v17744_v55, %v2938_v54  ;;  %v17771_v32 = vld [vmem:[#allocation91_spill] sm:$0xff] }
 0x300   : > { %2998 = vst [vmem:[%s9544_s6 + $0x2e8] sm:$0x3f] %v2970_v19  ;;  %v2973_v33 = vadd.f32 %v17744_v55, %v2939_v3  ;;  %v2974_v19 = vadd.f32 %v17744_v55, %v2940_v28  ;;  %v3609_v6 = vmul.f32 %v17712_v49, %v17769_v21  ;;  %v3610_v53 = vmul.f32 %v17712_v49, %v17770_v42 }
 0x301   : > { %v3611_v2 = vmul.f32 %v17712_v49, %v17771_v32  ;;  %v3612_v26 = vmul.f32 %v17712_v49, %v17772_v52  ;;  %2999 = vst [vmem:[%s9544_s6 + $0x308] sm:$0xff] %v2971_v31  ;;  %3000 = vst [vmem:[%s9544_s6 + $0x328] sm:$0x3f] %v2972_v24  ;;  %v3613_v29 = vmul.f32 %v17712_v49, %v11723_v59  ;;  %v12073_v31 = vld [vmem:[%s6442_s17 + $0x1f0] sm:$0xff] }
 0x302   : > { %3001 = vst [vmem:[%s9544_s6 + $0x348] sm:$0xff] %v2973_v33  ;;  %3002 = vst [vmem:[%s9544_s6 + $0x368] sm:$0x3f] %v2974_v19  ;;  %v3614_v55 = vmul.f32 %v17712_v49, %v11741_v25  ;;  %v11932_v54 = vadd.f32 %v11715_v23, %v11628_v9  ;;  %v11936_v3 = vadd.f32 %v11719_v15, %v11631_v48  ;;  %v12006_v23 = vld [vmem:[%s6442_s17 + $0xb0] sm:$0xff] }
 0x303   : > { %v11940_v52 = vadd.f32 %v11727_v1, %v11634_v8  ;;  %v11944_v28 = vadd.f32 %v11731_v46, %v11637_v51  ;;  %v11948_v49 = vadd.f32 %v11735_v50, %v11640_v0  ;;  %v11952_v9 = vadd.f32 %v11745_v40, %v11643_v63  ;;  %17774 = vst [vmem:[#allocation132_spill] sm:$0xff] %v12006_v23  ;;  %v12024_v1 = vld [vmem:[%s6442_s17 + $0xf0] sm:$0xff] }
 0x304   : > { %v11956_v48 = vadd.f32 %v11749_v58, %v11646_v38  ;;  %v11960_v8 = vadd.f32 %v11753_v37, %v11649_v43  ;;  %v11964_v51 = vadd.f32 %v11757_v13, %v11652_v62  ;;  %v11968_v0 = vadd.f32 %v11761_v7, %v11655_v57  ;;  %17776 = vst [vmem:[#allocation32_spill] sm:$0xff] %v12024_v1  ;;  %v12027_v46 = vld [vmem:[%s6442_s17 + $0x110] sm:$0xff] }
 0x305   : > { %v11972_v63 = vadd.f32 %v11765_v34, %v11658_v45  ;;  %v11976_v38 = vadd.f32 %v11772_v16, %v11661_v18  ;;  %v11980_v43 = vadd.f32 %v11776_v44, %v11664_v22  ;;  %v11984_v62 = vadd.f32 %v11780_v12, %v11667_v10  ;;  %v12003_v10 = vld [vmem:[%s6442_s17 + $0x90] sm:$0xff]  ;;  %17777 = vst [vmem:[#allocation135_spill] sm:$0xff] %v12027_v46  ;;  %v17786_v44 = vld [vmem:[#allocation94_spill] sm:$0xff] }
 0x306   : > { %v11988_v57 = vadd.f32 %v11784_v39, %v11670_v4  ;;  %v11992_v45 = vadd.f32 %v11788_v30, %v11673_v5  ;;  %v11996_v18 = vadd.f32 %v11792_v35, %v11676_v56  ;;  %v12000_v22 = vadd.f32 %v11796_v41, %v11679_v27  ;;  %17773 = vst [vmem:[#allocation78_spill] sm:$0xff] %v12003_v10  ;;  %v12009_v4 = vld [vmem:[%s6442_s17 + $0xd0] sm:$0xff]  ;;  %v17787_v39 = vld [vmem:[#allocation93_spill] sm:$0xff] }
 0x307   : > { %17775 = vst [vmem:[#allocation12_spill] sm:$0xff] %v12009_v4  ;;  %v12012_v5 = vadd.f32 %v3605_v20, %v11684_v47  ;;  %v12015_v56 = vadd.f32 %v3606_v60, %v11687_v14  ;;  %v12018_v15 = vadd.f32 %v3607_v17, %v11690_v11  ;;  %v12021_v27 = vadd.f32 %v3608_v61, %v11693_v36  ;;  %v12030_v50 = vld [vmem:[%s6442_s17 + $0x130] sm:$0xff]  ;;  %v17779_v47 = vld [vmem:[#allocation89_spill] sm:$0xff]  ;;  %v17780_v14 = vld [vmem:[#allocation42_spill] sm:$0xff] }
 0x308   : > { %17778 = vst [vmem:[#allocation101_spill] sm:$0xff] %v12030_v50  ;;  %v12033_v40 = vadd.f32 %v3609_v6, %v17779_v47  ;;  %v12036_v58 = vadd.f32 %v3610_v53, %v17780_v14  ;;  %v17781_v11 = vld [vmem:[#allocation79_spill] sm:$0xff]  ;;  %v12054_v12 = vadd.f32 %v3613_v29, %v17786_v44  ;;  %v12057_v30 = vadd.f32 %v3614_v55, %v17787_v39  ;;  %v17791_v60 = vld [vmem:[#allocation126_spill] sm:$0xff] }
 0x309   : > { %v12039_v37 = vadd.f32 %v3611_v2, %v17781_v11  ;;  %v17782_v36 = vld [vmem:[#allocation115_spill] sm:$0xff]  ;;  %v3675_v17 = vmul.f32 %v12003_v10, %v17791_v60  ;;  %v3676_v61 = vmul.f32 %v12006_v23, %v17791_v60  ;;  %17792 = vst [vmem:[#allocation87_spill] sm:$0xff] %v12073_v31  ;;  %v3677_v19 = vmul.f32 %v12009_v4, %v17791_v60  ;;  %v17806_v4 = vld [vmem:[#allocation110_spill] sm:$0xff] }
 0x30a   : > { %v12042_v13 = vadd.f32 %v3612_v26, %v17782_v36  ;;  %v12045_v7 = vld [vmem:[%s6442_s17 + $0x150] sm:$0xff]  ;;  %v3678_v21 = vmul.f32 %v12024_v1, %v17791_v60  ;;  %v3679_v6 = vmul.f32 %v12027_v46, %v17791_v60  ;;  %v3680_v42 = vmul.f32 %v12030_v50, %v17791_v60  ;;  %v17805_v46 = vld [vmem:[#allocation10_spill] sm:$0xff] }
 0x30b   : > { %17783 = vst [vmem:[#allocation136_spill] sm:$0xff] %v12045_v7  ;;  %v12048_v34 = vld [vmem:[%s6442_s17 + $0x170] sm:$0xff]  ;;  %v3681_v26 = vmul.f32 %v12045_v7, %v17791_v60  ;;  %v3686_v39 = vmul.f32 %v12073_v31, %v17791_v60  ;;  %v12167_v10 = vadd.f32 %v3675_v17, %v11932_v54 }
 0x30c   : > { %17784 = vst [vmem:[#allocation138_spill] sm:$0xff] %v12048_v34  ;;  %v12051_v16 = vld [vmem:[%s6442_s17 + $0x190] sm:$0xff]  ;;  %v3682_v29 = vmul.f32 %v12048_v34, %v17791_v60 }
 0x30d   : > { %17785 = vst [vmem:[#allocation116_spill] sm:$0xff] %v12051_v16  ;;  %v12060_v35 = vld [vmem:[%s6442_s17 + $0x1b0] sm:$0xff]  ;;  %v3683_v55 = vmul.f32 %v12051_v16, %v17791_v60 }
 0x30e   : > { %17788 = vst [vmem:[#allocation139_spill] sm:$0xff] %v12060_v35  ;;  %v12063_v41 = vld [vmem:[%s6442_s17 + $0x1d0] sm:$0xff]  ;;  %v3684_v47 = vmul.f32 %v12060_v35, %v17791_v60  ;;  %v12188_v54 = vadd.f32 %v3682_v29, %v11960_v8 }
 0x30f   : > { %17789 = vst [vmem:[#allocation108_spill] sm:$0xff] %v12063_v41  ;;  %v12066_v20 = vld [vmem:[%s6442_s17 + $0x210] sm:$0xff]  ;;  %v3685_v44 = vmul.f32 %v12063_v41, %v17791_v60 }
 0x310   : > { %17790 = vst [vmem:[#allocation86_spill] sm:$0xff] %v12066_v20  ;;  %v12076_v24 = vld [vmem:[%s6442_s17 + $0x250] sm:$0xff]  ;;  %v3687_v59 = vmul.f32 %v12066_v20, %v17791_v60 }
 0x311   : > { %17793 = vst [vmem:[#allocation47_spill] sm:$0xff] %v12076_v24  ;;  %v12079_v33 = vld [vmem:[%s6442_s17 + $0x290] sm:$0xff]  ;;  %v3689_v1 = vmul.f32 %v12076_v24, %v17791_v60 }
 0x312   : > { %17794 = vst [vmem:[#allocation18_spill] sm:$0xff] %v12079_v33  ;;  %v12090_v53 = vld [vmem:[%s6442_s17 + $0x230] sm:$0xff]  ;;  %v3691_v31 = vmul.f32 %v12079_v33, %v17791_v60 }
 0x313   : > { %17795 = vst [vmem:[#allocation80_spill] sm:$0xff] %v12090_v53  ;;  %v12093_v32 = vld [vmem:[%s6442_s17 + $0x2d0] sm:$0xff]  ;;  %v3688_v25 = vmul.f32 %v12090_v53, %v17791_v60  ;;  %v12209_v8 = vadd.f32 %v3689_v1, %v11988_v57 }
 0x314   : > { %17796 = vst [vmem:[#allocation83_spill] sm:$0xff] %v12093_v32  ;;  %v12096_v2 = vld [vmem:[%s6442_s17 + $0x310] sm:$0xff]  ;;  %v3693_v53 = vmul.f32 %v12093_v32, %v17791_v60  ;;  %v3699_v32 = vmul.f32 %v17805_v46, %v17791_v60  ;;  %v12176_v46 = vadd.f32 %v3678_v21, %v11944_v28  ;;  %v12197_v28 = vadd.f32 %v3685_v44, %v11972_v63 }
 0x315   : > { %17797 = vst [vmem:[#allocation131_spill] sm:$0xff] %v12096_v2  ;;  %v12107_v14 = vld [vmem:[%s6442_s17 + $0x270] sm:$0xff]  ;;  %v3695_v24 = vmul.f32 %v12096_v2, %v17791_v60  ;;  %17811 = vst [vmem:[#allocation36_spill] sm:$0xff] %v12209_v8 }
 0x316   : > { %17798 = vst [vmem:[#allocation23_spill] sm:$0xff] %v12107_v14  ;;  %v12110_v11 = vld [vmem:[%s6442_s17 + $0x2b0] sm:$0xff]  ;;  %v3690_v23 = vmul.f32 %v12107_v14, %v17791_v60  ;;  %17807 = vst [vmem:[#allocation85_spill] sm:$0xff] %v12197_v28  ;;  %v17830_v17 = vld [vmem:[#allocation108_spill] sm:$0xff] }
 0x317   : > { %17799 = vst [vmem:[#allocation51_spill] sm:$0xff] %v12110_v11  ;;  %v12113_v36 = vld [vmem:[%s6442_s17 + $0x350] sm:$0xff]  ;;  %v3692_v20 = vmul.f32 %v12110_v11, %v17791_v60 }
 0x318   : > { %17800 = vst [vmem:[#allocation59_spill] sm:$0xff] %v12113_v36  ;;  %v12124_v35 = vld [vmem:[%s6442_s17 + $0x2f0] sm:$0xff]  ;;  %v3697_v33 = vmul.f32 %v12113_v36, %v17791_v60  ;;  %v12170_v36 = vadd.f32 %v3676_v61, %v11936_v3  ;;  %v12191_v3 = vadd.f32 %v3683_v55, %v11964_v51  ;;  %v12212_v51 = vadd.f32 %v3690_v23, %v11992_v45 }
 0x319   : > { %17801 = vst [vmem:[#allocation140_spill] sm:$0xff] %v12124_v35  ;;  %v12127_v34 = vld [vmem:[%s6442_s17 + $0x330] sm:$0xff]  ;;  %v3694_v16 = vmul.f32 %v12124_v35, %v17791_v60  ;;  %v3700_v35 = vmul.f32 %v17806_v4, %v17791_v60  ;;  %v12179_v4 = vadd.f32 %v3679_v6, %v11948_v49  ;;  %v12200_v49 = vadd.f32 %v3686_v39, %v11976_v38  ;;  %v17836_v6 = vld [vmem:[#allocation32_spill] sm:$0xff] }
 0x31a   : > { %17802 = vst [vmem:[#allocation52_spill] sm:$0xff] %v12127_v34  ;;  %v12130_v50 = vld [vmem:[%s6442_s17 + $0x3d0] sm:$0xff]  ;;  %v3696_v14 = vmul.f32 %v12127_v34, %v17791_v60  ;;  %17812 = vst [vmem:[#allocation124_spill] sm:$0xff] %v12212_v51  ;;  %v12218_v63 = vadd.f32 %v3692_v20, %v12000_v22  ;;  %v12221_v38 = vadd.f32 %v3693_v53, %v12012_v5  ;;  %v17825_v5 = vld [vmem:[#allocation78_spill] sm:$0xff]  ;;  %v3736_v61 = vrot.slane %v17830_v17, 1 }
 0x31b   : > { %17803 = vst [vmem:[#allocation143_spill] sm:$0xff] %v12130_v50  ;;  %v12141_v41 = vld [vmem:[%s6442_s17 + $0x370] sm:$0xff]  ;;  %v3701_v2 = vmul.f32 %v12130_v50, %v17791_v60  ;;  %v12182_v50 = vadd.f32 %v3680_v42, %v11952_v9  ;;  %17808 = vst [vmem:[#allocation99_spill] sm:$0xff] %v12200_v49  ;;  %v12203_v9 = vadd.f32 %v3687_v59, %v11980_v43  ;;  %v17829_v20 = vld [vmem:[#allocation116_spill] sm:$0xff]  ;;  %v3746_v42 = vrot.slane %v17836_v6, 1 }
 0x31c   : > { %17804 = vst [vmem:[#allocation31_spill] sm:$0xff] %v12141_v41  ;;  %v12152_v7 = vld [vmem:[%s6442_s17 + $0x3f0] sm:$0xff]  ;;  %v3698_v11 = vmul.f32 %v12141_v41, %v17791_v60  ;;  %v12173_v41 = vadd.f32 %v3677_v19, %v11940_v52  ;;  %v12194_v52 = vadd.f32 %v3684_v47, %v11968_v0  ;;  %v12215_v0 = vadd.f32 %v3691_v31, %v11996_v18  ;;  %v17835_v19 = vld [vmem:[#allocation132_spill] sm:$0xff]  ;;  %v17837_v53 = vld [vmem:[#allocation101_spill] sm:$0xff] }
 0x31d   : > { %v3702_v34 = vmul.f32 %v12152_v7, %v17791_v60  ;;  %v12185_v60 = vadd.f32 %v3681_v26, %v11956_v48  ;;  %17809 = vst [vmem:[#allocation55_spill] sm:$0xff] %v12203_v9  ;;  %v12206_v48 = vadd.f32 %v3688_v25, %v11984_v62  ;;  %17814 = vst [vmem:[#allocation45_spill] sm:$0xff] %v12218_v63  ;;  %v17827_v1 = vld [vmem:[#allocation135_spill] sm:$0xff]  ;;  %v3745_v21 = vrot.slane %v17835_v19, 1 }
 0x31e   : > { %17813 = vst [vmem:[#allocation25_spill] sm:$0xff] %v12215_v0  ;;  %17815 = vst [vmem:[#allocation56_spill] sm:$0xff] %v12221_v38  ;;  %v12224_v59 = vadd.f32 %v3694_v16, %v12015_v56  ;;  %v12227_v25 = vadd.f32 %v3695_v24, %v12018_v15  ;;  %v12230_v43 = vadd.f32 %v3696_v14, %v12021_v27  ;;  %v3731_v56 = vrot.slane %v17825_v5, 1  ;;  %v17826_v15 = vld [vmem:[#allocation12_spill] sm:$0xff]  ;;  %v17832_v31 = vld [vmem:[#allocation47_spill] sm:$0xff] }
 0x31f   : > { %17810 = vst [vmem:[#allocation68_spill] sm:$0xff] %v12206_v48  ;;  %v12233_v62 = vadd.f32 %v3697_v33, %v12033_v40  ;;  %v12236_v57 = vadd.f32 %v3698_v11, %v12036_v58  ;;  %v12239_v45 = vadd.f32 %v3699_v32, %v12039_v37  ;;  %v12242_v18 = vadd.f32 %v3700_v35, %v12042_v13  ;;  %v17828_v58 = vld [vmem:[#allocation136_spill] sm:$0xff]  ;;  %v17831_v13 = vld [vmem:[#allocation86_spill] sm:$0xff]  ;;  %v17839_v29 = vld [vmem:[#allocation131_spill] sm:$0xff] }
 0x320   : > { %17816 = vst [vmem:[#allocation44_spill] sm:$0xff] %v12224_v59  ;;  %17817 = vst [vmem:[#allocation113_spill] sm:$0xff] %v12227_v25  ;;  %v12245_v22 = vadd.f32 %v3701_v2, %v12054_v12  ;;  %v12248_v23 = vadd.f32 %v3702_v34, %v12057_v30  ;;  %v3732_v27 = vrot.slane %v17826_v15, 1  ;;  %v3733_v40 = vrot.slane %v17827_v1, 1  ;;  %v17833_v24 = vld [vmem:[#allocation18_spill] sm:$0xff]  ;;  %v17834_v34 = vld [vmem:[#allocation83_spill] sm:$0xff] }
 0x321   : > { %17818 = vst [vmem:[#allocation60_spill] sm:$0xff] %v12230_v43  ;;  %17819 = vst [vmem:[#allocation11_spill] sm:$0xff] %v12233_v62  ;;  %v3734_v16 = vrot.slane %v17828_v58, 1  ;;  %v3735_v37 = vrot.slane %v17829_v20, 1  ;;  %v3737_v35 = vrot.slane %v17831_v13, 1  ;;  %v3738_v12 = vrot.slane %v17832_v31, 1 }
 0x322   : > { %17820 = vst [vmem:[#allocation73_spill] sm:$0xff] %v12236_v57  ;;  %17821 = vst [vmem:[#allocation46_spill] sm:$0xff] %v12239_v45  ;;  %v3747_v32 = vrot.slane %v17837_v53, 1  ;;  %v17838_v2 = vld [vmem:[#allocation138_spill] sm:$0xff]  ;;  %v17840_v47 = vld [vmem:[#allocation59_spill] sm:$0xff]  ;;  %v3759_v44 = vsel %vm689_vm0, %v3731_v56, %v3745_v21  ;;  %v3760_v8 = vsel %vm689_vm0, %v3732_v27, %v3746_v42  ;;  %v3773_v55 = vsel %vm689_vm0, %v3745_v21, %v3731_v56 }
 0x323   : > { %17822 = vst [vmem:[#allocation54_spill] sm:$0xff] %v12242_v18  ;;  %17823 = vst [vmem:[#allocation35_spill] sm:$0xff] %v12245_v22  ;;  %v3748_v26 = vrot.slane %v17838_v2, 1  ;;  %v17841_v11 = vld [vmem:[#allocation143_spill] sm:$0xff]  ;;  %v17844_v62 = vld [vmem:[#allocation80_spill] sm:$0xff]  ;;  %v3847_v14 = vrot.slane %v17825_v5, 2  ;;  %v3774_v21 = vsel %vm689_vm0, %v3746_v42, %v3732_v27 }
 0x324   : > { %17824 = vst [vmem:[#allocation102_spill] sm:$0xff] %v12248_v23  ;;  %v17842_v39 = vld [vmem:[#allocation139_spill] sm:$0xff]  ;;  %v3751_v30 = vrot.slane %v17844_v62, 1  ;;  %v17847_v25 = vld [vmem:[#allocation140_spill] sm:$0xff]  ;;  %v3761_v48 = vsel %vm689_vm0, %v3733_v40, %v3747_v32  ;;  %v3861_v63 = vrot.slane %v17835_v19, 2  ;;  %v17853_v49 = vrot.slane %v17833_v24, 1 }
 0x325   : > { %v3749_v22 = vrot.slane %v17842_v39, 1  ;;  %v17843_v45 = vld [vmem:[#allocation87_spill] sm:$0xff]  ;;  %v3754_v59 = vrot.slane %v17847_v25, 1  ;;  %v17848_v38 = vld [vmem:[#allocation52_spill] sm:$0xff]  ;;  %v17855_v5 = vrot.slane %v17834_v34, 1  ;;  %v3848_v28 = vrot.slane %v17826_v15, 2 }
 0x326   : > { %v3750_v33 = vrot.slane %v17843_v45, 1  ;;  %v17845_v23 = vld [vmem:[#allocation23_spill] sm:$0xff]  ;;  %v17858_v62 = vrot.slane %v17839_v29, 1  ;;  %v17863_v15 = vrot.slane %v12152_v7, 1  ;;  %v17864_v27 = vrot.slane %v17841_v11, 1 }
 0x327   : > { %v3752_v18 = vrot.slane %v17845_v23, 1  ;;  %v17846_v57 = vld [vmem:[#allocation51_spill] sm:$0xff]  ;;  %v3763_v25 = vsel %vm689_vm0, %v3735_v37, %v3749_v22  ;;  %v12296_v23 = vsel %vm689_vm0, %v3737_v35, %v3751_v30  ;;  %v12312_v19 = vsel %vm689_vm0, %v17855_v5, %v3754_v59 }
 0x328   : > { %v3753_v43 = vrot.slane %v17846_v57, 1  ;;  %v17849_v0 = vld [vmem:[#allocation31_spill] sm:$0xff]  ;;  %v3762_v57 = vsel %vm689_vm0, %v3734_v16, %v3748_v26  ;;  %v12292_v9 = vsel %vm689_vm0, %v3736_v61, %v3750_v33  ;;  %17851 = vst [vmem:[#allocation26_spill] sm:$0xff] %v12296_v23  ;;  %17856 = vst [vmem:[#allocation7_spill] sm:$0xff] %v12312_v19  ;;  %v3862_v23 = vrot.slane %v17836_v6, 2 }
 0x329   : > { %v12300_v31 = vsel %vm689_vm0, %v3738_v12, %v3752_v18  ;;  %v17861_v5 = vrot.slane %v17840_v47, 1  ;;  %v12340_v6 = vsel %vm689_vm0, %v17864_v27, %v17863_v15  ;;  %v17865_v42 = vld [vmem:[#allocation75_spill] sm:$0xff]  ;;  %v3875_v27 = vsel %vm806_vm1, %v3847_v14, %v3861_v63 }
 0x32a   : > { %17852 = vst [vmem:[#allocation61_spill] sm:$0xff] %v12300_v31  ;;  %v12306_v56 = vsel %vm689_vm0, %v17853_v49, %v3753_v43  ;;  %v17857_v31 = vrot.slane %v17848_v38, 1  ;;  %v3792_v13 = vmul.f32 %v17865_v42, %v3773_v55  ;;  %v3793_v15 = vmul.f32 %v17865_v42, %v3760_v8 }
 0x32b   : > { %17854 = vst [vmem:[#allocation57_spill] sm:$0xff] %v12306_v56  ;;  %v17860_v56 = vrot.slane %v17849_v0, 1  ;;  %v3794_v55 = vmul.f32 %v17865_v42, %v3774_v21 }
 0x32c   : > { %v12324_v49 = vsel %vm689_vm0, %v17858_v62, %v17857_v31  ;;  %v12344_v62 = vld [vmem:[%s6437_s21 + $0x30] ss:$0 sm:$0xff]  ;;  %v3775_v31 = vsel %vm689_vm0, %v3747_v32, %v3733_v40  ;;  %v3778_v40 = vsel %vm689_vm0, %v3750_v33, %v3736_v61  ;;  %v3863_v32 = vrot.slane %v17837_v53, 2 }
 0x32d   : > { %17859 = vst [vmem:[#allocation29_spill] sm:$0xff] %v12324_v49  ;;  %v12332_v19 = vsel %vm689_vm0, %v17861_v5, %v17860_v56  ;;  %v3776_v49 = vsel %vm689_vm0, %v3748_v26, %v3734_v16  ;;  %v3791_v56 = vmul.f32 %v17865_v42, %v3759_v44  ;;  %v3889_v5 = vsel %vm806_vm1, %v3861_v63, %v3847_v14 }
 0x32e   : > { %17862 = vst [vmem:[#allocation112_spill] sm:$0xff] %v12332_v19  ;;  %v3777_v19 = vsel %vm689_vm0, %v3749_v22, %v3735_v37  ;;  %v3849_v16 = vrot.slane %v17827_v1, 2  ;;  %v3890_v26 = vsel %vm806_vm1, %v3862_v23, %v3848_v28  ;;  %v12367_v22 = vsel %vm689_vm0, %v3751_v30, %v3737_v35 }
 0x32f   : > { %v3820_v8 = vadd.f32 %v3792_v13, %v12170_v36  ;;  %v3876_v37 = vsel %vm806_vm1, %v3848_v28, %v3862_v23  ;;  %v3908_v63 = vmul.f32 %v12344_v62, %v3889_v5  ;;  %v12375_v61 = vsel %vm689_vm0, %v3752_v18, %v3738_v12 }
 0x330   : > { %v3795_v1 = vmul.f32 %v17865_v42, %v3761_v48  ;;  %v3819_v33 = vadd.f32 %v3791_v56, %v12167_v10  ;;  %v3907_v53 = vmul.f32 %v12344_v62, %v3875_v27  ;;  %v3796_v35 = vmul.f32 %v17865_v42, %v3775_v31 }
 0x331   : > { %v3821_v30 = vadd.f32 %v3793_v15, %v12173_v41  ;;  %v3822_v36 = vadd.f32 %v3794_v55, %v12176_v46  ;;  %v3910_v28 = vmul.f32 %v12344_v62, %v3890_v26  ;;  %v3850_v23 = vrot.slane %v17828_v58, 2 }
 0x332   : > { %v3864_v13 = vrot.slane %v17838_v2, 2  ;;  %v3891_v18 = vsel %vm806_vm1, %v3863_v32, %v3849_v16  ;;  %v3909_v48 = vmul.f32 %v12344_v62, %v3876_v37  ;;  %v17866_v10 = vrot.slane %v17833_v24, 1 }
 0x333   : > { %v17867_v41 = vrot.slane %v17834_v34, 1  ;;  %v3877_v58 = vsel %vm806_vm1, %v3849_v16, %v3863_v32  ;;  %v12403_v2 = vadd.f32 %v3908_v63, %v3820_v8  ;;  %v3797_v14 = vmul.f32 %v17865_v42, %v3762_v57 }
 0x334   : > { %v12393_v12 = vsel %vm689_vm0, %v3753_v43, %v17866_v10  ;;  %v3798_v44 = vmul.f32 %v17865_v42, %v3776_v49  ;;  %v3823_v21 = vadd.f32 %v3795_v1, %v12179_v4  ;;  %v12408_v31 = vadd.f32 %v3907_v53, %v3819_v33 }
 0x335   : > { %v12399_v46 = vsel %vm689_vm0, %v3754_v59, %v17867_v41  ;;  %v3824_v43 = vadd.f32 %v3796_v35, %v12182_v50  ;;  %v3851_v56 = vrot.slane %v17829_v20, 2  ;;  %v3912_v59 = vmul.f32 %v12344_v62, %v3891_v18 }
 0x336   : > { %v12413_v5 = vadd.f32 %v3910_v28, %v3822_v36  ;;  %v3865_v15 = vrot.slane %v17842_v39, 2  ;;  %v3892_v55 = vsel %vm806_vm1, %v3864_v13, %v3850_v23  ;;  %v3911_v57 = vmul.f32 %v12344_v62, %v3877_v58 }
 0x337   : > { %v12419_v49 = vadd.f32 %v3909_v48, %v3821_v30  ;;  %v3799_v4 = vmul.f32 %v17865_v42, %v3763_v25  ;;  %v3800_v27 = vmul.f32 %v17865_v42, %v3777_v19  ;;  %v3878_v50 = vsel %vm806_vm1, %v3850_v23, %v3864_v13  ;;  %v17873_v23 = vld [vmem:[#allocation86_spill] sm:$0xff]  ;;  %v17874_v48 = vld [vmem:[#allocation80_spill] sm:$0xff] }
 0x338   : > { %17868 = vst [vmem:[#allocation33_spill] sm:$0xff] %v12413_v5  ;;  %v3963_v20 = vsel %vm1537_vm2, %v12403_v2, 0.0  ;;  %v3825_v16 = vadd.f32 %v3797_v14, %v12185_v60  ;;  %v3826_v39 = vadd.f32 %v3798_v44, %v12188_v54  ;;  %v3852_v32 = vrot.slane %v17830_v17, 2 }
 0x339   : > { %17869 = vst [vmem:[#allocation39_spill] sm:$0xff] %v12419_v49  ;;  %v3964_v26 = vadd.f32 %v3963_v20, %v12408_v31  ;;  %v3866_v8 = vrot.slane %v17843_v45, 2  ;;  %v3914_v25 = vmul.f32 %v12344_v62, %v3892_v55  ;;  %v12433_v37 = vadd.f32 %v3912_v59, %v3824_v43  ;;  %v17881_v20 = vld [vmem:[#allocation47_spill] sm:$0xff] }
 0x33a   : > { %v3966_v19 = vsel %vm1537_vm2, %v12413_v5, 0.0  ;;  %v3893_v63 = vsel %vm806_vm1, %v3865_v15, %v3851_v56  ;;  %v3913_v60 = vmul.f32 %v12344_v62, %v3878_v50  ;;  %v12440_v1 = vadd.f32 %v3911_v57, %v3823_v21  ;;  %v17879_v57 = vld [vmem:[#allocation85_spill] sm:$0xff] }
 0x33b   : > { %17870 = vst [vmem:[#allocation84_spill] sm:$0xff] %v12433_v37  ;;  %v3965_v54 = vadd.f32 %v3964_v26, %v12419_v49  ;;  %v17871_v17 = vrot.slane %v17839_v29, 1  ;;  %v17872_v45 = vrot.slane %v17848_v38, 1  ;;  %v3801_v53 = vmul.f32 %v17865_v42, %v12292_v9  ;;  %v17882_v26 = vld [vmem:[#allocation23_spill] sm:$0xff] }
 0x33c   : > { %v3802_v35 = vmul.f32 %v17865_v42, %v3778_v40  ;;  %v3879_v30 = vsel %vm806_vm1, %v3851_v56, %v3865_v15  ;;  %v3827_v36 = vadd.f32 %v3799_v4, %v12191_v3  ;;  %v3828_v28 = vadd.f32 %v3800_v27, %v12194_v52  ;;  %v17878_v56 = vld [vmem:[#allocation26_spill] sm:$0xff]  ;;  %v17880_v27 = vld [vmem:[#allocation99_spill] sm:$0xff] }
 0x33d   : > { %v12449_v33 = vsel %vm689_vm0, %v17872_v45, %v17871_v17  ;;  %v3853_v13 = vrot.slane %v17873_v23, 2  ;;  %v3967_v18 = vadd.f32 %v3966_v19, %v3965_v54  ;;  %v3867_v10 = vrot.slane %v17874_v48, 2  ;;  %v17887_v23 = vld [vmem:[#allocation55_spill] sm:$0xff]  ;;  %v17888_v48 = vld [vmem:[#allocation68_spill] sm:$0xff] }
 0x33e   : > { %v3916_v41 = vmul.f32 %v12344_v62, %v3893_v63  ;;  %v12461_v58 = vadd.f32 %v3914_v25, %v3826_v39  ;;  %v3969_v9 = vsel %vm1537_vm2, %v12433_v37, 0.0  ;;  %v3894_v40 = vsel %vm806_vm1, %v3866_v8, %v3852_v32  ;;  %v12870_v37 = vld [vmem:[%s6442_s17 + $0x358] sm:$0xff] }
 0x33f   : > { %v3915_v14 = vmul.f32 %v12344_v62, %v3879_v30  ;;  %v12468_v3 = vadd.f32 %v3913_v60, %v3825_v16  ;;  %v3968_v52 = vadd.f32 %v3967_v18, %v12440_v1  ;;  %v17876_v44 = vrot.slane %v17840_v47, 1  ;;  %17987 = vst [vmem:[#allocation115_spill] sm:$0xff] %v12870_v37 }
 0x340   : > { %17875 = vst [vmem:[#allocation14_spill] sm:$0xff] %v12461_v58  ;;  %v17877_v21 = vrot.slane %v17849_v0, 1  ;;  %v3803_v59 = vmul.f32 %v17865_v42, %v17878_v56  ;;  %v3804_v15 = vmul.f32 %v17865_v42, %v12367_v22  ;;  %v3880_v55 = vsel %vm806_vm1, %v3852_v32, %v3866_v8 }
 0x341   : > { %v3829_v4 = vadd.f32 %v3801_v53, %v17879_v57  ;;  %v3830_v50 = vadd.f32 %v3802_v35, %v17880_v27  ;;  %v3854_v16 = vrot.slane %v17881_v20, 2  ;;  %v3970_v39 = vadd.f32 %v3969_v9, %v3968_v52  ;;  %v17886_v35 = vld [vmem:[#allocation61_spill] sm:$0xff]  ;;  %v17892_v57 = vld [vmem:[#allocation7_spill] sm:$0xff]  ;;  %v17893_v20 = vld [vmem:[#allocation36_spill] sm:$0xff] }
 0x342   : > { %v12477_v43 = vsel %vm689_vm0, %v17877_v21, %v17876_v44  ;;  %v3868_v25 = vrot.slane %v17882_v26, 2  ;;  %v3918_v19 = vmul.f32 %v12344_v62, %v3894_v40  ;;  %v12490_v63 = vadd.f32 %v3916_v41, %v3828_v28  ;;  %v17894_v26 = vld [vmem:[#allocation124_spill] sm:$0xff] }
 0x343   : > { %v3972_v60 = vsel %vm1537_vm2, %v12461_v58, 0.0  ;;  %v3895_v22 = vsel %vm806_vm1, %v3867_v10, %v3853_v13  ;;  %v3917_v32 = vmul.f32 %v12344_v62, %v3880_v55  ;;  %v12497_v8 = vadd.f32 %v3915_v14, %v3827_v36  ;;  %v17889_v14 = vld [vmem:[#allocation51_spill] sm:$0xff] }
 0x344   : > { %17883 = vst [vmem:[#allocation17_spill] sm:$0xff] %v12490_v63  ;;  %v3971_v54 = vadd.f32 %v3970_v39, %v12468_v3  ;;  %v17884_v17 = vrot.slane %v17841_v11, 1  ;;  %v17885_v45 = vrot.slane %v12152_v7, 1  ;;  %v3805_v30 = vmul.f32 %v17865_v42, %v17886_v35 }
 0x345   : > { %v3806_v28 = vmul.f32 %v17865_v42, %v12375_v61  ;;  %v3881_v36 = vsel %vm806_vm1, %v3853_v13, %v3867_v10  ;;  %v3831_v18 = vadd.f32 %v3803_v59, %v17887_v23  ;;  %v3832_v41 = vadd.f32 %v3804_v15, %v17888_v48  ;;  %v17898_v48 = vld [vmem:[#allocation25_spill] sm:$0xff] }
 0x346   : > { %v12506_v53 = vsel %vm689_vm0, %v17885_v45, %v17884_v17  ;;  %v3855_v9 = vrot.slane %v17833_v24, 2  ;;  %v3973_v40 = vadd.f32 %v3972_v60, %v3971_v54  ;;  %v3869_v52 = vrot.slane %v17889_v14, 2  ;;  %v17891_v24 = vld [vmem:[#allocation57_spill] sm:$0xff] }
 0x347   : > { %v3920_v44 = vmul.f32 %v12344_v62, %v3895_v22  ;;  %v12519_v21 = vadd.f32 %v3918_v19, %v3830_v50  ;;  %v3975_v56 = vsel %vm1537_vm2, %v12490_v63, 0.0  ;;  %v3896_v61 = vsel %vm806_vm1, %v3868_v25, %v3854_v16  ;;  %v17895_v22 = vld [vmem:[#allocation140_spill] sm:$0xff] }
 0x348   : > { %v3919_v13 = vmul.f32 %v12344_v62, %v3881_v36  ;;  %v12526_v10 = vadd.f32 %v3917_v32, %v3829_v4  ;;  %v3974_v59 = vadd.f32 %v3973_v40, %v12497_v8  ;;  %v3807_v15 = vmul.f32 %v17865_v42, %v17891_v24  ;;  %v17899_v40 = vld [vmem:[#allocation45_spill] sm:$0xff]  ;;  %v12830_v63 = vld [vmem:[%s6442_s17 + $0x2d8] sm:$0xff] }
 0x349   : > { %17890 = vst [vmem:[#allocation66_spill] sm:$0xff] %v12519_v21  ;;  %v3808_v55 = vmul.f32 %v17865_v42, %v12393_v12  ;;  %v3809_v27 = vmul.f32 %v17865_v42, %v17892_v57  ;;  %v3882_v50 = vsel %vm806_vm1, %v3854_v16, %v3868_v25  ;;  %v3833_v39 = vadd.f32 %v3805_v30, %v17893_v20  ;;  %v17897_v30 = vld [vmem:[#allocation29_spill] sm:$0xff] }
 0x34a   : > { %v3834_v19 = vadd.f32 %v3806_v28, %v17894_v26  ;;  %v3856_v4 = vrot.slane %v17834_v34, 2  ;;  %v3976_v60 = vadd.f32 %v3975_v56, %v3974_v59  ;;  %v3870_v32 = vrot.slane %v17895_v22, 2  ;;  %17976 = vst [vmem:[#allocation123_spill] sm:$0xff] %v12830_v63 }
 0x34b   : > { %v3922_v54 = vmul.f32 %v12344_v62, %v3896_v61  ;;  %v12542_v17 = vadd.f32 %v3920_v44, %v3832_v41  ;;  %v3978_v12 = vsel %vm1537_vm2, %v12519_v21, 0.0  ;;  %v3897_v45 = vsel %vm806_vm1, %v3869_v52, %v3855_v9  ;;  %v12827_v21 = vld [vmem:[%s6442_s17 + $0x2b8] sm:$0xff] }
 0x34c   : > { %v3921_v16 = vmul.f32 %v12344_v62, %v3882_v50  ;;  %v12549_v25 = vadd.f32 %v3919_v13, %v3831_v18  ;;  %v3977_v35 = vadd.f32 %v3976_v60, %v12526_v10  ;;  %v3810_v34 = vmul.f32 %v17865_v42, %v12399_v46  ;;  %17975 = vst [vmem:[#allocation65_spill] sm:$0xff] %v12827_v21 }
 0x34d   : > { %17896 = vst [vmem:[#allocation21_spill] sm:$0xff] %v12542_v17  ;;  %v3811_v28 = vmul.f32 %v17865_v42, %v17897_v30  ;;  %v3812_v36 = vmul.f32 %v17865_v42, %v12449_v33  ;;  %v3883_v23 = vsel %vm806_vm1, %v3855_v9, %v3869_v52  ;;  %v3835_v41 = vadd.f32 %v3807_v15, %v17898_v48  ;;  %v17907_v30 = vld [vmem:[#allocation113_spill] sm:$0xff]  ;;  %v17908_v48 = vld [vmem:[#allocation60_spill] sm:$0xff] }
 0x34e   : > { %v3836_v14 = vadd.f32 %v3808_v55, %v17899_v40  ;;  %v3857_v18 = vrot.slane %v17839_v29, 2  ;;  %v3979_v44 = vadd.f32 %v3978_v12, %v3977_v35  ;;  %v3871_v56 = vrot.slane %v17848_v38, 2  ;;  %v17901_v29 = vld [vmem:[#allocation112_spill] sm:$0xff] }
 0x34f   : > { %v3924_v46 = vmul.f32 %v12344_v62, %v3897_v45  ;;  %v12565_v61 = vadd.f32 %v3922_v54, %v3834_v19  ;;  %v3981_v13 = vsel %vm1537_vm2, %v12542_v17, 0.0  ;;  %v3898_v33 = vsel %vm806_vm1, %v3870_v32, %v3856_v4  ;;  %v17902_v38 = vld [vmem:[#allocation56_spill] sm:$0xff]  ;;  %v17906_v45 = vld [vmem:[#allocation58_spill] sm:$0xff] }
 0x350   : > { %v3923_v9 = vmul.f32 %v12344_v62, %v3883_v23  ;;  %v12572_v52 = vadd.f32 %v3921_v16, %v3833_v39  ;;  %v3980_v59 = vadd.f32 %v3979_v44, %v12549_v25  ;;  %v3813_v24 = vmul.f32 %v17865_v42, %v17901_v29  ;;  %v17903_v55 = vld [vmem:[#allocation44_spill] sm:$0xff] }
 0x351   : > { %17900 = vst [vmem:[#allocation111_spill] sm:$0xff] %v12565_v61  ;;  %v3837_v15 = vadd.f32 %v3809_v27, %v17902_v38  ;;  %v3838_v57 = vadd.f32 %v3810_v34, %v17903_v55  ;;  %v3884_v50 = vsel %vm806_vm1, %v3856_v4, %v3870_v32  ;;  %v3858_v20 = vrot.slane %v17840_v47, 2  ;;  %v17912_v38 = vld [vmem:[#allocation102_spill] sm:$0xff]  ;;  %v12824_v17 = vld [vmem:[%s6442_s17 + $0x298] sm:$0xff] }
 0x352   : > { %v3860_v26 = vrot.slane %v17841_v11, 2  ;;  %v3872_v19 = vrot.slane %v17849_v0, 2  ;;  %v3982_v39 = vadd.f32 %v3981_v13, %v3980_v59  ;;  %v3874_v60 = vrot.slane %v12152_v7, 2  ;;  %v17905_v7 = vld [vmem:[#allocation96_spill] sm:$0xff]  ;;  %v17910_v13 = vld [vmem:[#allocation73_spill] sm:$0xff]  ;;  %17974 = vst [vmem:[#allocation74_spill] sm:$0xff] %v12824_v17 }
 0x353   : > { %v3926_v22 = vmul.f32 %v12344_v62, %v3898_v33  ;;  %v12586_v54 = vadd.f32 %v3924_v46, %v3836_v14  ;;  %v3984_v27 = vsel %vm1537_vm2, %v12565_v61, 0.0  ;;  %v3899_v12 = vsel %vm806_vm1, %v3871_v56, %v3857_v18 }
 0x354   : > { %v3925_v4 = vmul.f32 %v12344_v62, %v3884_v50  ;;  %v12593_v47 = vadd.f32 %v3923_v9, %v3835_v41  ;;  %v3983_v11 = vadd.f32 %v3982_v39, %v12572_v52  ;;  %v3814_v0 = vmul.f32 %v17865_v42, %v12477_v43  ;;  %v17911_v9 = vld [vmem:[#allocation54_spill] sm:$0xff]  ;;  %v17913_v39 = vld [vmem:[#allocation81_spill] sm:$0xff] }
 0x355   : > { %17904 = vst [vmem:[#allocation50_spill] sm:$0xff] %v12586_v54  ;;  %v3815_v32 = vmul.f32 %v17865_v42, %v17905_v7  ;;  %v3816_v16 = vmul.f32 %v17865_v42, %v17906_v45  ;;  %v3885_v35 = vsel %vm806_vm1, %v3857_v18, %v3871_v56  ;;  %v3818_v34 = vmul.f32 %v17865_v42, %v12506_v53  ;;  %v17916_v7 = vld [vmem:[#allocation13_spill] sm:$0xff] }
 0x356   : > { %v3839_v23 = vadd.f32 %v3811_v28, %v17907_v30  ;;  %v3840_v41 = vadd.f32 %v3812_v36, %v17908_v48  ;;  %v3985_v40 = vadd.f32 %v3984_v27, %v3983_v11  ;;  %v3900_v43 = vsel %vm806_vm1, %v3872_v19, %v3858_v20  ;;  %v17919_v48 = vld [vmem:[#allocation41_spill] sm:$0xff] }
 0x357   : > { %v3928_v14 = vmul.f32 %v12344_v62, %v3899_v12  ;;  %v12611_v44 = vadd.f32 %v3926_v22, %v3838_v57  ;;  %v3987_v46 = vsel %vm1537_vm2, %v12586_v54, 0.0  ;;  %v3902_v18 = vsel %vm806_vm1, %v3874_v60, %v3860_v26  ;;  %v17915_v12 = vld [vmem:[#allocation11_spill] sm:$0xff] }
 0x358   : > { %v3927_v53 = vmul.f32 %v12344_v62, %v3885_v35  ;;  %v12618_v56 = vadd.f32 %v3925_v4, %v3837_v15  ;;  %v3986_v28 = vadd.f32 %v3985_v40, %v12593_v47  ;;  %v3817_v36 = vmul.f32 %v17865_v42, %v12340_v6 }
 0x359   : > { %17909 = vst [vmem:[#allocation103_spill] sm:$0xff] %v12611_v44  ;;  %v3842_v33 = vadd.f32 %v3814_v0, %v17910_v13  ;;  %v3844_v59 = vadd.f32 %v3816_v16, %v17911_v9  ;;  %v3886_v29 = vsel %vm806_vm1, %v3858_v20, %v3872_v19  ;;  %v3846_v55 = vadd.f32 %v3818_v34, %v17912_v38  ;;  %v6058_v0 = vld [vmem:[%s6437_s21 + $0x18] sm:$0xff]  ;;  %v17917_v16 = vld [vmem:[#allocation46_spill] sm:$0xff]  ;;  %v17918_v34 = vld [vmem:[#allocation35_spill] sm:$0xff] }
 0x35a   : > { %v3888_v15 = vsel %vm806_vm1, %v3860_v26, %v3874_v60  ;;  %v3930_v57 = vmul.f32 %v12344_v62, %v3900_v43  ;;  %v3988_v50 = vadd.f32 %v3987_v46, %v3986_v28  ;;  %v3932_v6 = vmul.f32 %v12344_v62, %v17913_v39  ;;  %v6057_v60 = vld [vmem:[%s8538_s27] sm:$0xf]  ;;  %v17921_v43 = vld [vmem:[#allocation8_spill] sm:$0xff]  ;;  %v17929_v9 = vld [vmem:[#allocation6_spill] sm:$0xff] }
 0x35b   : > { %v3934_v42 = vmul.f32 %v12344_v62, %v3902_v18  ;;  %v12634_v22 = vadd.f32 %v3928_v14, %v3840_v41  ;;  %v3990_v27 = vsel %vm1537_vm2, %v12611_v44, 0.0  ;;  %v3841_v20 = vadd.f32 %v3813_v24, %v17915_v12  ;;  %v12686_v39 = vld [vmem:[%s6442_s17 + $0x18] sm:$0xff] }
 0x35c   : > { %v3929_v19 = vmul.f32 %v12344_v62, %v3886_v29  ;;  %v12640_v4 = vadd.f32 %v3927_v53, %v3839_v23  ;;  %v3989_v26 = vadd.f32 %v3988_v50, %v12618_v56  ;;  %v4154_v11 = vrot.slane %v6057_v60, 2  ;;  %v17925_v53 = vld [vmem:[#allocation104_spill] sm:$0xff]  ;;  %v17931_v29 = vld [vmem:[#allocation106_spill] sm:$0xff]  ;;  %17937 = vst [vmem:[#allocation134_spill] sm:$0xff] %v12686_v39 }
 0x35d   : > { %17914 = vst [vmem:[#allocation130_spill] sm:$0xff] %v12634_v22  ;;  %v12646_v45 = vrot.slane %v6058_v0, %v17916_v7  ;;  %v3843_v35 = vadd.f32 %v3815_v32, %v17917_v16  ;;  %v3845_v30 = vadd.f32 %v3817_v36, %v17918_v34  ;;  %v3931_v41 = vmul.f32 %v12344_v62, %v17919_v48  ;;  %v12704_v60 = vld [vmem:[%s6442_s17 + $0x98] sm:$0xff]  ;;  %v17945_v34 = vld [vmem:[#allocation62_spill] sm:$0xff] }
 0x35e   : > { %v3933_v24 = vmul.f32 %v12344_v62, %v3888_v15  ;;  %v12653_v23 = vadd.f32 %v3930_v57, %v3842_v33  ;;  %v3991_v40 = vadd.f32 %v3990_v27, %v3989_v26  ;;  %v12656_v14 = vrot.slane %v6058_v0, %v17921_v43  ;;  %v17927_v62 = vld [vmem:[#allocation105_spill] sm:$0xff]  ;;  %v17935_v57 = vld [vmem:[#allocation71_spill] sm:$0xff]  ;;  %v12701_v26 = vld [vmem:[%s6442_s17 + $0x78] sm:$0xff]  ;;  %17941 = vst [vmem:[#allocation100_spill] sm:$0xff] %v12704_v60 }
 0x35f   : > { %v12658_v46 = vadd.f32 %v3932_v6, %v3844_v59  ;;  %v12660_v18 = vadd.f32 %v3934_v42, %v3846_v55  ;;  %v3993_v32 = vsel %vm1537_vm2, %v12634_v22, 0.0  ;;  %v12665_v28 = vrot.slane %v6058_v0, %v17925_v53  ;;  %v17933_v55 = vld [vmem:[#allocation43_spill] sm:$0xff]  ;;  %v12689_v6 = vld [vmem:[%s6442_s17 + $0x38] sm:$0xff]  ;;  %17940 = vst [vmem:[#allocation69_spill] sm:$0xff] %v12701_v26 }
 0x360   : > { %17920 = vst [vmem:[#allocation122_spill] sm:$0xff] %v12653_v23  ;;  %17922 = vst [vmem:[#allocation92_spill] sm:$0xff] %v12656_v14  ;;  %v12668_v36 = vrot.slane %v6058_v0, %v17927_v62  ;;  %v12670_v13 = vadd.f32 %v3929_v19, %v3841_v20  ;;  %v3992_v33 = vadd.f32 %v3991_v40, %v12640_v4  ;;  %v3996_v20 = vsel %vm1537_vm2, %v12653_v23, 0.0  ;;  %v12698_v19 = vld [vmem:[%s6442_s17 + $0x58] sm:$0xff] }
 0x361   : > { %17923 = vst [vmem:[#allocation38_spill] sm:$0xff] %v12658_v46  ;;  %17924 = vst [vmem:[#allocation82_spill] sm:$0xff] %v12660_v18  ;;  %v12674_v59 = vrot.slane %v4154_v11, %v17929_v9  ;;  %v12677_v38 = vrot.slane %v6058_v0, %v17931_v29  ;;  %v12680_v15 = vrot.slane %v6058_v0, %v17933_v55  ;;  %v3999_v11 = vsel %vm1537_vm2, %v12658_v46, 0.0  ;;  %v12713_v7 = vld [vmem:[%s6442_s17 + $0xb8] sm:$0xff] }
 0x362   : > { %17926 = vst [vmem:[#allocation16_spill] sm:$0xff] %v12665_v28  ;;  %17928 = vst [vmem:[#allocation30_spill] sm:$0xff] %v12668_v36  ;;  %v12683_v50 = vrot.slane %v6058_v0, %v17935_v57  ;;  %v12691_v42 = vadd.f32 %v3931_v41, %v3843_v35  ;;  %v12693_v27 = vadd.f32 %v3933_v24, %v3845_v30  ;;  %v12710_v0 = vsel %vm1537_vm2, %v12660_v18, 0.0  ;;  %v12716_v16 = vld [vmem:[%s6442_s17 + $0xd8] sm:$0xff] }
 0x363   : > { %17930 = vst [vmem:[#allocation133_spill] sm:$0xff] %v12674_v59  ;;  %17932 = vst [vmem:[#allocation27_spill] sm:$0xff] %v12677_v38  ;;  %v3994_v12 = vadd.f32 %v3993_v32, %v3992_v33  ;;  %v12719_v35 = vld [vmem:[%s6442_s17 + $0xf8] sm:$0xff]  ;;  %v12723_v30 = vmul.f32 %v17945_v34, %v12686_v39  ;;  %v12727_v48 = vmul.f32 %v17945_v34, %v12689_v6 }
 0x364   : > { %17934 = vst [vmem:[#allocation117_spill] sm:$0xff] %v12680_v15  ;;  %17936 = vst [vmem:[#allocation28_spill] sm:$0xff] %v12683_v50  ;;  %v12731_v24 = vld [vmem:[%s6442_s17 + $0x118] sm:$0xff]  ;;  %v12741_v32 = vmul.f32 %v17945_v34, %v12698_v19  ;;  %v12745_v53 = vmul.f32 %v17945_v34, %v12701_v26  ;;  %v12749_v62 = vmul.f32 %v17945_v34, %v12704_v60 }
 0x365   : > { %17938 = vst [vmem:[#allocation72_spill] sm:$0xff] %v12689_v6  ;;  %17939 = vst [vmem:[#allocation137_spill] sm:$0xff] %v12698_v19  ;;  %v3995_v41 = vadd.f32 %v3994_v12, %v12670_v13  ;;  %v12734_v40 = vld [vmem:[%s6442_s17 + $0x138] sm:$0xff]  ;;  %v12762_v57 = vmul.f32 %v17945_v34, %v12713_v7  ;;  %v12766_v12 = vmul.f32 %v17945_v34, %v12716_v16 }
 0x366   : > { %17942 = vst [vmem:[#allocation53_spill] sm:$0xff] %v12713_v7  ;;  %17943 = vst [vmem:[#allocation63_spill] sm:$0xff] %v12716_v16  ;;  %v12737_v43 = vld [vmem:[%s6442_s17 + $0x158] sm:$0xff]  ;;  %v12770_v50 = vmul.f32 %v17945_v34, %v12719_v35  ;;  %v12774_v15 = vmul.f32 %v17945_v34, %v12731_v24  ;;  %v12787_v28 = vmul.f32 %v17945_v34, %v12734_v40 }
 0x367   : > { %17944 = vst [vmem:[#allocation76_spill] sm:$0xff] %v12719_v35  ;;  %17946 = vst [vmem:[#allocation70_spill] sm:$0xff] %v12723_v30  ;;  %v12752_v33 = vld [vmem:[%s6442_s17 + $0x178] sm:$0xff]  ;;  %v3997_v59 = vadd.f32 %v3996_v20, %v3995_v41  ;;  %v12791_v18 = vmul.f32 %v17945_v34, %v12737_v43 }
 0x368   : > { %17947 = vst [vmem:[#allocation67_spill] sm:$0xff] %v12727_v48  ;;  %17948 = vst [vmem:[#allocation37_spill] sm:$0xff] %v12731_v24  ;;  %v12755_v29 = vld [vmem:[%s6442_s17 + $0x198] sm:$0xff]  ;;  %v12795_v20 = vmul.f32 %v17945_v34, %v12752_v33 }
 0x369   : > { %17949 = vst [vmem:[#allocation88_spill] sm:$0xff] %v12734_v40  ;;  %17950 = vst [vmem:[#allocation109_spill] sm:$0xff] %v12737_v43  ;;  %v12758_v55 = vld [vmem:[%s6442_s17 + $0x1b8] sm:$0xff]  ;;  %v12808_v22 = vmul.f32 %v17945_v34, %v12755_v29  ;;  %v3998_v61 = vadd.f32 %v3997_v59, %v12691_v42 }
 0x36a   : > { %17951 = vst [vmem:[#allocation49_spill] sm:$0xff] %v12741_v32  ;;  %17952 = vst [vmem:[#allocation97_spill] sm:$0xff] %v12745_v53  ;;  %v12777_v9 = vld [vmem:[%s6442_s17 + $0x1d8] sm:$0xff]  ;;  %v12812_v14 = vmul.f32 %v17945_v34, %v12758_v55 }
 0x36b   : > { %17953 = vst [vmem:[#allocation114_spill] sm:$0xff] %v12749_v62  ;;  %17954 = vst [vmem:[#allocation9_spill] sm:$0xff] %v12752_v33  ;;  %v12780_v38 = vld [vmem:[%s6442_s17 + $0x1f8] sm:$0xff]  ;;  %v12816_v44 = vmul.f32 %v17945_v34, %v12777_v9 }
 0x36c   : > { %17955 = vst [vmem:[#allocation125_spill] sm:$0xff] %v12755_v29  ;;  %17956 = vst [vmem:[#allocation34_spill] sm:$0xff] %v12758_v55  ;;  %v12783_v36 = vld [vmem:[%s6442_s17 + $0x218] sm:$0xff]  ;;  %v12820_v54 = vmul.f32 %v17945_v34, %v12780_v38 }
 0x36d   : > { %17957 = vst [vmem:[#allocation141_spill] sm:$0xff] %v12762_v57  ;;  %17958 = vst [vmem:[#allocation98_spill] sm:$0xff] %v12766_v12  ;;  %v12798_v41 = vld [vmem:[%s6442_s17 + $0x238] sm:$0xff]  ;;  %v12834_v58 = vmul.f32 %v17945_v34, %v12783_v36  ;;  %v4309_v12 = vrot.slane %v12737_v43, 1  ;;  %v4311_v57 = vrot.slane %v12777_v9, 1  ;;  %v4318_v43 = vrot.slane %v12689_v6, 1 }
 0x36e   : > { %17959 = vst [vmem:[#allocation129_spill] sm:$0xff] %v12770_v50  ;;  %17960 = vst [vmem:[#allocation48_spill] sm:$0xff] %v12774_v15  ;;  %v12801_v46 = vld [vmem:[%s6442_s17 + $0x258] sm:$0xff]  ;;  %v4307_v50 = vrot.slane %v12716_v16, 1 }
 0x36f   : > { %17961 = vst [vmem:[#allocation142_spill] sm:$0xff] %v12777_v9  ;;  %17962 = vst [vmem:[#allocation19_spill] sm:$0xff] %v12780_v38  ;;  %v12804_v23 = vld [vmem:[%s6442_s17 + $0x278] sm:$0xff]  ;;  %v4320_v9 = vrot.slane %v12713_v7, 1 }
 0x370   : > { %17963 = vst [vmem:[#allocation64_spill] sm:$0xff] %v12783_v36  ;;  %17964 = vst [vmem:[#allocation127_spill] sm:$0xff] %v12787_v28  ;;  %v12845_v59 = vld [vmem:[%s6442_s17 + $0x2f8] sm:$0xff]  ;;  %v4327_v6 = vrot.slane %v12804_v23, 1 }
 0x371   : > { %17965 = vst [vmem:[#allocation90_spill] sm:$0xff] %v12791_v18  ;;  %17966 = vst [vmem:[#allocation22_spill] sm:$0xff] %v12795_v20  ;;  %v12855_v20 = vmul.f32 %v17945_v34, %v12804_v23  ;;  %v4000_v18 = vadd.f32 %v3999_v11, %v3998_v61  ;;  %v12873_v28 = vld [vmem:[%s6442_s17 + $0x378] sm:$0xff]  ;;  %v4304_v11 = vrot.slane %v12686_v39, 1  ;;  %v4329_v7 = vrot.slane %v12845_v59, 1 }
 0x372   : > { %17967 = vst [vmem:[#allocation95_spill] sm:$0xff] %v12798_v41  ;;  %17968 = vst [vmem:[#allocation15_spill] sm:$0xff] %v12801_v46  ;;  %v12893_v61 = vmul.f32 %v17945_v34, %v12873_v28 }
 0x373   : > { %17969 = vst [vmem:[#allocation107_spill] sm:$0xff] %v12804_v23  ;;  %17970 = vst [vmem:[#allocation24_spill] sm:$0xff] %v12808_v22  ;;  %v12851_v22 = vld [vmem:[%s6442_s17 + $0x338] sm:$0xff]  ;;  %v4001_v15 = vadd.f32 %v4000_v18, %v12693_v27  ;;  %v4314_v18 = vrot.slane %v12824_v17, 1 }
 0x374   : > { %17971 = vst [vmem:[#allocation120_spill] sm:$0xff] %v12812_v14  ;;  %17972 = vst [vmem:[#allocation128_spill] sm:$0xff] %v12816_v44  ;;  %v12838_v44 = vmul.f32 %v17945_v34, %v12798_v41  ;;  %v12848_v14 = vld [vmem:[%s6442_s17 + $0x318] sm:$0xff] }
 0x375   : > { %17973 = vst [vmem:[#allocation121_spill] sm:$0xff] %v12820_v54  ;;  %17977 = vst [vmem:[#allocation118_spill] sm:$0xff] %v12834_v58  ;;  %v12842_v54 = vmul.f32 %v17945_v34, %v12801_v46  ;;  %v12859_v58 = vmul.f32 %v17945_v34, %v12824_v17  ;;  %v4003_v39 = vadd.f32 %v12710_v0, %v4001_v15  ;;  %v4316_v16 = vrot.slane %v12848_v14, 1 }
 0x376   : > { %17978 = vst [vmem:[#allocation77_spill] sm:$0xff] %v12838_v44  ;;  %17980 = vst [vmem:[#allocation20_spill] sm:$0xff] %v12845_v59  ;;  %v12863_v44 = vmul.f32 %v17945_v34, %v12827_v21  ;;  %v4322_v15 = vrot.slane %v12734_v40, 1  ;;  %v4323_v0 = vrot.slane %v12752_v33, 1  ;;  %v4331_v40 = vrot.slane %v12873_v28, 1 }
 0x377   : > { %17979 = vst [vmem:[#allocation40_spill] sm:$0xff] %v12842_v54  ;;  %17981 = vst [vmem:[#allocation119_spill] sm:$0xff] %v12848_v14  ;;  %v12867_v54 = vmul.f32 %v17945_v34, %v12830_v63  ;;  %v4332_v33 = vsel %vm689_vm0, %v4304_v11, %v4318_v43 }
 0x378   : > { %17982 = vst [vmem:[#allocation91_spill] sm:$0xff] %v12851_v22  ;;  %17983 = vst [vmem:[#allocation144_spill] sm:$0xff] %v12855_v20  ;;  %v12877_v20 = vmul.f32 %v17945_v34, %v12845_v59 }
 0x379   : > { %17984 = vst [vmem:[#allocation89_spill] sm:$0xff] %v12859_v58  ;;  %17985 = vst [vmem:[#allocation42_spill] sm:$0xff] %v12863_v44  ;;  %v12881_v58 = vmul.f32 %v17945_v34, %v12848_v14  ;;  %v12885_v44 = vmul.f32 %v17945_v34, %v12851_v22  ;;  %v4325_v14 = vrot.slane %v12780_v38, 1 }
 0x37a   : > { %17986 = vst [vmem:[#allocation79_spill] sm:$0xff] %v12867_v54  ;;  %17988 = vst [vmem:[#allocation94_spill] sm:$0xff] %v12873_v28  ;;  %v12889_v54 = vmul.f32 %v17945_v34, %v12870_v37  ;;  %v4312_v34 = vrot.slane %v12783_v36, 1  ;;  %v4321_v36 = vrot.slane %v12719_v35, 1  ;;  %v4330_v35 = vrot.slane %v12851_v22, 1 }
 0x37b   : > { %17989 = vst [vmem:[#allocation93_spill] sm:$0xff] %v12877_v20  ;;  %17990 = vst [vmem:[#allocation126_spill] sm:$0xff] %v12881_v58  ;;  %v4305_v20 = vrot.slane %v12698_v19, 1  ;;  %v4306_v58 = vrot.slane %v12704_v60, 1  ;;  %v4313_v19 = vrot.slane %v12801_v46, 1  ;;  %v4315_v60 = vrot.slane %v12830_v63, 1 }
 0x37c   : > { %17991 = vst [vmem:[#allocation10_spill] sm:$0xff] %v12885_v44  ;;  %17992 = vst [vmem:[#allocation110_spill] sm:$0xff] %v12889_v54  ;;  %v4308_v44 = vrot.slane %v12731_v24, 1  ;;  %v4310_v54 = vrot.slane %v12755_v29, 1  ;;  %v4317_v24 = vrot.slane %v12870_v37, 1  ;;  %v4319_v29 = vrot.slane %v12701_v26, 1 }
 0x37d   : > { %17993 = vst [vmem:[#allocation78_spill] sm:$0xff] %v12893_v61  ;;  %v4004_v61 = vrot.slane %v4003_v39, 4  ;;  %v4324_v63 = vrot.slane %v12758_v55, 1  ;;  %v4326_v37 = vrot.slane %v12798_v41, 1  ;;  %v4328_v26 = vrot.slane %v12827_v21, 1 }
 0x37e   : > { %v12929_v55 = vsel %vm689_vm0, %v4305_v20, %v4319_v29  ;;  %v12941_v22 = vsel %vm689_vm0, %v4308_v44, %v4322_v15  ;;  %v12944_v28 = vld [vmem:[%s9426_s30] sm:$0xf]  ;;  %v12949_v21 = vsel %vm689_vm0, %v4309_v12, %v4323_v0  ;;  %v12957_v41 = vsel %vm689_vm0, %v4311_v57, %v4325_v14 }
 0x37f   : > { %v4005_v17 = vadd.f32 %v4004_v61, %v4003_v39  ;;  %17994 = vst [vmem:[#allocation12_spill] sm:$0xff] %v12929_v55  ;;  %v12933_v39 = vsel %vm689_vm0, %v4306_v58, %v4320_v9  ;;  %v12937_v61 = vsel %vm689_vm0, %v4307_v50, %v4321_v36  ;;  %17997 = vst [vmem:[#allocation116_spill] sm:$0xff] %v12941_v22  ;;  %v18246_v51 = vld [vmem:[#allocation91_spill] sm:$0xff] }
 0x380   : > { %17995 = vst [vmem:[#allocation135_spill] sm:$0xff] %v12933_v39  ;;  %17996 = vst [vmem:[#allocation136_spill] sm:$0xff] %v12937_v61  ;;  %v12953_v23 = vsel %vm689_vm0, %v4310_v54, %v4324_v63  ;;  %v12961_v62 = vsel %vm689_vm0, %v4312_v34, %v4326_v37  ;;  %v12965_v59 = vsel %vm689_vm0, %v4313_v19, %v4327_v6 }
 0x381   : > { %v4006_v38 = vrot.slane %v4005_v17, 2  ;;  %17998 = vst [vmem:[#allocation108_spill] sm:$0xff] %v12944_v28  ;;  %17999 = vst [vmem:[#allocation18_spill] sm:$0xff] %v12949_v21  ;;  %v12969_v28 = vsel %vm689_vm0, %v4314_v18, %v4328_v26  ;;  %v12973_v53 = vsel %vm689_vm0, %v4315_v60, %v4329_v7  ;;  %v12977_v32 = vsel %vm689_vm0, %v4316_v16, %v4330_v35 }
 0x382   : > { %18000 = vst [vmem:[#allocation83_spill] sm:$0xff] %v12953_v23  ;;  %18001 = vst [vmem:[#allocation132_spill] sm:$0xff] %v12957_v41  ;;  %v12987_v49 = vsel %vm689_vm0, %v4319_v29, %v4305_v20  ;;  %v12991_v30 = vsel %vm689_vm0, %v4320_v9, %v4306_v58  ;;  %v12995_v5 = vsel %vm689_vm0, %v4321_v36, %v4307_v50 }
 0x383   : > { %v4007_v46 = vadd.f32 %v4006_v38, %v4005_v17  ;;  %18002 = vst [vmem:[#allocation32_spill] sm:$0xff] %v12961_v62  ;;  %18003 = vst [vmem:[#allocation101_spill] sm:$0xff] %v12965_v59  ;;  %v12981_v17 = vsel %vm689_vm0, %v4317_v24, %v4331_v40  ;;  %v4346_v38 = vsel %vm689_vm0, %v4318_v43, %v4304_v11 }
 0x384   : > { %18004 = vst [vmem:[#allocation138_spill] sm:$0xff] %v12969_v28  ;;  %18005 = vst [vmem:[#allocation131_spill] sm:$0xff] %v12973_v53  ;;  %v13003_v43 = vsel %vm689_vm0, %v4323_v0, %v4309_v12  ;;  %v13007_v29 = vsel %vm689_vm0, %v4324_v63, %v4310_v54  ;;  %v13011_v58 = vsel %vm689_vm0, %v4325_v14, %v4311_v57 }
 0x385   : > { %18006 = vst [vmem:[#allocation59_spill] sm:$0xff] %v12977_v32  ;;  %18007 = vst [vmem:[#allocation143_spill] sm:$0xff] %v12981_v17  ;;  %v4008_v48 = vrot.slane %v4007_v46, 1  ;;  %v12999_v32 = vsel %vm689_vm0, %v4322_v15, %v4308_v44  ;;  %v13015_v36 = vsel %vm689_vm0, %v4326_v37, %v4312_v34  ;;  %v13019_v44 = vsel %vm689_vm0, %v4327_v6, %v4313_v19 }
 0x386   : > { %18008 = vst [vmem:[#allocation139_spill] sm:$0xff] %v12987_v49  ;;  %18009 = vst [vmem:[#allocation87_spill] sm:$0xff] %v12991_v30  ;;  %v13023_v50 = vsel %vm689_vm0, %v4328_v26, %v4314_v18  ;;  %v13027_v63 = vsel %vm689_vm0, %v4329_v7, %v4315_v60  ;;  %v13031_v54 = vsel %vm689_vm0, %v4330_v35, %v4316_v16 }
 0x387   : > { %18010 = vst [vmem:[#allocation52_spill] sm:$0xff] %v12995_v5  ;;  %18011 = vst [vmem:[#allocation31_spill] sm:$0xff] %v12999_v32  ;;  %v4009_v9 = vadd.f32 %v4008_v48, %v4007_v46  ;;  %v13035_v37 = vsel %vm689_vm0, %v4331_v40, %v4317_v24  ;;  %v4364_v14 = vmul.f32 %v12646_v45, %v4332_v33 }
 0x388   : > { %18012 = vst [vmem:[#allocation75_spill] sm:$0xff] %v13003_v43  ;;  %18013 = vst [vmem:[#allocation86_spill] sm:$0xff] %v13007_v29  ;;  %v4365_v46 = vmul.f32 %v12646_v45, %v4346_v38  ;;  %v4366_v6 = vmul.f32 %v12646_v45, %v12929_v55  ;;  %v4367_v19 = vmul.f32 %v12646_v45, %v12987_v49  ;;  %v18107_v49 = vld [vmem:[#allocation142_spill] sm:$0xff]  ;;  %v18108_v55 = vld [vmem:[#allocation64_spill] sm:$0xff] }
 0x389   : > { %18014 = vst [vmem:[#allocation80_spill] sm:$0xff] %v13011_v58  ;;  %18015 = vst [vmem:[#allocation26_spill] sm:$0xff] %v13015_v36  ;;  %v4368_v26 = vmul.f32 %v12646_v45, %v12933_v39  ;;  %v13045_v60 = vmul.f32 0.0051020407, %v4009_v9  ;;  %v4369_v7 = vmul.f32 %v12646_v45, %v12991_v30  ;;  %v4370_v16 = vmul.f32 %v12646_v45, %v12937_v61  ;;  %v18070_v61 = vld [vmem:[#allocation121_spill] sm:$0xff]  ;;  %v18100_v39 = vld [vmem:[#allocation100_spill] sm:$0xff] }
 0x38a   : > { %18016 = vst [vmem:[#allocation85_spill] sm:$0xff] %v13019_v44  ;;  %18017 = vst [vmem:[#allocation99_spill] sm:$0xff] %v13023_v50  ;;  %v4371_v35 = vmul.f32 %v12646_v45, %v12995_v5  ;;  %v4372_v48 = vmul.f32 %v12646_v45, %v12941_v22  ;;  %v4373_v24 = vmul.f32 %v12646_v45, %v12999_v32 }
 0x38b   : > { %18018 = vst [vmem:[#allocation47_spill] sm:$0xff] %v13027_v63  ;;  %18019 = vst [vmem:[#allocation23_spill] sm:$0xff] %v13031_v54  ;;  %v4374_v40 = vmul.f32 %v12646_v45, %v12949_v21  ;;  %v4375_v33 = vmul.f32 %v12646_v45, %v13003_v43  ;;  %v13063_v57 = vsub.f32 %v12440_v1, %v13045_v60 }
 0x38c   : > { %18020 = vst [vmem:[#allocation61_spill] sm:$0xff] %v13035_v37  ;;  %v13067_v12 = vsub.f32 %v12468_v3, %v13045_v60  ;;  %v4376_v20 = vmul.f32 %v12646_v45, %v12953_v23  ;;  %v4377_v11 = vmul.f32 %v12646_v45, %v13007_v29  ;;  %v13075_v34 = vsub.f32 %v12497_v8, %v13045_v60  ;;  %v18038_v29 = vld [vmem:[#allocation70_spill] sm:$0xff] }
 0x38d   : > { %18021 = vst [vmem:[#allocation55_spill] sm:$0xff] %v13063_v57  ;;  %v13079_v18 = vsub.f32 %v12526_v10, %v13045_v60  ;;  %v4378_v1 = vmul.f32 %v12646_v45, %v12957_v41  ;;  %v4379_v3 = vmul.f32 %v12646_v45, %v13011_v58  ;;  %v13087_v15 = vsub.f32 %v12549_v25, %v13045_v60  ;;  %v18036_v41 = vld [vmem:[#allocation33_spill] sm:$0xff] }
 0x38e   : > { %18022 = vst [vmem:[#allocation68_spill] sm:$0xff] %v13067_v12  ;;  %18023 = vst [vmem:[#allocation51_spill] sm:$0xff] %v13075_v34  ;;  %v13091_v0 = vsub.f32 %v12572_v52, %v13045_v60  ;;  %v4380_v8 = vmul.f32 %v12646_v45, %v12961_v62  ;;  %v4381_v10 = vmul.f32 %v12646_v45, %v13015_v36 }
 0x38f   : > { %18024 = vst [vmem:[#allocation57_spill] sm:$0xff] %v13079_v18  ;;  %18025 = vst [vmem:[#allocation7_spill] sm:$0xff] %v13087_v15  ;;  %v13099_v38 = vsub.f32 %v12593_v47, %v13045_v60  ;;  %v13103_v9 = vsub.f32 %v12618_v56, %v13045_v60  ;;  %v4382_v25 = vmul.f32 %v12646_v45, %v12965_v59 }
 0x390   : > { %18026 = vst [vmem:[#allocation36_spill] sm:$0xff] %v13091_v0  ;;  %v4383_v52 = vmul.f32 %v12646_v45, %v13019_v44  ;;  %v13111_v62 = vsub.f32 %v12640_v4, %v13045_v60  ;;  %v13115_v36 = vsub.f32 %v12670_v13, %v13045_v60  ;;  %v4384_v47 = vmul.f32 %v12646_v45, %v12969_v28 }
 0x391   : > { %18027 = vst [vmem:[#allocation124_spill] sm:$0xff] %v13099_v38  ;;  %18028 = vst [vmem:[#allocation140_spill] sm:$0xff] %v13103_v9  ;;  %v4385_v56 = vmul.f32 %v12646_v45, %v13023_v50  ;;  %v13123_v59 = vsub.f32 %v12403_v2, %v13045_v60  ;;  %v13127_v44 = vsub.f32 %v12691_v42, %v13045_v60  ;;  %v18035_v2 = vld [vmem:[#allocation59_spill] sm:$0xff] }
 0x392   : > { %18029 = vst [vmem:[#allocation29_spill] sm:$0xff] %v13111_v62  ;;  %18030 = vst [vmem:[#allocation25_spill] sm:$0xff] %v13115_v36  ;;  %v13131_v4 = vsub.f32 %v12693_v27, %v13045_v60  ;;  %v4386_v13 = vmul.f32 %v12646_v45, %v12973_v53  ;;  %v13137_v28 = vsub.f32 %v12408_v31, %v13045_v60 }
 0x393   : > { %18031 = vst [vmem:[#allocation45_spill] sm:$0xff] %v13123_v59  ;;  %18032 = vst [vmem:[#allocation112_spill] sm:$0xff] %v13127_v44  ;;  %v4387_v50 = vmul.f32 %v12646_v45, %v13027_v63  ;;  %v4388_v58 = vmul.f32 %v12646_v45, %v18035_v2  ;;  %v4389_v42 = vmul.f32 %v12646_v45, %v13031_v54  ;;  %v18039_v63 = vld [vmem:[#allocation39_spill] sm:$0xff]  ;;  %v18042_v54 = vld [vmem:[#allocation49_spill] sm:$0xff] }
 0x394   : > { %18033 = vst [vmem:[#allocation56_spill] sm:$0xff] %v13131_v4  ;;  %18034 = vst [vmem:[#allocation44_spill] sm:$0xff] %v13137_v28  ;;  %v13147_v27 = vsub.f32 %v18036_v41, %v13045_v60  ;;  %v4390_v53 = vmul.f32 %v12646_v45, %v12981_v17  ;;  %v4391_v31 = vmul.f32 %v12646_v45, %v13035_v37  ;;  %v18041_v2 = vld [vmem:[#allocation67_spill] sm:$0xff]  ;;  %v18044_v41 = vld [vmem:[#allocation97_spill] sm:$0xff] }
 0x395   : > { %v13154_v23 = vadd.f32 %v4364_v14, %v18038_v29  ;;  %v13158_v43 = vsub.f32 %v18039_v63, %v13045_v60  ;;  %v13161_v21 = vadd.f32 %v4365_v46, %v18041_v2  ;;  %v13164_v32 = vadd.f32 %v4366_v6, %v18042_v54  ;;  %v18046_v45 = vld [vmem:[#allocation114_spill] sm:$0xff]  ;;  %v18048_v29 = vld [vmem:[#allocation141_spill] sm:$0xff] }
 0x396   : > { %18037 = vst [vmem:[#allocation96_spill] sm:$0xff] %v13147_v27  ;;  %v13167_v22 = vadd.f32 %v4367_v19, %v18044_v41  ;;  %v4040_v17 = vmul.f32 %v13123_v59, %v13123_v59  ;;  %v13172_v37 = vadd.f32 %v4368_v26, %v18046_v45  ;;  %v13175_v14 = vadd.f32 %v4369_v7, %v18048_v29  ;;  %v18050_v63 = vld [vmem:[#allocation98_spill] sm:$0xff]  ;;  %v18052_v54 = vld [vmem:[#allocation129_spill] sm:$0xff]  ;;  %v18054_v19 = vld [vmem:[#allocation48_spill] sm:$0xff] }
 0x397   : > { %18040 = vst [vmem:[#allocation58_spill] sm:$0xff] %v13158_v43  ;;  %18043 = vst [vmem:[#allocation113_spill] sm:$0xff] %v13164_v32  ;;  %v13178_v5 = vadd.f32 %v4370_v16, %v18050_v63  ;;  %v4039_v46 = vmul.f32 %v13137_v28, %v13137_v28  ;;  %v13183_v6 = vadd.f32 %v4371_v35, %v18052_v54  ;;  %v18056_v41 = vld [vmem:[#allocation127_spill] sm:$0xff]  ;;  %v18058_v26 = vld [vmem:[#allocation84_spill] sm:$0xff] }
 0x398   : > { %18045 = vst [vmem:[#allocation60_spill] sm:$0xff] %v13167_v22  ;;  %18047 = vst [vmem:[#allocation73_spill] sm:$0xff] %v13172_v37  ;;  %v13186_v2 = vadd.f32 %v4372_v48, %v18054_v19  ;;  %v13189_v59 = vadd.f32 %v4373_v24, %v18056_v41  ;;  %v13193_v45 = vsub.f32 %v18058_v26, %v13045_v60  ;;  %v18060_v16 = vld [vmem:[#allocation90_spill] sm:$0xff]  ;;  %v18064_v48 = vld [vmem:[#allocation24_spill] sm:$0xff] }
 0x399   : > { %18049 = vst [vmem:[#allocation54_spill] sm:$0xff] %v13175_v14  ;;  %18051 = vst [vmem:[#allocation102_spill] sm:$0xff] %v13178_v5  ;;  %v4042_v7 = vmul.f32 %v13147_v27, %v13147_v27  ;;  %v13198_v29 = vadd.f32 %v4374_v40, %v18060_v16  ;;  %v18062_v63 = vld [vmem:[#allocation22_spill] sm:$0xff]  ;;  %v4041_v35 = vmul.f32 %v13158_v43, %v13158_v43  ;;  %v18066_v24 = vld [vmem:[#allocation120_spill] sm:$0xff]  ;;  %v4067_v27 = vsel %vm1537_vm2, %v4040_v17, 0.0 }
 0x39a   : > { %18053 = vst [vmem:[#allocation81_spill] sm:$0xff] %v13183_v6  ;;  %18055 = vst [vmem:[#allocation11_spill] sm:$0xff] %v13186_v2  ;;  %v13201_v28 = vadd.f32 %v4375_v33, %v18062_v63  ;;  %v13206_v54 = vadd.f32 %v4376_v20, %v18064_v48  ;;  %v13209_v19 = vadd.f32 %v4377_v11, %v18066_v24  ;;  %v18068_v41 = vld [vmem:[#allocation128_spill] sm:$0xff]  ;;  %v18072_v16 = vld [vmem:[#allocation118_spill] sm:$0xff]  ;;  %v18149_v6 = vrot.slane %v18108_v55, 2 }
 0x39b   : > { %18057 = vst [vmem:[#allocation13_spill] sm:$0xff] %v13189_v59  ;;  %18059 = vst [vmem:[#allocation46_spill] sm:$0xff] %v13193_v45  ;;  %v13212_v26 = vadd.f32 %v4378_v1, %v18068_v41  ;;  %v13216_v40 = vadd.f32 %v4379_v3, %v18070_v61  ;;  %v13219_v33 = vadd.f32 %v4380_v8, %v18072_v16  ;;  %v18074_v63 = vld [vmem:[#allocation77_spill] sm:$0xff]  ;;  %v18076_v20 = vld [vmem:[#allocation40_spill] sm:$0xff]  ;;  %v4070_v8 = vsel %vm1537_vm2, %v4042_v7, 0.0 }
 0x39c   : > { %18061 = vst [vmem:[#allocation35_spill] sm:$0xff] %v13198_v29  ;;  %18063 = vst [vmem:[#allocation41_spill] sm:$0xff] %v13201_v28  ;;  %v13222_v30 = vadd.f32 %v4381_v10, %v18074_v63  ;;  %v4068_v43 = vadd.f32 %v4067_v27, %v4039_v46  ;;  %v13225_v48 = vadd.f32 %v4382_v25, %v18076_v20  ;;  %v18078_v11 = vld [vmem:[#allocation144_spill] sm:$0xff]  ;;  %v18080_v1 = vld [vmem:[#allocation89_spill] sm:$0xff] }
 0x39d   : > { %18065 = vst [vmem:[#allocation8_spill] sm:$0xff] %v13206_v54  ;;  %18067 = vst [vmem:[#allocation104_spill] sm:$0xff] %v13209_v19  ;;  %v13228_v24 = vadd.f32 %v4383_v52, %v18078_v11  ;;  %v13231_v41 = vadd.f32 %v4384_v47, %v18080_v1  ;;  %v18082_v17 = vld [vmem:[#allocation14_spill] sm:$0xff]  ;;  %v4044_v3 = vmul.f32 %v13193_v45, %v13193_v45  ;;  %v18086_v46 = vld [vmem:[#allocation79_spill] sm:$0xff] }
 0x39e   : > { %18069 = vst [vmem:[#allocation105_spill] sm:$0xff] %v13212_v26  ;;  %18071 = vst [vmem:[#allocation106_spill] sm:$0xff] %v13216_v40  ;;  %v13235_v61 = vsub.f32 %v18082_v17, %v13045_v60  ;;  %v18084_v10 = vld [vmem:[#allocation42_spill] sm:$0xff]  ;;  %v4043_v25 = vmul.f32 %v13063_v57, %v13063_v57  ;;  %v4069_v52 = vadd.f32 %v4068_v43, %v4041_v35  ;;  %v18088_v47 = vld [vmem:[#allocation93_spill] sm:$0xff] }
 0x39f   : > { %18073 = vst [vmem:[#allocation43_spill] sm:$0xff] %v13219_v33  ;;  %18075 = vst [vmem:[#allocation71_spill] sm:$0xff] %v13222_v30  ;;  %v13241_v27 = vadd.f32 %v4385_v56, %v18084_v10  ;;  %v13246_v16 = vadd.f32 %v4386_v13, %v18086_v46  ;;  %v13249_v63 = vadd.f32 %v4387_v50, %v18088_v47  ;;  %v18090_v20 = vld [vmem:[#allocation126_spill] sm:$0xff]  ;;  %v18099_v13 = vld [vmem:[#allocation137_spill] sm:$0xff] }
 0x3a0   : > { %18077 = vst [vmem:[#allocation62_spill] sm:$0xff] %v13225_v48  ;;  %18079 = vst [vmem:[#allocation33_spill] sm:$0xff] %v13228_v24  ;;  %v13252_v11 = vadd.f32 %v4388_v58, %v18090_v20  ;;  %v18092_v1 = vld [vmem:[#allocation10_spill] sm:$0xff]  ;;  %v4071_v57 = vadd.f32 %v4070_v8, %v4069_v52  ;;  %v18101_v47 = vld [vmem:[#allocation17_spill] sm:$0xff]  ;;  %v4051_v59 = vmul.f32 %v13087_v15, %v13087_v15  ;;  %v18164_v44 = vrot.slane %v18099_v13, 2 }
 0x3a1   : > { %18081 = vst [vmem:[#allocation70_spill] sm:$0xff] %v13231_v41  ;;  %18083 = vst [vmem:[#allocation39_spill] sm:$0xff] %v13235_v61  ;;  %v13255_v17 = vadd.f32 %v4389_v42, %v18092_v1  ;;  %v18094_v7 = vld [vmem:[#allocation110_spill] sm:$0xff]  ;;  %v13268_v58 = vsub.f32 %v18101_v47, %v13045_v60  ;;  %v4046_v42 = vmul.f32 %v13235_v61, %v13235_v61  ;;  %v18103_v20 = vld [vmem:[#allocation63_spill] sm:$0xff] }
 0x3a2   : > { %18085 = vst [vmem:[#allocation67_spill] sm:$0xff] %v13241_v27  ;;  %18087 = vst [vmem:[#allocation49_spill] sm:$0xff] %v13246_v16  ;;  %v13258_v45 = vadd.f32 %v4390_v53, %v18094_v7  ;;  %v18096_v56 = vld [vmem:[#allocation78_spill] sm:$0xff]  ;;  %v4073_v53 = vsel %vm1537_vm2, %v4044_v3, 0.0  ;;  %v4072_v8 = vadd.f32 %v4071_v57, %v4043_v25  ;;  %v18104_v52 = vld [vmem:[#allocation37_spill] sm:$0xff] }
 0x3a3   : > { %18089 = vst [vmem:[#allocation97_spill] sm:$0xff] %v13249_v63  ;;  %18091 = vst [vmem:[#allocation114_spill] sm:$0xff] %v13252_v11  ;;  %v13261_v10 = vadd.f32 %v4391_v31, %v18096_v56  ;;  %v18098_v43 = vld [vmem:[#allocation134_spill] sm:$0xff]  ;;  %v4045_v31 = vmul.f32 %v13067_v12, %v13067_v12  ;;  %v18105_v56 = vld [vmem:[#allocation109_spill] sm:$0xff]  ;;  %v4048_v35 = vmul.f32 %v13268_v58, %v13268_v58  ;;  %v4076_v47 = vsel %vm1537_vm2, %v4046_v42, 0.0 }
 0x3a4   : > { %18093 = vst [vmem:[#allocation141_spill] sm:$0xff] %v13255_v17  ;;  %18095 = vst [vmem:[#allocation98_spill] sm:$0xff] %v13258_v45  ;;  %v18106_v50 = vld [vmem:[#allocation125_spill] sm:$0xff]  ;;  %v18109_v45 = vld [vmem:[#allocation15_spill] sm:$0xff]  ;;  %v4074_v17 = vadd.f32 %v4073_v53, %v4072_v8  ;;  %v4047_v53 = vmul.f32 %v13075_v34, %v13075_v34  ;;  %v18132_v29 = vrot.slane %v18098_v43, 2 }
 0x3a5   : > { %18097 = vst [vmem:[#allocation129_spill] sm:$0xff] %v13261_v10  ;;  %18102 = vst [vmem:[#allocation48_spill] sm:$0xff] %v13268_v58  ;;  %v18110_v3 = vld [vmem:[#allocation74_spill] sm:$0xff]  ;;  %v18111_v1 = vld [vmem:[#allocation123_spill] sm:$0xff]  ;;  %v18145_v2 = vrot.slane %v18106_v50, 2 }
 0x3a6   : > { %v18112_v16 = vld [vmem:[#allocation119_spill] sm:$0xff]  ;;  %v18113_v57 = vld [vmem:[#allocation66_spill] sm:$0xff]  ;;  %v4075_v8 = vadd.f32 %v4074_v17, %v4045_v31  ;;  %v18116_v11 = vld [vmem:[#allocation72_spill] sm:$0xff] }
 0x3a7   : > { %v13287_v25 = vsub.f32 %v18113_v57, %v13045_v60  ;;  %v18115_v46 = vld [vmem:[#allocation115_spill] sm:$0xff]  ;;  %v4434_v61 = vrot.slane %v18116_v11, 2  ;;  %v18117_v63 = vld [vmem:[#allocation69_spill] sm:$0xff]  ;;  %v18119_v41 = vld [vmem:[#allocation76_spill] sm:$0xff]  ;;  %v18157_v14 = vrot.slane %v18112_v16, 2 }
 0x3a8   : > { %v4435_v7 = vrot.slane %v18117_v63, 2  ;;  %v18118_v12 = vld [vmem:[#allocation53_spill] sm:$0xff]  ;;  %v4437_v57 = vrot.slane %v18119_v41, 2  ;;  %v18120_v24 = vld [vmem:[#allocation88_spill] sm:$0xff]  ;;  %v4077_v33 = vadd.f32 %v4076_v47, %v4075_v8  ;;  %v18122_v42 = vld [vmem:[#allocation34_spill] sm:$0xff]  ;;  %v4079_v41 = vsel %vm1537_vm2, %v4048_v35, 0.0 }
 0x3a9   : > { %18114 = vst [vmem:[#allocation127_spill] sm:$0xff] %v13287_v25  ;;  %v4436_v27 = vrot.slane %v18118_v12, 2  ;;  %v4438_v48 = vrot.slane %v18120_v24, 2  ;;  %v18121_v30 = vld [vmem:[#allocation9_spill] sm:$0xff]  ;;  %v4440_v40 = vrot.slane %v18122_v42, 2  ;;  %v18123_v10 = vld [vmem:[#allocation19_spill] sm:$0xff]  ;;  %v4050_v31 = vmul.f32 %v13287_v25, %v13287_v25 }
 0x3aa   : > { %v4439_v58 = vrot.slane %v18121_v30, 2  ;;  %v4441_v26 = vrot.slane %v18123_v10, 2  ;;  %v18124_v19 = vld [vmem:[#allocation95_spill] sm:$0xff]  ;;  %v18125_v17 = vld [vmem:[#allocation21_spill] sm:$0xff]  ;;  %v4049_v47 = vmul.f32 %v13079_v18, %v13079_v18  ;;  %v4078_v8 = vadd.f32 %v4077_v33, %v4047_v53  ;;  %v18129_v10 = vld [vmem:[#allocation20_spill] sm:$0xff] }
 0x3ab   : > { %v4442_v34 = vrot.slane %v18124_v19, 2  ;;  %v13306_v11 = vsub.f32 %v18125_v17, %v13045_v60  ;;  %v18127_v12 = vld [vmem:[#allocation107_spill] sm:$0xff]  ;;  %v18128_v42 = vld [vmem:[#allocation65_spill] sm:$0xff]  ;;  %v4445_v63 = vrot.slane %v18129_v10, 2  ;;  %v18131_v28 = vld [vmem:[#allocation94_spill] sm:$0xff]  ;;  %v4448_v25 = vsel %vm806_vm1, %v18132_v29, %v4434_v61 }
 0x3ac   : > { %v4443_v24 = vrot.slane %v18127_v12, 2  ;;  %v4444_v30 = vrot.slane %v18128_v42, 2  ;;  %v18130_v19 = vld [vmem:[#allocation91_spill] sm:$0xff]  ;;  %v4447_v17 = vrot.slane %v18131_v28, 2  ;;  %v18133_v35 = vrot.slane %v18099_v13, 2 }
 0x3ad   : > { %18126 = vst [vmem:[#allocation84_spill] sm:$0xff] %v13306_v11  ;;  %v4446_v54 = vrot.slane %v18130_v19, 2  ;;  %v4080_v33 = vadd.f32 %v4079_v41, %v4078_v8  ;;  %v18135_v53 = vrot.slane %v18100_v39, 2  ;;  %v18137_v28 = vrot.slane %v18103_v20, 2  ;;  %v18141_v41 = vld [vmem:[#allocation111_spill] sm:$0xff] }
 0x3ae   : > { %v13326_v12 = vsel %vm806_vm1, %v18133_v35, %v4435_v7  ;;  %v18139_v29 = vrot.slane %v18104_v52, 2  ;;  %v13348_v8 = vsub.f32 %v18141_v41, %v13045_v60  ;;  %v4052_v35 = vmul.f32 %v13306_v11, %v13306_v11 }
 0x3af   : > { %18134 = vst [vmem:[#allocation90_spill] sm:$0xff] %v13326_v12  ;;  %v13332_v18 = vsel %vm806_vm1, %v18135_v53, %v4436_v27  ;;  %v13338_v19 = vsel %vm806_vm1, %v18137_v28, %v4437_v57  ;;  %v4082_v53 = vsel %vm1537_vm2, %v4050_v31, 0.0  ;;  %v18143_v42 = vrot.slane %v18105_v56, 2 }
 0x3b0   : > { %18136 = vst [vmem:[#allocation22_spill] sm:$0xff] %v13332_v18  ;;  %18138 = vst [vmem:[#allocation24_spill] sm:$0xff] %v13338_v19  ;;  %v13344_v10 = vsel %vm806_vm1, %v18139_v29, %v4438_v48  ;;  %v4081_v29 = vadd.f32 %v4080_v33, %v4049_v47  ;;  %v13365_v41 = vsel %vm806_vm1, %v18145_v2, %v4440_v40  ;;  %v18147_v11 = vrot.slane %v18107_v49, 2 }
 0x3b1   : > { %18140 = vst [vmem:[#allocation120_spill] sm:$0xff] %v13344_v10  ;;  %18142 = vst [vmem:[#allocation128_spill] sm:$0xff] %v13348_v8  ;;  %v13357_v28 = vsel %vm806_vm1, %v18143_v42, %v4439_v58  ;;  %v13377_v42 = vsel %vm806_vm1, %v18149_v6, %v4442_v34  ;;  %v18151_v47 = vrot.slane %v18109_v45, 2  ;;  %v18153_v2 = vrot.slane %v18110_v3, 2 }
 0x3b2   : > { %18144 = vst [vmem:[#allocation121_spill] sm:$0xff] %v13357_v28  ;;  %18146 = vst [vmem:[#allocation118_spill] sm:$0xff] %v13365_v41  ;;  %v13371_v31 = vsel %vm806_vm1, %v18147_v11, %v4441_v26  ;;  %v18155_v11 = vrot.slane %v18111_v1, 2  ;;  %v4083_v6 = vadd.f32 %v4082_v53, %v4081_v29  ;;  %v13401_v37 = vsel %vm806_vm1, %v18157_v14, %v4446_v54 }
 0x3b3   : > { %18148 = vst [vmem:[#allocation77_spill] sm:$0xff] %v13371_v31  ;;  %18150 = vst [vmem:[#allocation40_spill] sm:$0xff] %v13377_v42  ;;  %v13383_v33 = vsel %vm806_vm1, %v18151_v47, %v4443_v24  ;;  %v13389_v15 = vsel %vm806_vm1, %v18153_v2, %v4444_v30  ;;  %v18159_v47 = vrot.slane %v18115_v46, 2  ;;  %v18161_v2 = vrot.slane %v18098_v43, 2 }
 0x3b4   : > { %18152 = vst [vmem:[#allocation144_spill] sm:$0xff] %v13383_v33  ;;  %18154 = vst [vmem:[#allocation89_spill] sm:$0xff] %v13389_v15  ;;  %v13395_v5 = vsel %vm806_vm1, %v18155_v11, %v4445_v63  ;;  %v18162_v11 = vld [vmem:[#allocation50_spill] sm:$0xff]  ;;  %v4054_v29 = vmul.f32 %v13348_v8, %v13348_v8  ;;  %v4085_v14 = vsel %vm1537_vm2, %v4052_v35, 0.0  ;;  %v4053_v43 = vmul.f32 %v13091_v0, %v13091_v0 }
 0x3b5   : > { %18156 = vst [vmem:[#allocation14_spill] sm:$0xff] %v13395_v5  ;;  %18158 = vst [vmem:[#allocation42_spill] sm:$0xff] %v13401_v37  ;;  %v13407_v22 = vsel %vm806_vm1, %v18159_v47, %v4447_v17  ;;  %v4462_v4 = vsel %vm806_vm1, %v4434_v61, %v18161_v2  ;;  %v13415_v53 = vsub.f32 %v18162_v11, %v13045_v60  ;;  %v18166_v61 = vrot.slane %v18100_v39, 2 }
 0x3b6   : > { %18160 = vst [vmem:[#allocation79_spill] sm:$0xff] %v13407_v22  ;;  %v13424_v47 = vsel %vm806_vm1, %v4435_v7, %v18164_v44  ;;  %v4084_v32 = vadd.f32 %v4083_v6, %v4051_v59  ;;  %v18168_v11 = vrot.slane %v18103_v20, 2  ;;  %v18170_v8 = vrot.slane %v18104_v52, 2 }
 0x3b7   : > { %18163 = vst [vmem:[#allocation93_spill] sm:$0xff] %v13415_v53  ;;  %18165 = vst [vmem:[#allocation126_spill] sm:$0xff] %v13424_v47  ;;  %v13432_v2 = vsel %vm806_vm1, %v4436_v27, %v18166_v61  ;;  %v18172_v59 = vrot.slane %v18105_v56, 2  ;;  %v18174_v27 = vrot.slane %v18106_v50, 2 }
 0x3b8   : > { %18167 = vst [vmem:[#allocation10_spill] sm:$0xff] %v13432_v2  ;;  %v13438_v35 = vsel %vm806_vm1, %v4437_v57, %v18168_v11  ;;  %v13444_v44 = vsel %vm806_vm1, %v4438_v48, %v18170_v8  ;;  %v18176_v57 = vrot.slane %v18107_v49, 2  ;;  %v4086_v48 = vadd.f32 %v4085_v14, %v4084_v32  ;;  %v18184_v32 = vld [vmem:[#allocation103_spill] sm:$0xff] }
 0x3b9   : > { %18169 = vst [vmem:[#allocation110_spill] sm:$0xff] %v13438_v35  ;;  %18171 = vst [vmem:[#allocation78_spill] sm:$0xff] %v13444_v44  ;;  %v13450_v7 = vsel %vm806_vm1, %v4439_v58, %v18172_v59  ;;  %v13456_v6 = vsel %vm806_vm1, %v4440_v40, %v18174_v27  ;;  %v18178_v8 = vrot.slane %v18108_v55, 2  ;;  %v18180_v58 = vrot.slane %v18109_v45, 2 }
 0x3ba   : > { %18173 = vst [vmem:[#allocation134_spill] sm:$0xff] %v13450_v7  ;;  %18175 = vst [vmem:[#allocation137_spill] sm:$0xff] %v13456_v6  ;;  %v13462_v61 = vsel %vm806_vm1, %v4441_v26, %v18176_v57  ;;  %v18182_v40 = vrot.slane %v18110_v3, 2  ;;  %v13484_v26 = vsub.f32 %v18184_v32, %v13045_v60  ;;  %v4088_v14 = vsel %vm1537_vm2, %v4054_v29, 0.0 }
 0x3bb   : > { %18177 = vst [vmem:[#allocation100_spill] sm:$0xff] %v13462_v61  ;;  %v13468_v11 = vsel %vm806_vm1, %v4442_v34, %v18178_v8  ;;  %v13474_v59 = vsel %vm806_vm1, %v4443_v24, %v18180_v58  ;;  %v4056_v34 = vmul.f32 %v13415_v53, %v13415_v53  ;;  %v18186_v57 = vrot.slane %v18111_v1, 2  ;;  %v18192_v53 = vld [vmem:[#allocation92_spill] sm:$0xff] }
 0x3bc   : > { %18179 = vst [vmem:[#allocation17_spill] sm:$0xff] %v13468_v11  ;;  %18181 = vst [vmem:[#allocation63_spill] sm:$0xff] %v13474_v59  ;;  %v13480_v27 = vsel %vm806_vm1, %v4444_v30, %v18182_v40  ;;  %v4055_v8 = vmul.f32 %v13099_v38, %v13099_v38  ;;  %v4087_v30 = vadd.f32 %v4086_v48, %v4053_v43  ;;  %v18188_v58 = vrot.slane %v18112_v16, 2 }
 0x3bd   : > { %18183 = vst [vmem:[#allocation37_spill] sm:$0xff] %v13480_v27  ;;  %18185 = vst [vmem:[#allocation109_spill] sm:$0xff] %v13484_v26  ;;  %v13493_v24 = vsel %vm806_vm1, %v4445_v63, %v18186_v57  ;;  %v18190_v32 = vrot.slane %v18115_v46, 2  ;;  %v4480_v0 = vmul.f32 %v18192_v53, %v4448_v25  ;;  %v4481_v63 = vmul.f32 %v18192_v53, %v4462_v4  ;;  %v18193_v25 = vld [vmem:[#allocation130_spill] sm:$0xff] }
 0x3be   : > { %18187 = vst [vmem:[#allocation125_spill] sm:$0xff] %v13493_v24  ;;  %v13501_v40 = vsel %vm806_vm1, %v4446_v54, %v18188_v58  ;;  %v4482_v57 = vmul.f32 %v18192_v53, %v13326_v12  ;;  %v4483_v43 = vmul.f32 %v18192_v53, %v13424_v47  ;;  %v4089_v48 = vadd.f32 %v4088_v14, %v4087_v30 }
 0x3bf   : > { %18189 = vst [vmem:[#allocation142_spill] sm:$0xff] %v13501_v40  ;;  %v13507_v29 = vsel %vm806_vm1, %v4447_v17, %v18190_v32  ;;  %v4484_v54 = vmul.f32 %v18192_v53, %v13332_v18  ;;  %v4485_v58 = vmul.f32 %v18192_v53, %v13432_v2  ;;  %v4486_v17 = vmul.f32 %v18192_v53, %v13338_v19 }
 0x3c0   : > { %18191 = vst [vmem:[#allocation64_spill] sm:$0xff] %v13507_v29  ;;  %v13523_v32 = vsub.f32 %v18193_v25, %v13045_v60  ;;  %v4058_v4 = vmul.f32 %v13484_v26, %v13484_v26  ;;  %v4091_v38 = vsel %vm1537_vm2, %v4056_v34, 0.0  ;;  %v4487_v14 = vmul.f32 %v18192_v53, %v13438_v35 }
 0x3c1   : > { %v4057_v30 = vmul.f32 %v13103_v9, %v13103_v9  ;;  %v4090_v18 = vadd.f32 %v4089_v48, %v4055_v8  ;;  %v4488_v2 = vmul.f32 %v18192_v53, %v13344_v10  ;;  %v4489_v19 = vmul.f32 %v18192_v53, %v13444_v44  ;;  %v18195_v8 = vld [vmem:[#allocation122_spill] sm:$0xff] }
 0x3c2   : > { %18194 = vst [vmem:[#allocation15_spill] sm:$0xff] %v13523_v32  ;;  %v4490_v25 = vmul.f32 %v18192_v53, %v13357_v28  ;;  %v4491_v26 = vmul.f32 %v18192_v53, %v13450_v7  ;;  %v4492_v34 = vmul.f32 %v18192_v53, %v13365_v41  ;;  %v4493_v35 = vmul.f32 %v18192_v53, %v13456_v6  ;;  %v18197_v10 = vld [vmem:[#allocation38_spill] sm:$0xff] }
 0x3c3   : > { %v13546_v48 = vsub.f32 %v18195_v8, %v13045_v60  ;;  %v4092_v9 = vadd.f32 %v4091_v38, %v4090_v18  ;;  %v4494_v44 = vmul.f32 %v18192_v53, %v13371_v31  ;;  %v4495_v28 = vmul.f32 %v18192_v53, %v13462_v61  ;;  %v18199_v41 = vld [vmem:[#allocation82_spill] sm:$0xff] }
 0x3c4   : > { %v13554_v7 = vsub.f32 %v18197_v10, %v13045_v60  ;;  %v13558_v47 = vsub.f32 %v18199_v41, %v13045_v60  ;;  %v4060_v6 = vmul.f32 %v13523_v32, %v13523_v32  ;;  %v4094_v8 = vsel %vm1537_vm2, %v4058_v4, 0.0 }
 0x3c5   : > { %18196 = vst [vmem:[#allocation74_spill] sm:$0xff] %v13546_v48  ;;  %v4059_v18 = vmul.f32 %v13111_v62, %v13111_v62  ;;  %v4093_v38 = vadd.f32 %v4092_v9, %v4057_v30  ;;  %v4496_v61 = vmul.f32 %v18192_v53, %v13377_v42  ;;  %v4497_v10 = vmul.f32 %v18192_v53, %v13468_v11 }
 0x3c6   : > { %18198 = vst [vmem:[#allocation123_spill] sm:$0xff] %v13554_v7  ;;  %18200 = vst [vmem:[#allocation119_spill] sm:$0xff] %v13558_v47  ;;  %v4498_v31 = vmul.f32 %v18192_v53, %v13383_v33  ;;  %v4499_v60 = vmul.f32 %v18192_v53, %v13474_v59  ;;  %v4500_v41 = vmul.f32 %v18192_v53, %v13389_v15  ;;  %v4097_v15 = vsel %vm1537_vm2, %v4060_v6, 0.0 }
 0x3c7   : > { %v4501_v4 = vmul.f32 %v18192_v53, %v13480_v27  ;;  %v4062_v9 = vmul.f32 %v13546_v48, %v13546_v48  ;;  %v4095_v30 = vadd.f32 %v4094_v8, %v4093_v38  ;;  %v4502_v42 = vmul.f32 %v18192_v53, %v13395_v5 }
 0x3c8   : > { %v4503_v11 = vmul.f32 %v18192_v53, %v13493_v24  ;;  %v4064_v33 = vmul.f32 %v13554_v7, %v13554_v7  ;;  %v4066_v59 = vmul.f32 %v13558_v47, %v13558_v47  ;;  %v4504_v27 = vmul.f32 %v18192_v53, %v13401_v37  ;;  %v18201_v37 = vld [vmem:[#allocation113_spill] sm:$0xff] }
 0x3c9   : > { %v4061_v8 = vmul.f32 %v13115_v36, %v13115_v36  ;;  %v4096_v38 = vadd.f32 %v4095_v30, %v4059_v18  ;;  %v4505_v5 = vmul.f32 %v18192_v53, %v13501_v40  ;;  %v4506_v24 = vmul.f32 %v18192_v53, %v13407_v22  ;;  %v18202_v36 = vld [vmem:[#allocation112_spill] sm:$0xff] }
 0x3ca   : > { %v4507_v7 = vmul.f32 %v18192_v53, %v13507_v29  ;;  %v13599_v47 = vadd.f32 %v4480_v0, %v13154_v23  ;;  %v13602_v6 = vadd.f32 %v4481_v63, %v13161_v21  ;;  %v13605_v48 = vadd.f32 %v4482_v57, %v18201_v37  ;;  %v18203_v30 = vld [vmem:[#allocation56_spill] sm:$0xff]  ;;  %v18205_v21 = vld [vmem:[#allocation73_spill] sm:$0xff]  ;;  %v18206_v57 = vld [vmem:[#allocation54_spill] sm:$0xff] }
 0x3cb   : > { %v4063_v18 = vmul.f32 %v18202_v36, %v18202_v36  ;;  %v4065_v40 = vmul.f32 %v18203_v30, %v18203_v30  ;;  %v4098_v32 = vadd.f32 %v4097_v15, %v4096_v38  ;;  %v4100_v22 = vsel %vm1537_vm2, %v4062_v9, 0.0  ;;  %v18204_v0 = vld [vmem:[#allocation60_spill] sm:$0xff]  ;;  %v18207_v36 = vld [vmem:[#allocation102_spill] sm:$0xff]  ;;  %v18208_v15 = vld [vmem:[#allocation81_spill] sm:$0xff] }
 0x3cc   : > { %v4103_v53 = vsel %vm1537_vm2, %v4064_v33, 0.0  ;;  %v4106_v23 = vsel %vm1537_vm2, %v4066_v59, 0.0  ;;  %v13615_v29 = vadd.f32 %v4483_v43, %v18204_v0  ;;  %v13618_v63 = vadd.f32 %v4484_v54, %v18205_v21  ;;  %v18209_v9 = vld [vmem:[#allocation11_spill] sm:$0xff]  ;;  %v18210_v59 = vld [vmem:[#allocation13_spill] sm:$0xff] }
 0x3cd   : > { %v4099_v37 = vadd.f32 %v4098_v32, %v4061_v8  ;;  %v13621_v62 = vadd.f32 %v4485_v58, %v18206_v57  ;;  %v13624_v12 = vadd.f32 %v4486_v17, %v18207_v36  ;;  %v13627_v38 = vadd.f32 %v4487_v14, %v18208_v15  ;;  %v18211_v43 = vld [vmem:[#allocation35_spill] sm:$0xff]  ;;  %v18212_v54 = vld [vmem:[#allocation41_spill] sm:$0xff]  ;;  %v18213_v8 = vld [vmem:[#allocation8_spill] sm:$0xff] }
 0x3ce   : > { %v13630_v33 = vadd.f32 %v4488_v2, %v18209_v9  ;;  %v13633_v30 = vadd.f32 %v4489_v19, %v18210_v59  ;;  %v13636_v0 = vadd.f32 %v4490_v25, %v18211_v43  ;;  %v13639_v32 = vadd.f32 %v4491_v26, %v18212_v54  ;;  %v18214_v36 = vld [vmem:[#allocation104_spill] sm:$0xff]  ;;  %v18215_v14 = vld [vmem:[#allocation105_spill] sm:$0xff]  ;;  %v18216_v2 = vld [vmem:[#allocation106_spill] sm:$0xff] }
 0x3cf   : > { %v4101_v58 = vadd.f32 %v4100_v22, %v4099_v37  ;;  %v13642_v21 = vadd.f32 %v4492_v34, %v18213_v8  ;;  %v13645_v17 = vadd.f32 %v4493_v35, %v18214_v36  ;;  %v13648_v57 = vadd.f32 %v4494_v44, %v18215_v14  ;;  %v18217_v19 = vld [vmem:[#allocation43_spill] sm:$0xff]  ;;  %v18219_v26 = vld [vmem:[#allocation62_spill] sm:$0xff]  ;;  %v18220_v37 = vld [vmem:[#allocation33_spill] sm:$0xff] }
 0x3d0   : > { %v13651_v15 = vadd.f32 %v4495_v28, %v18216_v2  ;;  %v13654_v9 = vadd.f32 %v4496_v61, %v18217_v19  ;;  %v18218_v25 = vld [vmem:[#allocation71_spill] sm:$0xff]  ;;  %v13660_v22 = vadd.f32 %v4498_v31, %v18219_v26  ;;  %v13663_v43 = vadd.f32 %v4499_v60, %v18220_v37  ;;  %v18221_v35 = vld [vmem:[#allocation70_spill] sm:$0xff]  ;;  %v18223_v28 = vld [vmem:[#allocation49_spill] sm:$0xff] }
 0x3d1   : > { %v13657_v59 = vadd.f32 %v4497_v10, %v18218_v25  ;;  %v4102_v34 = vadd.f32 %v4101_v58, %v4063_v18  ;;  %v13666_v54 = vadd.f32 %v4500_v41, %v18221_v35  ;;  %v18222_v44 = vld [vmem:[#allocation67_spill] sm:$0xff]  ;;  %v13672_v36 = vadd.f32 %v4502_v42, %v18223_v28  ;;  %v18224_v61 = vld [vmem:[#allocation97_spill] sm:$0xff]  ;;  %v18225_v10 = vld [vmem:[#allocation114_spill] sm:$0xff] }
 0x3d2   : > { %v13669_v8 = vadd.f32 %v4501_v4, %v18222_v44  ;;  %v13675_v14 = vadd.f32 %v4503_v11, %v18224_v61  ;;  %v13678_v2 = vadd.f32 %v4504_v27, %v18225_v10  ;;  %v18226_v31 = vld [vmem:[#allocation141_spill] sm:$0xff]  ;;  %v18228_v58 = vld [vmem:[#allocation98_spill] sm:$0xff]  ;;  %v18232_v4 = vld [vmem:[#allocation16_spill] sm:$0xff] }
 0x3d3   : > { %v13681_v18 = vadd.f32 %v4505_v5, %v18226_v31  ;;  %v4104_v60 = vadd.f32 %v4103_v53, %v4102_v34  ;;  %v13684_v19 = vadd.f32 %v4506_v24, %v18228_v58  ;;  %v18230_v41 = vld [vmem:[#allocation129_spill] sm:$0xff]  ;;  %v4568_v42 = vmul.f32 %v18232_v4, %v18099_v13  ;;  %v18235_v34 = vld [vmem:[#allocation76_spill] sm:$0xff] }
 0x3d4   : > { %v13687_v25 = vadd.f32 %v4507_v7, %v18230_v41  ;;  %v18233_v26 = vld [vmem:[#allocation69_spill] sm:$0xff]  ;;  %v4570_v27 = vmul.f32 %v18232_v4, %v18100_v39  ;;  %v4572_v24 = vmul.f32 %v18232_v4, %v18103_v20  ;;  %v4573_v7 = vmul.f32 %v18232_v4, %v18235_v34  ;;  %v18236_v35 = vld [vmem:[#allocation88_spill] sm:$0xff]  ;;  %v18242_v34 = vld [vmem:[#allocation107_spill] sm:$0xff] }
 0x3d5   : > { %18227 = vst [vmem:[#allocation66_spill] sm:$0xff] %v13681_v18  ;;  %18229 = vst [vmem:[#allocation115_spill] sm:$0xff] %v13684_v19  ;;  %v4569_v11 = vmul.f32 %v18232_v4, %v18233_v26  ;;  %v18234_v37 = vld [vmem:[#allocation53_spill] sm:$0xff]  ;;  %v4105_v53 = vadd.f32 %v4104_v60, %v4065_v40  ;;  %v4574_v13 = vmul.f32 %v18232_v4, %v18104_v52  ;;  %v18238_v40 = vld [vmem:[#allocation34_spill] sm:$0xff] }
 0x3d6   : > { %18231 = vst [vmem:[#allocation72_spill] sm:$0xff] %v13687_v25  ;;  %v4571_v5 = vmul.f32 %v18232_v4, %v18234_v37  ;;  %v4575_v44 = vmul.f32 %v18232_v4, %v18236_v35  ;;  %v4576_v28 = vmul.f32 %v18232_v4, %v18105_v56  ;;  %v18237_v39 = vld [vmem:[#allocation9_spill] sm:$0xff]  ;;  %v4578_v20 = vmul.f32 %v18232_v4, %v18106_v50  ;;  %v18239_v60 = vld [vmem:[#allocation19_spill] sm:$0xff]  ;;  %v13720_v41 = vld [vmem:[%s6442_s17 + $0x398] sm:$0xff] }
 0x3d7   : > { %v4577_v61 = vmul.f32 %v18232_v4, %v18237_v39  ;;  %v4579_v10 = vmul.f32 %v18232_v4, %v18238_v40  ;;  %v4107_v31 = vadd.f32 %v4106_v23, %v4105_v53  ;;  %v4580_v52 = vmul.f32 %v18232_v4, %v18107_v49  ;;  %18240 = vst [vmem:[#allocation21_spill] sm:$0xff] %v13720_v41  ;;  %v18241_v26 = vld [vmem:[#allocation95_spill] sm:$0xff]  ;;  %v18243_v35 = vld [vmem:[#allocation65_spill] sm:$0xff]  ;;  %v18244_v40 = vld [vmem:[#allocation20_spill] sm:$0xff] }
 0x3d8   : > { %v4581_v58 = vmul.f32 %v18232_v4, %v18239_v60  ;;  %v4582_v56 = vmul.f32 %v18232_v4, %v18108_v55  ;;  %v4583_v37 = vmul.f32 %v18232_v4, %v18241_v26  ;;  %v4584_v50 = vmul.f32 %v18232_v4, %v18109_v45  ;;  %v13737_v26 = vld [vmem:[%s6442_s17 + $0x3b8] sm:$0xff]  ;;  %v18247_v25 = vld [vmem:[#allocation94_spill] sm:$0xff] }
 0x3d9   : > { %v4585_v23 = vmul.f32 %v18232_v4, %v18242_v34  ;;  %v4586_v49 = vmul.f32 %v18232_v4, %v18110_v3  ;;  %v4108_v53 = vrot.slane %v4107_v31, 4  ;;  %v4587_v39 = vmul.f32 %v18232_v4, %v18243_v35  ;;  %18245 = vst [vmem:[#allocation111_spill] sm:$0xff] %v13737_v26 }
 0x3da   : > { %v4588_v55 = vmul.f32 %v18232_v4, %v18111_v1  ;;  %v4589_v60 = vmul.f32 %v18232_v4, %v18244_v40  ;;  %v4590_v45 = vmul.f32 %v18232_v4, %v18112_v16  ;;  %v4591_v34 = vmul.f32 %v18232_v4, %v18246_v51 }
 0x3db   : > { %v4592_v3 = vmul.f32 %v18232_v4, %v18115_v46  ;;  %v4593_v35 = vmul.f32 %v18232_v4, %v18247_v25  ;;  %v4109_v19 = vadd.f32 %v4108_v53, %v4107_v31  ;;  %v4594_v1 = vmul.f32 %v13720_v41, %v18232_v4 }
 0x3dc   : > { %v4595_v40 = vmul.f32 %v13737_v26, %v18232_v4  ;;  %v13752_v18 = vadd.f32 %v4568_v42, %v13599_v47  ;;  %v13755_v16 = vadd.f32 %v4569_v11, %v13602_v6  ;;  %v13758_v51 = vadd.f32 %v4570_v27, %v13605_v48  ;;  %v18248_v27 = vld [vmem:[#allocation66_spill] sm:$0xff] }
 0x3dd   : > { %v13761_v46 = vadd.f32 %v4571_v5, %v13615_v29  ;;  %v13764_v25 = vadd.f32 %v4572_v24, %v13618_v63  ;;  %v4110_v31 = vrot.slane %v4109_v19, 2  ;;  %v13767_v53 = vadd.f32 %v4573_v7, %v13621_v62  ;;  %v18249_v24 = vld [vmem:[#allocation115_spill] sm:$0xff] }
 0x3de   : > { %v13770_v4 = vadd.f32 %v4574_v13, %v13624_v12  ;;  %v13773_v47 = vadd.f32 %v4575_v44, %v13627_v38  ;;  %v13776_v6 = vadd.f32 %v4576_v28, %v13630_v33  ;;  %v13779_v48 = vadd.f32 %v4577_v61, %v13633_v30  ;;  %v18254_v44 = vld [vmem:[#allocation30_spill] sm:$0xff]  ;;  %v18255_v28 = vld [vmem:[#allocation139_spill] sm:$0xff] }
 0x3df   : > { %v13782_v29 = vadd.f32 %v4578_v20, %v13636_v0  ;;  %v13785_v63 = vadd.f32 %v4579_v10, %v13639_v32  ;;  %v4111_v62 = vadd.f32 %v4110_v31, %v4109_v19  ;;  %v13788_v42 = vadd.f32 %v4580_v52, %v13642_v21  ;;  %v18256_v61 = vld [vmem:[#allocation135_spill] sm:$0xff] }
 0x3e0   : > { %v13791_v12 = vadd.f32 %v4581_v58, %v13645_v17  ;;  %v13794_v38 = vadd.f32 %v4582_v56, %v13648_v57  ;;  %v13797_v33 = vadd.f32 %v4583_v37, %v13651_v15  ;;  %v13800_v30 = vadd.f32 %v4584_v50, %v13654_v9  ;;  %v18259_v58 = vld [vmem:[#allocation87_spill] sm:$0xff]  ;;  %v18260_v37 = vld [vmem:[#allocation136_spill] sm:$0xff] }
 0x3e1   : > { %v13803_v0 = vadd.f32 %v4585_v23, %v13657_v59  ;;  %v13806_v32 = vadd.f32 %v4586_v49, %v13660_v22  ;;  %v4112_v21 = vrot.slane %v4111_v62, 1  ;;  %v13809_v19 = vadd.f32 %v4587_v39, %v13663_v43  ;;  %v18262_v49 = vld [vmem:[#allocation52_spill] sm:$0xff]  ;;  %v18280_v10 = vld [vmem:[#allocation23_spill] sm:$0xff] }
 0x3e2   : > { %v4637_v17 = vrot.slane %v13720_v41, 1  ;;  %v4651_v57 = vrot.slane %v13737_v26, 1  ;;  %v13814_v15 = vadd.f32 %v4588_v55, %v13666_v54  ;;  %v13817_v9 = vadd.f32 %v4589_v60, %v13669_v8  ;;  %v18251_v54 = vld [vmem:[#allocation72_spill] sm:$0xff] }
 0x3e3   : > { %v13820_v59 = vadd.f32 %v4590_v45, %v13672_v36  ;;  %v13823_v22 = vadd.f32 %v4591_v34, %v13675_v14  ;;  %v4113_v11 = vadd.f32 %v4112_v21, %v4111_v62  ;;  %v13826_v43 = vadd.f32 %v4592_v3, %v13678_v2  ;;  %v18253_v8 = vld [vmem:[#allocation12_spill] sm:$0xff]  ;;  %v18264_v45 = vld [vmem:[#allocation31_spill] sm:$0xff] }
 0x3e4   : > { %v13829_v5 = vadd.f32 %v4593_v35, %v18248_v27  ;;  %v13832_v7 = vadd.f32 %v4594_v1, %v18249_v24  ;;  %v13835_v13 = vadd.f32 %v4595_v40, %v18251_v54  ;;  %v4684_v36 = vmul.f32 %v18254_v44, %v18253_v8  ;;  %v18263_v55 = vld [vmem:[#allocation116_spill] sm:$0xff]  ;;  %v18265_v35 = vld [vmem:[#allocation18_spill] sm:$0xff]  ;;  %v18266_v40 = vld [vmem:[#allocation75_spill] sm:$0xff] }
 0x3e5   : > { %v4685_v14 = vmul.f32 %v18254_v44, %v18255_v28  ;;  %v4686_v20 = vmul.f32 %v18254_v44, %v18256_v61  ;;  %v4114_v2 = vmul.f32 0.0051020407, %v4113_v11  ;;  %v13845_v52 = vsel %vm689_vm0, %v4637_v17, %v4651_v57  ;;  %v18267_v62 = vld [vmem:[#allocation83_spill] sm:$0xff]  ;;  %v18269_v11 = vld [vmem:[#allocation132_spill] sm:$0xff]  ;;  %v18272_v61 = vld [vmem:[#allocation26_spill] sm:$0xff] }
 0x3e6   : > { %18250 = vst [vmem:[#allocation50_spill] sm:$0xff] %v13832_v7  ;;  %18252 = vst [vmem:[#allocation103_spill] sm:$0xff] %v13835_v13  ;;  %v4687_v56 = vmul.f32 %v18254_v44, %v18259_v58  ;;  %v4688_v50 = vmul.f32 %v18254_v44, %v18260_v37  ;;  %v13853_v23 = vsel %vm689_vm0, %v4651_v57, %v4637_v17  ;;  %v18268_v17 = vld [vmem:[#allocation86_spill] sm:$0xff]  ;;  %v18270_v24 = vld [vmem:[#allocation80_spill] sm:$0xff] }
 0x3e7   : > { %18258 = vst [vmem:[#allocation92_spill] sm:$0xff] %v13845_v52  ;;  %18261 = vst [vmem:[#allocation130_spill] sm:$0xff] %v13853_v23  ;;  %v4689_v39 = vmul.f32 %v18254_v44, %v18262_v49  ;;  %v4690_v60 = vmul.f32 %v18254_v44, %v18263_v55  ;;  %v4691_v34 = vmul.f32 %v18254_v44, %v18264_v45  ;;  %v4117_v3 = vadd.f32 0.001, %v4114_v2  ;;  %v18271_v8 = vld [vmem:[#allocation32_spill] sm:$0xff]  ;;  %v18273_v58 = vld [vmem:[#allocation101_spill] sm:$0xff] }
 0x3e8   : > { %v4692_v1 = vmul.f32 %v18254_v44, %v18265_v35  ;;  %v4693_v31 = vmul.f32 %v18254_v44, %v18266_v40  ;;  %v4694_v21 = vmul.f32 %v18254_v44, %v18267_v62  ;;  %v4695_v57 = vmul.f32 %v18254_v44, %v18268_v17  ;;  %v18274_v49 = vld [vmem:[#allocation85_spill] sm:$0xff]  ;;  %v18275_v45 = vld [vmem:[#allocation138_spill] sm:$0xff]  ;;  %v18276_v40 = vld [vmem:[#allocation99_spill] sm:$0xff] }
 0x3e9   : > { %v4696_v27 = vmul.f32 %v18254_v44, %v18269_v11  ;;  %v4697_v54 = vmul.f32 %v18254_v44, %v18270_v24  ;;  %v4698_v28 = vmul.f32 %v18254_v44, %v18271_v8  ;;  %6049 = vrsqrt.f32 %v4117_v3  ;;  %v18277_v17 = vld [vmem:[#allocation131_spill] sm:$0xff]  ;;  %v18282_v7 = vld [vmem:[#allocation61_spill] sm:$0xff] }
 0x3ea   : > { %v4699_v2 = vmul.f32 %v18254_v44, %v18272_v61  ;;  %v4700_v37 = vmul.f32 %v18254_v44, %v18273_v58  ;;  %v4701_v55 = vmul.f32 %v18254_v44, %v18274_v49  ;;  %v4702_v35 = vmul.f32 %v18254_v44, %v18275_v45  ;;  %v18278_v24 = vld [vmem:[#allocation47_spill] sm:$0xff] }
 0x3eb   : > { %v4703_v62 = vmul.f32 %v18254_v44, %v18276_v40  ;;  %v4704_v11 = vmul.f32 %v18254_v44, %v18277_v17  ;;  %v4705_v3 = vmul.f32 %v18254_v44, %v18278_v24  ;;  %v18279_v8 = vld [vmem:[#allocation59_spill] sm:$0xff]  ;;  %v4707_v58 = vmul.f32 %v18254_v44, %v18280_v10 }
 0x3ec   : > { %v4706_v61 = vmul.f32 %v18254_v44, %v18279_v8  ;;  %v18281_v13 = vld [vmem:[#allocation143_spill] sm:$0xff]  ;;  %v4709_v45 = vmul.f32 %v18254_v44, %v18282_v7  ;;  %v4710_v40 = vmul.f32 %v18254_v44, %v13845_v52  ;;  %v4711_v17 = vmul.f32 %v18254_v44, %v13853_v23 }
 0x3ed   : > { %v4708_v49 = vmul.f32 %v18254_v44, %v18281_v13  ;;  %v13902_v24 = vadd.f32 %v4684_v36, %v13752_v18  ;;  %v13905_v8 = vadd.f32 %v4685_v14, %v13755_v16  ;;  %v13908_v10 = vadd.f32 %v4686_v20, %v13758_v51  ;;  %v18283_v20 = vld [vmem:[#allocation50_spill] sm:$0xff] }
 0x3ee   : > { %v13911_v13 = vadd.f32 %v4687_v56, %v13761_v46  ;;  %v13914_v7 = vadd.f32 %v4688_v50, %v13764_v25  ;;  %v13917_v52 = vadd.f32 %v4689_v39, %v13767_v53  ;;  %v13920_v44 = vadd.f32 %v4690_v60, %v13770_v4  ;;  %v18289_v60 = vld [vmem:[#allocation90_spill] sm:$0xff] }
 0x3ef   : > { %v13923_v18 = vadd.f32 %v4691_v34, %v13773_v47  ;;  %v13926_v16 = vadd.f32 %v4692_v1, %v13776_v6  ;;  %v13929_v51 = vadd.f32 %v4693_v31, %v13779_v48  ;;  %v13932_v46 = vadd.f32 %v4694_v21, %v13782_v29  ;;  %v18290_v34 = vld [vmem:[#allocation27_spill] sm:$0xff]  ;;  %v18291_v1 = vld [vmem:[#allocation126_spill] sm:$0xff] }
 0x3f0   : > { %v13935_v25 = vadd.f32 %v4695_v57, %v13785_v63  ;;  %v13938_v53 = vadd.f32 %v4696_v27, %v13788_v42  ;;  %v13941_v4 = vadd.f32 %v4697_v54, %v13791_v12  ;;  %v13944_v47 = vadd.f32 %v4698_v28, %v13794_v38  ;;  %v18292_v31 = vld [vmem:[#allocation22_spill] sm:$0xff] }
 0x3f1   : > { %v13947_v6 = vadd.f32 %v4699_v2, %v13797_v33  ;;  %v13950_v48 = vadd.f32 %v4700_v37, %v13800_v30  ;;  %v13953_v29 = vadd.f32 %v4701_v55, %v13803_v0  ;;  %v13956_v63 = vadd.f32 %v4702_v35, %v13806_v32  ;;  %v18296_v54 = vld [vmem:[#allocation10_spill] sm:$0xff]  ;;  %v18297_v2 = vld [vmem:[#allocation24_spill] sm:$0xff] }
 0x3f2   : > { %v13959_v42 = vadd.f32 %v4703_v62, %v13809_v19  ;;  %v4753_v12 = vrot.slane %v13720_v41, 2  ;;  %v4767_v38 = vrot.slane %v13737_v26, 2  ;;  %v13964_v36 = vadd.f32 %v4704_v11, %v13814_v15  ;;  %v18285_v15 = vld [vmem:[#allocation103_spill] sm:$0xff]  ;;  %v18298_v55 = vld [vmem:[#allocation6_spill] sm:$0xff]  ;;  %v18342_v41 = vld [vmem:[#allocation37_spill] sm:$0xff] }
 0x3f3   : > { %v13967_v33 = vadd.f32 %v4705_v3, %v13817_v9  ;;  %v13970_v30 = vadd.f32 %v4706_v61, %v13820_v59  ;;  %v13973_v0 = vadd.f32 %v4707_v58, %v13823_v22  ;;  %v6050_v32 = vpop.eup %6049  ;;  %v13976_v19 = vadd.f32 %v4708_v49, %v13826_v43  ;;  %v18287_v9 = vld [vmem:[#allocation108_spill] sm:$0xff]  ;;  %v18299_v62 = vld [vmem:[#allocation110_spill] sm:$0xff] }
 0x3f4   : > { %v13979_v14 = vadd.f32 %v4709_v45, %v13829_v5  ;;  %v13982_v56 = vadd.f32 %v4710_v40, %v18283_v20  ;;  %v13985_v50 = vadd.f32 %v4711_v17, %v18285_v15  ;;  %v18288_v39 = vrot.slane %v18287_v9, 2  ;;  %v18300_v3 = vld [vmem:[#allocation120_spill] sm:$0xff]  ;;  %v18301_v58 = vld [vmem:[#allocation78_spill] sm:$0xff]  ;;  %v18302_v45 = vld [vmem:[#allocation121_spill] sm:$0xff] }
 0x3f5   : > { %v13991_v22 = vmul.f32 %v18290_v34, %v18289_v60  ;;  %v13995_v43 = vmul.f32 %v18290_v34, %v18291_v1  ;;  %v13999_v5 = vmul.f32 %v18290_v34, %v18292_v31  ;;  %v14003_v57 = vsel %vm806_vm1, %v4753_v12, %v4767_v38  ;;  %v18303_v17 = vld [vmem:[#allocation134_spill] sm:$0xff]  ;;  %v18305_v20 = vld [vmem:[#allocation137_spill] sm:$0xff]  ;;  %v18306_v9 = vld [vmem:[#allocation44_spill] sm:$0xff] }
 0x3f6   : > { %18284 = vst [vmem:[#allocation122_spill] sm:$0xff] %v13982_v56  ;;  %18286 = vst [vmem:[#allocation38_spill] sm:$0xff] %v13985_v50  ;;  %v4119_v59 = vmul.f32 %v6050_v32, %v18288_v39  ;;  %v14007_v27 = vsel %vm806_vm1, %v4767_v38, %v4753_v12  ;;  %v14011_v28 = vmul.f32 %v18290_v34, %v18296_v54  ;;  %v18304_v38 = vld [vmem:[#allocation118_spill] sm:$0xff]  ;;  %v18309_v54 = vld [vmem:[#allocation96_spill] sm:$0xff] }
 0x3f7   : > { %18294 = vst [vmem:[#allocation82_spill] sm:$0xff] %v14003_v57  ;;  %18295 = vst [vmem:[#allocation113_spill] sm:$0xff] %v14007_v27  ;;  %v14015_v37 = vmul.f32 %v18290_v34, %v18297_v2  ;;  %v14022_v11 = vmul.f32 %v18290_v34, %v18299_v62  ;;  %v14026_v61 = vmul.f32 %v18290_v34, %v18300_v3  ;;  %v18308_v1 = vld [vmem:[#allocation58_spill] sm:$0xff]  ;;  %v18310_v62 = vld [vmem:[#allocation55_spill] sm:$0xff] }
 0x3f8   : > { %v14018_v35 = vrot.slane %v4119_v59, %v18298_v55  ;;  %v14030_v49 = vmul.f32 %v18290_v34, %v18301_v58  ;;  %v14034_v40 = vmul.f32 %v18290_v34, %v18302_v45  ;;  %v14038_v12 = vmul.f32 %v18290_v34, %v18303_v17  ;;  %v18307_v59 = vld [vmem:[#allocation45_spill] sm:$0xff]  ;;  %v18311_v58 = vld [vmem:[#allocation46_spill] sm:$0xff]  ;;  %v18312_v17 = vld [vmem:[#allocation68_spill] sm:$0xff] }
 0x3f9   : > { %v14042_v32 = vmul.f32 %v18290_v34, %v18304_v38  ;;  %v14046_v15 = vmul.f32 %v18290_v34, %v18305_v20  ;;  %v18313_v20 = vld [vmem:[#allocation39_spill] sm:$0xff] }
 0x3fa   : > { %v4126_v39 = vmul.f32 %v14018_v35, %v18306_v9  ;;  %v4127_v60 = vmul.f32 %v14018_v35, %v18307_v59  ;;  %v4128_v31 = vmul.f32 %v14018_v35, %v18308_v1  ;;  %v4129_v2 = vmul.f32 %v14018_v35, %v18309_v54  ;;  %v18314_v59 = vld [vmem:[#allocation133_spill] sm:$0xff] }
 0x3fb   : > { %v4130_v3 = vmul.f32 %v14018_v35, %v18310_v62  ;;  %v4131_v45 = vmul.f32 %v14018_v35, %v18311_v58  ;;  %v4132_v38 = vmul.f32 %v14018_v35, %v18312_v17  ;;  %v4133_v9 = vmul.f32 %v14018_v35, %v18313_v20 }
 0x3fc   : > { %v4160_v55 = vadd.f32 %v18314_v59, %v4126_v39  ;;  %v4161_v1 = vadd.f32 %v18314_v59, %v4127_v60  ;;  %v4162_v54 = vadd.f32 %v18314_v59, %v4128_v31  ;;  %v4163_v62 = vadd.f32 %v18314_v59, %v4129_v2  ;;  %v18315_v39 = vld [vmem:[#allocation51_spill] sm:$0xff]  ;;  %v18316_v31 = vld [vmem:[#allocation48_spill] sm:$0xff]  ;;  %v18317_v2 = vld [vmem:[#allocation57_spill] sm:$0xff] }
 0x3fd   : > { %v4164_v58 = vadd.f32 %v18314_v59, %v4130_v3  ;;  %v4165_v23 = vadd.f32 %v18314_v59, %v4131_v45  ;;  %v4166_v17 = vadd.f32 %v18314_v59, %v4132_v38  ;;  %v4167_v20 = vadd.f32 %v18314_v59, %v4133_v9  ;;  %v18318_v3 = vld [vmem:[#allocation127_spill] sm:$0xff]  ;;  %v18320_v9 = vld [vmem:[#allocation84_spill] sm:$0xff] }
 0x3fe   : > { %4188 = vst [vmem:[%s9544_s6 + $0x10] sm:$0xff] %v4160_v55  ;;  %4189 = vst [vmem:[%s9544_s6 + $0x30] sm:$0x3f] %v4161_v1  ;;  %v4134_v60 = vmul.f32 %v14018_v35, %v18315_v39  ;;  %v4135_v21 = vmul.f32 %v14018_v35, %v18316_v31  ;;  %v4136_v26 = vmul.f32 %v14018_v35, %v18317_v2  ;;  %v18319_v55 = vld [vmem:[#allocation7_spill] sm:$0xff]  ;;  %v18322_v39 = vld [vmem:[#allocation128_spill] sm:$0xff] }
 0x3ff   : > { %4190 = vst [vmem:[%s9544_s6 + $0x50] sm:$0xff] %v4162_v54  ;;  %4191 = vst [vmem:[%s9544_s6 + $0x70] sm:$0x3f] %v4163_v62  ;;  %v4137_v45 = vmul.f32 %v14018_v35, %v18318_v3  ;;  %v4138_v38 = vmul.f32 %v14018_v35, %v18319_v55  ;;  %v4139_v1 = vmul.f32 %v14018_v35, %v18320_v9  ;;  %v18321_v54 = vld [vmem:[#allocation36_spill] sm:$0xff] }
 0x400   : > { %4192 = vst [vmem:[%s9544_s6 + $0x90] sm:$0xff] %v4164_v58  ;;  %4193 = vst [vmem:[%s9544_s6 + $0xb0] sm:$0x3f] %v4165_v23  ;;  %v4140_v62 = vmul.f32 %v14018_v35, %v18321_v54  ;;  %v4141_v31 = vmul.f32 %v14018_v35, %v18322_v39  ;;  %v4168_v58 = vadd.f32 %v18314_v59, %v4134_v60 }
 0x401   : > { %4194 = vst [vmem:[%s9544_s6 + $0xd0] sm:$0xff] %v4166_v17  ;;  %4195 = vst [vmem:[%s9544_s6 + $0xf0] sm:$0x3f] %v4167_v20  ;;  %v4169_v23 = vadd.f32 %v18314_v59, %v4135_v21  ;;  %v4170_v17 = vadd.f32 %v18314_v59, %v4136_v26  ;;  %v4171_v20 = vadd.f32 %v18314_v59, %v4137_v45  ;;  %v18323_v21 = vld [vmem:[#allocation124_spill] sm:$0xff]  ;;  %v18324_v26 = vld [vmem:[#allocation93_spill] sm:$0xff] }
 0x402   : > { %v4172_v2 = vadd.f32 %v18314_v59, %v4138_v38  ;;  %v4173_v3 = vadd.f32 %v18314_v59, %v4139_v1  ;;  %v4174_v55 = vadd.f32 %v18314_v59, %v4140_v62  ;;  %v4175_v9 = vadd.f32 %v18314_v59, %v4141_v31  ;;  %4196 = vst [vmem:[%s9544_s6 + $0x110] sm:$0xff] %v4168_v58  ;;  %v18325_v45 = vld [vmem:[#allocation140_spill] sm:$0xff]  ;;  %v18326_v38 = vld [vmem:[#allocation109_spill] sm:$0xff]  ;;  %v18328_v58 = vld [vmem:[#allocation15_spill] sm:$0xff] }
 0x403   : > { %4197 = vst [vmem:[%s9544_s6 + $0x130] sm:$0x3f] %v4169_v23  ;;  %4198 = vst [vmem:[%s9544_s6 + $0x150] sm:$0xff] %v4170_v17  ;;  %v4142_v60 = vmul.f32 %v14018_v35, %v18323_v21  ;;  %v4143_v54 = vmul.f32 %v14018_v35, %v18324_v26  ;;  %v4144_v39 = vmul.f32 %v14018_v35, %v18325_v45  ;;  %v18327_v62 = vld [vmem:[#allocation29_spill] sm:$0xff]  ;;  %v18330_v21 = vld [vmem:[#allocation74_spill] sm:$0xff] }
 0x404   : > { %4199 = vst [vmem:[%s9544_s6 + $0x170] sm:$0x3f] %v4171_v20  ;;  %v4145_v1 = vmul.f32 %v14018_v35, %v18326_v38  ;;  %4200 = vst [vmem:[%s9544_s6 + $0x190] sm:$0xff] %v4172_v2  ;;  %v4146_v31 = vmul.f32 %v14018_v35, %v18327_v62  ;;  %v4147_v23 = vmul.f32 %v14018_v35, %v18328_v58  ;;  %v18329_v17 = vld [vmem:[#allocation25_spill] sm:$0xff] }
 0x405   : > { %4201 = vst [vmem:[%s9544_s6 + $0x1b0] sm:$0x3f] %v4173_v3  ;;  %4202 = vst [vmem:[%s9544_s6 + $0x1d0] sm:$0xff] %v4174_v55  ;;  %v4148_v20 = vmul.f32 %v14018_v35, %v18329_v17  ;;  %v4149_v26 = vmul.f32 %v14018_v35, %v18330_v21  ;;  %v4176_v2 = vadd.f32 %v18314_v59, %v4142_v60  ;;  %v18331_v60 = vld [vmem:[#allocation112_spill] sm:$0xff] }
 0x406   : > { %4203 = vst [vmem:[%s9544_s6 + $0x1f0] sm:$0x3f] %v4175_v9  ;;  %v4177_v3 = vadd.f32 %v18314_v59, %v4143_v54  ;;  %v4178_v55 = vadd.f32 %v18314_v59, %v4144_v39  ;;  %v4179_v9 = vadd.f32 %v18314_v59, %v4145_v1  ;;  %v4180_v45 = vadd.f32 %v18314_v59, %v4146_v31  ;;  %v18332_v39 = vld [vmem:[#allocation123_spill] sm:$0xff]  ;;  %v18333_v1 = vld [vmem:[#allocation56_spill] sm:$0xff] }
 0x407   : > { %v4181_v38 = vadd.f32 %v18314_v59, %v4147_v23  ;;  %v4182_v62 = vadd.f32 %v18314_v59, %v4148_v20  ;;  %v4183_v58 = vadd.f32 %v18314_v59, %v4149_v26  ;;  %4204 = vst [vmem:[%s9544_s6 + $0x210] sm:$0xff] %v4176_v2  ;;  %v4150_v54 = vmul.f32 %v14018_v35, %v18331_v60  ;;  %v18334_v31 = vld [vmem:[#allocation119_spill] sm:$0xff]  ;;  %v18335_v20 = vld [vmem:[#allocation77_spill] sm:$0xff]  ;;  %v18336_v2 = vld [vmem:[#allocation100_spill] sm:$0xff] }
 0x408   : > { %4205 = vst [vmem:[%s9544_s6 + $0x230] sm:$0x3f] %v4177_v3  ;;  %4206 = vst [vmem:[%s9544_s6 + $0x250] sm:$0xff] %v4178_v55  ;;  %v4151_v17 = vmul.f32 %v14018_v35, %v18332_v39  ;;  %v4152_v21 = vmul.f32 %v14018_v35, %v18333_v1  ;;  %v4153_v23 = vmul.f32 %v14018_v35, %v18334_v31  ;;  %v18337_v55 = vld [vmem:[#allocation40_spill] sm:$0xff]  ;;  %v18338_v60 = vld [vmem:[#allocation17_spill] sm:$0xff] }
 0x409   : > { %4207 = vst [vmem:[%s9544_s6 + $0x270] sm:$0x3f] %v4179_v9  ;;  %4208 = vst [vmem:[%s9544_s6 + $0x290] sm:$0xff] %v4180_v45  ;;  %v4812_v26 = vmul.f32 %v18290_v34, %v18335_v20  ;;  %v4813_v3 = vmul.f32 %v18290_v34, %v18336_v2  ;;  %v4814_v9 = vmul.f32 %v18290_v34, %v18337_v55  ;;  %v18339_v39 = vld [vmem:[#allocation144_spill] sm:$0xff]  ;;  %v18340_v31 = vld [vmem:[#allocation63_spill] sm:$0xff] }
 0x40a   : > { %4209 = vst [vmem:[%s9544_s6 + $0x2b0] sm:$0x3f] %v4181_v38  ;;  %4210 = vst [vmem:[%s9544_s6 + $0x2d0] sm:$0xff] %v4182_v62  ;;  %v4815_v35 = vmul.f32 %v18290_v34, %v18338_v60  ;;  %v4184_v45 = vadd.f32 %v18314_v59, %v4150_v54  ;;  %v4185_v38 = vadd.f32 %v18314_v59, %v4151_v17  ;;  %v18341_v2 = vld [vmem:[#allocation89_spill] sm:$0xff]  ;;  %v18343_v54 = vld [vmem:[#allocation14_spill] sm:$0xff] }
 0x40b   : > { %4211 = vst [vmem:[%s9544_s6 + $0x2f0] sm:$0x3f] %v4183_v58  ;;  %v4186_v62 = vadd.f32 %v18314_v59, %v4152_v21  ;;  %v4187_v58 = vadd.f32 %v18314_v59, %v4153_v23  ;;  %v4816_v1 = vmul.f32 %v18290_v34, %v18339_v39  ;;  %v4817_v20 = vmul.f32 %v18290_v34, %v18340_v31  ;;  %v18344_v59 = vld [vmem:[#allocation125_spill] sm:$0xff]  ;;  %v18345_v23 = vld [vmem:[#allocation42_spill] sm:$0xff] }
 0x40c   : > { %v4818_v55 = vmul.f32 %v18290_v34, %v18341_v2  ;;  %v4819_v60 = vmul.f32 %v18290_v34, %v18342_v41  ;;  %4212 = vst [vmem:[%s9544_s6 + $0x310] sm:$0xff] %v4184_v45  ;;  %4213 = vst [vmem:[%s9544_s6 + $0x330] sm:$0x3f] %v4185_v38  ;;  %v4820_v17 = vmul.f32 %v18290_v34, %v18343_v54  ;;  %v18346_v31 = vld [vmem:[#allocation142_spill] sm:$0xff]  ;;  %v18347_v2 = vld [vmem:[#allocation79_spill] sm:$0xff] }
 0x40d   : > { %4214 = vst [vmem:[%s9544_s6 + $0x350] sm:$0xff] %v4186_v62  ;;  %4215 = vst [vmem:[%s9544_s6 + $0x370] sm:$0x3f] %v4187_v58  ;;  %v4821_v21 = vmul.f32 %v18290_v34, %v18344_v59  ;;  %v4822_v39 = vmul.f32 %v18290_v34, %v18345_v23  ;;  %v4823_v50 = vmul.f32 %v18290_v34, %v18346_v31  ;;  %v18348_v41 = vld [vmem:[#allocation64_spill] sm:$0xff] }
 0x40e   : > { %v4824_v56 = vmul.f32 %v18290_v34, %v18347_v2  ;;  %v4825_v45 = vmul.f32 %v18290_v34, %v18348_v41  ;;  %v4826_v38 = vmul.f32 %v18290_v34, %v14003_v57  ;;  %v4827_v62 = vmul.f32 %v18290_v34, %v14007_v27  ;;  %v14356_v31 = vld [vmem:[%s6442_s17 + $0x278] sm:$0xff] }
 0x40f   : > { %v14194_v58 = vadd.f32 %v13991_v22, %v13902_v24  ;;  %v14198_v54 = vadd.f32 %v13995_v43, %v13905_v8  ;;  %v14202_v59 = vadd.f32 %v13999_v5, %v13908_v10  ;;  %v14206_v23 = vadd.f32 %v14011_v28, %v13911_v13  ;;  %v14274_v5 = vld [vmem:[%s6442_s17 + $0xf8] sm:$0xff]  ;;  %18369 = vst [vmem:[#allocation70_spill] sm:$0xff] %v14356_v31 }
 0x410   : > { %v14210_v34 = vadd.f32 %v14015_v37, %v13914_v7  ;;  %v14214_v24 = vadd.f32 %v14022_v11, %v13917_v52  ;;  %v14218_v8 = vadd.f32 %v14026_v61, %v13920_v44  ;;  %v14222_v10 = vadd.f32 %v14030_v49, %v13923_v18  ;;  %18350 = vst [vmem:[#allocation73_spill] sm:$0xff] %v14274_v5  ;;  %v14292_v37 = vld [vmem:[%s6442_s17 + $0x138] sm:$0xff] }
 0x411   : > { %v14226_v13 = vadd.f32 %v14034_v40, %v13926_v16  ;;  %v14230_v52 = vadd.f32 %v14038_v12, %v13929_v51  ;;  %v14234_v7 = vadd.f32 %v14042_v32, %v13932_v46  ;;  %v14238_v44 = vadd.f32 %v14046_v15, %v13935_v25  ;;  %v14253_v46 = vld [vmem:[%s6442_s17 + $0xb8] sm:$0xff]  ;;  %18351 = vst [vmem:[#allocation54_spill] sm:$0xff] %v14292_v37  ;;  %v18365_v15 = vld [vmem:[#allocation117_spill] sm:$0xff] }
 0x412   : > { %v14241_v18 = vadd.f32 %v4812_v26, %v13938_v53  ;;  %v14244_v22 = vadd.f32 %v4813_v3, %v13941_v4  ;;  %v14247_v16 = vadd.f32 %v4814_v9, %v13944_v47  ;;  %v14250_v51 = vadd.f32 %v4815_v35, %v13947_v6  ;;  %18349 = vst [vmem:[#allocation60_spill] sm:$0xff] %v14253_v46  ;;  %v14268_v47 = vld [vmem:[%s6442_s17 + $0x98] sm:$0xff] }
 0x413   : > { %v14256_v25 = vadd.f32 %v4816_v1, %v13950_v48  ;;  %v14259_v53 = vadd.f32 %v4817_v20, %v13953_v29  ;;  %v14262_v4 = vadd.f32 %v4818_v55, %v13956_v63  ;;  %v14265_v43 = vadd.f32 %v4819_v60, %v13959_v42  ;;  %v14271_v6 = vld [vmem:[%s6442_s17 + $0xd8] sm:$0xff] }
 0x414   : > { %v14277_v48 = vld [vmem:[%s6442_s17 + $0x118] sm:$0xff]  ;;  %v14280_v29 = vadd.f32 %v4820_v17, %v13964_v36  ;;  %v14283_v63 = vadd.f32 %v4821_v21, %v13967_v33  ;;  %v14286_v42 = vadd.f32 %v4822_v39, %v13970_v30  ;;  %v14289_v28 = vadd.f32 %v4823_v50, %v13973_v0  ;;  %v18355_v30 = vld [vmem:[#allocation122_spill] sm:$0xff] }
 0x415   : > { %v14295_v11 = vld [vmem:[%s6442_s17 + $0x158] sm:$0xff]  ;;  %v14301_v36 = vadd.f32 %v4824_v56, %v13976_v19  ;;  %v14304_v33 = vadd.f32 %v4825_v45, %v13979_v14  ;;  %v14307_v49 = vadd.f32 %v4826_v38, %v18355_v30  ;;  %v18357_v0 = vld [vmem:[#allocation38_spill] sm:$0xff]  ;;  %v4888_v26 = vmul.f32 %v14268_v47, %v18365_v15 }
 0x416   : > { %18352 = vst [vmem:[#allocation102_spill] sm:$0xff] %v14295_v11  ;;  %v14298_v61 = vld [vmem:[%s6442_s17 + $0x178] sm:$0xff]  ;;  %v14310_v50 = vadd.f32 %v4827_v62, %v18357_v0  ;;  %v4889_v3 = vmul.f32 %v14253_v46, %v18365_v15  ;;  %v4890_v9 = vmul.f32 %v14271_v6, %v18365_v15  ;;  %v4891_v35 = vmul.f32 %v14274_v5, %v18365_v15 }
 0x417   : > { %18353 = vst [vmem:[#allocation81_spill] sm:$0xff] %v14298_v61  ;;  %18354 = vst [vmem:[#allocation11_spill] sm:$0xff] %v14304_v33  ;;  %v14313_v40 = vld [vmem:[%s6442_s17 + $0x198] sm:$0xff]  ;;  %v4892_v60 = vmul.f32 %v14277_v48, %v18365_v15  ;;  %v4893_v17 = vmul.f32 %v14292_v37, %v18365_v15  ;;  %v4894_v21 = vmul.f32 %v14295_v11, %v18365_v15 }
 0x418   : > { %18356 = vst [vmem:[#allocation13_spill] sm:$0xff] %v14307_v49  ;;  %18358 = vst [vmem:[#allocation35_spill] sm:$0xff] %v14310_v50  ;;  %v14316_v12 = vld [vmem:[%s6442_s17 + $0x1b8] sm:$0xff]  ;;  %v4895_v39 = vmul.f32 %v14298_v61, %v18365_v15  ;;  %v4896_v45 = vmul.f32 %v14313_v40, %v18365_v15 }
 0x419   : > { %18359 = vst [vmem:[#allocation41_spill] sm:$0xff] %v14313_v40  ;;  %18360 = vst [vmem:[#allocation8_spill] sm:$0xff] %v14316_v12  ;;  %v14319_v32 = vld [vmem:[%s6442_s17 + $0x1d8] sm:$0xff]  ;;  %v4897_v38 = vmul.f32 %v14316_v12, %v18365_v15  ;;  %v4903_v12 = vmul.f32 %v14356_v31, %v18365_v15  ;;  %v18378_v40 = vld [vmem:[#allocation111_spill] sm:$0xff] }
 0x41a   : > { %18361 = vst [vmem:[#allocation104_spill] sm:$0xff] %v14319_v32  ;;  %v14322_v19 = vld [vmem:[%s6442_s17 + $0x1f8] sm:$0xff]  ;;  %v4898_v62 = vmul.f32 %v14319_v32, %v18365_v15  ;;  %v18377_v32 = vld [vmem:[#allocation21_spill] sm:$0xff] }
 0x41b   : > { %18362 = vst [vmem:[#allocation105_spill] sm:$0xff] %v14322_v19  ;;  %v14325_v56 = vld [vmem:[%s6442_s17 + $0x218] sm:$0xff]  ;;  %v4899_v30 = vmul.f32 %v14322_v19, %v18365_v15 }
 0x41c   : > { %18363 = vst [vmem:[#allocation106_spill] sm:$0xff] %v14325_v56  ;;  %v14328_v14 = vld [vmem:[%s6442_s17 + $0x258] sm:$0xff]  ;;  %v4900_v50 = vmul.f32 %v14325_v56, %v18365_v15 }
 0x41d   : > { %18364 = vst [vmem:[#allocation43_spill] sm:$0xff] %v14328_v14  ;;  %v14339_v1 = vld [vmem:[%s6442_s17 + $0x238] sm:$0xff]  ;;  %v4902_v33 = vmul.f32 %v14328_v14, %v18365_v15 }
 0x41e   : > { %18366 = vst [vmem:[#allocation71_spill] sm:$0xff] %v14339_v1  ;;  %v14342_v20 = vld [vmem:[%s6442_s17 + $0x298] sm:$0xff]  ;;  %v4901_v49 = vmul.f32 %v14339_v1, %v18365_v15 }
 0x41f   : > { %18367 = vst [vmem:[#allocation62_spill] sm:$0xff] %v14342_v20  ;;  %v14345_v55 = vld [vmem:[%s6442_s17 + $0x2d8] sm:$0xff]  ;;  %v4904_v37 = vmul.f32 %v14342_v20, %v18365_v15 }
 0x420   : > { %18368 = vst [vmem:[#allocation33_spill] sm:$0xff] %v14345_v55  ;;  %v14359_v2 = vld [vmem:[%s6442_s17 + $0x318] sm:$0xff]  ;;  %v4906_v46 = vmul.f32 %v14345_v55, %v18365_v15  ;;  %v4912_v55 = vmul.f32 %v18377_v32, %v18365_v15  ;;  %v14435_v32 = vadd.f32 %v4890_v9, %v14202_v59  ;;  %v14456_v59 = vadd.f32 %v4897_v38, %v14230_v52 }
 0x421   : > { %v14362_v41 = vld [vmem:[%s6442_s17 + $0x358] sm:$0xff]  ;;  %v4908_v31 = vmul.f32 %v14359_v2, %v18365_v15  ;;  %v14477_v52 = vadd.f32 %v4904_v37, %v14256_v25  ;;  %v18396_v37 = vld [vmem:[#allocation41_spill] sm:$0xff] }
 0x422   : > { %18370 = vst [vmem:[#allocation67_spill] sm:$0xff] %v14362_v41  ;;  %v14373_v0 = vld [vmem:[%s6442_s17 + $0x2b8] sm:$0xff]  ;;  %v4910_v20 = vmul.f32 %v14362_v41, %v18365_v15  ;;  %v14429_v41 = vadd.f32 %v4888_v26, %v14194_v58  ;;  %v14450_v58 = vadd.f32 %v4895_v39, %v14222_v10  ;;  %v14471_v10 = vadd.f32 %v4902_v33, %v14247_v16 }
 0x423   : > { %18371 = vst [vmem:[#allocation49_spill] sm:$0xff] %v14373_v0  ;;  %v14376_v57 = vld [vmem:[%s6442_s17 + $0x2f8] sm:$0xff]  ;;  %v4905_v5 = vmul.f32 %v14373_v0, %v18365_v15  ;;  %18386 = vst [vmem:[#allocation19_spill] sm:$0xff] %v14477_v52 }
 0x424   : > { %18372 = vst [vmem:[#allocation97_spill] sm:$0xff] %v14376_v57  ;;  %v14379_v27 = vld [vmem:[%s6442_s17 + $0x3d8] sm:$0xff]  ;;  %v4907_v1 = vmul.f32 %v14376_v57, %v18365_v15  ;;  %v14418_v57 = vmul.f32 %v18378_v40, %v18365_v15  ;;  %v14438_v40 = vadd.f32 %v4891_v35, %v14206_v23  ;;  %v14459_v23 = vadd.f32 %v4898_v62, %v14234_v7 }
 0x425   : > { %18373 = vst [vmem:[#allocation114_spill] sm:$0xff] %v14379_v27  ;;  %v14390_v61 = vld [vmem:[%s6442_s17 + $0x338] sm:$0xff]  ;;  %v14422_v11 = vmul.f32 %v14379_v27, %v18365_v15  ;;  %18384 = vst [vmem:[#allocation9_spill] sm:$0xff] %v14471_v10  ;;  %v14480_v7 = vadd.f32 %v4905_v5, %v14259_v53  ;;  %v14501_v53 = vadd.f32 %v4912_v55, %v14301_v36  ;;  %v18395_v5 = vld [vmem:[#allocation102_spill] sm:$0xff] }
 0x426   : > { %18374 = vst [vmem:[#allocation141_spill] sm:$0xff] %v14390_v61  ;;  %v14393_v19 = vld [vmem:[%s6442_s17 + $0x378] sm:$0xff]  ;;  %v4909_v56 = vmul.f32 %v14390_v61, %v18365_v15  ;;  %18379 = vst [vmem:[#allocation16_spill] sm:$0xff] %v14418_v57  ;;  %v14441_v57 = vadd.f32 %v4892_v60, %v14210_v34  ;;  %v14462_v34 = vadd.f32 %v4899_v30, %v14238_v44  ;;  %v18404_v60 = vld [vmem:[#allocation54_spill] sm:$0xff] }
 0x427   : > { %18375 = vst [vmem:[#allocation98_spill] sm:$0xff] %v14393_v19  ;;  %v14404_v14 = vld [vmem:[%s6442_s17 + $0x3f8] sm:$0xff]  ;;  %v4911_v0 = vmul.f32 %v14393_v19, %v18365_v15  ;;  %18380 = vst [vmem:[#allocation69_spill] sm:$0xff] %v14422_v11  ;;  %v14432_v19 = vadd.f32 %v4889_v3, %v14198_v54  ;;  %v14444_v11 = vadd.f32 %v4893_v17, %v14214_v24  ;;  %v18401_v36 = vld [vmem:[#allocation33_spill] sm:$0xff]  ;;  %v4960_v17 = vrot.slane %v18404_v60, 1 }
 0x428   : > { %18376 = vst [vmem:[#allocation129_spill] sm:$0xff] %v14404_v14  ;;  %v14426_v61 = vmul.f32 %v14404_v14, %v18365_v15  ;;  %v14447_v15 = vadd.f32 %v4894_v21, %v14218_v8  ;;  %v14453_v54 = vadd.f32 %v4896_v45, %v14226_v13  ;;  %v14465_v24 = vadd.f32 %v4900_v50, %v14241_v18  ;;  %v18397_v33 = vld [vmem:[#allocation104_spill] sm:$0xff]  ;;  %v18405_v21 = vld [vmem:[#allocation81_spill] sm:$0xff]  ;;  %v18410_v50 = vld [vmem:[#allocation70_spill] sm:$0xff] }
 0x429   : > { %v14468_v8 = vadd.f32 %v4901_v49, %v14244_v22  ;;  %v14474_v13 = vadd.f32 %v4903_v12, %v14250_v51  ;;  %18387 = vst [vmem:[#allocation95_spill] sm:$0xff] %v14480_v7  ;;  %v14483_v44 = vadd.f32 %v4906_v46, %v14262_v4  ;;  %v14486_v18 = vadd.f32 %v4907_v1, %v14265_v43  ;;  %v18399_v12 = vld [vmem:[#allocation43_spill] sm:$0xff]  ;;  %v18402_v9 = vld [vmem:[#allocation60_spill] sm:$0xff]  ;;  %v18408_v30 = vld [vmem:[#allocation105_spill] sm:$0xff] }
 0x42a   : > { %18381 = vst [vmem:[#allocation53_spill] sm:$0xff] %v14426_v61  ;;  %18382 = vst [vmem:[#allocation76_spill] sm:$0xff] %v14465_v24  ;;  %v14489_v22 = vadd.f32 %v4908_v31, %v14280_v29  ;;  %v14492_v16 = vadd.f32 %v4909_v56, %v14283_v63  ;;  %v14495_v51 = vadd.f32 %v4910_v20, %v14286_v42  ;;  %v4944_v46 = vrot.slane %v14268_v47, 1  ;;  %v18398_v42 = vld [vmem:[#allocation106_spill] sm:$0xff]  ;;  %v18403_v20 = vld [vmem:[#allocation73_spill] sm:$0xff] }
 0x42b   : > { %18383 = vst [vmem:[#allocation88_spill] sm:$0xff] %v14468_v8  ;;  %18385 = vst [vmem:[#allocation34_spill] sm:$0xff] %v14474_v13  ;;  %v14498_v25 = vadd.f32 %v4911_v0, %v14289_v28  ;;  %v4945_v4 = vrot.slane %v14271_v6, 1  ;;  %v4946_v43 = vrot.slane %v14277_v48, 1  ;;  %v4947_v29 = vrot.slane %v18395_v5, 1  ;;  %v18400_v56 = vld [vmem:[#allocation62_spill] sm:$0xff] }
 0x42c   : > { %18388 = vst [vmem:[#allocation107_spill] sm:$0xff] %v14483_v44  ;;  %18389 = vst [vmem:[#allocation65_spill] sm:$0xff] %v14486_v18  ;;  %v4958_v35 = vrot.slane %v18402_v9, 1  ;;  %v4959_v55 = vrot.slane %v18403_v20, 1  ;;  %v4961_v39 = vrot.slane %v18405_v21, 1  ;;  %v18406_v31 = vld [vmem:[#allocation67_spill] sm:$0xff] }
 0x42d   : > { %18390 = vst [vmem:[#allocation20_spill] sm:$0xff] %v14489_v22  ;;  %18391 = vst [vmem:[#allocation91_spill] sm:$0xff] %v14492_v16  ;;  %v18407_v38 = vld [vmem:[#allocation8_spill] sm:$0xff]  ;;  %v4963_v0 = vrot.slane %v18408_v30, 1  ;;  %v18409_v28 = vld [vmem:[#allocation71_spill] sm:$0xff]  ;;  %v5060_v14 = vrot.slane %v14268_v47, 2  ;;  %v4974_v1 = vsel %vm689_vm0, %v4946_v43, %v4960_v17 }
 0x42e   : > { %18392 = vst [vmem:[#allocation94_spill] sm:$0xff] %v14495_v51  ;;  %18393 = vst [vmem:[#allocation66_spill] sm:$0xff] %v14498_v25  ;;  %v4962_v62 = vrot.slane %v18407_v38, 1  ;;  %v18411_v49 = vld [vmem:[#allocation49_spill] sm:$0xff]  ;;  %v18414_v51 = vld [vmem:[#allocation98_spill] sm:$0xff]  ;;  %v4986_v45 = vsel %vm689_vm0, %v4958_v35, %v4944_v46  ;;  %v5074_v27 = vrot.slane %v18402_v9, 2  ;;  %v4972_v26 = vsel %vm689_vm0, %v4944_v46, %v4958_v35 }
 0x42f   : > { %18394 = vst [vmem:[#allocation115_spill] sm:$0xff] %v14501_v53  ;;  %v18412_v53 = vld [vmem:[#allocation97_spill] sm:$0xff]  ;;  %v4973_v63 = vsel %vm689_vm0, %v4945_v4, %v4959_v55  ;;  %v4975_v16 = vsel %vm689_vm0, %v4947_v29, %v4961_v39  ;;  %v18416_v25 = vrot.slane %v18396_v37, 1  ;;  %v4987_v47 = vsel %vm689_vm0, %v4959_v55, %v4945_v4  ;;  %v18423_v55 = vld [vmem:[#allocation28_spill] sm:$0xff] }
 0x430   : > { %v18413_v61 = vld [vmem:[#allocation141_spill] sm:$0xff]  ;;  %v5061_v9 = vrot.slane %v14271_v6, 2  ;;  %v5075_v46 = vrot.slane %v18403_v20, 2  ;;  %v18417_v35 = vrot.slane %v18397_v33, 1  ;;  %v18418_v44 = vrot.slane %v18409_v28, 1 }
 0x431   : > { %v4976_v3 = vsel %vm689_vm0, %v18416_v25, %v4962_v62  ;;  %v18419_v7 = vrot.slane %v18398_v42, 1  ;;  %v18420_v4 = vrot.slane %v18410_v50, 1  ;;  %v18421_v6 = vrot.slane %v18399_v12, 1 }
 0x432   : > { %v14551_v18 = vsel %vm689_vm0, %v18417_v35, %v4963_v0  ;;  %v5005_v52 = vmul.f32 %v18423_v55, %v4986_v45  ;;  %v14571_v35 = vld [vmem:[%s6437_s21 + $0x38] ss:$0 sm:$0xff]  ;;  %v18424_v13 = vrot.slane %v18411_v49, 1  ;;  %v18425_v10 = vrot.slane %v18400_v56, 1 }
 0x433   : > { %v14559_v25 = vsel %vm689_vm0, %v18419_v7, %v18418_v44  ;;  %v14567_v20 = vsel %vm689_vm0, %v18421_v6, %v18420_v4  ;;  %v18427_v44 = vrot.slane %v18412_v53, 1  ;;  %v18428_v8 = vrot.slane %v18401_v36, 1 }
 0x434   : > { %18422 = vst [vmem:[#allocation72_spill] sm:$0xff] %v14567_v20  ;;  %v14579_v7 = vsel %vm689_vm0, %v18425_v10, %v18424_v13  ;;  %v5004_v45 = vmul.f32 %v18423_v55, %v4972_v26  ;;  %v5102_v6 = vsel %vm806_vm1, %v5074_v27, %v5060_v14  ;;  %v18430_v24 = vrot.slane %v18413_v61, 1 }
 0x435   : > { %18426 = vst [vmem:[#allocation12_spill] sm:$0xff] %v14579_v7  ;;  %v14587_v4 = vsel %vm689_vm0, %v18428_v8, %v18427_v44  ;;  %v18431_v20 = vrot.slane %v14359_v2, 1  ;;  %v5006_v13 = vmul.f32 %v18423_v55, %v4973_v63  ;;  %v5007_v7 = vmul.f32 %v18423_v55, %v4987_v47 }
 0x436   : > { %18429 = vst [vmem:[#allocation30_spill] sm:$0xff] %v14587_v4  ;;  %v5088_v8 = vsel %vm806_vm1, %v5060_v14, %v5074_v27  ;;  %v4988_v26 = vsel %vm689_vm0, %v4960_v17, %v4946_v43  ;;  %v5062_v44 = vrot.slane %v14277_v48, 2  ;;  %v5076_v4 = vrot.slane %v18404_v60, 2 }
 0x437   : > { %v14598_v10 = vsel %vm689_vm0, %v18431_v20, %v18430_v24  ;;  %v5103_v61 = vsel %vm806_vm1, %v5075_v46, %v5061_v9  ;;  %v18433_v24 = vrot.slane %v18414_v51, 1  ;;  %v18434_v20 = vrot.slane %v18406_v31, 1 }
 0x438   : > { %18432 = vst [vmem:[#allocation139_spill] sm:$0xff] %v14598_v10  ;;  %v5033_v27 = vadd.f32 %v5005_v52, %v14432_v19  ;;  %v5089_v14 = vsel %vm806_vm1, %v5061_v9, %v5075_v46  ;;  %v5121_v48 = vmul.f32 %v14571_v35, %v5102_v6  ;;  %v4989_v43 = vsel %vm689_vm0, %v4961_v39, %v4947_v29 }
 0x439   : > { %v14616_v63 = vsel %vm689_vm0, %v18434_v20, %v18433_v24  ;;  %v5008_v60 = vmul.f32 %v18423_v55, %v4974_v1  ;;  %v5032_v17 = vadd.f32 %v5004_v45, %v14429_v41  ;;  %v5120_v47 = vmul.f32 %v14571_v35, %v5088_v8 }
 0x43a   : > { %v5009_v10 = vmul.f32 %v18423_v55, %v4988_v26  ;;  %v5034_v24 = vadd.f32 %v5006_v13, %v14435_v32  ;;  %v5035_v19 = vadd.f32 %v5007_v7, %v14438_v40  ;;  %v5123_v52 = vmul.f32 %v14571_v35, %v5103_v61 }
 0x43b   : > { %v5063_v9 = vrot.slane %v18395_v5, 2  ;;  %v5077_v46 = vrot.slane %v18405_v21, 2  ;;  %v5104_v29 = vsel %vm806_vm1, %v5076_v4, %v5062_v44  ;;  %v5122_v1 = vmul.f32 %v14571_v35, %v5089_v14 }
 0x43c   : > { %v18435_v41 = vrot.slane %v18396_v37, 1  ;;  %v18436_v32 = vrot.slane %v18397_v33, 1  ;;  %v5090_v61 = vsel %vm806_vm1, %v5062_v44, %v5076_v4  ;;  %v14646_v5 = vadd.f32 %v5121_v48, %v5033_v27 }
 0x43d   : > { %v5010_v21 = vmul.f32 %v18423_v55, %v4975_v16  ;;  %v5011_v7 = vmul.f32 %v18423_v55, %v4989_v43  ;;  %v5036_v45 = vadd.f32 %v5008_v60, %v14441_v57  ;;  %v14651_v6 = vadd.f32 %v5120_v47, %v5032_v17 }
 0x43e   : > { %v4990_v39 = vsel %vm689_vm0, %v4962_v62, %v18435_v41  ;;  %v4991_v40 = vsel %vm689_vm0, %v4963_v0, %v18436_v32  ;;  %v5037_v62 = vadd.f32 %v5009_v10, %v14444_v11  ;;  %v5064_v13 = vrot.slane %v18396_v37, 2 }
 0x43f   : > { %v5125_v8 = vmul.f32 %v14571_v35, %v5104_v29  ;;  %v14656_v0 = vadd.f32 %v5123_v52, %v5035_v19  ;;  %v5078_v4 = vrot.slane %v18407_v38, 2  ;;  %v5105_v26 = vsel %vm806_vm1, %v5077_v46, %v5063_v9 }
 0x440   : > { %v5124_v16 = vmul.f32 %v14571_v35, %v5090_v61  ;;  %v14662_v44 = vadd.f32 %v5122_v1, %v5034_v24  ;;  %v5012_v57 = vmul.f32 %v18423_v55, %v4976_v3  ;;  %v5013_v20 = vmul.f32 %v18423_v55, %v4990_v39 }
 0x441   : > { %v5091_v11 = vsel %vm806_vm1, %v5063_v9, %v5077_v46  ;;  %v5176_v37 = vsel %vm1537_vm2, %v14646_v5, 0.0  ;;  %v5038_v10 = vadd.f32 %v5010_v21, %v14447_v15  ;;  %v5039_v38 = vadd.f32 %v5011_v7, %v14450_v58 }
 0x442   : > { %v5065_v27 = vrot.slane %v18397_v33, 2  ;;  %v5177_v14 = vadd.f32 %v5176_v37, %v14651_v6  ;;  %v5079_v48 = vrot.slane %v18408_v30, 2  ;;  %v5127_v3 = vmul.f32 %v14571_v35, %v5105_v26 }
 0x443   : > { %v14676_v43 = vadd.f32 %v5125_v8, %v5037_v62  ;;  %v5179_v60 = vsel %vm1537_vm2, %v14656_v0, 0.0  ;;  %v5106_v17 = vsel %vm806_vm1, %v5078_v4, %v5064_v13  ;;  %v5126_v15 = vmul.f32 %v14571_v35, %v5091_v11 }
 0x444   : > { %v14683_v47 = vadd.f32 %v5124_v16, %v5036_v45  ;;  %v5178_v58 = vadd.f32 %v5177_v14, %v14662_v44  ;;  %v18437_v33 = vrot.slane %v18398_v42, 1  ;;  %v18438_v30 = vrot.slane %v18409_v28, 1 }
 0x445   : > { %v5014_v19 = vmul.f32 %v18423_v55, %v14551_v18  ;;  %v5015_v52 = vmul.f32 %v18423_v55, %v4991_v40  ;;  %v5092_v9 = vsel %vm806_vm1, %v5064_v13, %v5078_v4  ;;  %v5040_v46 = vadd.f32 %v5012_v57, %v14453_v54 }
 0x446   : > { %v4992_v24 = vsel %vm689_vm0, %v18438_v30, %v18437_v33  ;;  %v5041_v29 = vadd.f32 %v5013_v20, %v14456_v59  ;;  %v5066_v1 = vrot.slane %v18398_v42, 2  ;;  %v5180_v41 = vadd.f32 %v5179_v60, %v5178_v58  ;;  %v18444_v60 = vld [vmem:[#allocation76_spill] sm:$0xff] }
 0x447   : > { %v5080_v39 = vrot.slane %v18409_v28, 2  ;;  %v5129_v32 = vmul.f32 %v14571_v35, %v5106_v17  ;;  %v14702_v61 = vadd.f32 %v5127_v3, %v5039_v38  ;;  %v5182_v18 = vsel %vm1537_vm2, %v14676_v43, 0.0 }
 0x448   : > { %v5107_v40 = vsel %vm806_vm1, %v5079_v48, %v5065_v27  ;;  %v5128_v21 = vmul.f32 %v14571_v35, %v5092_v9  ;;  %v14709_v54 = vadd.f32 %v5126_v15, %v5038_v10  ;;  %v5181_v59 = vadd.f32 %v5180_v41, %v14683_v47  ;;  %v18445_v15 = vld [vmem:[#allocation88_spill] sm:$0xff] }
 0x449   : > { %v18439_v42 = vrot.slane %v18399_v12, 1  ;;  %v18440_v28 = vrot.slane %v18410_v50, 1  ;;  %v5016_v45 = vmul.f32 %v18423_v55, %v14559_v25  ;;  %v5017_v62 = vmul.f32 %v18423_v55, %v4992_v24 }
 0x44a   : > { %v5093_v13 = vsel %vm806_vm1, %v5065_v27, %v5079_v48  ;;  %v5042_v8 = vadd.f32 %v5014_v19, %v14459_v23  ;;  %v5043_v4 = vadd.f32 %v5015_v52, %v14462_v34  ;;  %v5067_v26 = vrot.slane %v18399_v12, 2  ;;  %v18443_v27 = vld [vmem:[#allocation72_spill] sm:$0xff] }
 0x44b   : > { %v4993_v7 = vsel %vm689_vm0, %v18440_v28, %v18439_v42  ;;  %v5183_v16 = vadd.f32 %v5182_v18, %v5181_v59  ;;  %v5081_v57 = vrot.slane %v18410_v50, 2  ;;  %v5131_v20 = vmul.f32 %v14571_v35, %v5107_v40  ;;  %v18449_v59 = vld [vmem:[#allocation9_spill] sm:$0xff]  ;;  %v18450_v28 = vld [vmem:[#allocation34_spill] sm:$0xff] }
 0x44c   : > { %v14728_v11 = vadd.f32 %v5129_v32, %v5041_v29  ;;  %v5185_v25 = vsel %vm1537_vm2, %v14702_v61, 0.0  ;;  %v5108_v37 = vsel %vm806_vm1, %v5080_v39, %v5066_v1  ;;  %v5130_v10 = vmul.f32 %v14571_v35, %v5093_v13  ;;  %v18448_v32 = vld [vmem:[#allocation12_spill] sm:$0xff] }
 0x44d   : > { %v14735_v23 = vadd.f32 %v5128_v21, %v5040_v46  ;;  %v5184_v34 = vadd.f32 %v5183_v16, %v14709_v54  ;;  %v18441_v12 = vrot.slane %v18400_v56, 1  ;;  %v18442_v50 = vrot.slane %v18411_v49, 1 }
 0x44e   : > { %v5018_v14 = vmul.f32 %v18423_v55, %v18443_v27  ;;  %v5019_v48 = vmul.f32 %v18423_v55, %v4993_v7  ;;  %v5094_v3 = vsel %vm806_vm1, %v5066_v1, %v5080_v39  ;;  %v5044_v17 = vadd.f32 %v5016_v45, %v18444_v60  ;;  %v18455_v27 = vld [vmem:[#allocation19_spill] sm:$0xff] }
 0x44f   : > { %v4994_v38 = vsel %vm689_vm0, %v18442_v50, %v18441_v12  ;;  %v5045_v58 = vadd.f32 %v5017_v62, %v18445_v15  ;;  %v5068_v33 = vrot.slane %v18400_v56, 2  ;;  %v5186_v30 = vadd.f32 %v5185_v25, %v5184_v34  ;;  %v18454_v34 = vld [vmem:[#allocation30_spill] sm:$0xff] }
 0x450   : > { %v5082_v24 = vrot.slane %v18411_v49, 2  ;;  %v5133_v19 = vmul.f32 %v14571_v35, %v5108_v37  ;;  %v14754_v52 = vadd.f32 %v5131_v20, %v5043_v4  ;;  %v5188_v9 = vsel %vm1537_vm2, %v14728_v11, 0.0  ;;  %v18452_v37 = vld [vmem:[#allocation141_spill] sm:$0xff] }
 0x451   : > { %v5109_v46 = vsel %vm806_vm1, %v5081_v57, %v5067_v26  ;;  %v5132_v29 = vmul.f32 %v14571_v35, %v5094_v3  ;;  %v14761_v1 = vadd.f32 %v5130_v10, %v5042_v8  ;;  %v5187_v41 = vadd.f32 %v5186_v30, %v14735_v23 }
 0x452   : > { %v18446_v56 = vrot.slane %v18401_v36, 1  ;;  %v18447_v49 = vrot.slane %v18412_v53, 1  ;;  %v5020_v18 = vmul.f32 %v18423_v55, %v18448_v32  ;;  %v5021_v40 = vmul.f32 %v18423_v55, %v4994_v38 }
 0x453   : > { %v5095_v21 = vsel %vm806_vm1, %v5067_v26, %v5081_v57  ;;  %v5046_v42 = vadd.f32 %v5018_v14, %v18449_v59  ;;  %v5047_v7 = vadd.f32 %v5019_v48, %v18450_v28  ;;  %v5069_v45 = vrot.slane %v18401_v36, 2  ;;  %v18456_v48 = vld [vmem:[#allocation95_spill] sm:$0xff] }
 0x454   : > { %v4995_v39 = vsel %vm689_vm0, %v18447_v49, %v18446_v56  ;;  %v5189_v62 = vadd.f32 %v5188_v9, %v5187_v41  ;;  %v5083_v13 = vrot.slane %v18412_v53, 2  ;;  %v5135_v8 = vmul.f32 %v14571_v35, %v5109_v46  ;;  %v18459_v56 = vld [vmem:[#allocation139_spill] sm:$0xff] }
 0x455   : > { %v14780_v4 = vadd.f32 %v5133_v19, %v5045_v58  ;;  %v5191_v16 = vsel %vm1537_vm2, %v14754_v52, 0.0  ;;  %v5110_v20 = vsel %vm806_vm1, %v5082_v24, %v5068_v33  ;;  %v5134_v26 = vmul.f32 %v14571_v35, %v5095_v21  ;;  %v18461_v21 = vld [vmem:[#allocation65_spill] sm:$0xff] }
 0x456   : > { %v14787_v57 = vadd.f32 %v5132_v29, %v5044_v17  ;;  %v5190_v25 = vadd.f32 %v5189_v62, %v14761_v1  ;;  %v18451_v36 = vrot.slane %v14359_v2, 1  ;;  %v18453_v53 = vrot.slane %v18452_v37, 1 }
 0x457   : > { %v5022_v12 = vmul.f32 %v18423_v55, %v18454_v34  ;;  %v5023_v50 = vmul.f32 %v18423_v55, %v4995_v39  ;;  %v5096_v38 = vsel %vm806_vm1, %v5068_v33, %v5082_v24  ;;  %v5048_v14 = vadd.f32 %v5020_v18, %v18455_v27  ;;  %v18460_v18 = vld [vmem:[#allocation107_spill] sm:$0xff] }
 0x458   : > { %v4996_v10 = vsel %vm689_vm0, %v18453_v53, %v18451_v36  ;;  %v5049_v3 = vadd.f32 %v5021_v40, %v18456_v48  ;;  %v5070_v60 = vrot.slane %v14359_v2, 2  ;;  %v5192_v17 = vadd.f32 %v5191_v16, %v5190_v25  ;;  %v18463_v25 = vld [vmem:[#allocation16_spill] sm:$0xff]  ;;  %v18465_v53 = vld [vmem:[#allocation129_spill] sm:$0xff]  ;;  %v18467_v48 = vld [vmem:[#allocation91_spill] sm:$0xff] }
 0x459   : > { %v5084_v15 = vrot.slane %v18452_v37, 2  ;;  %v5137_v58 = vmul.f32 %v14571_v35, %v5110_v20  ;;  %v14806_v30 = vadd.f32 %v5135_v8, %v5047_v7  ;;  %v5194_v19 = vsel %vm1537_vm2, %v14780_v4, 0.0 }
 0x45a   : > { %v5111_v9 = vsel %vm806_vm1, %v5083_v13, %v5069_v45  ;;  %v5136_v33 = vmul.f32 %v14571_v35, %v5096_v38  ;;  %v14813_v24 = vadd.f32 %v5134_v26, %v5046_v42  ;;  %v5193_v46 = vadd.f32 %v5192_v17, %v14787_v57  ;;  %v18466_v38 = vld [vmem:[#allocation20_spill] sm:$0xff] }
 0x45b   : > { %v18457_v2 = vrot.slane %v18406_v31, 1  ;;  %v18458_v29 = vrot.slane %v18414_v51, 1  ;;  %v5024_v49 = vmul.f32 %v18423_v55, %v18459_v56  ;;  %v5025_v39 = vmul.f32 %v18423_v55, %v4996_v10  ;;  %v18469_v56 = vld [vmem:[#allocation130_spill] sm:$0xff] }
 0x45c   : > { %v5097_v32 = vsel %vm806_vm1, %v5069_v45, %v5083_v13  ;;  %v5050_v40 = vadd.f32 %v5022_v12, %v18460_v18  ;;  %v5051_v59 = vadd.f32 %v5023_v50, %v18461_v21  ;;  %v5071_v42 = vrot.slane %v18406_v31, 2  ;;  %v18462_v31 = vld [vmem:[#allocation11_spill] sm:$0xff]  ;;  %v18471_v18 = vld [vmem:[#allocation66_spill] sm:$0xff] }
 0x45d   : > { %v4997_v41 = vsel %vm689_vm0, %v18458_v29, %v18457_v2  ;;  %v5195_v28 = vadd.f32 %v5194_v19, %v5193_v46  ;;  %v5085_v7 = vrot.slane %v18414_v51, 2  ;;  %v5139_v62 = vmul.f32 %v14571_v35, %v5111_v9  ;;  %v18464_v51 = vld [vmem:[#allocation114_spill] sm:$0xff]  ;;  %v18468_v2 = vld [vmem:[#allocation92_spill] sm:$0xff] }
 0x45e   : > { %v14832_v8 = vadd.f32 %v5137_v58, %v5049_v3  ;;  %v5197_v16 = vsel %vm1537_vm2, %v14806_v30, 0.0  ;;  %v5112_v20 = vsel %vm806_vm1, %v5084_v15, %v5070_v60  ;;  %v5138_v45 = vmul.f32 %v14571_v35, %v5097_v32 }
 0x45f   : > { %v14839_v13 = vadd.f32 %v5136_v33, %v5048_v14  ;;  %v5196_v26 = vadd.f32 %v5195_v28, %v14813_v24  ;;  %v4941_v36 = vadd.f32 %v18463_v25, %v18462_v31  ;;  %v4957_v37 = vrot.slane %v18464_v51, 1  ;;  %v18473_v31 = vld [vmem:[#allocation69_spill] sm:$0xff] }
 0x460   : > { %v4971_v10 = vrot.slane %v18465_v53, 1  ;;  %v5098_v34 = vsel %vm806_vm1, %v5070_v60, %v5084_v15  ;;  %v5026_v12 = vmul.f32 %v18423_v55, %v14616_v63  ;;  %v5027_v50 = vmul.f32 %v18423_v55, %v4997_v41 }
 0x461   : > { %v5052_v27 = vadd.f32 %v5024_v49, %v18466_v38  ;;  %v5198_v14 = vadd.f32 %v5197_v16, %v5196_v26  ;;  %v5053_v3 = vadd.f32 %v5025_v39, %v18467_v48  ;;  %v5141_v17 = vmul.f32 %v14571_v35, %v5112_v20  ;;  %v18470_v39 = vld [vmem:[#allocation94_spill] sm:$0xff]  ;;  %v18472_v26 = vld [vmem:[#allocation13_spill] sm:$0xff] }
 0x462   : > { %v14854_v58 = vadd.f32 %v5139_v62, %v5051_v59  ;;  %v5200_v19 = vsel %vm1537_vm2, %v14832_v8, 0.0  ;;  %v5113_v60 = vsel %vm806_vm1, %v5085_v7, %v5071_v42  ;;  %v5140_v15 = vmul.f32 %v14571_v35, %v5098_v34 }
 0x463   : > { %v14861_v63 = vadd.f32 %v5138_v45, %v5050_v40  ;;  %v5199_v9 = vadd.f32 %v5198_v14, %v14839_v13  ;;  %v4985_v33 = vsel %vm689_vm0, %v4957_v37, %v4971_v10  ;;  %v4999_v46 = vsel %vm689_vm0, %v4971_v10, %v4957_v37  ;;  %v18474_v37 = vld [vmem:[#allocation35_spill] sm:$0xff]  ;;  %v18475_v10 = vld [vmem:[#allocation53_spill] sm:$0xff] }
 0x464   : > { %v5028_v29 = vmul.f32 %v18423_v55, %v18468_v2  ;;  %v5099_v41 = vsel %vm806_vm1, %v5071_v42, %v5085_v7  ;;  %v5029_v49 = vmul.f32 %v18423_v55, %v18469_v56  ;;  %v5054_v32 = vadd.f32 %v5026_v12, %v18470_v39 }
 0x465   : > { %v5055_v40 = vadd.f32 %v5027_v50, %v18471_v18  ;;  %v5201_v21 = vadd.f32 %v5200_v19, %v5199_v9  ;;  %v5073_v59 = vrot.slane %v18464_v51, 2  ;;  %v5143_v28 = vmul.f32 %v14571_v35, %v5113_v60  ;;  %v18476_v50 = vld [vmem:[#allocation115_spill] sm:$0xff]  ;;  %v18478_v60 = vld [vmem:[#allocation82_spill] sm:$0xff] }
 0x466   : > { %v14878_v62 = vadd.f32 %v5141_v17, %v5053_v3  ;;  %v5203_v16 = vsel %vm1537_vm2, %v14854_v58, 0.0  ;;  %v5087_v20 = vrot.slane %v18465_v53, 2  ;;  %v5142_v42 = vmul.f32 %v14571_v35, %v5099_v41  ;;  %v18477_v53 = vld [vmem:[#allocation113_spill] sm:$0xff] }
 0x467   : > { %v5168_v7 = vadd.f32 %v5140_v15, %v5052_v27  ;;  %v5202_v45 = vadd.f32 %v5201_v21, %v14861_v63  ;;  %v4942_v25 = vadd.f32 %v18473_v31, %v18472_v26  ;;  %v4943_v51 = vadd.f32 %v18475_v10, %v18474_v37 }
 0x468   : > { %v5030_v34 = vmul.f32 %v18423_v55, %v4985_v33  ;;  %v5031_v12 = vmul.f32 %v18423_v55, %v4999_v46  ;;  %v5056_v38 = vadd.f32 %v5028_v29, %v18476_v50  ;;  %v5057_v48 = vadd.f32 %v5029_v49, %v4941_v36 }
 0x469   : > { %v5204_v14 = vadd.f32 %v5203_v16, %v5202_v45  ;;  %v5145_v3 = vmul.f32 %v14571_v35, %v18477_v53  ;;  %v14894_v27 = vadd.f32 %v5143_v28, %v5055_v40  ;;  %v5206_v17 = vsel %vm1537_vm2, %v14878_v62, 0.0 }
 0x46a   : > { %v5115_v19 = vsel %vm806_vm1, %v5087_v20, %v5073_v59  ;;  %v5144_v15 = vmul.f32 %v14571_v35, %v18478_v60  ;;  %v5170_v9 = vadd.f32 %v5142_v42, %v5054_v32  ;;  %v5101_v33 = vsel %vm806_vm1, %v5073_v59, %v5087_v20 }
 0x46b   : > { %v5205_v55 = vadd.f32 %v5204_v14, %v5168_v7  ;;  %v5059_v46 = vadd.f32 %v5031_v12, %v4943_v51  ;;  %v5147_v2 = vmul.f32 %v14571_v35, %v5115_v19  ;;  %v14905_v29 = vadd.f32 %v5145_v3, %v5057_v48 }
 0x46c   : > { %v5209_v41 = vsel %vm1537_vm2, %v14894_v27, 0.0  ;;  %v5058_v56 = vadd.f32 %v5030_v34, %v4942_v25  ;;  %v5146_v49 = vmul.f32 %v14571_v35, %v5101_v33  ;;  %v5172_v39 = vadd.f32 %v5144_v15, %v5056_v38 }
 0x46d   : > { %v5207_v36 = vadd.f32 %v5206_v17, %v5205_v55  ;;  %v14910_v32 = vadd.f32 %v5147_v2, %v5059_v46  ;;  %v5212_v22 = vsel %vm1537_vm2, %v14905_v29, 0.0 }
 0x46e   : > { %v5174_v21 = vadd.f32 %v5146_v49, %v5058_v56 }
 0x46f   : > { %v5208_v18 = vadd.f32 %v5207_v36, %v5170_v9  ;;  %v5215_v16 = vsel %vm1537_vm2, %v14910_v32, 0.0 }
 0x471   : > { %v5210_v40 = vadd.f32 %v5209_v41, %v5208_v18 }
 0x473   : > { %v5211_v59 = vadd.f32 %v5210_v40, %v5172_v39 }
 0x475   : > { %v5213_v28 = vadd.f32 %v5212_v22, %v5211_v59 }
 0x477   : > { %v5214_v20 = vadd.f32 %v5213_v28, %v5174_v21 }
 0x479   : > { %v5216_v42 = vadd.f32 %v5215_v16, %v5214_v20 }
 0x47b   : > { %v5217_v45 = vrot.slane %v5216_v42, 4 }
 0x47d   : > { %v5218_v26 = vadd.f32 %v5217_v45, %v5216_v42 }
 0x47f   : > { %v5219_v31 = vrot.slane %v5218_v26, 2 }
 0x481   : > { %v5220_v35 = vadd.f32 %v5219_v31, %v5218_v26 }
 0x483   : > { %v5221_v25 = vrot.slane %v5220_v35, 1 }
 0x485   : > { %v5222_v37 = vadd.f32 %v5221_v25, %v5220_v35 }
 0x487   : > { %v14916_v10 = vmul.f32 0.0051020407, %v5222_v37 }
 0x489   : > { %v14920_v51 = vsub.f32 %v14683_v47, %v14916_v10  ;;  %v14924_v34 = vsub.f32 %v14709_v54, %v14916_v10  ;;  %v14928_v12 = vsub.f32 %v14735_v23, %v14916_v10  ;;  %v14932_v50 = vsub.f32 %v14761_v1, %v14916_v10 }
 0x48a   : > { %v14936_v38 = vsub.f32 %v14787_v57, %v14916_v10  ;;  %v14940_v47 = vsub.f32 %v14813_v24, %v14916_v10  ;;  %v14944_v54 = vsub.f32 %v14839_v13, %v14916_v10  ;;  %v14948_v23 = vsub.f32 %v14861_v63, %v14916_v10 }
 0x48b   : > { %v14951_v14 = vsub.f32 %v5168_v7, %v14916_v10  ;;  %v14954_v1 = vsub.f32 %v5170_v9, %v14916_v10  ;;  %v14958_v57 = vsub.f32 %v14646_v5, %v14916_v10  ;;  %v14961_v24 = vsub.f32 %v5172_v39, %v14916_v10 }
 0x48c   : > { %v14964_v13 = vsub.f32 %v5174_v21, %v14916_v10  ;;  %v14968_v63 = vsub.f32 %v14651_v6, %v14916_v10  ;;  %v14972_v7 = vsub.f32 %v14656_v0, %v14916_v10  ;;  %v14976_v48 = vsub.f32 %v14662_v44, %v14916_v10 }
 0x48d   : > { %v5253_v5 = vmul.f32 %v14958_v57, %v14958_v57  ;;  %v14984_v3 = vsub.f32 %v14676_v43, %v14916_v10  ;;  %v14993_v19 = vsub.f32 %v14702_v61, %v14916_v10  ;;  %v5256_v43 = vmul.f32 %v14920_v51, %v14920_v51 }
 0x48e   : > { %v5252_v53 = vmul.f32 %v14968_v63, %v14968_v63  ;;  %v5255_v6 = vmul.f32 %v14972_v7, %v14972_v7  ;;  %v5254_v0 = vmul.f32 %v14976_v48, %v14976_v48  ;;  %v15002_v33 = vsub.f32 %v14728_v11, %v14916_v10 }
 0x48f   : > { %v5280_v17 = vsel %vm1537_vm2, %v5253_v5, 0.0  ;;  %v5257_v60 = vmul.f32 %v14984_v3, %v14984_v3  ;;  %v5259_v36 = vmul.f32 %v14993_v19, %v14993_v19  ;;  %v5258_v46 = vmul.f32 %v14924_v34, %v14924_v34 }
 0x490   : > { %v5281_v44 = vadd.f32 %v5280_v17, %v5252_v53  ;;  %v5283_v15 = vsel %vm1537_vm2, %v5255_v6, 0.0  ;;  %v15011_v56 = vsub.f32 %v14754_v52, %v14916_v10  ;;  %v5261_v49 = vmul.f32 %v15002_v33, %v15002_v33 }
 0x491   : > { %v5286_v61 = vsel %vm1537_vm2, %v5257_v60, 0.0  ;;  %v5289_v11 = vsel %vm1537_vm2, %v5259_v36, 0.0  ;;  %v5260_v39 = vmul.f32 %v14928_v12, %v14928_v12  ;;  %v15020_v22 = vsub.f32 %v14780_v4, %v14916_v10 }
 0x492   : > { %v5282_v9 = vadd.f32 %v5281_v44, %v5254_v0  ;;  %v5263_v21 = vmul.f32 %v15011_v56, %v15011_v56  ;;  %v5292_v52 = vsel %vm1537_vm2, %v5261_v49, 0.0  ;;  %v5262_v59 = vmul.f32 %v14932_v50, %v14932_v50 }
 0x493   : > { %v15029_v20 = vsub.f32 %v14806_v30, %v14916_v10  ;;  %v5265_v42 = vmul.f32 %v15020_v22, %v15020_v22  ;;  %v5264_v45 = vmul.f32 %v14936_v38, %v14936_v38  ;;  %v15038_v35 = vsub.f32 %v14832_v8, %v14916_v10 }
 0x494   : > { %v5284_v55 = vadd.f32 %v5283_v15, %v5282_v9  ;;  %v5295_v4 = vsel %vm1537_vm2, %v5263_v21, 0.0  ;;  %v5266_v37 = vmul.f32 %v14940_v47, %v14940_v47  ;;  %v15047_v6 = vsub.f32 %v14854_v58, %v14916_v10 }
 0x495   : > { %v5267_v25 = vmul.f32 %v15029_v20, %v15029_v20  ;;  %v5298_v30 = vsel %vm1537_vm2, %v5265_v42, 0.0  ;;  %v5269_v0 = vmul.f32 %v15038_v35, %v15038_v35  ;;  %v5268_v17 = vmul.f32 %v14944_v54, %v14944_v54 }
 0x496   : > { %v5285_v2 = vadd.f32 %v5284_v55, %v5256_v43  ;;  %v15056_v15 = vsub.f32 %v14878_v62, %v14916_v10  ;;  %v5271_v43 = vmul.f32 %v15047_v6, %v15047_v6  ;;  %v5270_v9 = vmul.f32 %v14948_v23, %v14948_v23 }
 0x497   : > { %v5301_v8 = vsel %vm1537_vm2, %v5267_v25, 0.0  ;;  %v5304_v58 = vsel %vm1537_vm2, %v5269_v0, 0.0 }
 0x498   : > { %v5287_v41 = vadd.f32 %v5286_v61, %v5285_v2  ;;  %v15065_v61 = vsub.f32 %v14894_v27, %v14916_v10  ;;  %v5307_v62 = vsel %vm1537_vm2, %v5271_v43, 0.0  ;;  %v5272_v2 = vmul.f32 %v14951_v14, %v14951_v14  ;;  %v6060_v43 = vld [vmem:[%s9426_s30] sm:$0xf] }
 0x49a   : > { %v5288_v18 = vadd.f32 %v5287_v41, %v5258_v46  ;;  %v5273_v46 = vmul.f32 %v15056_v15, %v15056_v15 }
 0x49c   : > { %v5290_v40 = vadd.f32 %v5289_v11, %v5288_v18  ;;  %v15074_v11 = vsub.f32 %v14905_v29, %v14916_v10  ;;  %v5310_v27 = vsel %vm1537_vm2, %v5273_v46, 0.0  ;;  %v5274_v18 = vmul.f32 %v14954_v1, %v14954_v1 }
 0x49e   : > { %v5291_v28 = vadd.f32 %v5290_v40, %v5260_v39  ;;  %v5275_v39 = vmul.f32 %v15065_v61, %v15065_v61 }
 0x4a0   : > { %v5293_v16 = vadd.f32 %v5292_v52, %v5291_v28  ;;  %v15083_v52 = vsub.f32 %v14910_v32, %v14916_v10  ;;  %v5313_v29 = vsel %vm1537_vm2, %v5275_v39, 0.0  ;;  %v5276_v28 = vmul.f32 %v14961_v24, %v14961_v24 }
 0x4a1   : > { %v5278_v32 = vmul.f32 %v14964_v13, %v14964_v13 }
 0x4a2   : > { %v5294_v26 = vadd.f32 %v5293_v16, %v5262_v59  ;;  %v5277_v59 = vmul.f32 %v15074_v11, %v15074_v11 }
 0x4a4   : > { %v5296_v31 = vadd.f32 %v5295_v4, %v5294_v26  ;;  %v5279_v4 = vmul.f32 %v15083_v52, %v15083_v52 }
 0x4a6   : > { %v5297_v5 = vadd.f32 %v5296_v31, %v5264_v45  ;;  %v5316_v45 = vsel %vm1537_vm2, %v5277_v59, 0.0  ;;  %v5319_v31 = vsel %vm1537_vm2, %v5279_v4, 0.0 }
 0x4a8   : > { %v5299_v53 = vadd.f32 %v5298_v30, %v5297_v5 }
 0x4aa   : > { %v5300_v44 = vadd.f32 %v5299_v53, %v5266_v37 }
 0x4ac   : > { %v5302_v60 = vadd.f32 %v5301_v8, %v5300_v44 }
 0x4ae   : > { %v5303_v55 = vadd.f32 %v5302_v60, %v5268_v17 }
 0x4b0   : > { %v5305_v36 = vadd.f32 %v5304_v58, %v5303_v55  ;;  %v5328_v58 = vrot.slane %v6060_v43, 3 }
 0x4b2   : > { %v5306_v41 = vadd.f32 %v5305_v36, %v5270_v9  ;;  %v6061_v9 = vld [vmem:[%s8538_s27] sm:$0xf] }
 0x4b3   : > { %v5367_v55 = vrot.slane %v6061_v9, 3 }
 0x4b4   : > { %v5308_v49 = vadd.f32 %v5307_v62, %v5306_v41  ;;  %v18479_v62 = vld [vmem:[#allocation6_spill] sm:$0xff] }
 0x4b6   : > { %v5309_v40 = vadd.f32 %v5308_v49, %v5272_v2  ;;  %v15099_v2 = vrot.slane %v5367_v55, %v18479_v62 }
 0x4b8   : > { %v5311_v21 = vadd.f32 %v5310_v27, %v5309_v40 }
 0x4ba   : > { %v5312_v16 = vadd.f32 %v5311_v21, %v5274_v18 }
 0x4bc   : > { %v5314_v42 = vadd.f32 %v5313_v29, %v5312_v16 }
 0x4be   : > { %v5315_v10 = vadd.f32 %v5314_v42, %v5276_v28 }
 0x4c0   : > { %v5317_v26 = vadd.f32 %v5316_v45, %v5315_v10 }
 0x4c2   : > { %v5318_v25 = vadd.f32 %v5317_v26, %v5278_v32 }
 0x4c4   : > { %v5320_v30 = vadd.f32 %v5319_v31, %v5318_v25 }
 0x4c6   : > { %v5321_v37 = vrot.slane %v5320_v30, 4 }
 0x4c8   : > { %v5322_v5 = vadd.f32 %v5321_v37, %v5320_v30 }
 0x4ca   : > { %v5323_v53 = vrot.slane %v5322_v5, 2 }
 0x4cc   : > { %v5324_v0 = vadd.f32 %v5323_v53, %v5322_v5 }
 0x4ce   : > { %v5325_v8 = vrot.slane %v5324_v0, 1 }
 0x4d0   : > { %v5326_v17 = vadd.f32 %v5325_v8, %v5324_v0 }
 0x4d2   : > { %v5327_v44 = vmul.f32 0.0051020407, %v5326_v17 }
 0x4d4   : > { %v5330_v60 = vadd.f32 0.001, %v5327_v44 }
 0x4d6   : > { %6051 = vrsqrt.f32 %v5330_v60 }
 0x4e0   : > { %v6052_v36 = vpop.eup %6051 }
 0x4e1   : > { %v5332_v46 = vmul.f32 %v6052_v36, %v5328_v58 }
 0x4e3   : > { %v15102_v41 = vrot.slane %v5332_v46, %v18479_v62  ;;  %v5459_v46 = vld [vmem:[%s9544_s6 + $0x20] sm:$0xff] (%p6146_p5)  ;;  %v5461_v62 = vld [vmem:[%s9544_s6 + $0x28] sm:$0xff] (%p6146_p5) }
 0x4e4   : > { %5460 = vst [vmem:[%s15225_s10 + $0x40] sm:$0xff] (%p6146_p5), %v5459_v46  ;;  %5462 = vst [vmem:[%s15225_s10 + $0x48] sm:$0xff] (%p6146_p5), %v5461_v62  ;;  %v5587_v46 = vld [vmem:[%s9544_s6 + $0x220] sm:$0xff] (%p6146_p5)  ;;  %v5589_v62 = vld [vmem:[%s9544_s6 + $0x228] sm:$0xff] (%p6146_p5) }
 0x4e5   : > { %v5339_v49 = vmul.f32 %v15102_v41, %v14968_v63  ;;  %v5340_v39 = vmul.f32 %v15102_v41, %v14958_v57  ;;  %v5341_v27 = vmul.f32 %v15102_v41, %v14976_v48  ;;  %v5342_v18 = vmul.f32 %v15102_v41, %v14972_v7  ;;  %5588 = vst [vmem:[%s15225_s10 + $0x440] sm:$0xff] (%p6146_p5), %v5587_v46 }
 0x4e6   : > { %v5343_v40 = vmul.f32 %v15102_v41, %v14920_v51  ;;  %v5344_v21 = vmul.f32 %v15102_v41, %v14984_v3  ;;  %v5345_v63 = vmul.f32 %v15102_v41, %v14924_v34  ;;  %v5346_v57 = vmul.f32 %v15102_v41, %v14993_v19  ;;  %5590 = vst [vmem:[%s15225_s10 + $0x448] sm:$0xff] (%p6146_p5), %v5589_v62 }
 0x4e7   : > { %v5373_v59 = vadd.f32 %v15099_v2, %v5339_v49  ;;  %v5374_v48 = vadd.f32 %v15099_v2, %v5340_v39  ;;  %v5375_v7 = vadd.f32 %v15099_v2, %v5341_v27  ;;  %v5376_v51 = vadd.f32 %v15099_v2, %v5342_v18  ;;  %v5467_v49 = vld [vmem:[%s9544_s6 + $0x40] sm:$0xff] (%p6146_p5)  ;;  %v5469_v39 = vld [vmem:[%s9544_s6 + $0x48] sm:$0xff] (%p6146_p5)  ;;  %v5471_v27 = vld [vmem:[%s9544_s6 + $0x50] sm:$0xff] (%p6146_p5) }
 0x4e8   : > { %v5377_v3 = vadd.f32 %v15099_v2, %v5343_v40  ;;  %v5378_v29 = vadd.f32 %v15099_v2, %v5344_v21  ;;  %v5379_v34 = vadd.f32 %v15099_v2, %v5345_v63  ;;  %v5380_v19 = vadd.f32 %v15099_v2, %v5346_v57  ;;  %5468 = vst [vmem:[%s15225_s10 + $0x80] sm:$0xff] (%p6146_p5), %v5467_v49  ;;  %v5475_v40 = vld [vmem:[%s9544_s6 + $0x60] sm:$0xff] (%p6146_p5)  ;;  %v5477_v21 = vld [vmem:[%s9544_s6 + $0x68] sm:$0xff] (%p6146_p5)  ;;  %v5479_v63 = vld [vmem:[%s9544_s6 + $0x70] sm:$0xff] (%p6146_p5) }
 0x4e9   : > { %5401 = vst [vmem:[%s9544_s6 + $0x18] sm:$0xff] %v5373_v59  ;;  %5402 = vst [vmem:[%s9544_s6 + $0x38] sm:$0x3f] %v5374_v48  ;;  %v5347_v28 = vmul.f32 %v15102_v41, %v14928_v12  ;;  %v5348_v16 = vmul.f32 %v15102_v41, %v15002_v33  ;;  %v5349_v42 = vmul.f32 %v15102_v41, %v14932_v50  ;;  %v5483_v59 = vld [vmem:[%s9544_s6 + $0x80] sm:$0xff] (%p6146_p5)  ;;  %v5485_v48 = vld [vmem:[%s9544_s6 + $0x88] sm:$0xff] (%p6146_p5) }
 0x4ea   : > { %5403 = vst [vmem:[%s9544_s6 + $0x58] sm:$0xff] %v5375_v7  ;;  %5404 = vst [vmem:[%s9544_s6 + $0x78] sm:$0x3f] %v5376_v51  ;;  %v5350_v4 = vmul.f32 %v15102_v41, %v15011_v56  ;;  %v5351_v12 = vmul.f32 %v15102_v41, %v14936_v38  ;;  %v5352_v33 = vmul.f32 %v15102_v41, %v15020_v22  ;;  %v5487_v7 = vld [vmem:[%s9544_s6 + $0x90] sm:$0xff] (%p6146_p5)  ;;  %v5595_v49 = vld [vmem:[%s9544_s6 + $0x240] sm:$0xff] (%p6146_p5) }
 0x4eb   : > { %5405 = vst [vmem:[%s9544_s6 + $0x98] sm:$0xff] %v5377_v3  ;;  %5406 = vst [vmem:[%s9544_s6 + $0xb8] sm:$0x3f] %v5378_v29  ;;  %v5353_v50 = vmul.f32 %v15102_v41, %v14940_v47  ;;  %v5354_v56 = vmul.f32 %v15102_v41, %v15029_v20  ;;  %v5381_v45 = vadd.f32 %v15099_v2, %v5347_v28  ;;  %v5491_v3 = vld [vmem:[%s9544_s6 + $0xa0] sm:$0xff] (%p6146_p5)  ;;  %v5493_v29 = vld [vmem:[%s9544_s6 + $0xa8] sm:$0xff] (%p6146_p5) }
 0x4ec   : > { %5407 = vst [vmem:[%s9544_s6 + $0xd8] sm:$0xff] %v5379_v34  ;;  %5408 = vst [vmem:[%s9544_s6 + $0xf8] sm:$0x3f] %v5380_v19  ;;  %v5382_v32 = vadd.f32 %v15099_v2, %v5348_v16  ;;  %v5383_v10 = vadd.f32 %v15099_v2, %v5349_v42  ;;  %v5384_v38 = vadd.f32 %v15099_v2, %v5350_v4  ;;  %v5495_v34 = vld [vmem:[%s9544_s6 + $0xb0] sm:$0xff] (%p6146_p5)  ;;  %v5499_v28 = vld [vmem:[%s9544_s6 + $0xc0] sm:$0xff] (%p6146_p5) }
 0x4ed   : > { %v5385_v22 = vadd.f32 %v15099_v2, %v5351_v12  ;;  %v5386_v26 = vadd.f32 %v15099_v2, %v5352_v33  ;;  %v5387_v47 = vadd.f32 %v15099_v2, %v5353_v50  ;;  %v5388_v20 = vadd.f32 %v15099_v2, %v5354_v56  ;;  %5409 = vst [vmem:[%s9544_s6 + $0x118] sm:$0xff] %v5381_v45  ;;  %v5501_v16 = vld [vmem:[%s9544_s6 + $0xc8] sm:$0xff] (%p6146_p5)  ;;  %v5503_v42 = vld [vmem:[%s9544_s6 + $0xd0] sm:$0xff] (%p6146_p5)  ;;  %v5507_v12 = vld [vmem:[%s9544_s6 + $0xe0] sm:$0xff] (%p6146_p5) }
 0x4ee   : > { %5410 = vst [vmem:[%s9544_s6 + $0x138] sm:$0x3f] %v5382_v32  ;;  %5411 = vst [vmem:[%s9544_s6 + $0x158] sm:$0xff] %v5383_v10  ;;  %v5355_v31 = vmul.f32 %v15102_v41, %v14944_v54  ;;  %v5356_v25 = vmul.f32 %v15102_v41, %v15038_v35  ;;  %v5357_v30 = vmul.f32 %v15102_v41, %v14948_v23  ;;  %v5509_v33 = vld [vmem:[%s9544_s6 + $0xe8] sm:$0xff] (%p6146_p5)  ;;  %v5511_v50 = vld [vmem:[%s9544_s6 + $0xf0] sm:$0xff] (%p6146_p5) }
 0x4ef   : > { %5412 = vst [vmem:[%s9544_s6 + $0x178] sm:$0x3f] %v5384_v38  ;;  %v5358_v37 = vmul.f32 %v15102_v41, %v15047_v6  ;;  %5413 = vst [vmem:[%s9544_s6 + $0x198] sm:$0xff] %v5385_v22  ;;  %v5359_v54 = vmul.f32 %v15102_v41, %v14951_v14  ;;  %v5360_v35 = vmul.f32 %v15102_v41, %v15056_v15  ;;  %v5515_v45 = vld [vmem:[%s9544_s6 + $0x100] sm:$0xff] (%p6146_p5)  ;;  %v5517_v32 = vld [vmem:[%s9544_s6 + $0x108] sm:$0xff] (%p6146_p5) }
 0x4f0   : > { %5414 = vst [vmem:[%s9544_s6 + $0x1b8] sm:$0x3f] %v5386_v26  ;;  %5415 = vst [vmem:[%s9544_s6 + $0x1d8] sm:$0xff] %v5387_v47  ;;  %v5361_v23 = vmul.f32 %v15102_v41, %v14954_v1  ;;  %v5362_v6 = vmul.f32 %v15102_v41, %v15065_v61  ;;  %v5389_v5 = vadd.f32 %v15099_v2, %v5355_v31  ;;  %v5457_v36 = vld [vmem:[%s9544_s6 + $0x18] sm:$0xff] (%p6146_p5)  ;;  %v5519_v10 = vld [vmem:[%s9544_s6 + $0x110] sm:$0xff] (%p6146_p5) }
 0x4f1   : > { %5416 = vst [vmem:[%s9544_s6 + $0x1f8] sm:$0x3f] %v5388_v20  ;;  %v5390_v53 = vadd.f32 %v15099_v2, %v5356_v25  ;;  %v5391_v0 = vadd.f32 %v15099_v2, %v5357_v30  ;;  %v5392_v14 = vadd.f32 %v15099_v2, %v5358_v37  ;;  %v5393_v15 = vadd.f32 %v15099_v2, %v5359_v54  ;;  %v5473_v18 = vld [vmem:[%s9544_s6 + $0x58] sm:$0xff] (%p6146_p5)  ;;  %v5523_v22 = vld [vmem:[%s9544_s6 + $0x120] sm:$0xff] (%p6146_p5)  ;;  %v5525_v26 = vld [vmem:[%s9544_s6 + $0x128] sm:$0xff] (%p6146_p5) }
 0x4f2   : > { %v5394_v8 = vadd.f32 %v15099_v2, %v5360_v35  ;;  %v5395_v1 = vadd.f32 %v15099_v2, %v5361_v23  ;;  %v5396_v61 = vadd.f32 %v15099_v2, %v5362_v6  ;;  %5417 = vst [vmem:[%s9544_s6 + $0x218] sm:$0xff] %v5389_v5  ;;  %v5363_v17 = vmul.f32 %v15102_v41, %v14961_v24  ;;  %5435 = sbr.rel (!%p6146_p5) target bundleno = 1326 (0x52e), region = 86  ;;  %v5481_v57 = vld [vmem:[%s9544_s6 + $0x78] sm:$0xff] (%p6146_p5)  ;;  %v5527_v47 = vld [vmem:[%s9544_s6 + $0x130] sm:$0xff] (%p6146_p5)  ;;  %v5531_v31 = vld [vmem:[%s9544_s6 + $0x140] sm:$0xff] (%p6146_p5) }
 0x4f3   : > { %5418 = vst [vmem:[%s9544_s6 + $0x238] sm:$0x3f] %v5390_v53  ;;  %5419 = vst [vmem:[%s9544_s6 + $0x258] sm:$0xff] %v5391_v0  ;;  %v5364_v44 = vmul.f32 %v15102_v41, %v15074_v11  ;;  %v5365_v60 = vmul.f32 %v15102_v41, %v14964_v13  ;;  %v5366_v43 = vmul.f32 %v15102_v41, %v15083_v52  ;;  %v5451_v13 = vld [vmem:[%s9544_s6] sm:$0xff] (%p6146_p5)  ;;  %v5453_v11 = vld [vmem:[%s9544_s6 + $0x8] sm:$0xff] (%p6146_p5) }
 0x4f4   : > { %5420 = vst [vmem:[%s9544_s6 + $0x278] sm:$0x3f] %v5392_v14  ;;  %5421 = vst [vmem:[%s9544_s6 + $0x298] sm:$0xff] %v5393_v15  ;;  %v5397_v58 = vadd.f32 %v15099_v2, %v5363_v17  ;;  %v5455_v52 = vld [vmem:[%s9544_s6 + $0x10] sm:$0xff] (%p6146_p5)  ;;  %v5465_v41 = vld [vmem:[%s9544_s6 + $0x38] sm:$0xff] (%p6146_p5) }
 0x4f5   : > { %5422 = vst [vmem:[%s9544_s6 + $0x2b8] sm:$0x3f] %v5394_v8  ;;  %5423 = vst [vmem:[%s9544_s6 + $0x2d8] sm:$0xff] %v5395_v1  ;;  %v5398_v9 = vadd.f32 %v15099_v2, %v5364_v44  ;;  %v5399_v55 = vadd.f32 %v15099_v2, %v5365_v60  ;;  %v5400_v24 = vadd.f32 %v15099_v2, %v5366_v43  ;;  %v5463_v2 = vld [vmem:[%s9544_s6 + $0x30] sm:$0xff] (%p6146_p5)  ;;  %v5489_v51 = vld [vmem:[%s9544_s6 + $0x98] sm:$0xff] (%p6146_p5) }
 0x4f6   : > { %5424 = vst [vmem:[%s9544_s6 + $0x2f8] sm:$0x3f] %v5396_v61  ;;  %5425 = vst [vmem:[%s9544_s6 + $0x318] sm:$0xff] %v5397_v58  ;;  %v5497_v19 = vld [vmem:[%s9544_s6 + $0xb8] sm:$0xff] (%p6146_p5)  ;;  %v5533_v25 = vld [vmem:[%s9544_s6 + $0x148] sm:$0xff] (%p6146_p5) }
 0x4f7   : > { %5426 = vst [vmem:[%s9544_s6 + $0x338] sm:$0x3f] %v5398_v9  ;;  %5427 = vst [vmem:[%s9544_s6 + $0x358] sm:$0xff] %v5399_v55  ;;  %v5505_v4 = vld [vmem:[%s9544_s6 + $0xd8] sm:$0xff] (%p6146_p5)  ;;  %v5535_v30 = vld [vmem:[%s9544_s6 + $0x150] sm:$0xff] (%p6146_p5) }
 0x4f8   : > { %5428 = vst [vmem:[%s9544_s6 + $0x378] sm:$0x3f] %v5400_v24  ;;  %5452 = vst [vmem:[%s15225_s10] sm:$0xff] (%p6146_p5), %v5451_v13  ;;  %v5513_v56 = vld [vmem:[%s9544_s6 + $0xf8] sm:$0xff] (%p6146_p5)  ;;  %v5539_v54 = vld [vmem:[%s9544_s6 + $0x160] sm:$0xff] (%p6146_p5) }
 0x4f9   : > { %5454 = vst [vmem:[%s15225_s10 + $0x8] sm:$0xff] %v5453_v11  ;;  %5456 = vst [vmem:[%s15225_s10 + $0x10] sm:$0xff] %v5455_v52  ;;  %v5521_v38 = vld [vmem:[%s9544_s6 + $0x118] sm:$0xff]  ;;  %v5541_v35 = vld [vmem:[%s9544_s6 + $0x168] sm:$0xff] }
 0x4fa   : > { %5458 = vst [vmem:[%s15225_s10 + $0x18] sm:$0xff] %v5457_v36  ;;  %5464 = vst [vmem:[%s15225_s10 + $0x50] sm:$0xff] %v5463_v2  ;;  %v5529_v20 = vld [vmem:[%s9544_s6 + $0x138] sm:$0xff]  ;;  %v5543_v23 = vld [vmem:[%s9544_s6 + $0x170] sm:$0xff] }
 0x4fb   : > { %5466 = vst [vmem:[%s15225_s10 + $0x58] sm:$0xff] %v5465_v41  ;;  %5470 = vst [vmem:[%s15225_s10 + $0x88] sm:$0xff] %v5469_v39  ;;  %v5537_v37 = vld [vmem:[%s9544_s6 + $0x158] sm:$0xff]  ;;  %v5547_v5 = vld [vmem:[%s9544_s6 + $0x180] sm:$0xff] }
 0x4fc   : > { %5472 = vst [vmem:[%s15225_s10 + $0x90] sm:$0xff] %v5471_v27  ;;  %5474 = vst [vmem:[%s15225_s10 + $0x98] sm:$0xff] %v5473_v18  ;;  %v5545_v6 = vld [vmem:[%s9544_s6 + $0x178] sm:$0xff]  ;;  %v5549_v53 = vld [vmem:[%s9544_s6 + $0x188] sm:$0xff] }
 0x4fd   : > { %5476 = vst [vmem:[%s15225_s10 + $0xc0] sm:$0xff] %v5475_v40  ;;  %5478 = vst [vmem:[%s15225_s10 + $0xc8] sm:$0xff] %v5477_v21  ;;  %v5551_v0 = vld [vmem:[%s9544_s6 + $0x190] sm:$0xff]  ;;  %v5553_v14 = vld [vmem:[%s9544_s6 + $0x198] sm:$0xff] }
 0x4fe   : > { %5480 = vst [vmem:[%s15225_s10 + $0xd0] sm:$0xff] %v5479_v63  ;;  %5482 = vst [vmem:[%s15225_s10 + $0xd8] sm:$0xff] %v5481_v57  ;;  %v5555_v15 = vld [vmem:[%s9544_s6 + $0x1a0] sm:$0xff]  ;;  %v5557_v8 = vld [vmem:[%s9544_s6 + $0x1a8] sm:$0xff] }
 0x4ff   : > { %5484 = vst [vmem:[%s15225_s10 + $0x100] sm:$0xff] %v5483_v59  ;;  %5486 = vst [vmem:[%s15225_s10 + $0x108] sm:$0xff] %v5485_v48  ;;  %v5559_v1 = vld [vmem:[%s9544_s6 + $0x1b0] sm:$0xff]  ;;  %v5561_v61 = vld [vmem:[%s9544_s6 + $0x1b8] sm:$0xff] }
 0x500   : > { %5488 = vst [vmem:[%s15225_s10 + $0x110] sm:$0xff] %v5487_v7  ;;  %5490 = vst [vmem:[%s15225_s10 + $0x118] sm:$0xff] %v5489_v51  ;;  %v5563_v17 = vld [vmem:[%s9544_s6 + $0x1c0] sm:$0xff]  ;;  %v5565_v44 = vld [vmem:[%s9544_s6 + $0x1c8] sm:$0xff] }
 0x501   : > { %5492 = vst [vmem:[%s15225_s10 + $0x140] sm:$0xff] %v5491_v3  ;;  %5494 = vst [vmem:[%s15225_s10 + $0x148] sm:$0xff] %v5493_v29  ;;  %v5567_v60 = vld [vmem:[%s9544_s6 + $0x1d0] sm:$0xff]  ;;  %v5569_v43 = vld [vmem:[%s9544_s6 + $0x1d8] sm:$0xff] }
 0x502   : > { %5496 = vst [vmem:[%s15225_s10 + $0x150] sm:$0xff] %v5495_v34  ;;  %5498 = vst [vmem:[%s15225_s10 + $0x158] sm:$0xff] %v5497_v19  ;;  %v5571_v58 = vld [vmem:[%s9544_s6 + $0x1e0] sm:$0xff]  ;;  %v5573_v9 = vld [vmem:[%s9544_s6 + $0x1e8] sm:$0xff] }
 0x503   : > { %5500 = vst [vmem:[%s15225_s10 + $0x180] sm:$0xff] %v5499_v28  ;;  %5502 = vst [vmem:[%s15225_s10 + $0x188] sm:$0xff] %v5501_v16  ;;  %v5575_v55 = vld [vmem:[%s9544_s6 + $0x1f0] sm:$0xff]  ;;  %v5577_v24 = vld [vmem:[%s9544_s6 + $0x1f8] sm:$0xff] }
 0x504   : > { %5504 = vst [vmem:[%s15225_s10 + $0x190] sm:$0xff] %v5503_v42  ;;  %5506 = vst [vmem:[%s15225_s10 + $0x198] sm:$0xff] %v5505_v4  ;;  %v5579_v13 = vld [vmem:[%s9544_s6 + $0x200] sm:$0xff]  ;;  %v5581_v11 = vld [vmem:[%s9544_s6 + $0x208] sm:$0xff] }
 0x505   : > { %5508 = vst [vmem:[%s15225_s10 + $0x1c0] sm:$0xff] %v5507_v12  ;;  %5510 = vst [vmem:[%s15225_s10 + $0x1c8] sm:$0xff] %v5509_v33  ;;  %v5583_v52 = vld [vmem:[%s9544_s6 + $0x210] sm:$0xff]  ;;  %v5585_v36 = vld [vmem:[%s9544_s6 + $0x218] sm:$0xff] }
 0x506   : > { %5512 = vst [vmem:[%s15225_s10 + $0x1d0] sm:$0xff] %v5511_v50  ;;  %5514 = vst [vmem:[%s15225_s10 + $0x1d8] sm:$0xff] %v5513_v56  ;;  %v5591_v2 = vld [vmem:[%s9544_s6 + $0x230] sm:$0xff]  ;;  %v5593_v41 = vld [vmem:[%s9544_s6 + $0x238] sm:$0xff] }
 0x507   : > { %5516 = vst [vmem:[%s15225_s10 + $0x200] sm:$0xff] %v5515_v45  ;;  %5518 = vst [vmem:[%s15225_s10 + $0x208] sm:$0xff] %v5517_v32  ;;  %v5597_v39 = vld [vmem:[%s9544_s6 + $0x248] sm:$0xff]  ;;  %v5599_v27 = vld [vmem:[%s9544_s6 + $0x250] sm:$0xff] }
 0x508   : > { %5520 = vst [vmem:[%s15225_s10 + $0x210] sm:$0xff] %v5519_v10  ;;  %5522 = vst [vmem:[%s15225_s10 + $0x218] sm:$0xff] %v5521_v38  ;;  %v5601_v18 = vld [vmem:[%s9544_s6 + $0x258] sm:$0xff]  ;;  %v5603_v40 = vld [vmem:[%s9544_s6 + $0x260] sm:$0xff] }
 0x509   : > { %5524 = vst [vmem:[%s15225_s10 + $0x240] sm:$0xff] %v5523_v22  ;;  %5526 = vst [vmem:[%s15225_s10 + $0x248] sm:$0xff] %v5525_v26  ;;  %v5605_v21 = vld [vmem:[%s9544_s6 + $0x268] sm:$0xff]  ;;  %v5607_v63 = vld [vmem:[%s9544_s6 + $0x270] sm:$0xff] }
 0x50a   : > { %5528 = vst [vmem:[%s15225_s10 + $0x250] sm:$0xff] %v5527_v47  ;;  %5530 = vst [vmem:[%s15225_s10 + $0x258] sm:$0xff] %v5529_v20  ;;  %v5609_v57 = vld [vmem:[%s9544_s6 + $0x278] sm:$0xff]  ;;  %v5611_v59 = vld [vmem:[%s9544_s6 + $0x280] sm:$0xff] }
 0x50b   : > { %5532 = vst [vmem:[%s15225_s10 + $0x280] sm:$0xff] %v5531_v31  ;;  %5534 = vst [vmem:[%s15225_s10 + $0x288] sm:$0xff] %v5533_v25  ;;  %v5613_v48 = vld [vmem:[%s9544_s6 + $0x288] sm:$0xff]  ;;  %v5615_v7 = vld [vmem:[%s9544_s6 + $0x290] sm:$0xff] }
 0x50c   : > { %5536 = vst [vmem:[%s15225_s10 + $0x290] sm:$0xff] %v5535_v30  ;;  %5538 = vst [vmem:[%s15225_s10 + $0x298] sm:$0xff] %v5537_v37  ;;  %v5617_v51 = vld [vmem:[%s9544_s6 + $0x298] sm:$0xff]  ;;  %v5619_v3 = vld [vmem:[%s9544_s6 + $0x2a0] sm:$0xff] }
 0x50d   : > { %5540 = vst [vmem:[%s15225_s10 + $0x2c0] sm:$0xff] %v5539_v54  ;;  %5542 = vst [vmem:[%s15225_s10 + $0x2c8] sm:$0xff] %v5541_v35  ;;  %v5621_v29 = vld [vmem:[%s9544_s6 + $0x2a8] sm:$0xff]  ;;  %v5623_v34 = vld [vmem:[%s9544_s6 + $0x2b0] sm:$0xff] }
 0x50e   : > { %5544 = vst [vmem:[%s15225_s10 + $0x2d0] sm:$0xff] %v5543_v23  ;;  %5546 = vst [vmem:[%s15225_s10 + $0x2d8] sm:$0xff] %v5545_v6  ;;  %v5625_v19 = vld [vmem:[%s9544_s6 + $0x2b8] sm:$0xff]  ;;  %v5627_v28 = vld [vmem:[%s9544_s6 + $0x2c0] sm:$0xff] }
 0x50f   : > { %5548 = vst [vmem:[%s15225_s10 + $0x300] sm:$0xff] %v5547_v5  ;;  %5550 = vst [vmem:[%s15225_s10 + $0x308] sm:$0xff] %v5549_v53  ;;  %v5629_v16 = vld [vmem:[%s9544_s6 + $0x2c8] sm:$0xff]  ;;  %v5631_v42 = vld [vmem:[%s9544_s6 + $0x2d0] sm:$0xff] }
 0x510   : > { %5552 = vst [vmem:[%s15225_s10 + $0x310] sm:$0xff] %v5551_v0  ;;  %5554 = vst [vmem:[%s15225_s10 + $0x318] sm:$0xff] %v5553_v14  ;;  %v5633_v4 = vld [vmem:[%s9544_s6 + $0x2d8] sm:$0xff]  ;;  %v5635_v12 = vld [vmem:[%s9544_s6 + $0x2e0] sm:$0xff] }
 0x511   : > { %5556 = vst [vmem:[%s15225_s10 + $0x340] sm:$0xff] %v5555_v15  ;;  %5558 = vst [vmem:[%s15225_s10 + $0x348] sm:$0xff] %v5557_v8  ;;  %v5637_v33 = vld [vmem:[%s9544_s6 + $0x2e8] sm:$0xff]  ;;  %v5639_v50 = vld [vmem:[%s9544_s6 + $0x2f0] sm:$0xff] }
 0x512   : > { %5560 = vst [vmem:[%s15225_s10 + $0x350] sm:$0xff] %v5559_v1  ;;  %5562 = vst [vmem:[%s15225_s10 + $0x358] sm:$0xff] %v5561_v61  ;;  %v5641_v56 = vld [vmem:[%s9544_s6 + $0x2f8] sm:$0xff]  ;;  %v5643_v45 = vld [vmem:[%s9544_s6 + $0x300] sm:$0xff] }
 0x513   : > { %5564 = vst [vmem:[%s15225_s10 + $0x380] sm:$0xff] %v5563_v17  ;;  %5566 = vst [vmem:[%s15225_s10 + $0x388] sm:$0xff] %v5565_v44  ;;  %v5645_v32 = vld [vmem:[%s9544_s6 + $0x308] sm:$0xff]  ;;  %v5647_v10 = vld [vmem:[%s9544_s6 + $0x310] sm:$0xff] }
 0x514   : > { %5568 = vst [vmem:[%s15225_s10 + $0x390] sm:$0xff] %v5567_v60  ;;  %5570 = vst [vmem:[%s15225_s10 + $0x398] sm:$0xff] %v5569_v43  ;;  %v5649_v38 = vld [vmem:[%s9544_s6 + $0x318] sm:$0xff]  ;;  %v5651_v22 = vld [vmem:[%s9544_s6 + $0x320] sm:$0xff] }
 0x515   : > { %5572 = vst [vmem:[%s15225_s10 + $0x3c0] sm:$0xff] %v5571_v58  ;;  %5574 = vst [vmem:[%s15225_s10 + $0x3c8] sm:$0xff] %v5573_v9  ;;  %v5653_v26 = vld [vmem:[%s9544_s6 + $0x328] sm:$0xff]  ;;  %v5655_v47 = vld [vmem:[%s9544_s6 + $0x330] sm:$0xff] }
 0x516   : > { %5576 = vst [vmem:[%s15225_s10 + $0x3d0] sm:$0xff] %v5575_v55  ;;  %5578 = vst [vmem:[%s15225_s10 + $0x3d8] sm:$0xff] %v5577_v24  ;;  %v5657_v20 = vld [vmem:[%s9544_s6 + $0x338] sm:$0xff]  ;;  %v5659_v31 = vld [vmem:[%s9544_s6 + $0x340] sm:$0xff] }
 0x517   : > { %5580 = vst [vmem:[%s15225_s10 + $0x400] sm:$0xff] %v5579_v13  ;;  %5582 = vst [vmem:[%s15225_s10 + $0x408] sm:$0xff] %v5581_v11  ;;  %v5661_v25 = vld [vmem:[%s9544_s6 + $0x348] sm:$0xff]  ;;  %v5663_v30 = vld [vmem:[%s9544_s6 + $0x350] sm:$0xff] }
 0x518   : > { %5584 = vst [vmem:[%s15225_s10 + $0x410] sm:$0xff] %v5583_v52  ;;  %5586 = vst [vmem:[%s15225_s10 + $0x418] sm:$0xff] %v5585_v36  ;;  %v5665_v37 = vld [vmem:[%s9544_s6 + $0x358] sm:$0xff]  ;;  %v5667_v54 = vld [vmem:[%s9544_s6 + $0x360] sm:$0xff] }
 0x519   : > { %5592 = vst [vmem:[%s15225_s10 + $0x450] sm:$0xff] %v5591_v2  ;;  %5594 = vst [vmem:[%s15225_s10 + $0x458] sm:$0xff] %v5593_v41  ;;  %v5669_v35 = vld [vmem:[%s9544_s6 + $0x368] sm:$0xff]  ;;  %v5671_v23 = vld [vmem:[%s9544_s6 + $0x370] sm:$0xff] }
 0x51a   : > { %5596 = vst [vmem:[%s15225_s10 + $0x480] sm:$0xff] %v5595_v49  ;;  %5598 = vst [vmem:[%s15225_s10 + $0x488] sm:$0xff] %v5597_v39  ;;  %v5673_v6 = vld [vmem:[%s9544_s6 + $0x378] sm:$0xff] }
 0x51b   : > { %5600 = vst [vmem:[%s15225_s10 + $0x490] sm:$0xff] %v5599_v27  ;;  %5602 = vst [vmem:[%s15225_s10 + $0x498] sm:$0xff] %v5601_v18 }
 0x51c   : > { %5604 = vst [vmem:[%s15225_s10 + $0x4c0] sm:$0xff] %v5603_v40  ;;  %5606 = vst [vmem:[%s15225_s10 + $0x4c8] sm:$0xff] %v5605_v21 }
 0x51d   : > { %5608 = vst [vmem:[%s15225_s10 + $0x4d0] sm:$0xff] %v5607_v63  ;;  %5610 = vst [vmem:[%s15225_s10 + $0x4d8] sm:$0xff] %v5609_v57 }
 0x51e   : > { %5612 = vst [vmem:[%s15225_s10 + $0x500] sm:$0xff] %v5611_v59  ;;  %5614 = vst [vmem:[%s15225_s10 + $0x508] sm:$0xff] %v5613_v48 }
 0x51f   : > { %5616 = vst [vmem:[%s15225_s10 + $0x510] sm:$0xff] %v5615_v7  ;;  %5618 = vst [vmem:[%s15225_s10 + $0x518] sm:$0xff] %v5617_v51 }
 0x520   : > { %5620 = vst [vmem:[%s15225_s10 + $0x540] sm:$0xff] %v5619_v3  ;;  %5622 = vst [vmem:[%s15225_s10 + $0x548] sm:$0xff] %v5621_v29 }
 0x521   : > { %5624 = vst [vmem:[%s15225_s10 + $0x550] sm:$0xff] %v5623_v34  ;;  %5626 = vst [vmem:[%s15225_s10 + $0x558] sm:$0xff] %v5625_v19 }
 0x522   : > { %5628 = vst [vmem:[%s15225_s10 + $0x580] sm:$0xff] %v5627_v28  ;;  %5630 = vst [vmem:[%s15225_s10 + $0x588] sm:$0xff] %v5629_v16 }
 0x523   : > { %5632 = vst [vmem:[%s15225_s10 + $0x590] sm:$0xff] %v5631_v42  ;;  %5634 = vst [vmem:[%s15225_s10 + $0x598] sm:$0xff] %v5633_v4 }
 0x524   : > { %5636 = vst [vmem:[%s15225_s10 + $0x5c0] sm:$0xff] %v5635_v12  ;;  %5638 = vst [vmem:[%s15225_s10 + $0x5c8] sm:$0xff] %v5637_v33 }
 0x525   : > { %5640 = vst [vmem:[%s15225_s10 + $0x5d0] sm:$0xff] %v5639_v50  ;;  %5642 = vst [vmem:[%s15225_s10 + $0x5d8] sm:$0xff] %v5641_v56 }
 0x526   : > { %5644 = vst [vmem:[%s15225_s10 + $0x600] sm:$0xff] %v5643_v45  ;;  %5646 = vst [vmem:[%s15225_s10 + $0x608] sm:$0xff] %v5645_v32 }
 0x527   : > { %5648 = vst [vmem:[%s15225_s10 + $0x610] sm:$0xff] %v5647_v10  ;;  %5650 = vst [vmem:[%s15225_s10 + $0x618] sm:$0xff] %v5649_v38 }
 0x528   : > { %5652 = vst [vmem:[%s15225_s10 + $0x640] sm:$0xff] %v5651_v22  ;;  %5654 = vst [vmem:[%s15225_s10 + $0x648] sm:$0xff] %v5653_v26 }
 0x529   : > { %5656 = vst [vmem:[%s15225_s10 + $0x650] sm:$0xff] %v5655_v47  ;;  %5658 = vst [vmem:[%s15225_s10 + $0x658] sm:$0xff] %v5657_v20 }
 0x52a   : > { %5660 = vst [vmem:[%s15225_s10 + $0x680] sm:$0xff] %v5659_v31  ;;  %5662 = vst [vmem:[%s15225_s10 + $0x688] sm:$0xff] %v5661_v25 }
 0x52b   : > { %5664 = vst [vmem:[%s15225_s10 + $0x690] sm:$0xff] %v5663_v30  ;;  %5666 = vst [vmem:[%s15225_s10 + $0x698] sm:$0xff] %v5665_v37 }
 0x52c   : > { %5668 = vst [vmem:[%s15225_s10 + $0x6c0] sm:$0xff] %v5667_v54  ;;  %5670 = vst [vmem:[%s15225_s10 + $0x6c8] sm:$0xff] %v5669_v35 }
 0x52d   : > { %5672 = vst [vmem:[%s15225_s10 + $0x6d0] sm:$0xff] %v5671_v23  ;;  %5674 = vst [vmem:[%s15225_s10 + $0x6d8] sm:$0xff] %v5673_v6 }
 0x52e PF: > { %p11_p11 = scmp.ge.s32.totalorder %s6130_s19, 4   ;;  %s18480_s15 = smov %s6080_s16 }
 0x52f   : > { %s18481_s16 = smov %s6140_s22  ;;  %s18482_s17 = smov %s6130_s19 }
 0x530   :  { %13 = sbr.rel (!%p11_p11) target bundleno = 2 (0x2), region = 156 }

</bundles_post_ra>
